<compile_context>
chip_gen: v7x
topology: tpu7x:2x2x1
jax: 0.10.0
libtpu: 0.0.40
codegen_flags: <defaults>
</compile_context>

<pallas_src>
import jax
import jax.numpy as jnp
from jax.experimental import pallas as pl
from jax.experimental.pallas import tpu as pltpu

C1 = 16      # conv1 out channels   (Conv2d(1, 16, (1, 64), padding=(0, 32)))
C2 = 32      # conv2 out channels   (Conv2d(16, 32, (n_ch, 1), groups=16))
KTAP = 64    # temporal kernel width
PAD = 32     # temporal zero padding per side
LANE = 128   # TPU lane width


def _round_up(x, m):
    return (x + m - 1) // m * m


def _choose_bt(B, n_ch):
    """Batch elements per grid step.

    Fill the MXU M dim (n_ch * BT >= 256 when the batch allows it) without padding the
    batch past round_up(B, 8); when the padded batch allows >= 2 grid steps, prefer that
    so v7x's second TensorCore gets work.  BT always divides the padded batch.
    """
    b8 = _round_up(max(B, 1), 8)
    bt = min(_round_up(max(8, 256 // max(n_ch, 1)), 8), b8)
    if b8 // bt < 2:                         # try to expose >= 2 parallel grid steps
        half = b8 // 2
        if half >= 8 and half % 8 == 0:
            bt = half
    while b8 % bt != 0:                      # keep b_pad == b8 (no extra pad rows)
        bt -= 8
    return max(bt, 8)


def surrogate_kernel(x_ref, w1t_ref, b1_ref, w2_ref, b2_ref, v_ref, b3_ref, o_ref):
    """SurrogateNet forward for one batch tile of BT elements.

    x_ref  : (n_ch*BT, t_pad)      bf16  zero-padded input rows [electrode, batch-in-tile]
    w1t_ref: (t_pad, C1*t1c)       bf16  Toeplitz conv1 weight (im2col folded into weight)
    b1_ref : (1, C1*t1c)           f32   conv1 bias tiled per (c1, t) column
    w2_ref : (2, n_ch, 1, C1*t1c)  f32   grouped conv2 weight per (parity j, electrode e)
    b2_ref : (2, 1, C1*t1c)        f32   conv2 bias per (j, c1, t)
    v_ref  : (2*C1*t1c, n_out)     f32   fused (time mask / t1) * Linear weight, lane-padded
    b3_ref : (1, n_out)            f32   lane-padded Linear bias
    o_ref  : (BT, n_out)           f32   lane-dense output block
    """
    rows = x_ref.shape[0]
    bt = o_ref.shape[0]
    n_ch = rows // bt
    ncols = b1_ref.shape[1]

    # ---- conv1 (64-tap temporal conv) + ReLU: ONE MXU matmul vs. the Toeplitz weight ----
    h1 = jnp.dot(x_ref[...], w1t_ref[...], preferred_element_type=jnp.float32)
    h1 = jnp.maximum(h1 + b1_ref[...], 0.0).reshape(n_ch, bt, ncols)

    # ---- conv2 (groups=16, kernel (n_ch,1)) + ReLU: VPU broadcast-FMA over electrodes ----
    w2 = w2_ref[...]
    b2 = b2_ref[...]
    h2_0 = jnp.maximum(jnp.sum(w2[0] * h1, axis=0) + b2[0], 0.0)   # (bt, ncols)
    h2_1 = jnp.maximum(jnp.sum(w2[1] * h1, axis=0) + b2[1], 0.0)   # (bt, ncols)
    h2 = jnp.concatenate([h2_0, h2_1], axis=-1)                    # (bt, 2*ncols)

    # ---- AdaptiveAvgPool((1,1)) + Flatten + Linear: ONE lane-dense MXU matmul ----
    o_ref[...] = jnp.dot(h2, v_ref[...], preferred_element_type=jnp.float32) + b3_ref[...]


def init_params(key, n_ch, n_cls):
    """Deterministic synthetic parameters (shapes follow SurrogateNet.__init__)."""
    ks = jax.random.split(key, 6)
    w1 = jax.random.normal(ks[0], (C1, KTAP), jnp.float32) * 0.1   # (16,1,1,64) squeezed
    b1 = jax.random.normal(ks[1], (C1,), jnp.float32) * 0.1
    w2 = jax.random.normal(ks[2], (C2, n_ch), jnp.float32) * 0.1   # (32,1,n_ch,1) squeezed
    b2 = jax.random.normal(ks[3], (C2,), jnp.float32) * 0.1
    w3 = jax.random.normal(ks[4], (n_cls, C2), jnp.float32) * 0.1  # Linear(32, n_cls)
    b3 = jax.random.normal(ks[5], (n_cls,), jnp.float32) * 0.1
    return dict(w1=w1, b1=b1, w2=w2, b2=b2, w3=w3, b3=b3)


def _run_pallas(xr, w1t, b1row, w2all, b2all, vall, b3row, *, nb, BT, n_ch, t_pad,
                ncols, n_out, b_pad, flops, bytes_accessed, vmem_limit,
                single_buffer_weights):
    if single_buffer_weights:
        # Grid-invariant weights: one resident buffer (saves VMEM; critical as T grows on
        # v7x's 64 MiB VMEM -- w1t is O(T^2) bytes).
        wkw = dict(pipeline_mode=pl.Buffered(1))
    else:
        wkw = {}
    return pl.pallas_call(
        surrogate_kernel,
        out_shape=jax.ShapeDtypeStruct((b_pad, n_out), jnp.float32),
        grid_spec=pltpu.PrefetchScalarGridSpec(
            num_scalar_prefetch=0,
            grid=(nb,),
            in_specs=[
                pl.BlockSpec((n_ch * BT, t_pad), lambda i: (i, 0)),
                pl.BlockSpec((t_pad, ncols), lambda i: (0, 0), **wkw),
                pl.BlockSpec((1, ncols), lambda i: (0, 0), **wkw),
                pl.BlockSpec((2, n_ch, 1, ncols), lambda i: (0, 0, 0, 0), **wkw),
                pl.BlockSpec((2, 1, ncols), lambda i: (0, 0, 0), **wkw),
                pl.BlockSpec((2 * ncols, n_out), lambda i: (0, 0), **wkw),
                pl.BlockSpec((1, n_out), lambda i: (0, 0), **wkw),
            ],
            out_specs=pl.BlockSpec((BT, n_out), lambda i: (i, 0)),
        ),
        compiler_params=pltpu.CompilerParams(
            dimension_semantics=("parallel",),
            vmem_limit_bytes=int(vmem_limit),
        ),
        cost_estimate=pl.CostEstimate(
            flops=int(flops), transcendentals=0, bytes_accessed=int(bytes_accessed)),
    )(xr, w1t, b1row, w2all, b2all, vall, b3row)


def surrogate_forward(x, params):
    """x: (B, 1, n_ch, T) -> (B, n_cls) float32."""
    B, cin, n_ch, T = x.shape
    assert cin == 1
    t_pad = T + 2 * PAD
    t1 = T + 2 * PAD - KTAP + 1                      # valid conv1 output width (= T + 1)
    t1c = _round_up(t1, 8)                           # lane-friendly padded width
    ncols = C1 * t1c                                 # multiple of 128
    BT = _choose_bt(B, n_ch)
    b_pad = _round_up(B, 8)                          # BT divides b_pad by construction
    nb = b_pad // BT

    w1, b1 = params["w1"], params["b1"]
    w2, b2 = params["w2"], params["b2"]
    w3, b3 = params["w3"], params["b3"]
    n_cls = w3.shape[0]
    n_out = _round_up(n_cls, LANE)                   # lane-dense output width

    # Input: zero-pad time, pad batch, regroup rows as [batch tile, electrode, batch-in-tile]
    # so each grid step's block is already (n_ch*BT, t_pad) -- no in-kernel reshape.
    xp = jnp.pad(x[:, 0].astype(jnp.float32),
                 ((0, b_pad - B), (0, 0), (PAD, PAD)))            # (b_pad, n_ch, t_pad)
    xr = (xp.reshape(nb, BT, n_ch, t_pad)
            .transpose(0, 2, 1, 3)
            .reshape(nb * n_ch * BT, t_pad)
            .astype(jnp.bfloat16))

    # conv1 as a Toeplitz matmul weight: W1T[s, c1*t1c + t] = w1[c1, s - t] (0 <= s-t < 64).
    s_idx = jnp.arange(t_pad)[:, None]
    t_idx = jnp.arange(t1c)[None, :]
    k_idx = s_idx - t_idx                                         # (t_pad, t1c)
    valid = (k_idx >= 0) & (k_idx < KTAP)
    taps = w1[:, jnp.clip(k_idx, 0, KTAP - 1)]                    # (C1, t_pad, t1c)
    w1t = jnp.where(valid[None], taps, 0.0)
    w1t = jnp.transpose(w1t, (1, 0, 2)).reshape(t_pad, ncols).astype(jnp.bfloat16)

    b1row = jnp.repeat(b1, t1c)[None, :]                          # (1, ncols)

    # Grouped conv2: output channel oc = 2*c1 + j only sees conv1 channel c1 = oc // 2.
    w2_jec = jnp.transpose(w2.reshape(C1, 2, n_ch), (1, 2, 0))    # (2, n_ch, C1)
    w2all = jnp.repeat(w2_jec, t1c, axis=-1)[:, :, None, :]       # (2, n_ch, 1, ncols)
    b2all = jnp.repeat(b2.reshape(C1, 2).T, t1c, axis=-1)[:, None, :]   # (2, 1, ncols)

    # AdaptiveAvgPool((1,1)) + Flatten + Linear folded into one (2*ncols, n_out) matrix:
    # V[j*ncols + c1*t1c + t, m] = w3[m, 2*c1 + j] / t1 for t < t1 and m < n_cls, else 0.
    tmask = (jnp.arange(t1c) < t1).astype(jnp.float32) / float(t1)
    w3p = jnp.pad(w3, ((0, n_out - n_cls), (0, 0)))                      # (n_out, C2)
    w3_jcm = jnp.transpose(w3p.T.reshape(C1, 2, n_out), (1, 0, 2))       # (2, C1, n_out)
    vall = (w3_jcm[:, :, None, :] * tmask[None, None, :, None]).reshape(2 * ncols, n_out)
    b3row = jnp.pad(b3, (0, n_out - n_cls))[None, :]                     # (1, n_out)

    flops = (2 * b_pad * n_ch * t_pad * ncols        # conv1 Toeplitz matmul
             + 4 * b_pad * n_ch * ncols              # grouped conv2 (VPU mul+add, 2 parities)
             + 2 * b_pad * (2 * ncols) * n_out)      # fused pool + linear matmul
    bytes_accessed = (xr.size * 2 + w1t.size * 2
                      + (b1row.size + w2all.size + b2all.size + vall.size + b3row.size) * 4
                      + b_pad * n_out * 4)

    vmem_est = (2 * n_ch * BT * t_pad * 2            # streamed x block (double-buffered bf16)
                + w1t.size * 2
                + (b1row.size + w2all.size + b2all.size + vall.size + b3row.size) * 4
                + 2 * BT * n_out * 4                  # output block (double-buffered)
                + 4 * n_ch * BT * ncols * 4)          # h1/h2 intermediates headroom
    vmem_limit = min(128 * 1024 * 1024, max(32 * 1024 * 1024, 2 * vmem_est))

    kwargs = dict(nb=nb, BT=BT, n_ch=n_ch, t_pad=t_pad, ncols=ncols, n_out=n_out,
                  b_pad=b_pad, flops=flops, bytes_accessed=bytes_accessed,
                  vmem_limit=vmem_limit)
    try:
        out = jax.block_until_ready(
            _run_pallas(xr, w1t, b1row, w2all, b2all, vall, b3row,
                        single_buffer_weights=True, **kwargs))
    except Exception:
        # Older jax without pipeline_mode / Buffered(1): fall back to default buffering.
        out = _run_pallas(xr, w1t, b1row, w2all, b2all, vall, b3row,
                          single_buffer_weights=False, **kwargs)
    return out[:B, :n_cls]


def reference_forward(x, params):
    """Pure-jnp f32 reference of the PyTorch forward (for numeric checking)."""
    B, _, n_ch, T = x.shape
    xp = jnp.pad(x[:, 0].astype(jnp.float32), ((0, 0), (0, 0), (PAD, PAD)))
    t1 = T + 2 * PAD - KTAP + 1
    w1, b1 = params["w1"], params["b1"]
    w2, b2 = params["w2"], params["b2"]
    w3, b3 = params["w3"], params["b3"]
    h1 = jnp.zeros((B, C1, n_ch, t1), jnp.float32)
    for k in range(KTAP):
        h1 = h1 + xp[:, None, :, k:k + t1] * w1[None, :, None, k:k + 1]
    h1 = jax.nn.relu(h1 + b1.reshape(1, C1, 1, 1))
    h1g = h1[:, jnp.arange(C2) // (C2 // C1)]                            # (B, C2, n_ch, t1)
    h2 = jax.nn.relu(jnp.einsum("bcet,ce->bct", h1g, w2) + b2.reshape(1, C2, 1))
    pooled = h2.mean(axis=-1)                                            # (B, C2)
    return pooled @ w3.T + b3[None, :]


if __name__ == "__main__":
    key = jax.random.PRNGKey(0)
    kx, kp = jax.random.split(key)
    B, n_ch, T, n_cls = 2, 4, 128, 4            # small shapes consistent with the module
    x = jax.random.normal(kx, (B, 1, n_ch, T), jnp.float32)
    params = init_params(kp, n_ch, n_cls)

    out = jax.block_until_ready(surrogate_forward(x, params))
    assert out.shape == (B, n_cls), out.shape

    ref = jax.block_until_ready(reference_forward(x, params))
    if not jnp.allclose(out, ref, rtol=2e-2, atol=2e-2):
        raise AssertionError(
            f"kernel/reference mismatch, max abs diff = {jnp.max(jnp.abs(out - ref))}")
    print("KERNEL_OK")
</pallas_src>

<mosaic_0001>
module attributes {stable_mosaic.version = 11 : i64} {
  func.func @surrogate_kernel(%arg0: i32, %arg1: memref<32x192xbf16, #tpu.memory_space<vmem>>, %arg2: memref<192x2176xbf16, #tpu.memory_space<vmem>>, %arg3: memref<1x2176xf32, #tpu.memory_space<vmem>>, %arg4: memref<2x4x1x2176xf32, #tpu.memory_space<vmem>>, %arg5: memref<2x1x2176xf32, #tpu.memory_space<vmem>>, %arg6: memref<4352x128xf32, #tpu.memory_space<vmem>>, %arg7: memref<1x128xf32, #tpu.memory_space<vmem>>, %arg8: memref<8x128xf32, #tpu.memory_space<vmem>>) attributes {dimension_semantics = [#tpu.dimension_semantics<parallel>], iteration_bounds = array<i64: 1>, scalar_prefetch = 0 : i64, scratch_operands = 0 : i64, tpu.core_type = #tpu.core_type<tc>, window_params = [{transform_indices = @transform_0, window_bounds = array<i64: 32, 192>}, {pipeline_mode = #tpu.pipeline_mode<synchronous>, transform_indices = @transform_1, window_bounds = array<i64: 192, 2176>}, {pipeline_mode = #tpu.pipeline_mode<synchronous>, transform_indices = @transform_2, window_bounds = array<i64: 1, 2176>}, {pipeline_mode = #tpu.pipeline_mode<synchronous>, transform_indices = @transform_3, window_bounds = array<i64: 2, 4, 1, 2176>}, {pipeline_mode = #tpu.pipeline_mode<synchronous>, transform_indices = @transform_4, window_bounds = array<i64: 2, 1, 2176>}, {pipeline_mode = #tpu.pipeline_mode<synchronous>, transform_indices = @transform_5, window_bounds = array<i64: 4352, 128>}, {pipeline_mode = #tpu.pipeline_mode<synchronous>, transform_indices = @transform_6, window_bounds = array<i64: 1, 128>}, {transform_indices = @transform_7, window_bounds = array<i64: 8, 128>}]} {
    %c0 = arith.constant 0 : index
    %c0_0 = arith.constant 0 : index
    %0 = vector.load %arg1[%c0, %c0_0] : memref<32x192xbf16, #tpu.memory_space<vmem>>, vector<32x192xbf16>
    %c0_1 = arith.constant 0 : index
    %c0_2 = arith.constant 0 : index
    %1 = vector.load %arg2[%c0_1, %c0_2] : memref<192x2176xbf16, #tpu.memory_space<vmem>>, vector<192x2176xbf16>
    %cst = arith.constant dense<0.000000e+00> : vector<32x2176xf32>
    %2 = tpu.matmul %0, %1, %cst {dimension_numbers = #tpu.dot_dimension_numbers<[1], [0], [0], [1], [0, 0, 1, 1], [], []>} : vector<32x192xbf16>, vector<192x2176xbf16>, vector<32x2176xf32> -> vector<32x2176xf32>
    %c0_3 = arith.constant 0 : index
    %c0_4 = arith.constant 0 : index
    %3 = vector.load %arg3[%c0_3, %c0_4] : memref<1x2176xf32, #tpu.memory_space<vmem>>, vector<1x2176xf32>
    %4 = vector.broadcast %3 : vector<1x2176xf32> to vector<32x2176xf32>
    %5 = arith.addf %2, %4 : vector<32x2176xf32>
    %cst_5 = arith.constant 0.000000e+00 : f32
    %6 = vector.broadcast %cst_5 : f32 to vector<32x2176xf32>
    %7 = arith.maximumf %5, %6 : vector<32x2176xf32>
    %8 = vector.shape_cast %7 : vector<32x2176xf32> to vector<4x8x2176xf32>
    %c0_6 = arith.constant 0 : index
    %c0_7 = arith.constant 0 : index
    %c0_8 = arith.constant 0 : index
    %c0_9 = arith.constant 0 : index
    %9 = vector.load %arg4[%c0_6, %c0_7, %c0_8, %c0_9] : memref<2x4x1x2176xf32, #tpu.memory_space<vmem>>, vector<2x4x1x2176xf32>
    %c0_10 = arith.constant 0 : index
    %c0_11 = arith.constant 0 : index
    %c0_12 = arith.constant 0 : index
    %10 = vector.load %arg5[%c0_10, %c0_11, %c0_12] : memref<2x1x2176xf32, #tpu.memory_space<vmem>>, vector<2x1x2176xf32>
    %11 = vector.extract_strided_slice %9 {offsets = [0, 0, 0, 0], sizes = [1, 4, 1, 2176], strides = [1, 1, 1, 1]} : vector<2x4x1x2176xf32> to vector<1x4x1x2176xf32>
    %12 = vector.shape_cast %11 : vector<1x4x1x2176xf32> to vector<4x1x2176xf32>
    %13 = vector.broadcast %12 : vector<4x1x2176xf32> to vector<4x8x2176xf32>
    %14 = arith.mulf %13, %8 : vector<4x8x2176xf32>
    %cst_13 = arith.constant dense<0.000000e+00> : vector<8x2176xf32>
    %15 = vector.multi_reduction <add>, %14, %cst_13 [0] : vector<4x8x2176xf32> to vector<8x2176xf32>
    %16 = vector.extract_strided_slice %10 {offsets = [0, 0, 0], sizes = [1, 1, 2176], strides = [1, 1, 1]} : vector<2x1x2176xf32> to vector<1x1x2176xf32>
    %17 = vector.shape_cast %16 : vector<1x1x2176xf32> to vector<1x2176xf32>
    %18 = vector.broadcast %17 : vector<1x2176xf32> to vector<8x2176xf32>
    %19 = arith.addf %15, %18 : vector<8x2176xf32>
    %cst_14 = arith.constant 0.000000e+00 : f32
    %20 = vector.broadcast %cst_14 : f32 to vector<8x2176xf32>
    %21 = arith.maximumf %19, %20 : vector<8x2176xf32>
    %22 = vector.extract_strided_slice %9 {offsets = [1, 0, 0, 0], sizes = [1, 4, 1, 2176], strides = [1, 1, 1, 1]} : vector<2x4x1x2176xf32> to vector<1x4x1x2176xf32>
    %23 = vector.shape_cast %22 : vector<1x4x1x2176xf32> to vector<4x1x2176xf32>
    %24 = vector.broadcast %23 : vector<4x1x2176xf32> to vector<4x8x2176xf32>
    %25 = arith.mulf %24, %8 : vector<4x8x2176xf32>
    %cst_15 = arith.constant dense<0.000000e+00> : vector<8x2176xf32>
    %26 = vector.multi_reduction <add>, %25, %cst_15 [0] : vector<4x8x2176xf32> to vector<8x2176xf32>
    %27 = vector.extract_strided_slice %10 {offsets = [1, 0, 0], sizes = [1, 1, 2176], strides = [1, 1, 1]} : vector<2x1x2176xf32> to vector<1x1x2176xf32>
    %28 = vector.shape_cast %27 : vector<1x1x2176xf32> to vector<1x2176xf32>
    %29 = vector.broadcast %28 : vector<1x2176xf32> to vector<8x2176xf32>
    %30 = arith.addf %26, %29 : vector<8x2176xf32>
    %cst_16 = arith.constant 0.000000e+00 : f32
    %31 = vector.broadcast %cst_16 : f32 to vector<8x2176xf32>
    %32 = arith.maximumf %30, %31 : vector<8x2176xf32>
    %33 = tpu.concatenate %21, %32 in 1 : vector<8x2176xf32>, vector<8x2176xf32> -> vector<8x4352xf32>
    %c0_17 = arith.constant 0 : index
    %c0_18 = arith.constant 0 : index
    %34 = vector.load %arg6[%c0_17, %c0_18] : memref<4352x128xf32, #tpu.memory_space<vmem>>, vector<4352x128xf32>
    %cst_19 = arith.constant dense<0.000000e+00> : vector<8x128xf32>
    %35 = tpu.matmul %33, %34, %cst_19 {dimension_numbers = #tpu.dot_dimension_numbers<[1], [0], [0], [1], [0, 0, 1, 1], [], []>} : vector<8x4352xf32>, vector<4352x128xf32>, vector<8x128xf32> -> vector<8x128xf32>
    %c0_20 = arith.constant 0 : index
    %c0_21 = arith.constant 0 : index
    %36 = vector.load %arg7[%c0_20, %c0_21] : memref<1x128xf32, #tpu.memory_space<vmem>>, vector<1x128xf32>
    %37 = vector.broadcast %36 : vector<1x128xf32> to vector<8x128xf32>
    %38 = arith.addf %35, %37 : vector<8x128xf32>
    %c0_22 = arith.constant 0 : index
    %c0_23 = arith.constant 0 : index
    %39 = vector.load %arg8[%c0_22, %c0_23] : memref<8x128xf32, #tpu.memory_space<vmem>>, vector<8x128xf32>
    tpu.vector_store %arg8[%c0_22, %c0_23], %38 {strides = array<i32>} : memref<8x128xf32, #tpu.memory_space<vmem>>, vector<8x128xf32>,
    return
  }
  func.func @transform_0(%arg0: i32) -> (i32, i32) {
    %c0_i32 = arith.constant 0 : i32
    %c0_i32_0 = arith.constant 0 : i32
    return %arg0, %c0_i32 : i32, i32
  }
  func.func @transform_1(%arg0: i32) -> (i32, i32) {
    %c0_i32 = arith.constant 0 : i32
    %c0_i32_0 = arith.constant 0 : i32
    %c0_i32_1 = arith.constant 0 : i32
    return %c0_i32, %c0_i32_0 : i32, i32
  }
  func.func @transform_2(%arg0: i32) -> (i32, i32) {
    %c0_i32 = arith.constant 0 : i32
    %c0_i32_0 = arith.constant 0 : i32
    %c0_i32_1 = arith.constant 0 : i32
    return %c0_i32, %c0_i32_0 : i32, i32
  }
  func.func @transform_3(%arg0: i32) -> (i32, i32, i32, i32) {
    %c0_i32 = arith.constant 0 : i32
    %c0_i32_0 = arith.constant 0 : i32
    %c0_i32_1 = arith.constant 0 : i32
    %c0_i32_2 = arith.constant 0 : i32
    %c0_i32_3 = arith.constant 0 : i32
    return %c0_i32, %c0_i32_0, %c0_i32_1, %c0_i32_2 : i32, i32, i32, i32
  }
  func.func @transform_4(%arg0: i32) -> (i32, i32, i32) {
    %c0_i32 = arith.constant 0 : i32
    %c0_i32_0 = arith.constant 0 : i32
    %c0_i32_1 = arith.constant 0 : i32
    %c0_i32_2 = arith.constant 0 : i32
    return %c0_i32, %c0_i32_0, %c0_i32_1 : i32, i32, i32
  }
  func.func @transform_5(%arg0: i32) -> (i32, i32) {
    %c0_i32 = arith.constant 0 : i32
    %c0_i32_0 = arith.constant 0 : i32
    %c0_i32_1 = arith.constant 0 : i32
    return %c0_i32, %c0_i32_0 : i32, i32
  }
  func.func @transform_6(%arg0: i32) -> (i32, i32) {
    %c0_i32 = arith.constant 0 : i32
    %c0_i32_0 = arith.constant 0 : i32
    %c0_i32_1 = arith.constant 0 : i32
    return %c0_i32, %c0_i32_0 : i32, i32
  }
  func.func @transform_7(%arg0: i32) -> (i32, i32) {
    %c0_i32 = arith.constant 0 : i32
    %c0_i32_0 = arith.constant 0 : i32
    return %arg0, %c0_i32 : i32, i32
  }
}

module attributes {stable_mosaic.version = 11 : i64} {
  func.func @surrogate_kernel(%arg0: i32, %arg1: memref<32x192xbf16, #tpu.memory_space<vmem>>, %arg2: memref<192x2176xbf16, #tpu.memory_space<vmem>>, %arg3: memref<1x2176xf32, #tpu.memory_space<vmem>>, %arg4: memref<2x4x1x2176xf32, #tpu.memory_space<vmem>>, %arg5: memref<2x1x2176xf32, #tpu.memory_space<vmem>>, %arg6: memref<4352x128xf32, #tpu.memory_space<vmem>>, %arg7: memref<1x128xf32, #tpu.memory_space<vmem>>, %arg8: memref<8x128xf32, #tpu.memory_space<vmem>>) attributes {dimension_semantics = [#tpu.dimension_semantics<parallel>], iteration_bounds = array<i64: 1>, scalar_prefetch = 0 : i64, scratch_operands = 0 : i64, tpu.core_type = #tpu.core_type<tc>, window_params = [{transform_indices = @transform_0, window_bounds = array<i64: 32, 192>}, {pipeline_mode = #tpu.pipeline_mode<synchronous>, transform_indices = @transform_1, window_bounds = array<i64: 192, 2176>}, {pipeline_mode = #tpu.pipeline_mode<synchronous>, transform_indices = @transform_2, window_bounds = array<i64: 1, 2176>}, {pipeline_mode = #tpu.pipeline_mode<synchronous>, transform_indices = @transform_3, window_bounds = array<i64: 2, 4, 1, 2176>}, {pipeline_mode = #tpu.pipeline_mode<synchronous>, transform_indices = @transform_4, window_bounds = array<i64: 2, 1, 2176>}, {pipeline_mode = #tpu.pipeline_mode<synchronous>, transform_indices = @transform_5, window_bounds = array<i64: 4352, 128>}, {pipeline_mode = #tpu.pipeline_mode<synchronous>, transform_indices = @transform_6, window_bounds = array<i64: 1, 128>}, {transform_indices = @transform_7, window_bounds = array<i64: 8, 128>}]} {
    %c0 = arith.constant 0 : index
    %c0_0 = arith.constant 0 : index
    %0 = vector.load %arg1[%c0, %c0_0] : memref<32x192xbf16, #tpu.memory_space<vmem>>, vector<32x192xbf16>
    %c0_1 = arith.constant 0 : index
    %c0_2 = arith.constant 0 : index
    %1 = vector.load %arg2[%c0_1, %c0_2] : memref<192x2176xbf16, #tpu.memory_space<vmem>>, vector<192x2176xbf16>
    %cst = arith.constant dense<0.000000e+00> : vector<32x2176xf32>
    %2 = tpu.matmul %0, %1, %cst {dimension_numbers = #tpu.dot_dimension_numbers<[1], [0], [0], [1], [0, 0, 1, 1], [], []>} : vector<32x192xbf16>, vector<192x2176xbf16>, vector<32x2176xf32> -> vector<32x2176xf32>
    %c0_3 = arith.constant 0 : index
    %c0_4 = arith.constant 0 : index
    %3 = vector.load %arg3[%c0_3, %c0_4] : memref<1x2176xf32, #tpu.memory_space<vmem>>, vector<1x2176xf32>
    %4 = vector.broadcast %3 : vector<1x2176xf32> to vector<32x2176xf32>
    %5 = arith.addf %2, %4 : vector<32x2176xf32>
    %cst_5 = arith.constant 0.000000e+00 : f32
    %6 = vector.broadcast %cst_5 : f32 to vector<32x2176xf32>
    %7 = arith.maximumf %5, %6 : vector<32x2176xf32>
    %8 = vector.shape_cast %7 : vector<32x2176xf32> to vector<4x8x2176xf32>
    %c0_6 = arith.constant 0 : index
    %c0_7 = arith.constant 0 : index
    %c0_8 = arith.constant 0 : index
    %c0_9 = arith.constant 0 : index
    %9 = vector.load %arg4[%c0_6, %c0_7, %c0_8, %c0_9] : memref<2x4x1x2176xf32, #tpu.memory_space<vmem>>, vector<2x4x1x2176xf32>
    %c0_10 = arith.constant 0 : index
    %c0_11 = arith.constant 0 : index
    %c0_12 = arith.constant 0 : index
    %10 = vector.load %arg5[%c0_10, %c0_11, %c0_12] : memref<2x1x2176xf32, #tpu.memory_space<vmem>>, vector<2x1x2176xf32>
    %11 = vector.extract_strided_slice %9 {offsets = [0, 0, 0, 0], sizes = [1, 4, 1, 2176], strides = [1, 1, 1, 1]} : vector<2x4x1x2176xf32> to vector<1x4x1x2176xf32>
    %12 = vector.shape_cast %11 : vector<1x4x1x2176xf32> to vector<4x1x2176xf32>
    %13 = vector.broadcast %12 : vector<4x1x2176xf32> to vector<4x8x2176xf32>
    %14 = arith.mulf %13, %8 : vector<4x8x2176xf32>
    %cst_13 = arith.constant dense<0.000000e+00> : vector<8x2176xf32>
    %15 = vector.multi_reduction <add>, %14, %cst_13 [0] : vector<4x8x2176xf32> to vector<8x2176xf32>
    %16 = vector.extract_strided_slice %10 {offsets = [0, 0, 0], sizes = [1, 1, 2176], strides = [1, 1, 1]} : vector<2x1x2176xf32> to vector<1x1x2176xf32>
    %17 = vector.shape_cast %16 : vector<1x1x2176xf32> to vector<1x2176xf32>
    %18 = vector.broadcast %17 : vector<1x2176xf32> to vector<8x2176xf32>
    %19 = arith.addf %15, %18 : vector<8x2176xf32>
    %cst_14 = arith.constant 0.000000e+00 : f32
    %20 = vector.broadcast %cst_14 : f32 to vector<8x2176xf32>
    %21 = arith.maximumf %19, %20 : vector<8x2176xf32>
    %22 = vector.extract_strided_slice %9 {offsets = [1, 0, 0, 0], sizes = [1, 4, 1, 2176], strides = [1, 1, 1, 1]} : vector<2x4x1x2176xf32> to vector<1x4x1x2176xf32>
    %23 = vector.shape_cast %22 : vector<1x4x1x2176xf32> to vector<4x1x2176xf32>
    %24 = vector.broadcast %23 : vector<4x1x2176xf32> to vector<4x8x2176xf32>
    %25 = arith.mulf %24, %8 : vector<4x8x2176xf32>
    %cst_15 = arith.constant dense<0.000000e+00> : vector<8x2176xf32>
    %26 = vector.multi_reduction <add>, %25, %cst_15 [0] : vector<4x8x2176xf32> to vector<8x2176xf32>
    %27 = vector.extract_strided_slice %10 {offsets = [1, 0, 0], sizes = [1, 1, 2176], strides = [1, 1, 1]} : vector<2x1x2176xf32> to vector<1x1x2176xf32>
    %28 = vector.shape_cast %27 : vector<1x1x2176xf32> to vector<1x2176xf32>
    %29 = vector.broadcast %28 : vector<1x2176xf32> to vector<8x2176xf32>
    %30 = arith.addf %26, %29 : vector<8x2176xf32>
    %cst_16 = arith.constant 0.000000e+00 : f32
    %31 = vector.broadcast %cst_16 : f32 to vector<8x2176xf32>
    %32 = arith.maximumf %30, %31 : vector<8x2176xf32>
    %33 = tpu.concatenate %21, %32 in 1 : vector<8x2176xf32>, vector<8x2176xf32> -> vector<8x4352xf32>
    %c0_17 = arith.constant 0 : index
    %c0_18 = arith.constant 0 : index
    %34 = vector.load %arg6[%c0_17, %c0_18] : memref<4352x128xf32, #tpu.memory_space<vmem>>, vector<4352x128xf32>
    %cst_19 = arith.constant dense<0.000000e+00> : vector<8x128xf32>
    %35 = tpu.matmul %33, %34, %cst_19 {dimension_numbers = #tpu.dot_dimension_numbers<[1], [0], [0], [1], [0, 0, 1, 1], [], []>} : vector<8x4352xf32>, vector<4352x128xf32>, vector<8x128xf32> -> vector<8x128xf32>
    %c0_20 = arith.constant 0 : index
    %c0_21 = arith.constant 0 : index
    %36 = vector.load %arg7[%c0_20, %c0_21] : memref<1x128xf32, #tpu.memory_space<vmem>>, vector<1x128xf32>
    %37 = vector.broadcast %36 : vector<1x128xf32> to vector<8x128xf32>
    %38 = arith.addf %35, %37 : vector<8x128xf32>
    %c0_22 = arith.constant 0 : index
    %c0_23 = arith.constant 0 : index
    %39 = vector.load %arg8[%c0_22, %c0_23] : memref<8x128xf32, #tpu.memory_space<vmem>>, vector<8x128xf32>
    tpu.vector_store %arg8[%c0_22, %c0_23], %38 {strides = array<i32>} : memref<8x128xf32, #tpu.memory_space<vmem>>, vector<8x128xf32>,
    return
  }
  func.func @transform_0(%arg0: i32) -> (i32, i32) {
    %c0_i32 = arith.constant 0 : i32
    %c0_i32_0 = arith.constant 0 : i32
    return %arg0, %c0_i32 : i32, i32
  }
  func.func @transform_1(%arg0: i32) -> (i32, i32) {
    %c0_i32 = arith.constant 0 : i32
    %c0_i32_0 = arith.constant 0 : i32
    %c0_i32_1 = arith.constant 0 : i32
    return %c0_i32, %c0_i32_0 : i32, i32
  }
  func.func @transform_2(%arg0: i32) -> (i32, i32) {
    %c0_i32 = arith.constant 0 : i32
    %c0_i32_0 = arith.constant 0 : i32
    %c0_i32_1 = arith.constant 0 : i32
    return %c0_i32, %c0_i32_0 : i32, i32
  }
  func.func @transform_3(%arg0: i32) -> (i32, i32, i32, i32) {
    %c0_i32 = arith.constant 0 : i32
    %c0_i32_0 = arith.constant 0 : i32
    %c0_i32_1 = arith.constant 0 : i32
    %c0_i32_2 = arith.constant 0 : i32
    %c0_i32_3 = arith.constant 0 : i32
    return %c0_i32, %c0_i32_0, %c0_i32_1, %c0_i32_2 : i32, i32, i32, i32
  }
  func.func @transform_4(%arg0: i32) -> (i32, i32, i32) {
    %c0_i32 = arith.constant 0 : i32
    %c0_i32_0 = arith.constant 0 : i32
    %c0_i32_1 = arith.constant 0 : i32
    %c0_i32_2 = arith.constant 0 : i32
    return %c0_i32, %c0_i32_0, %c0_i32_1 : i32, i32, i32
  }
  func.func @transform_5(%arg0: i32) -> (i32, i32) {
    %c0_i32 = arith.constant 0 : i32
    %c0_i32_0 = arith.constant 0 : i32
    %c0_i32_1 = arith.constant 0 : i32
    return %c0_i32, %c0_i32_0 : i32, i32
  }
  func.func @transform_6(%arg0: i32) -> (i32, i32) {
    %c0_i32 = arith.constant 0 : i32
    %c0_i32_0 = arith.constant 0 : i32
    %c0_i32_1 = arith.constant 0 : i32
    return %c0_i32, %c0_i32_0 : i32, i32
  }
  func.func @transform_7(%arg0: i32) -> (i32, i32) {
    %c0_i32 = arith.constant 0 : i32
    %c0_i32_0 = arith.constant 0 : i32
    return %arg0, %c0_i32 : i32, i32
  }
}

</mosaic_0001>

<bundles_post_ra>
// kernel: tpu_custom_call.1
= control target key start
LH: loop header
LB: loop body
LE: loop exit
PB: predicated region body
PF: predicated region fallthrough
CT: control target
= control target key end

     0   :  { %12 = vsyncpa [#allocation3], 0  ;;  %s8563_s0 = inlined_call_operand.hbm [shape: bf16[32,192], index: 0, kind: input, shape index: {}]   ;;  %s8564_s1 = inlined_call_operand.hbm [shape: bf16[192,2176], index: 1, kind: input, shape index: {}]   ;;  %s8565_s2 = inlined_call_operand.hbm [shape: f32[1,2176], index: 2, kind: input, shape index: {}]   ;;  %s8566_s3 = inlined_call_operand.hbm [shape: f32[2,4,1,2176], index: 3, kind: input, shape index: {}]   ;;  %s8567_s4 = inlined_call_operand.hbm [shape: f32[2,1,2176], index: 4, kind: input, shape index: {}]   ;;  %s8568_s5 = inlined_call_operand.hbm [shape: f32[4352,128], index: 5, kind: input, shape index: {}]   ;;  %s8569_s6 = inlined_call_operand.hbm [shape: f32[1,128], index: 6, kind: input, shape index: {}]   ;;  %s8570_s7 = inlined_call_operand.hbm [shape: f32[8,128], index: 7, kind: output, shape index: {}]  }
   0x1   :  { %13 = vsyncpa [#allocation6], 0 }
   0x2   :  { %14 = vsyncpa [#allocation9], 0 }
   0x3   :  { %15 = vsyncpa [#allocation12], 0 }
   0x4   :  { %16 = vsyncpa [#allocation4], 0  ;;  %s6893_s24 = smov [#allocation5]   ;;  %s6707_s28 = scalar_lea.hbm %s8564_s1, 26112 }
   0x5   :  { %s34_s25 = sshll.u32 %s6893_s24, 4  ;;  %p6708_p0 = scmp.ne.s32.totalorder %s8564_s1, %s6707_s28  ;;  %s35_s25 = int_to_ptr.vmem [resolvable:$true] %s34_s25 }
   0x6   :  { %p6711_p1 = scmp.lt.u32.totalorder %s6707_s28, %s8564_s1 }
   0x8   :  { %p6713_p2 = pnand %p6711_p1, %p6708_p0 }
   0xa   :  { %6716 = shalt.err (!%p6713_p2)
}
   0xb   :  { %s6717_s10 = scalar_lea.vmem %s35_s25, 26112  ;;  %p6722_p4 = scmp.lt.s32.totalorder %s35_s25, %s35_s25 }
   0xc   :  { %p6718_p3 = scmp.ne.s32.totalorder %s35_s25, %s6717_s10  ;;  %p6723_p5 = scmp.lt.s32.totalorder %s6717_s10, %s6717_s10 }
   0xe   :  { %p6724_p6 = por %p6723_p5, %p6722_p4 }
  0x10   :  { %p6725_p7 = pnand %p6724_p6, %p6718_p3 }
  0x12   :  { %6728 = shalt.err (!%p6725_p7)
}
  0x13   :  { %s6894_s11 = smov 1088   ;;  %s6895_s12 = smov 68  }
  0x14   :  { %40 = dma.hbm_to_vmem [thread:$0]  %s8564_s1, 26112, %s35_s25, [#allocation6], %s6894_s11, %s6894_s11, %s6895_s12  }
  0x15   :  { %s6896_s15 = smov [#allocation8]   ;;  %s6729_s19 = scalar_lea.hbm %s8566_s3, 2176 }
  0x16   :  { %s56_s16 = sshll.u32 %s6896_s15, 4  ;;  %p6730_p8 = scmp.ne.s32.totalorder %s8566_s3, %s6729_s19  ;;  %s57_s16 = int_to_ptr.vmem [resolvable:$true] %s56_s16 }
  0x17   :  { %p6733_p9 = scmp.lt.u32.totalorder %s6729_s19, %s8566_s3 }
  0x19   :  { %p6735_p10 = pnand %p6733_p9, %p6730_p8 }
  0x1b   :  { %6738 = shalt.err (!%p6735_p10)
}
  0x1c   :  { %s6739_s24 = scalar_lea.vmem %s57_s16, 2176  ;;  %p6744_p12 = scmp.lt.s32.totalorder %s57_s16, %s57_s16 }
  0x1d   :  { %p6740_p11 = scmp.ne.s32.totalorder %s57_s16, %s6739_s24  ;;  %p6745_p13 = scmp.lt.s32.totalorder %s6739_s24, %s6739_s24 }
  0x1f   :  { %p6746_p0 = por %p6745_p13, %p6744_p12 }
  0x21   :  { %p6747_p1 = pnand %p6746_p0, %p6740_p11 }
  0x23   :  { %6750 = shalt.err (!%p6747_p1)
}
  0x24   :  { %s6897_s1 = smov 272   ;;  %s6898_s25 = smov 17  }
  0x25   :  { %62 = dma.hbm_to_vmem [thread:$0]  %s8566_s3, 2176, %s57_s16, [#allocation9], %s6897_s1, %s6897_s1, %s6898_s25  }
  0x26   :  { %s6899_s28 = smov [#allocation11]   ;;  %s6900_s30 = smov [#allocation2]  }
  0x27   :  { %s80_s29 = sshll.u32 %s6899_s28, 4  ;;  %s22_s8 = sshll.u32 %s6900_s30, 4  ;;  %s81_s29 = int_to_ptr.vmem [resolvable:$true] %s80_s29  ;;  %s6975_s8 = int_to_ptr.vmem [resolvable:$true] %s22_s8 }
  0x28   :  { %s6751_s11 = scalar_lea.hbm %s8568_s5, 69632 }
  0x29   :  { %p6752_p2 = scmp.ne.s32.totalorder %s8568_s5, %s6751_s11  ;;  %p6755_p3 = scmp.lt.u32.totalorder %s6751_s11, %s8568_s5 }
  0x2b   :  { %p6757_p4 = pnand %p6755_p3, %p6752_p2 }
  0x2d   :  { %6760 = shalt.err (!%p6757_p4)
}
  0x2e   :  { %s6761_s3 = scalar_lea.vmem %s81_s29, 69632  ;;  %p6766_p6 = scmp.lt.s32.totalorder %s81_s29, %s81_s29 }
  0x2f   :  { %p6762_p5 = scmp.ne.s32.totalorder %s81_s29, %s6761_s3  ;;  %p6767_p7 = scmp.lt.s32.totalorder %s6761_s3, %s6761_s3 }
  0x31   :  { %p6768_p8 = por %p6767_p7, %p6766_p6 }
  0x33   :  { %p6769_p9 = pnand %p6768_p8, %p6762_p5 }
  0x35   :  { %6772 = shalt.err (!%p6769_p9)
}
  0x36   :  { %s6901_s16 = smov 128   ;;  %s6902_s17 = smov 8  }
  0x37   :  { %86 = dma.hbm_to_vmem [thread:$0]  %s8568_s5, 69632, %s81_s29, [#allocation12], %s6901_s16, %s6901_s16, %s6902_s17  }
  0x38   :  { %s6773_s22 = scalar_lea.hbm %s8563_s0, 512 }
  0x39   :  { %p6774_p10 = scmp.ne.s32.totalorder %s8563_s0, %s6773_s22  ;;  %p6777_p11 = scmp.lt.u32.totalorder %s6773_s22, %s8563_s0 }
  0x3b   :  { %p6779_p12 = pnand %p6777_p11, %p6774_p10 }
  0x3d   :  { %6782 = shalt.err (!%p6779_p12)
}
  0x3e   :  { %s6783_s28 = scalar_lea.vmem %s6975_s8, 512  ;;  %p6788_p0 = scmp.lt.s32.totalorder %s6975_s8, %s6975_s8 }
  0x3f   :  { %p6784_p13 = scmp.ne.s32.totalorder %s6975_s8, %s6783_s28  ;;  %p6789_p1 = scmp.lt.s32.totalorder %s6783_s28, %s6783_s28 }
  0x41   :  { %p6790_p2 = por %p6789_p1, %p6788_p0 }
  0x43   :  { %p6791_p3 = pnand %p6790_p2, %p6784_p13 }
  0x45   :  { %6794 = shalt.err (!%p6791_p3)
}
  0x46   :  { %28 = dma.hbm_to_vmem [thread:$0]  %s8563_s0, 512, %s6975_s8, [#allocation3], %s6901_s16, %s6901_s16, %s6902_s17  }
  0x47   :  { %s6903_s30 = smov [#allocation7]   ;;  %s6904_s10 = smov [#allocation10]  }
  0x48   :  { %s47_s9 = sshll.u32 %s6903_s30, 4  ;;  %s68_s11 = sshll.u32 %s6904_s10, 4  ;;  %s48_s9 = int_to_ptr.vmem [resolvable:$true] %s47_s9  ;;  %s7006_s11 = int_to_ptr.vmem [resolvable:$true] %s68_s11 }
  0x49   :  { %s6795_s14 = scalar_lea.hbm %s8565_s2, 272 }
  0x4a   :  { %p6796_p4 = scmp.ne.s32.totalorder %s8565_s2, %s6795_s14  ;;  %p6799_p5 = scmp.lt.u32.totalorder %s6795_s14, %s8565_s2 }
  0x4c   :  { %p6801_p6 = pnand %p6799_p5, %p6796_p4 }
  0x4e   :  { %6804 = shalt.err (!%p6801_p6)
}
  0x4f   :  { %s6805_s0 = scalar_lea.vmem %s48_s9, 272  ;;  %s6809_s8 = scalar_lea.vmem %s48_s9, 288 }
  0x50   :  { %p6806_p7 = scmp.ne.s32.totalorder %s48_s9, %s6805_s0  ;;  %p6810_p8 = scmp.lt.s32.totalorder %s48_s9, %s48_s9 }
  0x51   :  { %p6811_p9 = scmp.lt.s32.totalorder %s6809_s8, %s6805_s0 }
  0x53   :  { %p6812_p10 = por %p6811_p9, %p6810_p8 }
  0x55   :  { %p6813_p11 = pnand %p6812_p10, %p6806_p7 }
  0x57   :  { %6816 = shalt.err (!%p6813_p11)
}
  0x58   :  { %50 = dma.hbm_to_vmem [thread:$0]  %s8565_s2, 272, %s48_s9, [#allocation6]  }
  0x59   :  { %s6817_s22 = scalar_lea.hbm %s8567_s4, 544 }
  0x5a   :  { %p6818_p12 = scmp.ne.s32.totalorder %s8567_s4, %s6817_s22  ;;  %p6821_p13 = scmp.lt.u32.totalorder %s6817_s22, %s8567_s4 }
  0x5c   :  { %p6823_p0 = pnand %p6821_p13, %p6818_p12 }
  0x5e   :  { %6826 = shalt.err (!%p6823_p0)
}
  0x5f   :  { %s6827_s28 = scalar_lea.vmem %s7006_s11, 544  ;;  %p6832_p2 = scmp.lt.s32.totalorder %s7006_s11, %s7006_s11 }
  0x60   :  { %p6828_p1 = scmp.ne.s32.totalorder %s7006_s11, %s6827_s28  ;;  %p6833_p3 = scmp.lt.s32.totalorder %s6827_s28, %s6827_s28 }
  0x62   :  { %p6834_p4 = por %p6833_p3, %p6832_p2 }
  0x64   :  { %p6835_p5 = pnand %p6834_p4, %p6828_p1 }
  0x66   :  { %6838 = shalt.err (!%p6835_p5)
}
  0x67   :  { %74 = dma.hbm_to_vmem [thread:$0]  %s8567_s4, 544, %s7006_s11, [#allocation9], %s6897_s1, %s6897_s1, %s6898_s25  }
  0x68   :  { %s6905_s29 = smov [#allocation13]   ;;  %s6839_s12 = scalar_lea.hbm %s8569_s6, 16 }
  0x69   :  { %s93_s30 = sshll.u32 %s6905_s29, 4  ;;  %p6840_p6 = scmp.ne.s32.totalorder %s8569_s6, %s6839_s12  ;;  %s94_s30 = int_to_ptr.vmem [resolvable:$true] %s93_s30 }
  0x6a   :  { %p6843_p7 = scmp.lt.u32.totalorder %s6839_s12, %s8569_s6 }
  0x6c   :  { %p6845_p8 = pnand %p6843_p7, %p6840_p6 }
  0x6e   :  { %6848 = shalt.err (!%p6845_p8)
}
  0x6f   :  { %s6849_s18 = scalar_lea.vmem %s94_s30, 16  ;;  %s6853_s4 = scalar_lea.vmem %s94_s30, 32 }
  0x70   :  { %p6850_p9 = scmp.ne.s32.totalorder %s94_s30, %s6849_s18  ;;  %p6854_p10 = scmp.lt.s32.totalorder %s94_s30, %s94_s30 }
  0x71   :  { %p6855_p11 = scmp.lt.s32.totalorder %s6853_s4, %s6849_s18 }
  0x73   :  { %p6856_p12 = por %p6855_p11, %p6854_p10 }
  0x75   :  { %p6857_p13 = pnand %p6856_p12, %p6850_p9 }
  0x77   :  { %6860 = shalt.err (!%p6857_p13)
}
  0x78   :  { %96 = dma.hbm_to_vmem [thread:$0]  %s8569_s6, 16, %s94_s30, [#allocation12]  }
  0x79   :  { %6883 = dma.done.wait [#allocation3], 512  }
  0x7a   :  { %6884 = vsyncadd [#allocation3], 4294966784 }
  0x7b   :  { %6885 = dma.done.wait [#allocation6], 26384  }
  0x7c   :  { %6886 = vsyncadd [#allocation6], 4294940912 }
  0x7d   :  { %6887 = dma.done.wait [#allocation9], 2720  }
  0x7e   :  { %6888 = vsyncadd [#allocation9], 4294964576 }
  0x7f   :  { %6889 = dma.done.wait [#allocation12], 69648  }
  0x80   :  { %6890 = vsyncadd [#allocation12], 4294897648  ;;  %v6396_v0 = vld [vmem:[#allocation5 + $0x4] ss:$68 sps:$4 sm:$0xff]   ;;  %v6398_v1 = vld [vmem:[#allocation5 + $0xc] ss:$68 sps:$4 sm:$0xff]  }
  0x81   :  { %1487 = vmatprep.subr.bf16.mxu0 %v6396_v0  ;;  %v6400_v2 = vld [vmem:[#allocation5] ss:$68 sps:$4 sm:$0xff]   ;;  %v6401_v3 = vld [vmem:[#allocation5 + $0x8] ss:$68 sps:$4 sm:$0xff]   ;;  %1540 = vmatprep.subr.bf16.mxu1 %v6398_v1  ;;  %v6404_v5 = vld [vmem:[#allocation5 + $0x94] ss:$68 sps:$4 sm:$0xff]  }
  0x82   :  { %v6402_v4 = vld [vmem:[#allocation5 + $0x8c] ss:$68 sps:$4 sm:$0xff]   ;;  %1488 = vmatpush1.bf16.msra.mxu0 %v6400_v2  ;;  %1541 = vmatpush1.bf16.msra.mxu1 %v6401_v3  ;;  %v6408_v8 = vld [vmem:[#allocation5 + $0x114] ss:$68 sps:$4 sm:$0xff]   ;;  %v6410_v9 = vld [vmem:[#allocation5 + $0x11c] ss:$68 sps:$4 sm:$0xff]  }
  0x83   :  { %v6406_v6 = vld [vmem:[#allocation5 + $0x88] ss:$68 sps:$4 sm:$0xff]   ;;  %1489 = vmatprep.subr.bf16.mxu0 %v6402_v4  ;;  %v6407_v7 = vld [vmem:[#allocation5 + $0x90] ss:$68 sps:$4 sm:$0xff]   ;;  %1542 = vmatprep.subr.bf16.mxu1 %v6404_v5  ;;  %v6413_v11 = vld [vmem:[#allocation5 + $0x118] ss:$68 sps:$4 sm:$0xff]  }
  0x84   :  { %v6412_v10 = vld [vmem:[#allocation5 + $0x110] ss:$68 sps:$4 sm:$0xff]   ;;  %v6414_v12 = vld [vmem:[#allocation5 + $0x19c] ss:$68 sps:$4 sm:$0xff]   ;;  %v6416_v13 = vld [vmem:[#allocation5 + $0x1a4] ss:$68 sps:$4 sm:$0xff]  }
  0x85   :  { %v6418_v14 = vld [vmem:[#allocation5 + $0x198] ss:$68 sps:$4 sm:$0xff]   ;;  %v6419_v15 = vld [vmem:[#allocation5 + $0x1a0] ss:$68 sps:$4 sm:$0xff]   ;;  %v6422_v17 = vld [vmem:[#allocation5 + $0x22c] ss:$68 sps:$4 sm:$0xff]  }
  0x86   :  { %1490 = vmatpush1.bf16.msra.mxu0 %v6406_v6  ;;  %1543 = vmatpush1.bf16.msra.mxu1 %v6407_v7  ;;  %v6420_v16 = vld [vmem:[#allocation5 + $0x224] ss:$68 sps:$4 sm:$0xff]   ;;  %v6426_v20 = vld [vmem:[#allocation5 + $0x2ac] ss:$68 sps:$4 sm:$0xff]   ;;  %v6428_v21 = vld [vmem:[#allocation5 + $0x2b4] ss:$68 sps:$4 sm:$0xff]  }
  0x87   :  { %1491 = vmatprep.subr.bf16.mxu0 %v6408_v8  ;;  %1544 = vmatprep.subr.bf16.mxu1 %v6410_v9  ;;  %v6424_v18 = vld [vmem:[#allocation5 + $0x220] ss:$68 sps:$4 sm:$0xff]   ;;  %v6425_v19 = vld [vmem:[#allocation5 + $0x228] ss:$68 sps:$4 sm:$0xff]   ;;  %v6431_v23 = vld [vmem:[#allocation5 + $0x2b0] ss:$68 sps:$4 sm:$0xff]  }
  0x88   :  { %v6430_v22 = vld [vmem:[#allocation5 + $0x2a8] ss:$68 sps:$4 sm:$0xff]   ;;  %v6432_v24 = vld [vmem:[#allocation5 + $0x334] ss:$68 sps:$4 sm:$0xff]   ;;  %v6434_v25 = vld [vmem:[#allocation5 + $0x33c] ss:$68 sps:$4 sm:$0xff]  }
  0x89   :  { %v6436_v26 = vld [vmem:[#allocation5 + $0x330] ss:$68 sps:$4 sm:$0xff]   ;;  %v6437_v27 = vld [vmem:[#allocation5 + $0x338] ss:$68 sps:$4 sm:$0xff]   ;;  %v6440_v29 = vld [vmem:[#allocation5 + $0x3c4] ss:$68 sps:$4 sm:$0xff]  }
  0x8a   :  { %1492 = vmatpush1.bf16.msra.mxu0 %v6412_v10  ;;  %1545 = vmatpush1.bf16.msra.mxu1 %v6413_v11  ;;  %v6438_v28 = vld [vmem:[#allocation5 + $0x3bc] ss:$68 sps:$4 sm:$0xff]   ;;  %v6444_v32 = vld [vmem:[#allocation5 + $0x444] ss:$68 sps:$4 sm:$0xff]   ;;  %v6446_v33 = vld [vmem:[#allocation5 + $0x44c] ss:$68 sps:$4 sm:$0xff]  }
  0x8b   :  { %1493 = vmatprep.subr.bf16.mxu0 %v6414_v12  ;;  %1546 = vmatprep.subr.bf16.mxu1 %v6416_v13  ;;  %v6442_v30 = vld [vmem:[#allocation5 + $0x3b8] ss:$68 sps:$4 sm:$0xff]   ;;  %v6443_v31 = vld [vmem:[#allocation5 + $0x3c0] ss:$68 sps:$4 sm:$0xff]   ;;  %vm1480_vm0 = vcmask 523264   ;;  %s6907_s6 = smov [#allocation14]  }
  0x8c   :  { %v6448_v34 = vld [vmem:[#allocation5 + $0x440] ss:$68 sps:$4 sm:$0xff]   ;;  %v6449_v35 = vld [vmem:[#allocation5 + $0x448] ss:$68 sps:$4 sm:$0xff]   ;;  %v6452_v38 = vld [vmem:[#allocation5 + $0x4d4] ss:$68 sps:$4 sm:$0xff]  }
  0x8d   :  { %v6450_v36 = vld [vmem:[#allocation5 + $0x4cc] ss:$68 sps:$4 sm:$0xff]   ;;  %v6456_v41 = vld [vmem:[#allocation5 + $0x554] ss:$68 sps:$4 sm:$0xff]   ;;  %v6458_v42 = vld [vmem:[#allocation5 + $0x55c] ss:$68 sps:$4 sm:$0xff]  }
  0x8e   :  { %1494 = vmatpush1.bf16.msra.mxu0 %v6418_v14  ;;  %1547 = vmatpush1.bf16.msra.mxu1 %v6419_v15  ;;  %v7052_v37 = vld [vmem:[#allocation2 + $0x4] ss:$8 sps:$4 sm:$0xff]   ;;  %v6455_v40 = vld [vmem:[#allocation5 + $0x4d0] ss:$68 sps:$4 sm:$0xff]   ;;  %v6461_v44 = vld [vmem:[#allocation5 + $0x558] ss:$68 sps:$4 sm:$0xff]  }
  0x8f   :  { %1495 = vmatprep.subr.bf16.mxu0 %v6420_v16  ;;  %1548 = vmatprep.subr.bf16.mxu1 %v6422_v17  ;;  %v6454_v39 = vld [vmem:[#allocation5 + $0x4c8] ss:$68 sps:$4 sm:$0xff]   ;;  %v6460_v43 = vld [vmem:[#allocation5 + $0x550] ss:$68 sps:$4 sm:$0xff]   ;;  %v6462_v45 = vld [vmem:[#allocation5 + $0x5dc] ss:$68 sps:$4 sm:$0xff]  }
  0x90   :  { %5213 = vmatprep.mubr.msk.bf16.mxu0 %vm1480_vm0, %v7052_v37  ;;  %5215 = vmatprep.mubr.msk.bf16.mxu1 %vm1480_vm0, %v7052_v37  ;;  %v6464_v46 = vld [vmem:[#allocation5 + $0x5e4] ss:$68 sps:$4 sm:$0xff]   ;;  %v6466_v47 = vld [vmem:[#allocation5 + $0x5d8] ss:$68 sps:$4 sm:$0xff]   ;;  %v6471_v52 = vld [vmem:[#allocation5 + $0x10] ss:$68 sps:$4 sm:$0xff]  }
  0x91   :  { %v6467_v48 = vld [vmem:[#allocation5 + $0x5e0] ss:$68 sps:$4 sm:$0xff]   ;;  %v6473_v49 = vld [vmem:[#allocation5 + $0x14] ss:$68 sps:$4 sm:$0xff]   ;;  %v6491_v60 = vld [vmem:[#allocation5 + $0x12c] ss:$68 sps:$4 sm:$0xff]  }
  0x92   :  { %1496 = vmatpush1.bf16.msra.mxu0 %v6424_v18  ;;  %1549 = vmatpush1.bf16.msra.mxu1 %v6425_v19  ;;  %v6476_v50 = vld [vmem:[#allocation5 + $0x1c] ss:$68 sps:$4 sm:$0xff]   ;;  %v6482_v55 = vld [vmem:[#allocation5 + $0xa4] ss:$68 sps:$4 sm:$0xff]   ;;  %v7066_v61 = vld [vmem:[#allocation2 + $0x10] ss:$8 sps:$4 sm:$0xff]  }
  0x93   :  { %1497 = vmatprep.subr.bf16.mxu0 %v6426_v20  ;;  %1550 = vmatprep.subr.bf16.mxu1 %v6428_v21  ;;  %v7058_v51 = vld [vmem:[#allocation2] ss:$8 sps:$4 sm:$0xff]   ;;  %v6474_v53 = vld [vmem:[#allocation5 + $0x18] ss:$68 sps:$4 sm:$0xff]   ;;  %v6494_v0 = vld [vmem:[#allocation5 + $0x1ac] ss:$68 sps:$4 sm:$0xff]  }
  0x94   :  { %v6479_v54 = vld [vmem:[#allocation5 + $0x9c] ss:$68 sps:$4 sm:$0xff]   ;;  %v6488_v59 = vld [vmem:[#allocation5 + $0x124] ss:$68 sps:$4 sm:$0xff]   ;;  %v6497_v1 = vld [vmem:[#allocation5 + $0x1b4] ss:$68 sps:$4 sm:$0xff]  }
  0x95   :  { %v7060_v56 = vld [vmem:[#allocation2 + $0x14] ss:$8 sps:$4 sm:$0xff]   ;;  %v6480_v58 = vld [vmem:[#allocation5 + $0xa0] ss:$68 sps:$4 sm:$0xff]   ;;  %v6489_v63 = vld [vmem:[#allocation5 + $0x128] ss:$68 sps:$4 sm:$0xff]  }
  0x96   :  { %1498 = vmatpush1.bf16.msra.mxu0 %v6430_v22  ;;  %1551 = vmatpush1.bf16.msra.mxu1 %v6431_v23  ;;  %v6477_v57 = vld [vmem:[#allocation5 + $0x98] ss:$68 sps:$4 sm:$0xff]   ;;  %v6486_v62 = vld [vmem:[#allocation5 + $0x120] ss:$68 sps:$4 sm:$0xff]   ;;  %v6492_v2 = vld [vmem:[#allocation5 + $0x1a8] ss:$68 sps:$4 sm:$0xff]  }
  0x97   :  { %1499 = vmatprep.subr.bf16.mxu0 %v6432_v24  ;;  %1552 = vmatprep.subr.bf16.mxu1 %v6434_v25  ;;  %v6495_v3 = vld [vmem:[#allocation5 + $0x1b0] ss:$68 sps:$4 sm:$0xff]   ;;  %v6503_v5 = vld [vmem:[#allocation5 + $0x23c] ss:$68 sps:$4 sm:$0xff]   ;;  %v6509_v9 = vld [vmem:[#allocation5 + $0x2c4] ss:$68 sps:$4 sm:$0xff]  }
  0x98   :  { %v6500_v4 = vld [vmem:[#allocation5 + $0x234] ss:$68 sps:$4 sm:$0xff]   ;;  %v6506_v8 = vld [vmem:[#allocation5 + $0x2bc] ss:$68 sps:$4 sm:$0xff]   ;;  %v6512_v12 = vld [vmem:[#allocation5 + $0x344] ss:$68 sps:$4 sm:$0xff]  }
  0x99   :  { %v6498_v6 = vld [vmem:[#allocation5 + $0x230] ss:$68 sps:$4 sm:$0xff]   ;;  %v6501_v7 = vld [vmem:[#allocation5 + $0x238] ss:$68 sps:$4 sm:$0xff]   ;;  %v6507_v11 = vld [vmem:[#allocation5 + $0x2c0] ss:$68 sps:$4 sm:$0xff]  }
  0x9a   :  { %1500 = vmatpush1.bf16.msra.mxu0 %v6436_v26  ;;  %1553 = vmatpush1.bf16.msra.mxu1 %v6437_v27  ;;  %v6504_v10 = vld [vmem:[#allocation5 + $0x2b8] ss:$68 sps:$4 sm:$0xff]   ;;  %v6515_v13 = vld [vmem:[#allocation5 + $0x34c] ss:$68 sps:$4 sm:$0xff]   ;;  %v6510_v14 = vld [vmem:[#allocation5 + $0x340] ss:$68 sps:$4 sm:$0xff]  }
  0x9b   :  { %1501 = vmatprep.subr.bf16.mxu0 %v6438_v28  ;;  %1554 = vmatprep.subr.bf16.mxu1 %v6440_v29  ;;  %v6513_v15 = vld [vmem:[#allocation5 + $0x348] ss:$68 sps:$4 sm:$0xff]   ;;  %v6521_v17 = vld [vmem:[#allocation5 + $0x3d4] ss:$68 sps:$4 sm:$0xff]   ;;  %v6527_v21 = vld [vmem:[#allocation5 + $0x45c] ss:$68 sps:$4 sm:$0xff]  }
  0x9c   :  { %v6518_v16 = vld [vmem:[#allocation5 + $0x3cc] ss:$68 sps:$4 sm:$0xff]   ;;  %v6524_v20 = vld [vmem:[#allocation5 + $0x454] ss:$68 sps:$4 sm:$0xff]   ;;  %v6530_v24 = vld [vmem:[#allocation5 + $0x4dc] ss:$68 sps:$4 sm:$0xff]  }
  0x9d   :  { %v6516_v18 = vld [vmem:[#allocation5 + $0x3c8] ss:$68 sps:$4 sm:$0xff]   ;;  %v6519_v19 = vld [vmem:[#allocation5 + $0x3d0] ss:$68 sps:$4 sm:$0xff]   ;;  %v6525_v23 = vld [vmem:[#allocation5 + $0x458] ss:$68 sps:$4 sm:$0xff]  }
  0x9e   :  { %1502 = vmatpush1.bf16.msra.mxu0 %v6442_v30  ;;  %1555 = vmatpush1.bf16.msra.mxu1 %v6443_v31  ;;  %v6522_v22 = vld [vmem:[#allocation5 + $0x450] ss:$68 sps:$4 sm:$0xff]   ;;  %v6533_v25 = vld [vmem:[#allocation5 + $0x4e4] ss:$68 sps:$4 sm:$0xff]   ;;  %v6528_v26 = vld [vmem:[#allocation5 + $0x4d8] ss:$68 sps:$4 sm:$0xff]  }
  0x9f   :  { %1503 = vmatprep.subr.bf16.mxu0 %v6444_v32  ;;  %1556 = vmatprep.subr.bf16.mxu1 %v6446_v33  ;;  %v6531_v27 = vld [vmem:[#allocation5 + $0x4e0] ss:$68 sps:$4 sm:$0xff]   ;;  %v6539_v29 = vld [vmem:[#allocation5 + $0x56c] ss:$68 sps:$4 sm:$0xff]   ;;  %v6545_v33 = vld [vmem:[#allocation5 + $0x5f4] ss:$68 sps:$4 sm:$0xff]  }
  0xa0   :  { %v6536_v28 = vld [vmem:[#allocation5 + $0x564] ss:$68 sps:$4 sm:$0xff]   ;;  %v6542_v32 = vld [vmem:[#allocation5 + $0x5ec] ss:$68 sps:$4 sm:$0xff]   ;;  %s4992_s11 = sshll.u32 %s6907_s6, 4  ;;  %s4993_s11 = int_to_ptr.vmem [resolvable:$true] %s4992_s11 }
  0xa1   :  { %v6534_v30 = vld [vmem:[#allocation5 + $0x560] ss:$68 sps:$4 sm:$0xff]   ;;  %v6537_v31 = vld [vmem:[#allocation5 + $0x568] ss:$68 sps:$4 sm:$0xff]   ;;  %s6861_s19 = scalar_lea.vmem %s4993_s11, 128  ;;  %p6866_p1 = scmp.lt.s32.totalorder %s4993_s11, %s4993_s11 }
  0xa2   :  { %1504 = vmatpush1.bf16.msra.mxu0 %v6448_v34  ;;  %1557 = vmatpush1.bf16.msra.mxu1 %v6449_v35  ;;  %v6540_v34 = vld [vmem:[#allocation5 + $0x5e8] ss:$68 sps:$4 sm:$0xff]   ;;  %v6543_v35 = vld [vmem:[#allocation5 + $0x5f0] ss:$68 sps:$4 sm:$0xff]   ;;  %p6862_p0 = scmp.ne.s32.totalorder %s4993_s11, %s6861_s19  ;;  %p6867_p2 = scmp.lt.s32.totalorder %s6861_s19, %s6861_s19 }
  0xa3   :  { %1505 = vmatprep.subr.bf16.mxu0 %v6450_v36  ;;  %1558 = vmatprep.subr.bf16.mxu1 %v6452_v38  ;;  %v6548_v36 = vld [vmem:[#allocation5 + $0x24] ss:$68 sps:$4 sm:$0xff]   ;;  %v6551_v38 = vld [vmem:[#allocation5 + $0x2c] ss:$68 sps:$4 sm:$0xff]  }
  0xa4   :  { %p6868_p3 = por %p6867_p2, %p6866_p1 }
  0xa6   :  { %1506 = vmatpush1.bf16.msra.mxu0 %v6454_v39  ;;  %1559 = vmatpush1.bf16.msra.mxu1 %v6455_v40  ;;  %v6546_v39 = vld [vmem:[#allocation5 + $0x20] ss:$68 sps:$4 sm:$0xff]   ;;  %v6549_v40 = vld [vmem:[#allocation5 + $0x28] ss:$68 sps:$4 sm:$0xff]   ;;  %p6869_p4 = pnand %p6868_p3, %p6862_p0 }
  0xa7   :  { %1507 = vmatprep.subr.bf16.mxu0 %v6456_v41  ;;  %1560 = vmatprep.subr.bf16.mxu1 %v6458_v42  ;;  %v6554_v41 = vld [vmem:[#allocation5 + $0xac] ss:$68 sps:$4 sm:$0xff]   ;;  %v6557_v42 = vld [vmem:[#allocation5 + $0xb4] ss:$68 sps:$4 sm:$0xff]  }
  0xaa   :  { %1508 = vmatpush1.bf16.msra.mxu0 %v6460_v43  ;;  %1561 = vmatpush1.bf16.msra.mxu1 %v6461_v44  ;;  %v6552_v43 = vld [vmem:[#allocation5 + $0xa8] ss:$68 sps:$4 sm:$0xff]   ;;  %v6555_v44 = vld [vmem:[#allocation5 + $0xb0] ss:$68 sps:$4 sm:$0xff]  }
  0xab   :  { %1509 = vmatprep.subr.bf16.mxu0 %v6462_v45  ;;  %1562 = vmatprep.subr.bf16.mxu1 %v6464_v46  ;;  %v6560_v45 = vld [vmem:[#allocation5 + $0x134] ss:$68 sps:$4 sm:$0xff]   ;;  %v6563_v46 = vld [vmem:[#allocation5 + $0x13c] ss:$68 sps:$4 sm:$0xff]  }
  0xae   :  { %1510 = vmatpush1.bf16.msra.mxu0 %v6466_v47  ;;  %1563 = vmatpush1.bf16.msra.mxu1 %v6467_v48  ;;  %v6558_v47 = vld [vmem:[#allocation5 + $0x130] ss:$68 sps:$4 sm:$0xff]   ;;  %v6561_v48 = vld [vmem:[#allocation5 + $0x138] ss:$68 sps:$4 sm:$0xff]  }
  0xaf   :  { %1593 = vmatprep.subr.bf16.mxu0 %v6473_v49  ;;  %1646 = vmatprep.subr.bf16.mxu1 %v6476_v50  ;;  %v6566_v49 = vld [vmem:[#allocation5 + $0x1bc] ss:$68 sps:$4 sm:$0xff]   ;;  %v6569_v50 = vld [vmem:[#allocation5 + $0x1c4] ss:$68 sps:$4 sm:$0xff]  }
  0xb1   :  { %1520 = vmatmul.mubr.bf16.vlgmr.msra.gmra.mrb[0].mxu0 %v7058_v51  ;;  %1573 = vmatmul.mubr.bf16.vlgmr.msra.gmra.mrb[0].mxu1 %v7058_v51 }
  0xb2   :  { %1594 = vmatpush1.bf16.msra.mxu0 %v6471_v52  ;;  %1647 = vmatpush1.bf16.msra.mxu1 %v6474_v53  ;;  %v6564_v52 = vld [vmem:[#allocation5 + $0x1b8] ss:$68 sps:$4 sm:$0xff]   ;;  %v6567_v53 = vld [vmem:[#allocation5 + $0x1c0] ss:$68 sps:$4 sm:$0xff]  }
  0xb3   :  { %1595 = vmatprep.subr.bf16.mxu0 %v6479_v54  ;;  %1648 = vmatprep.subr.bf16.mxu1 %v6482_v55  ;;  %v6572_v54 = vld [vmem:[#allocation5 + $0x244] ss:$68 sps:$4 sm:$0xff]   ;;  %v6575_v55 = vld [vmem:[#allocation5 + $0x24c] ss:$68 sps:$4 sm:$0xff]  }
  0xb4   :  { %5214 = vmatprep.mubr.msk.bf16.mxu0 %vm1480_vm0, %v7060_v56  ;;  %5216 = vmatprep.mubr.msk.bf16.mxu1 %vm1480_vm0, %v7060_v56 }
  0xb6   :  { %1596 = vmatpush1.bf16.msra.mxu0 %v6477_v57  ;;  %1649 = vmatpush1.bf16.msra.mxu1 %v6480_v58  ;;  %v6570_v57 = vld [vmem:[#allocation5 + $0x240] ss:$68 sps:$4 sm:$0xff]   ;;  %v6573_v58 = vld [vmem:[#allocation5 + $0x248] ss:$68 sps:$4 sm:$0xff]  }
  0xb7   :  { %1597 = vmatprep.subr.bf16.mxu0 %v6488_v59  ;;  %1650 = vmatprep.subr.bf16.mxu1 %v6491_v60  ;;  %v6578_v59 = vld [vmem:[#allocation5 + $0x2cc] ss:$68 sps:$4 sm:$0xff]   ;;  %v6581_v60 = vld [vmem:[#allocation5 + $0x2d4] ss:$68 sps:$4 sm:$0xff]  }
  0xb9   :  { %1530 = vmatmul.mubr.bf16.gmra.mrb[4].mxu0 %v7066_v61  ;;  %1583 = vmatmul.mubr.bf16.gmra.mrb[4].mxu1 %v7066_v61 }
  0xba   :  { %1598 = vmatpush1.bf16.msra.mxu0 %v6486_v62  ;;  %1651 = vmatpush1.bf16.msra.mxu1 %v6489_v63  ;;  %v6576_v62 = vld [vmem:[#allocation5 + $0x2c8] ss:$68 sps:$4 sm:$0xff]   ;;  %v6579_v63 = vld [vmem:[#allocation5 + $0x2d0] ss:$68 sps:$4 sm:$0xff]  }
  0xbb   :  { %1599 = vmatprep.subr.bf16.mxu0 %v6494_v0  ;;  %1652 = vmatprep.subr.bf16.mxu1 %v6497_v1  ;;  %v6584_v0 = vld [vmem:[#allocation5 + $0x354] ss:$68 sps:$4 sm:$0xff]   ;;  %v6587_v1 = vld [vmem:[#allocation5 + $0x35c] ss:$68 sps:$4 sm:$0xff]  }
  0xbc   :  { %5217 = vmatprep.mubr.msk.bf16.mxu0 %vm1480_vm0, %v7052_v37  ;;  %5219 = vmatprep.mubr.msk.bf16.mxu1 %vm1480_vm0, %v7052_v37 }
  0xbe   :  { %1600 = vmatpush1.bf16.msra.mxu0 %v6492_v2  ;;  %1653 = vmatpush1.bf16.msra.mxu1 %v6495_v3  ;;  %v6582_v2 = vld [vmem:[#allocation5 + $0x350] ss:$68 sps:$4 sm:$0xff]   ;;  %v6585_v3 = vld [vmem:[#allocation5 + $0x358] ss:$68 sps:$4 sm:$0xff]  }
  0xbf   :  { %1601 = vmatprep.subr.bf16.mxu0 %v6500_v4  ;;  %1654 = vmatprep.subr.bf16.mxu1 %v6503_v5  ;;  %v6590_v4 = vld [vmem:[#allocation5 + $0x3dc] ss:$68 sps:$4 sm:$0xff]   ;;  %v6593_v5 = vld [vmem:[#allocation5 + $0x3e4] ss:$68 sps:$4 sm:$0xff]  }
  0xc2   :  { %1602 = vmatpush1.bf16.msra.mxu0 %v6498_v6  ;;  %1655 = vmatpush1.bf16.msra.mxu1 %v6501_v7  ;;  %v6588_v6 = vld [vmem:[#allocation5 + $0x3d8] ss:$68 sps:$4 sm:$0xff]   ;;  %v6591_v7 = vld [vmem:[#allocation5 + $0x3e0] ss:$68 sps:$4 sm:$0xff]  }
  0xc3   :  { %1603 = vmatprep.subr.bf16.mxu0 %v6506_v8  ;;  %1656 = vmatprep.subr.bf16.mxu1 %v6509_v9  ;;  %v6596_v8 = vld [vmem:[#allocation5 + $0x464] ss:$68 sps:$4 sm:$0xff]   ;;  %v6599_v9 = vld [vmem:[#allocation5 + $0x46c] ss:$68 sps:$4 sm:$0xff]  }
  0xc6   :  { %1604 = vmatpush1.bf16.msra.mxu0 %v6504_v10  ;;  %1657 = vmatpush1.bf16.msra.mxu1 %v6507_v11  ;;  %v6594_v10 = vld [vmem:[#allocation5 + $0x460] ss:$68 sps:$4 sm:$0xff]   ;;  %v6597_v11 = vld [vmem:[#allocation5 + $0x468] ss:$68 sps:$4 sm:$0xff]  }
  0xc7   :  { %1605 = vmatprep.subr.bf16.mxu0 %v6512_v12  ;;  %1658 = vmatprep.subr.bf16.mxu1 %v6515_v13  ;;  %v6602_v12 = vld [vmem:[#allocation5 + $0x4ec] ss:$68 sps:$4 sm:$0xff]   ;;  %v6605_v13 = vld [vmem:[#allocation5 + $0x4f4] ss:$68 sps:$4 sm:$0xff]  }
  0xca   :  { %1606 = vmatpush1.bf16.msra.mxu0 %v6510_v14  ;;  %1659 = vmatpush1.bf16.msra.mxu1 %v6513_v15  ;;  %v6600_v14 = vld [vmem:[#allocation5 + $0x4e8] ss:$68 sps:$4 sm:$0xff]   ;;  %v6603_v15 = vld [vmem:[#allocation5 + $0x4f0] ss:$68 sps:$4 sm:$0xff]  }
  0xcb   :  { %1607 = vmatprep.subr.bf16.mxu0 %v6518_v16  ;;  %1660 = vmatprep.subr.bf16.mxu1 %v6521_v17  ;;  %v6608_v16 = vld [vmem:[#allocation5 + $0x574] ss:$68 sps:$4 sm:$0xff]   ;;  %v6611_v17 = vld [vmem:[#allocation5 + $0x57c] ss:$68 sps:$4 sm:$0xff]  }
  0xce   :  { %1608 = vmatpush1.bf16.msra.mxu0 %v6516_v18  ;;  %1661 = vmatpush1.bf16.msra.mxu1 %v6519_v19  ;;  %v6606_v18 = vld [vmem:[#allocation5 + $0x570] ss:$68 sps:$4 sm:$0xff]   ;;  %v6609_v19 = vld [vmem:[#allocation5 + $0x578] ss:$68 sps:$4 sm:$0xff]  }
  0xcf   :  { %1609 = vmatprep.subr.bf16.mxu0 %v6524_v20  ;;  %1662 = vmatprep.subr.bf16.mxu1 %v6527_v21  ;;  %v6614_v20 = vld [vmem:[#allocation5 + $0x5fc] ss:$68 sps:$4 sm:$0xff]   ;;  %v6617_v21 = vld [vmem:[#allocation5 + $0x604] ss:$68 sps:$4 sm:$0xff]  }
  0xd2   :  { %1610 = vmatpush1.bf16.msra.mxu0 %v6522_v22  ;;  %1663 = vmatpush1.bf16.msra.mxu1 %v6525_v23  ;;  %v6612_v22 = vld [vmem:[#allocation5 + $0x5f8] ss:$68 sps:$4 sm:$0xff]   ;;  %v6615_v23 = vld [vmem:[#allocation5 + $0x600] ss:$68 sps:$4 sm:$0xff]  }
  0xd3   :  { %1611 = vmatprep.subr.bf16.mxu0 %v6530_v24  ;;  %1664 = vmatprep.subr.bf16.mxu1 %v6533_v25  ;;  %v6620_v24 = vld [vmem:[#allocation5 + $0x34] ss:$68 sps:$4 sm:$0xff]   ;;  %v6623_v25 = vld [vmem:[#allocation5 + $0x3c] ss:$68 sps:$4 sm:$0xff]  }
  0xd6   :  { %1612 = vmatpush1.bf16.msra.mxu0 %v6528_v26  ;;  %1665 = vmatpush1.bf16.msra.mxu1 %v6531_v27  ;;  %v6618_v26 = vld [vmem:[#allocation5 + $0x30] ss:$68 sps:$4 sm:$0xff]   ;;  %v6621_v27 = vld [vmem:[#allocation5 + $0x38] ss:$68 sps:$4 sm:$0xff]  }
  0xd7   :  { %1613 = vmatprep.subr.bf16.mxu0 %v6536_v28  ;;  %1666 = vmatprep.subr.bf16.mxu1 %v6539_v29  ;;  %v6626_v28 = vld [vmem:[#allocation5 + $0xbc] ss:$68 sps:$4 sm:$0xff]   ;;  %v6629_v29 = vld [vmem:[#allocation5 + $0xc4] ss:$68 sps:$4 sm:$0xff]  }
  0xda   :  { %1614 = vmatpush1.bf16.msra.mxu0 %v6534_v30  ;;  %1667 = vmatpush1.bf16.msra.mxu1 %v6537_v31  ;;  %v6624_v30 = vld [vmem:[#allocation5 + $0xb8] ss:$68 sps:$4 sm:$0xff]   ;;  %v6627_v31 = vld [vmem:[#allocation5 + $0xc0] ss:$68 sps:$4 sm:$0xff]  }
  0xdb   :  { %1615 = vmatprep.subr.bf16.mxu0 %v6542_v32  ;;  %1668 = vmatprep.subr.bf16.mxu1 %v6545_v33  ;;  %v6632_v32 = vld [vmem:[#allocation5 + $0x144] ss:$68 sps:$4 sm:$0xff]   ;;  %v6635_v33 = vld [vmem:[#allocation5 + $0x14c] ss:$68 sps:$4 sm:$0xff]  }
  0xde   :  { %1616 = vmatpush1.bf16.msra.mxu0 %v6540_v34  ;;  %1669 = vmatpush1.bf16.msra.mxu1 %v6543_v35  ;;  %v6630_v34 = vld [vmem:[#allocation5 + $0x140] ss:$68 sps:$4 sm:$0xff]   ;;  %v6633_v35 = vld [vmem:[#allocation5 + $0x148] ss:$68 sps:$4 sm:$0xff]  }
  0xdf   :  { %1699 = vmatprep.subr.bf16.mxu0 %v6548_v36  ;;  %1752 = vmatprep.subr.bf16.mxu1 %v6551_v38  ;;  %v6638_v36 = vld [vmem:[#allocation5 + $0x1cc] ss:$68 sps:$4 sm:$0xff]   ;;  %v6641_v38 = vld [vmem:[#allocation5 + $0x1d4] ss:$68 sps:$4 sm:$0xff]  }
  0xe1   :  { %1626 = vmatmul.mubr.bf16.vlgmr.msra.gmra.mrb[8].mxu0 %v7058_v51  ;;  %1679 = vmatmul.mubr.bf16.vlgmr.msra.gmra.mrb[8].mxu1 %v7058_v51 }
  0xe2   :  { %1700 = vmatpush1.bf16.msra.mxu0 %v6546_v39  ;;  %1753 = vmatpush1.bf16.msra.mxu1 %v6549_v40  ;;  %v6636_v39 = vld [vmem:[#allocation5 + $0x1c8] ss:$68 sps:$4 sm:$0xff]   ;;  %v6639_v40 = vld [vmem:[#allocation5 + $0x1d0] ss:$68 sps:$4 sm:$0xff]  }
  0xe3   :  { %1701 = vmatprep.subr.bf16.mxu0 %v6554_v41  ;;  %1754 = vmatprep.subr.bf16.mxu1 %v6557_v42  ;;  %v6644_v41 = vld [vmem:[#allocation5 + $0x254] ss:$68 sps:$4 sm:$0xff]   ;;  %v6647_v42 = vld [vmem:[#allocation5 + $0x25c] ss:$68 sps:$4 sm:$0xff]  }
  0xe4   :  { %5218 = vmatprep.mubr.msk.bf16.mxu0 %vm1480_vm0, %v7060_v56  ;;  %5220 = vmatprep.mubr.msk.bf16.mxu1 %vm1480_vm0, %v7060_v56 }
  0xe6   :  { %1702 = vmatpush1.bf16.msra.mxu0 %v6552_v43  ;;  %1755 = vmatpush1.bf16.msra.mxu1 %v6555_v44  ;;  %v6642_v43 = vld [vmem:[#allocation5 + $0x250] ss:$68 sps:$4 sm:$0xff]   ;;  %v6645_v44 = vld [vmem:[#allocation5 + $0x258] ss:$68 sps:$4 sm:$0xff]  }
  0xe7   :  { %1703 = vmatprep.subr.bf16.mxu0 %v6560_v45  ;;  %1756 = vmatprep.subr.bf16.mxu1 %v6563_v46  ;;  %v6650_v45 = vld [vmem:[#allocation5 + $0x2dc] ss:$68 sps:$4 sm:$0xff]   ;;  %v6653_v46 = vld [vmem:[#allocation5 + $0x2e4] ss:$68 sps:$4 sm:$0xff]  }
  0xe9   :  { %1636 = vmatmul.mubr.bf16.gmra.mrb[12].mxu0 %v7066_v61  ;;  %1689 = vmatmul.mubr.bf16.gmra.mrb[12].mxu1 %v7066_v61 }
  0xea   :  { %1704 = vmatpush1.bf16.msra.mxu0 %v6558_v47  ;;  %1757 = vmatpush1.bf16.msra.mxu1 %v6561_v48  ;;  %v6648_v47 = vld [vmem:[#allocation5 + $0x2d8] ss:$68 sps:$4 sm:$0xff]   ;;  %v6651_v48 = vld [vmem:[#allocation5 + $0x2e0] ss:$68 sps:$4 sm:$0xff]  }
  0xeb   :  { %1705 = vmatprep.subr.bf16.mxu0 %v6566_v49  ;;  %1758 = vmatprep.subr.bf16.mxu1 %v6569_v50  ;;  %v6656_v49 = vld [vmem:[#allocation5 + $0x364] ss:$68 sps:$4 sm:$0xff]   ;;  %v6659_v50 = vld [vmem:[#allocation5 + $0x36c] ss:$68 sps:$4 sm:$0xff]  }
  0xec   :  { %5221 = vmatprep.mubr.msk.bf16.mxu0 %vm1480_vm0, %v7052_v37  ;;  %5223 = vmatprep.mubr.msk.bf16.mxu1 %vm1480_vm0, %v7052_v37 }
  0xee   :  { %1706 = vmatpush1.bf16.msra.mxu0 %v6564_v52  ;;  %1759 = vmatpush1.bf16.msra.mxu1 %v6567_v53  ;;  %v6654_v52 = vld [vmem:[#allocation5 + $0x360] ss:$68 sps:$4 sm:$0xff]   ;;  %v6662_v53 = vld [vmem:[#allocation5 + $0x3ec] ss:$68 sps:$4 sm:$0xff]  }
  0xef   :  { %1707 = vmatprep.subr.bf16.mxu0 %v6572_v54  ;;  %1760 = vmatprep.subr.bf16.mxu1 %v6575_v55  ;;  %v6665_v54 = vld [vmem:[#allocation5 + $0x3f4] ss:$68 sps:$4 sm:$0xff]   ;;  %v6660_v55 = vld [vmem:[#allocation5 + $0x3e8] ss:$68 sps:$4 sm:$0xff]  }
  0xf2   :  { %1708 = vmatpush1.bf16.msra.mxu0 %v6570_v57  ;;  %1761 = vmatpush1.bf16.msra.mxu1 %v6573_v58  ;;  %v6663_v57 = vld [vmem:[#allocation5 + $0x3f0] ss:$68 sps:$4 sm:$0xff]  }
  0xf3   :  { %1709 = vmatprep.subr.bf16.mxu0 %v6578_v59  ;;  %1762 = vmatprep.subr.bf16.mxu1 %v6581_v60  ;;  %v6668_v58 = vld [vmem:[#allocation5 + $0x474] ss:$68 sps:$4 sm:$0xff]   ;;  %v6671_v59 = vld [vmem:[#allocation5 + $0x47c] ss:$68 sps:$4 sm:$0xff]  }
  0xf4   :  { %v6666_v60 = vld [vmem:[#allocation5 + $0x470] ss:$68 sps:$4 sm:$0xff]  }
  0xf6   :  { %1710 = vmatpush1.bf16.msra.mxu0 %v6576_v62  ;;  %1763 = vmatpush1.bf16.msra.mxu1 %v6579_v63  ;;  %v6669_v62 = vld [vmem:[#allocation5 + $0x478] ss:$68 sps:$4 sm:$0xff]  }
  0xf7   :  { %1711 = vmatprep.subr.bf16.mxu0 %v6584_v0  ;;  %1764 = vmatprep.subr.bf16.mxu1 %v6587_v1  ;;  %v6674_v63 = vld [vmem:[#allocation5 + $0x4fc] ss:$68 sps:$4 sm:$0xff]   ;;  %v6677_v0 = vld [vmem:[#allocation5 + $0x504] ss:$68 sps:$4 sm:$0xff]  }
  0xf8   :  { %v6672_v1 = vld [vmem:[#allocation5 + $0x4f8] ss:$68 sps:$4 sm:$0xff]  }
  0xfa   :  { %1712 = vmatpush1.bf16.msra.mxu0 %v6582_v2  ;;  %1765 = vmatpush1.bf16.msra.mxu1 %v6585_v3  ;;  %v6675_v2 = vld [vmem:[#allocation5 + $0x500] ss:$68 sps:$4 sm:$0xff]  }
  0xfb   :  { %1713 = vmatprep.subr.bf16.mxu0 %v6590_v4  ;;  %1766 = vmatprep.subr.bf16.mxu1 %v6593_v5  ;;  %v6680_v3 = vld [vmem:[#allocation5 + $0x584] ss:$68 sps:$4 sm:$0xff]   ;;  %v6683_v4 = vld [vmem:[#allocation5 + $0x58c] ss:$68 sps:$4 sm:$0xff]  }
  0xfc   :  { %v6678_v5 = vld [vmem:[#allocation5 + $0x580] ss:$68 sps:$4 sm:$0xff]  }
  0xfe   :  { %1714 = vmatpush1.bf16.msra.mxu0 %v6588_v6  ;;  %1767 = vmatpush1.bf16.msra.mxu1 %v6591_v7  ;;  %v6681_v6 = vld [vmem:[#allocation5 + $0x588] ss:$68 sps:$4 sm:$0xff]  }
  0xff   :  { %1715 = vmatprep.subr.bf16.mxu0 %v6596_v8  ;;  %1768 = vmatprep.subr.bf16.mxu1 %v6599_v9  ;;  %v6686_v7 = vld [vmem:[#allocation5 + $0x60c] ss:$68 sps:$4 sm:$0xff]   ;;  %v6689_v8 = vld [vmem:[#allocation5 + $0x614] ss:$68 sps:$4 sm:$0xff]   ;;  %v3260_v9 = vld [vmem:[#allocation11 + $0x80] sm:$0xff] }
 0x102   :  { %1716 = vmatpush1.bf16.msra.mxu0 %v6594_v10  ;;  %1769 = vmatpush1.bf16.msra.mxu1 %v6597_v11  ;;  %v3261_v10 = vld [vmem:[#allocation11 + $0x88] sm:$0xff] }
 0x103   :  { %1717 = vmatprep.subr.bf16.mxu0 %v6602_v12  ;;  %1770 = vmatprep.subr.bf16.mxu1 %v6605_v13  ;;  %v6684_v11 = vld [vmem:[#allocation5 + $0x608] ss:$68 sps:$4 sm:$0xff]   ;;  %v6687_v12 = vld [vmem:[#allocation5 + $0x610] ss:$68 sps:$4 sm:$0xff]   ;;  %v5837_v13 = vpack.c.bf16 %v3261_v10, %v3260_v9 }
 0x104   :  { %v6699_v9 = vld [vmem:[#allocation5 + $0x508] ss:$68 sps:$4 sm:$0xff]   ;;  %v6700_v10 = vld [vmem:[#allocation5 + $0x590] ss:$68 sps:$4 sm:$0xff]  }
 0x106   :  { %1718 = vmatpush1.bf16.msra.mxu0 %v6600_v14  ;;  %1771 = vmatpush1.bf16.msra.mxu1 %v6603_v15  ;;  %v3244_v14 = vld [vmem:[#allocation11] sm:$0xff]  ;;  %v3245_v15 = vld [vmem:[#allocation11 + $0x8] sm:$0xff] }
 0x107   :  { %1719 = vmatprep.subr.bf16.mxu0 %v6608_v16  ;;  %1772 = vmatprep.subr.bf16.mxu1 %v6611_v17  ;;  %v6690_v16 = vld [vmem:[#allocation5 + $0x40] ss:$68 sps:$4 sm:$0xff]   ;;  %v3262_v17 = vld [vmem:[#allocation11 + $0x90] sm:$0xff] }
 0x10a   :  { %1720 = vmatpush1.bf16.msra.mxu0 %v6606_v18  ;;  %1773 = vmatpush1.bf16.msra.mxu1 %v6609_v19  ;;  %v3263_v18 = vld [vmem:[#allocation11 + $0x98] sm:$0xff]  ;;  %v6906_v19 = vmov 0  }
 0x10b   :  { %1721 = vmatprep.subr.bf16.mxu0 %v6614_v20  ;;  %1774 = vmatprep.subr.bf16.mxu1 %v6617_v21  ;;  %v5839_v20 = vpack.c.bf16 %v3245_v15, %v3244_v14  ;;  %v5841_v21 = vpack.c.bf16 %v3263_v18, %v3262_v17  ;;  %v3308_v15 = vld [vmem:[#allocation11 + $0x200] sm:$0xff]  ;;  %v3326_v17 = vld [vmem:[#allocation11 + $0x290] sm:$0xff]  ;;  %v3327_v18 = vld [vmem:[#allocation11 + $0x298] sm:$0xff] }
 0x10e   :  { %1722 = vmatpush1.bf16.msra.mxu0 %v6612_v22  ;;  %1775 = vmatpush1.bf16.msra.mxu1 %v6615_v23  ;;  %v3246_v22 = vld [vmem:[#allocation11 + $0x10] sm:$0xff]  ;;  %v3247_v23 = vld [vmem:[#allocation11 + $0x18] sm:$0xff] }
 0x10f   :  { %1805 = vmatprep.subr.bf16.mxu0 %v6620_v24  ;;  %1858 = vmatprep.subr.bf16.mxu1 %v6623_v25  ;;  %v6691_v24 = vld [vmem:[#allocation5 + $0xc8] ss:$68 sps:$4 sm:$0xff]   ;;  %v5843_v25 = vpack.c.bf16 %v3247_v23, %v3246_v22  ;;  %v5905_v22 = vpack.c.bf16 %v3327_v18, %v3326_v17 }
 0x110   :  { %v3310_v23 = vld [vmem:[#allocation11 + $0x210] sm:$0xff] }
 0x111   :  { %1732 = vmatmul.mubr.bf16.vlgmr.msra.gmra.mrb[16].mxu0 %v7058_v51  ;;  %1785 = vmatmul.mubr.bf16.vlgmr.msra.gmra.mrb[16].mxu1 %v7058_v51 }
 0x112   :  { %1806 = vmatpush1.bf16.msra.mxu0 %v6618_v26  ;;  %1859 = vmatpush1.bf16.msra.mxu1 %v6621_v27  ;;  %v3264_v26 = vld [vmem:[#allocation11 + $0xa0] sm:$0xff]  ;;  %v3265_v27 = vld [vmem:[#allocation11 + $0xa8] sm:$0xff] }
 0x113   :  { %1807 = vmatprep.subr.bf16.mxu0 %v6626_v28  ;;  %1860 = vmatprep.subr.bf16.mxu1 %v6629_v29  ;;  %v3248_v28 = vld [vmem:[#allocation11 + $0x20] sm:$0xff]  ;;  %v6692_v29 = vld [vmem:[#allocation5 + $0x150] ss:$68 sps:$4 sm:$0xff]  }
 0x114   :  { %5222 = vmatprep.mubr.msk.bf16.mxu0 %vm1480_vm0, %v7060_v56  ;;  %5224 = vmatprep.mubr.msk.bf16.mxu1 %vm1480_vm0, %v7060_v56 }
 0x116   :  { %1808 = vmatpush1.bf16.msra.mxu0 %v6624_v30  ;;  %1861 = vmatpush1.bf16.msra.mxu1 %v6627_v31  ;;  %v3266_v30 = vld [vmem:[#allocation11 + $0xb0] sm:$0xff]  ;;  %v3267_v31 = vld [vmem:[#allocation11 + $0xb8] sm:$0xff] }
 0x117   :  { %1809 = vmatprep.subr.bf16.mxu0 %v6632_v32  ;;  %1862 = vmatprep.subr.bf16.mxu1 %v6635_v33  ;;  %v5845_v32 = vpack.c.bf16 %v3265_v27, %v3264_v26  ;;  %v3329_v26 = vld [vmem:[#allocation11 + $0x2a8] sm:$0xff] }
 0x118   :  { %v6703_v27 = vld [vmem:[#allocation2] ss:$8 sps:$4 sm:$0xff]  }
 0x119   :  { %1742 = vmatmul.mubr.bf16.gmra.mrb[20].mxu0 %v7066_v61  ;;  %1795 = vmatmul.mubr.bf16.gmra.mrb[20].mxu1 %v7066_v61 }
 0x11a   :  { %1810 = vmatpush1.bf16.msra.mxu0 %v6630_v34  ;;  %1863 = vmatpush1.bf16.msra.mxu1 %v6633_v35  ;;  %v3250_v34 = vld [vmem:[#allocation11 + $0x30] sm:$0xff]  ;;  %v3251_v35 = vld [vmem:[#allocation11 + $0x38] sm:$0xff] }
 0x11b   :  { %1811 = vmatprep.subr.bf16.mxu0 %v6638_v36  ;;  %1864 = vmatprep.subr.bf16.mxu1 %v6641_v38  ;;  %v6693_v36 = vld [vmem:[#allocation5 + $0x1d8] ss:$68 sps:$4 sm:$0xff]   ;;  %v6702_v38 = vld [vmem:[#allocation2 + $0x4] ss:$8 sps:$4 sm:$0xff]  }
 0x11c   :  { %5225 = vmatprep.mubr.msk.bf16.mxu0 %vm1480_vm0, %v7052_v37  ;;  %5227 = vmatprep.mubr.msk.bf16.mxu1 %vm1480_vm0, %v7052_v37  ;;  %v6657_v37 = vld [vmem:[#allocation5 + $0x368] ss:$68 sps:$4 sm:$0xff]  }
 0x11e   :  { %1812 = vmatpush1.bf16.msra.mxu0 %v6636_v39  ;;  %1865 = vmatpush1.bf16.msra.mxu1 %v6639_v40  ;;  %v3268_v39 = vld [vmem:[#allocation11 + $0xc0] sm:$0xff]  ;;  %v3269_v40 = vld [vmem:[#allocation11 + $0xc8] sm:$0xff] }
 0x11f   :  { %1813 = vmatprep.subr.bf16.mxu0 %v6644_v41  ;;  %1866 = vmatprep.subr.bf16.mxu1 %v6647_v42  ;;  %v5851_v41 = vpack.c.bf16 %v3251_v35, %v3250_v34  ;;  %v5853_v42 = vpack.c.bf16 %v3269_v40, %v3268_v39  ;;  %v7127_v34 = vld [vmem:[#allocation7] sm:$0xff]  ;;  %v7129_v35 = vld [vmem:[#allocation8] sm:$0xff] }
 0x120   :  { %v7136_v40 = vld [vmem:[#allocation8 + $0x11] sm:$0xff] }
 0x122   :  { %1814 = vmatpush1.bf16.msra.mxu0 %v6642_v43  ;;  %1867 = vmatpush1.bf16.msra.mxu1 %v6645_v44  ;;  %v3252_v43 = vld [vmem:[#allocation11 + $0x40] sm:$0xff]  ;;  %v3253_v44 = vld [vmem:[#allocation11 + $0x48] sm:$0xff] }
 0x123   :  { %1815 = vmatprep.subr.bf16.mxu0 %v6650_v45  ;;  %1868 = vmatprep.subr.bf16.mxu1 %v6653_v46  ;;  %v3270_v45 = vld [vmem:[#allocation11 + $0xd0] sm:$0xff]  ;;  %v3271_v46 = vld [vmem:[#allocation11 + $0xd8] sm:$0xff] }
 0x126   :  { %1816 = vmatpush1.bf16.msra.mxu0 %v6648_v47  ;;  %1869 = vmatpush1.bf16.msra.mxu1 %v6651_v48  ;;  %v5855_v47 = vpack.c.bf16 %v3253_v44, %v3252_v43  ;;  %v5857_v48 = vpack.c.bf16 %v3271_v46, %v3270_v45  ;;  %v3315_v43 = vld [vmem:[#allocation11 + $0x238] sm:$0xff]  ;;  %v7138_v44 = vld [vmem:[#allocation8 + $0x55] sm:$0xff] }
 0x127   :  { %1817 = vmatprep.subr.bf16.mxu0 %v6656_v49  ;;  %1870 = vmatprep.subr.bf16.mxu1 %v6659_v50  ;;  %v3254_v49 = vld [vmem:[#allocation11 + $0x50] sm:$0xff]  ;;  %v3255_v50 = vld [vmem:[#allocation11 + $0x58] sm:$0xff]  ;;  %v3333_v45 = vld [vmem:[#allocation11 + $0x2c8] sm:$0xff] }
 0x128   :  { %v6705_v46 = vld [vmem:[#allocation2 + $0x10] ss:$8 sps:$4 sm:$0xff]  }
 0x12a   :  { %1818 = vmatpush1.bf16.msra.mxu0 %v6654_v52  ;;  %1871 = vmatpush1.bf16.msra.mxu1 %v6657_v37  ;;  %v6695_v52 = vld [vmem:[#allocation5 + $0x2e8] ss:$68 sps:$4 sm:$0xff]   ;;  %v3272_v37 = vld [vmem:[#allocation11 + $0xe0] sm:$0xff] }
 0x12b   :  { %1819 = vmatprep.subr.bf16.mxu0 %v6662_v53  ;;  %1872 = vmatprep.subr.bf16.mxu1 %v6665_v54  ;;  %v3273_v53 = vld [vmem:[#allocation11 + $0xe8] sm:$0xff]  ;;  %v5859_v54 = vpack.c.bf16 %v3255_v50, %v3254_v49 }
 0x12e   :  { %1820 = vmatpush1.bf16.msra.mxu0 %v6660_v55  ;;  %1873 = vmatpush1.bf16.msra.mxu1 %v6663_v57  ;;  %v5861_v55 = vpack.c.bf16 %v3273_v53, %v3272_v37  ;;  %v3256_v57 = vld [vmem:[#allocation11 + $0x60] sm:$0xff]  ;;  %v7154_v37 = vld [vmem:[#allocation8 + $0x22] sm:$0xff] }
 0x12f   :  { %1821 = vmatprep.subr.bf16.mxu0 %v6668_v58  ;;  %1874 = vmatprep.subr.bf16.mxu1 %v6671_v59  ;;  %v3257_v58 = vld [vmem:[#allocation11 + $0x68] sm:$0xff]  ;;  %v6696_v59 = vld [vmem:[#allocation5 + $0x370] ss:$68 sps:$4 sm:$0xff]   ;;  %v7156_v53 = vld [vmem:[#allocation8 + $0x66] sm:$0xff] }
 0x132   :  { %1822 = vmatpush1.bf16.msra.mxu0 %v6666_v60  ;;  %1875 = vmatpush1.bf16.msra.mxu1 %v6669_v62  ;;  %v3274_v60 = vld [vmem:[#allocation11 + $0xf0] sm:$0xff]  ;;  %v3275_v62 = vld [vmem:[#allocation11 + $0xf8] sm:$0xff] }
 0x133   :  { %1823 = vmatprep.subr.bf16.mxu0 %v6674_v63  ;;  %1876 = vmatprep.subr.bf16.mxu1 %v6677_v0  ;;  %v5863_v63 = vpack.c.bf16 %v3257_v58, %v3256_v57  ;;  %v5865_v0 = vpack.c.bf16 %v3275_v62, %v3274_v60  ;;  %v7166_v60 = vld [vmem:[#allocation10] sm:$0xff] }
 0x136   :  { %1824 = vmatpush1.bf16.msra.mxu0 %v6672_v1  ;;  %1877 = vmatpush1.bf16.msra.mxu1 %v6675_v2  ;;  %v3258_v1 = vld [vmem:[#allocation11 + $0x70] sm:$0xff]  ;;  %v3259_v2 = vld [vmem:[#allocation11 + $0x78] sm:$0xff] }
 0x137   :  { %1825 = vmatprep.subr.bf16.mxu0 %v6680_v3  ;;  %1878 = vmatprep.subr.bf16.mxu1 %v6683_v4  ;;  %v6697_v3 = vld [vmem:[#allocation5 + $0x3f8] ss:$68 sps:$4 sm:$0xff]  }
 0x138   :  { %v3292_v4 = vld [vmem:[#allocation11 + $0x180] sm:$0xff] }
 0x13a   :  { %1826 = vmatpush1.bf16.msra.mxu0 %v6678_v5  ;;  %1879 = vmatpush1.bf16.msra.mxu1 %v6681_v6  ;;  %v3293_v5 = vld [vmem:[#allocation11 + $0x188] sm:$0xff]  ;;  %v5867_v6 = vpack.c.bf16 %v3259_v2, %v3258_v1 }
 0x13b   :  { %1827 = vmatprep.subr.bf16.mxu0 %v6686_v7  ;;  %1880 = vmatprep.subr.bf16.mxu1 %v6689_v8  ;;  %v5869_v7 = vpack.c.bf16 %v3293_v5, %v3292_v4  ;;  %v6698_v8 = vld [vmem:[#allocation5 + $0x480] ss:$68 sps:$4 sm:$0xff]  }
 0x13e   :  { %1828 = vmatpush1.bf16.msra.mxu0 %v6684_v11  ;;  %1881 = vmatpush1.bf16.msra.mxu1 %v6687_v12  ;;  %v3324_v11 = vld [vmem:[#allocation11 + $0x280] sm:$0xff]  ;;  %v3325_v12 = vld [vmem:[#allocation11 + $0x288] sm:$0xff] }
 0x13f   :  { %1911 = vmatprep.subr.bf16.mxu0 %v6906_v19  ;;  %5838 = vmatprep.subr.bf16.mxu1 %v5837_v13  ;;  %v6701_v13 = vld [vmem:[#allocation5 + $0x618] ss:$68 sps:$4 sm:$0xff]   ;;  %v5901_v14 = vpack.c.bf16 %v3325_v12, %v3324_v11 }
 0x141   :  { %1838 = vmatmul.mubr.bf16.vlgmr.msra.gmra.mrb[24].mxu0 %v7058_v51  ;;  %1891 = vmatmul.mubr.bf16.vlgmr.msra.gmra.mrb[24].mxu1 %v7058_v51  ;;  %v3249_v51 = vld [vmem:[#allocation11 + $0x28] sm:$0xff] }
 0x142   :  { %1912 = vmatpush1.bf16.msra.mxu0 %v6690_v16  ;;  %5226 = vmatprep.mubr.msk.bf16.mxu0 %vm1480_vm0, %v7060_v56  ;;  %v5847_v33 = vpack.c.bf16 %v3249_v51, %v3248_v28  ;;  %v3309_v16 = vld [vmem:[#allocation11 + $0x208] sm:$0xff]  ;;  %v6704_v51 = vld [vmem:[#allocation2 + $0x14] ss:$8 sps:$4 sm:$0xff]  }
 0x143   :  { %1913 = vmatprep.subr.bf16.mxu0 %v6906_v19  ;;  %5228 = vmatprep.mubr.msk.bf16.mxu1 %vm1480_vm0, %v7060_v56  ;;  %v5849_v56 = vpack.c.bf16 %v3267_v31, %v3266_v30  ;;  %v3312_v30 = vld [vmem:[#allocation11 + $0x220] sm:$0xff]  ;;  %v3313_v31 = vld [vmem:[#allocation11 + $0x228] sm:$0xff] }
 0x144   :  { %5840 = vmatpush3.bf16.msra.mxu1 %v5839_v20  ;;  %v345_v20 = vlaneseq  ;;  %v5911_v39 = vpack.c.bf16 %v3313_v31, %v3312_v30 }
 0x145   :  { %5842 = vmatprep.subr.bf16.mxu1 %v5841_v21  ;;  %v5903_v21 = vpack.c.bf16 %v3309_v16, %v3308_v15 }
 0x146   :  { %1914 = vmatpush1.bf16.msra.mxu0 %v6691_v24  ;;  %v3311_v24 = vld [vmem:[#allocation11 + $0x218] sm:$0xff]  ;;  %v7121_v28 = vshrl.u32 %v345_v20, 7 }
 0x147   :  { %1915 = vmatprep.subr.bf16.mxu0 %v6906_v19 }
 0x148   :  { %5844 = vmatpush3.bf16.msra.mxu1 %v5843_v25  ;;  %v3328_v25 = vld [vmem:[#allocation11 + $0x2a0] sm:$0xff]  ;;  %v7175_v4 = vsub.s32 2, %v7121_v28  ;;  %v7178_v5 = vsub.s32 3, %v7121_v28 }
 0x149   :  { %1848 = vmatmul.mubr.bf16.gmra.mrb[28].mxu0 %v7066_v61  ;;  %1901 = vmatmul.mubr.bf16.gmra.mrb[28].mxu1 %v7066_v61  ;;  %v6694_v61 = vld [vmem:[#allocation5 + $0x260] ss:$68 sps:$4 sm:$0xff]  }
 0x14a   :  { %1916 = vmatpush1.bf16.msra.mxu0 %v6692_v29  ;;  %5229 = vmatprep.mubr.msk.bf16.mxu0 %vm1480_vm0, %v6702_v38  ;;  %v5909_v29 = vpack.c.bf16 %v3329_v26, %v3328_v25  ;;  %v7134_v38 = vsub.s32 1, %v7121_v28  ;;  %8588 = vst [vmem:[#allocation22_spill] sm:$0xff] %v7175_v4  ;;  %8589 = vst [vmem:[#allocation23_spill] sm:$0xff] %v7178_v5  ;;  %v7210_v26 = vrot.slane %v7127_v34, %v7178_v5 }
 0x14b   :  { %1917 = vmatprep.subr.bf16.mxu0 %v6906_v19  ;;  %5846 = vmatprep.subr.bf16.mxu1 %v5845_v32  ;;  %v3330_v32 = vld [vmem:[#allocation11 + $0x2b0] sm:$0xff]  ;;  %v2149_v30 = vrot.slane %v7136_v40, %v7175_v4  ;;  %v2742_v31 = vrot.slane %v7138_v44, %v7175_v4 }
 0x14c   :  { %5848 = vmatpush3.bf16.msra.mxu1 %v5847_v33  ;;  %v3331_v33 = vld [vmem:[#allocation11 + $0x2b8] sm:$0xff]  ;;  %8587 = vst [vmem:[#allocation21_spill] sm:$0xff] %v7134_v38  ;;  %v7150_v50 = vrot.slane %v7127_v34, %v7134_v38  ;;  %v2145_v1 = vrot.slane %v7136_v40, %v7134_v38  ;;  %v2738_v2 = vrot.slane %v7138_v44, %v7134_v38 }
 0x14d   :  { %5850 = vmatprep.subr.bf16.mxu1 %v5849_v56  ;;  %v7125_v56 = vsub.s32 0, %v7121_v28 }
 0x14e   :  { %1918 = vmatpush1.bf16.msra.mxu0 %v6693_v36  ;;  %v7131_v36 = vld [vmem:[#allocation8 + $0x44] sm:$0xff] }
 0x14f   :  { %1919 = vmatprep.subr.bf16.mxu0 %v6906_v19  ;;  %8586 = vst [vmem:[#allocation20_spill] sm:$0xff] %v7125_v56  ;;  %v2666_v49 = vrot.slane %v7131_v36, %v7125_v56  ;;  %v2670_v57 = vrot.slane %v7131_v36, %v7134_v38  ;;  %v2141_v58 = vrot.slane %v7136_v40, %v7125_v56 }
 0x150   :  { %5852 = vmatpush3.bf16.msra.mxu1 %v5851_v41  ;;  %v5913_v41 = vpack.c.bf16 %v3331_v33, %v3330_v32  ;;  %v2674_v25 = vrot.slane %v7131_v36, %v7175_v4  ;;  %v3320_v32 = vld [vmem:[#allocation11 + $0x260] sm:$0xff]  ;;  %v3321_v33 = vld [vmem:[#allocation11 + $0x268] sm:$0xff] }
 0x151   :  { %5854 = vmatprep.subr.bf16.mxu1 %v5853_v42  ;;  %v3314_v42 = vld [vmem:[#allocation11 + $0x230] sm:$0xff] }
 0x152   :  { %1920 = vmatpush1.bf16.msra.mxu0 %v6694_v61  ;;  %v3332_v61 = vld [vmem:[#allocation11 + $0x2c0] sm:$0xff] }
 0x153   :  { %1921 = vmatprep.subr.bf16.mxu0 %v6906_v19  ;;  %v5917_v62 = vpack.c.bf16 %v3333_v45, %v3332_v61  ;;  %v3338_v61 = vld [vmem:[#allocation11 + $0x2f0] sm:$0xff]  ;;  %v3339_v45 = vld [vmem:[#allocation11 + $0x2f8] sm:$0xff] }
 0x154   :  { %5856 = vmatpush3.bf16.msra.mxu1 %v5855_v47  ;;  %v7142_v47 = vrot.slane %v7127_v34, %v7125_v56  ;;  %v5929_v17 = vpack.c.bf16 %v3339_v45, %v3338_v61 }
 0x155   :  { %5858 = vmatprep.subr.bf16.mxu1 %v5857_v48  ;;  %v2073_v48 = vrot.slane %v7129_v35, %v7125_v56 }
 0x156   :  { %1922 = vmatpush1.bf16.msra.mxu0 %v6695_v52  ;;  %v2077_v52 = vrot.slane %v7129_v35, %v7134_v38 }
 0x157   :  { %1923 = vmatprep.subr.bf16.mxu0 %v6906_v19 }
 0x158   :  { %5860 = vmatpush3.bf16.msra.mxu1 %v5859_v54  ;;  %v7158_v54 = vld [vmem:[#allocation8 + $0x33] sm:$0xff] }
 0x159   :  { %5862 = vmatprep.subr.bf16.mxu1 %v5861_v55  ;;  %v5915_v55 = vpack.c.bf16 %v3315_v43, %v3314_v42 }
 0x15a   :  { %1924 = vmatpush1.bf16.msra.mxu0 %v6696_v59  ;;  %v2734_v59 = vrot.slane %v7138_v44, %v7125_v56 }
 0x15b   :  { %1925 = vmatprep.subr.bf16.mxu0 %v6906_v19 }
 0x15c   :  { %5864 = vmatpush3.bf16.msra.mxu1 %v5863_v63  ;;  %v3316_v63 = vld [vmem:[#allocation11 + $0x240] sm:$0xff] }
 0x15d   :  { %5866 = vmatprep.subr.bf16.mxu1 %v5865_v0  ;;  %v3317_v0 = vld [vmem:[#allocation11 + $0x248] sm:$0xff] }
 0x15e   :  { %1926 = vmatpush1.bf16.msra.mxu0 %v6697_v3  ;;  %v7172_v3 = vld [vmem:[#allocation8 + $0x77] sm:$0xff]  ;;  %v5919_v15 = vpack.c.bf16 %v3317_v0, %v3316_v63 }
 0x15f   :  { %1927 = vmatprep.subr.bf16.mxu0 %v6906_v19 }
 0x160   :  { %5868 = vmatpush3.bf16.msra.mxu1 %v5867_v6  ;;  %v3334_v6 = vld [vmem:[#allocation11 + $0x2d0] sm:$0xff] }
 0x161   :  { %5870 = vmatprep.subr.bf16.mxu1 %v5869_v7  ;;  %v3335_v7 = vld [vmem:[#allocation11 + $0x2d8] sm:$0xff] }
 0x162   :  { %1928 = vmatpush1.bf16.msra.mxu0 %v6698_v8  ;;  %v2209_v8 = vrot.slane %v7154_v37, %v7125_v56  ;;  %v5921_v20 = vpack.c.bf16 %v3335_v7, %v3334_v6  ;;  %v7234_v6 = vld [vmem:[#allocation11 + $0x278] sm:$0xff]  ;;  %v7236_v7 = vld [vmem:[#allocation11 + $0x480] sm:$0xff] }
 0x163   :  { %1929 = vmatprep.subr.bf16.mxu0 %v6906_v19 }
 0x166   :  { %1930 = vmatpush1.bf16.msra.mxu0 %v6699_v9  ;;  %v2802_v9 = vrot.slane %v7156_v53, %v7125_v56 }
 0x167   :  { %1931 = vmatprep.subr.bf16.mxu0 %v6906_v19 }
 0x16a   :  { %1932 = vmatpush1.bf16.msra.mxu0 %v6700_v10  ;;  %v2213_v10 = vrot.slane %v7154_v37, %v7134_v38 }
 0x16b   :  { %1933 = vmatprep.subr.bf16.mxu0 %v6906_v19  ;;  %v5907_v19 = vpack.c.bf16 %v3311_v24, %v3310_v23  ;;  %v7202_v23 = vrot.slane %v7127_v34, %v7175_v4  ;;  %v2081_v24 = vrot.slane %v7129_v35, %v7175_v4 }
 0x16e   :  { %1934 = vmatpush1.bf16.msra.mxu0 %v6701_v13  ;;  %v5927_v13 = vpack.c.bf16 %v3321_v33, %v3320_v32 }
 0x16f   :  { %5902 = vmatprep.subr.bf16.mxu0 %v5901_v14 }
 0x171   :  { %1944 = vmatmul.mubr.bf16.vlgmr.msra.gmra.mrb[32].mxu0 %v6703_v27  ;;  %v3336_v27 = vld [vmem:[#allocation11 + $0x2e0] sm:$0xff] }
 0x172   :  { %5230 = vmatprep.mubr.msk.bf16.mxu0 %vm1480_vm0, %v6704_v51  ;;  %5904 = vmatpush3.bf16.msra.mxu0 %v5903_v21  ;;  %v3318_v21 = vld [vmem:[#allocation11 + $0x250] sm:$0xff]  ;;  %v3337_v51 = vld [vmem:[#allocation11 + $0x2e8] sm:$0xff] }
 0x173   :  { %5906 = vmatprep.subr.bf16.mxu0 %v5905_v22  ;;  %v3319_v22 = vld [vmem:[#allocation11 + $0x258] sm:$0xff]  ;;  %v5925_v0 = vpack.c.bf16 %v3337_v51, %v3336_v27 }
 0x174   :  { %v5923_v43 = vpack.c.bf16 %v3319_v22, %v3318_v21 }
 0x176   :  { %5908 = vmatpush3.bf16.msra.mxu0 %v5907_v19  ;;  %v2085_v19 = vrot.slane %v7129_v35, %v7178_v5 }
 0x177   :  { %5910 = vmatprep.subr.bf16.mxu0 %v5909_v29  ;;  %v2678_v29 = vrot.slane %v7131_v36, %v7178_v5 }
 0x179   :  { %1952 = vmatmul.mubr.bf16.gmra.mrb[36].mxu0 %v6705_v46  ;;  %v7226_v46 = vld [vmem:[#allocation11 + $0x270] sm:$0xff] }
 0x17a   :  { %5912 = vmatpush3.bf16.msra.mxu0 %v5911_v39  ;;  %v2153_v39 = vrot.slane %v7136_v40, %v7178_v5 }
 0x17b   :  { %5914 = vmatprep.subr.bf16.mxu0 %v5913_v41  ;;  %v2746_v41 = vrot.slane %v7138_v44, %v7178_v5 }
 0x17e   :  { %5916 = vmatpush3.bf16.msra.mxu0 %v5915_v55 }
 0x17f   :  { %5918 = vmatprep.subr.bf16.mxu0 %v5917_v62  ;;  %v5931_v62 = vpack.c.bf16 %v7234_v6, %v7226_v46 }
 0x182   :  { %5920 = vmatpush3.bf16.msra.mxu0 %v5919_v15  ;;  %v7238_v15 = vld [vmem:[#allocation11 + $0x488] sm:$0xff] }
 0x183   :  { %5922 = vmatprep.subr.bf16.mxu0 %v5921_v20  ;;  %v5965_v20 = vpack.c.bf16 %v7238_v15, %v7236_v7 }
 0x184   :  { %v1521_v21 = vpop.f32.mrb[0].mxu0  ;;  %v1574_v22 = vpop.f32.mrb[0].mxu1 }
 0x185   :  { %v1522_v27 = vadd.f32 %v1521_v21, %v7142_v47  ;;  %v1523_v51 = vpop.f32.mrb[1].mxu0  ;;  %v1575_v63 = vadd.f32 %v1574_v22, %v7202_v23  ;;  %v1576_v42 = vpop.f32.mrb[1].mxu1 }
 0x186   :  { %v1524_v14 = vadd.f32 %v1523_v51, %v7150_v50  ;;  %v1525_v18 = vpop.f32.mrb[2].mxu0  ;;  %v1577_v16 = vadd.f32 %v1576_v42, %v7210_v26  ;;  %v1578_v55 = vpop.f32.mrb[2].mxu1  ;;  %5924 = vmatpush3.bf16.msra.mxu0 %v5923_v43 }
 0x187   :  { %v1960_v21 = vmax.f32 %v1522_v27, 0.0  ;;  %v1526_v12 = vadd.f32 %v1525_v18, %v7142_v47  ;;  %v1527_v22 = vpop.f32.mrb[3].mxu0  ;;  %v1962_v11 = vmax.f32 %v1575_v63, 0.0  ;;  %v1579_v32 = vadd.f32 %v1578_v55, %v7202_v23  ;;  %v1580_v33 = vpop.f32.mrb[3].mxu1  ;;  %5926 = vmatprep.subr.bf16.mxu0 %v5925_v0 }
 0x188   :  { %v1961_v61 = vmax.f32 %v1524_v14, 0.0  ;;  %v1528_v42 = vadd.f32 %v1527_v22, %v7150_v50  ;;  %v1963_v45 = vmax.f32 %v1577_v16, 0.0  ;;  %v1581_v43 = vadd.f32 %v1580_v33, %v7210_v26 }
 0x189   :  { %v2410_v46 = vmul.f32 %v2073_v48, %v1960_v21  ;;  %v3003_v18 = vmul.f32 %v2666_v49, %v1960_v21  ;;  %v1977_v6 = vmax.f32 %v1526_v12, 0.0  ;;  %v2412_v63 = vmul.f32 %v2081_v24, %v1962_v11 }
 0x18a   :  { %v2411_v55 = vmul.f32 %v2077_v52, %v1961_v61  ;;  %v3004_v14 = vmul.f32 %v2670_v57, %v1961_v61  ;;  %v1978_v16 = vmax.f32 %v1528_v42, 0.0  ;;  %v3005_v0 = vmul.f32 %v2674_v25, %v1962_v11  ;;  %5928 = vmatpush3.bf16.msra.mxu0 %v5927_v13 }
 0x18b   :  { %v2427_v48 = vmul.f32 %v2141_v58, %v1977_v6  ;;  %v3020_v49 = vmul.f32 %v2734_v59, %v1977_v6  ;;  %v2413_v52 = vmul.f32 %v2085_v19, %v1963_v45  ;;  %v3006_v57 = vmul.f32 %v2678_v29, %v1963_v45  ;;  %5930 = vmatprep.subr.bf16.mxu0 %v5929_v17 }
 0x18c   :  { %v2428_v11 = vmul.f32 %v2145_v1, %v1978_v16  ;;  %v3021_v58 = vmul.f32 %v2738_v2, %v1978_v16  ;;  %v1531_v12 = vpop.f32.mrb[4].mxu0  ;;  %v1979_v13 = vmax.f32 %v1579_v32, 0.0  ;;  %v1980_v59 = vmax.f32 %v1581_v43, 0.0  ;;  %v1584_v24 = vpop.f32.mrb[4].mxu1 }
 0x18d   :  { %v2478_v25 = vadd.f32 %v2427_v48, %v2410_v46  ;;  %v3071_v7 = vadd.f32 %v3020_v49, %v3003_v18  ;;  %v1532_v19 = vadd.f32 %v1531_v12, %v7142_v47  ;;  %v1533_v15 = vpop.f32.mrb[5].mxu0  ;;  %v1585_v29 = vadd.f32 %v1584_v24, %v7202_v23  ;;  %v1586_v17 = vpop.f32.mrb[5].mxu1  ;;  %v3276_v24 = vld [vmem:[#allocation11 + $0x100] sm:$0xff] }
 0x18e   :  { %v2481_v27 = vadd.f32 %v2428_v11, %v2411_v55  ;;  %v3074_v51 = vadd.f32 %v3021_v58, %v3004_v14  ;;  %v1534_v1 = vadd.f32 %v1533_v15, %v7150_v50  ;;  %v1535_v21 = vpop.f32.mrb[6].mxu0  ;;  %v2429_v2 = vmul.f32 %v2149_v30, %v1979_v13  ;;  %v1588_v22 = vpop.f32.mrb[6].mxu1  ;;  %5932 = vmatpush3.bf16.msra.mxu0 %v5931_v62 }
 0x18f   :  { %v1994_v32 = vmax.f32 %v1532_v19, 0.0  ;;  %v1536_v33 = vadd.f32 %v1535_v21, %v7142_v47  ;;  %v1537_v61 = vpop.f32.mrb[7].mxu0  ;;  %v3022_v42 = vmul.f32 %v2742_v31, %v1979_v13  ;;  %v2430_v45 = vmul.f32 %v2153_v39, %v1980_v59  ;;  %v1590_v43 = vpop.f32.mrb[7].mxu1  ;;  %5966 = vmatprep.subr.bf16.mxu0 %v5965_v20 }
 0x190   :  { %v1995_v46 = vmax.f32 %v1534_v1, 0.0  ;;  %v1538_v18 = vadd.f32 %v1537_v61, %v7150_v50  ;;  %v2484_v30 = vadd.f32 %v2429_v2, %v2412_v63  ;;  %v3023_v62 = vmul.f32 %v2746_v41, %v1980_v59 }
 0x191   :  { %v2444_v47 = vmul.f32 %v2209_v8, %v1994_v32  ;;  %v3037_v31 = vmul.f32 %v2802_v9, %v1994_v32  ;;  %v2011_v6 = vmax.f32 %v1536_v33, 0.0  ;;  %v3077_v39 = vadd.f32 %v3022_v42, %v3005_v0 }
 0x192   :  { %v2445_v20 = vmul.f32 %v2213_v10, %v1995_v46  ;;  %v8590_v50 = vrot.slane %v7156_v53, %v7134_v38  ;;  %v2012_v55 = vmax.f32 %v1538_v18, 0.0  ;;  %v2487_v41 = vadd.f32 %v2430_v45, %v2413_v52 }
 0x193   :  { %v2479_v14 = vadd.f32 %v2478_v25, %v2444_v47  ;;  %v3072_v16 = vadd.f32 %v3071_v7, %v3037_v31  ;;  %v8591_v8 = vrot.slane %v7158_v54, %v7125_v56  ;;  %v8592_v9 = vrot.slane %v7172_v3, %v7125_v56  ;;  %v3277_v25 = vld [vmem:[#allocation11 + $0x108] sm:$0xff] }
 0x194   :  { %v3038_v63 = vmul.f32 %v8590_v50, %v1995_v46  ;;  %v2482_v49 = vadd.f32 %v2481_v27, %v2445_v20  ;;  %v8593_v10 = vrot.slane %v7158_v54, %v7134_v38  ;;  %v8594_v12 = vrot.slane %v7172_v3, %v7134_v38  ;;  %v3294_v27 = vld [vmem:[#allocation11 + $0x190] sm:$0xff] }
 0x195   :  { %v2461_v48 = vmul.f32 %v8591_v8, %v2011_v6  ;;  %v3054_v0 = vmul.f32 %v8592_v9, %v2011_v6  ;;  %v3080_v7 = vadd.f32 %v3023_v62, %v3006_v57  ;;  %v1996_v19 = vmax.f32 %v1585_v29, 0.0  ;;  %v3278_v8 = vld [vmem:[#allocation11 + $0x110] sm:$0xff] }
 0x196   :  { %v3075_v11 = vadd.f32 %v3074_v51, %v3038_v63  ;;  %v2462_v58 = vmul.f32 %v8593_v10, %v2012_v55  ;;  %v3055_v52 = vmul.f32 %v8594_v12, %v2012_v55  ;;  %v3295_v51 = vld [vmem:[#allocation11 + $0x198] sm:$0xff]  ;;  %v1587_v21 = vadd.f32 %v1586_v17, %v7210_v26  ;;  %v3296_v10 = vld [vmem:[#allocation11 + $0x1a0] sm:$0xff] }
 0x197   :  { %v2480_v13 = vadd.f32 %v2479_v14, %v2461_v48  ;;  %v7334_v59 = vadd.f32 %v3072_v16, %v3054_v0  ;;  %v1589_v2 = vadd.f32 %v1588_v22, %v7202_v23  ;;  %v8597_v32 = vrot.slane %v7166_v60, %v7125_v56  ;;  %v3279_v48 = vld [vmem:[#allocation11 + $0x118] sm:$0xff] }
 0x198   :  { %v2483_v15 = vadd.f32 %v2482_v49, %v2462_v58  ;;  %v7336_v1 = vadd.f32 %v3075_v11, %v3055_v52  ;;  %v8598_v61 = vrot.slane %v7154_v37, %v7175_v4  ;;  %v8599_v57 = vrot.slane %v7156_v53, %v7175_v4  ;;  %v3297_v58 = vld [vmem:[#allocation11 + $0x1a8] sm:$0xff] }
 0x199   :  { %8595 = vst [vmem:[#allocation24_spill] sm:$0xff] %v7334_v59  ;;  %v2617_v33 = vadd.f32 %v8597_v32, %v2480_v13  ;;  %v1591_v45 = vadd.f32 %v1590_v43, %v7210_v26  ;;  %v8600_v46 = vrot.slane %v7166_v60, %v7134_v38  ;;  %v5871_v18 = vpack.c.bf16 %v3277_v25, %v3276_v24  ;;  %v3298_v32 = vld [vmem:[#allocation11 + $0x1b0] sm:$0xff] }
 0x19a   :  { %8596 = vst [vmem:[#allocation25_spill] sm:$0xff] %v7336_v1  ;;  %v2446_v42 = vmul.f32 %v8598_v61, %v1996_v19  ;;  %v3039_v29 = vmul.f32 %v8599_v57, %v1996_v19  ;;  %v1997_v23 = vmax.f32 %v1587_v21, 0.0  ;;  %v2013_v22 = vmax.f32 %v1589_v2, 0.0  ;;  %v3280_v21 = vld [vmem:[#allocation11 + $0x120] sm:$0xff]  ;;  %v3281_v2 = vld [vmem:[#allocation11 + $0x128] sm:$0xff]  ;;  %v3283_v61 = vld [vmem:[#allocation11 + $0x138] sm:$0xff] }
 0x19b   :  { %v2618_v17 = vadd.f32 %v8600_v46, %v2483_v15  ;;  %v5873_v62 = vpack.c.bf16 %v3295_v51, %v3294_v27  ;;  %v2014_v6 = vmax.f32 %v1591_v45, 0.0  ;;  %v8601_v50 = vrot.slane %v7154_v37, %v7178_v5  ;;  %v3301_v57 = vld [vmem:[#allocation11 + $0x1c8] sm:$0xff]  ;;  %v7379_v45 = vld [vmem:[#allocation11 + $0x140] sm:$0xff] }
 0x19c   :  { %v2485_v47 = vadd.f32 %v2484_v30, %v2446_v42  ;;  %v3078_v31 = vadd.f32 %v3077_v39, %v3039_v29  ;;  %v8602_v55 = vrot.slane %v7156_v53, %v7178_v5  ;;  %v8603_v43 = vrot.slane %v7158_v54, %v7175_v4  ;;  %v3300_v42 = vld [vmem:[#allocation11 + $0x1c0] sm:$0xff]  ;;  %v7381_v46 = vld [vmem:[#allocation11 + $0x148] sm:$0xff] }
 0x19d   :  { %v2635_v20 = vmax.f32 %v2618_v17, 0.0  ;;  %v2447_v63 = vmul.f32 %v8601_v50, %v1997_v23  ;;  %v2634_v16 = vmax.f32 %v2617_v33, 0.0  ;;  %v8604_v30 = vrot.slane %v7172_v3, %v7175_v4  ;;  %v3282_v33 = vld [vmem:[#allocation11 + $0x130] sm:$0xff] }
 0x19e   :  { %v3040_v26 = vmul.f32 %v8602_v55, %v1997_v23  ;;  %v2463_v14 = vmul.f32 %v8603_v43, %v2013_v22  ;;  %v8605_v9 = vrot.slane %v7158_v54, %v7178_v5  ;;  %v8606_v49 = vrot.slane %v7172_v3, %v7178_v5  ;;  %v7383_v17 = vld [vmem:[#allocation11 + $0x1d0] sm:$0xff]  ;;  %v7403_v55 = vld [vmem:[#allocation11 + $0x168] sm:$0xff]  ;;  %v7407_v43 = vld [vmem:[#allocation11 + $0x1f8] sm:$0xff] }
 0x19f   :  { %v3056_v39 = vmul.f32 %v8604_v30, %v2013_v22  ;;  %3859 = vmatprep.mubr.f32.mxu1 %v2635_v20  ;;  %v2488_v12 = vadd.f32 %v2487_v41, %v2447_v63  ;;  %v2547_v24 = vrot.slane %v7166_v60, %v7178_v5  ;;  %v5875_v19 = vpack.c.bf16 %v3279_v48, %v3278_v8  ;;  %v3299_v41 = vld [vmem:[#allocation11 + $0x1b8] sm:$0xff]  ;;  %v7396_v20 = vld [vmem:[#allocation11 + $0x1e8] sm:$0xff]  ;;  %v7401_v63 = vld [vmem:[#allocation11 + $0x160] sm:$0xff] }
 0x1a0   :  { %v2464_v0 = vmul.f32 %v8605_v9, %v2014_v6  ;;  %v3057_v11 = vmul.f32 %v8606_v49, %v2014_v6  ;;  %v3081_v52 = vadd.f32 %v3080_v7, %v3040_v26  ;;  %v7371_v13 = vadd.f32 %v2485_v47, %v2463_v14  ;;  %3860 = vmatmul.mubr.f32.vlgmr.msra.gmra.mrb[32].mxu1 %v2634_v16  ;;  %v7385_v22 = vld [vmem:[#allocation11 + $0x1d8] sm:$0xff]  ;;  %v7394_v6 = vld [vmem:[#allocation11 + $0x1e0] sm:$0xff]  ;;  %v7405_v26 = vld [vmem:[#allocation11 + $0x1f0] sm:$0xff] }
 0x1a1   :  { %v7375_v25 = vadd.f32 %v3078_v31, %v3056_v39  ;;  %5872 = vmatpush3.bf16.msra.mxu1 %v5871_v18  ;;  %v5877_v51 = vpack.c.bf16 %v3297_v58, %v3296_v10  ;;  %v5879_v29 = vpack.c.bf16 %v3281_v2, %v3280_v21  ;;  %v5881_v23 = vpack.c.bf16 %v3299_v41, %v3298_v32  ;;  %v7389_v47 = vld [vmem:[#allocation11 + $0x158] sm:$0xff]  ;;  %v7413_v30 = vld [vmem:[#allocation11 + $0x170] sm:$0xff]  ;;  %v7427_v10 = vld [vmem:[#allocation11 + $0x380] sm:$0xff] }
 0x1a2   :  { %v2489_v15 = vadd.f32 %v2488_v12, %v2464_v0  ;;  %v7377_v27 = vadd.f32 %v3081_v52, %v3057_v11  ;;  %5874 = vmatprep.subr.bf16.mxu1 %v5873_v62  ;;  %v7387_v62 = vld [vmem:[#allocation11 + $0x150] sm:$0xff]  ;;  %v7392_v31 = vsub.s32 4, %v7121_v28  ;;  %v7399_v50 = vsub.s32 5, %v7121_v28  ;;  %v7415_v39 = vld [vmem:[#allocation11 + $0x178] sm:$0xff]  ;;  %v7429_v58 = vld [vmem:[#allocation11 + $0x388] sm:$0xff] }
 0x1a3   :  { %8607 = vst [vmem:[#allocation26_spill] sm:$0xff] %v7375_v25  ;;  %v5883_v14 = vpack.c.bf16 %v3283_v61, %v3282_v33  ;;  %v5885_v16 = vpack.c.bf16 %v3301_v57, %v3300_v42  ;;  %v2543_v8 = vrot.slane %v7166_v60, %v7175_v4  ;;  %v5887_v48 = vpack.c.bf16 %v7381_v46, %v7379_v45  ;;  %v7431_v12 = vld [vmem:[#allocation11 + $0x300] sm:$0xff]  ;;  %v7445_v21 = vld [vmem:[#allocation11 + $0x390] sm:$0xff]  ;;  %v7447_v2 = vld [vmem:[#allocation11 + $0x398] sm:$0xff] }
 0x1a4   :  { %8608 = vst [vmem:[#allocation27_spill] sm:$0xff] %v7377_v27  ;;  %v2620_v7 = vadd.f32 %v2547_v24, %v2489_v15  ;;  %8609 = vst [vmem:[#allocation28_spill] sm:$0xff] %v7399_v50  ;;  %v5889_v9 = vpack.c.bf16 %v7385_v22, %v7383_v17  ;;  %v5891_v0 = vpack.c.bf16 %v7389_v47, %v7387_v62  ;;  %v7457_v61 = vld [vmem:[#allocation11 + $0x310] sm:$0xff]  ;;  %v7467_v46 = vld [vmem:[#allocation11 + $0x318] sm:$0xff]  ;;  %v7492_v22 = vsub.s32 6, %v7121_v28 }
 0x1a5   :  { %5876 = vmatpush3.bf16.msra.mxu1 %v5875_v19  ;;  %v7423_v49 = vrot.slane %v7127_v34, %v7392_v31  ;;  %v7437_v24 = vrot.slane %v7127_v34, %v7399_v50  ;;  %v7469_v17 = vld [vmem:[#allocation11 + $0x3a0] sm:$0xff]  ;;  %v7483_v57 = vld [vmem:[#allocation11 + $0x328] sm:$0xff]  ;;  %v7485_v42 = vld [vmem:[#allocation11 + $0x3b0] sm:$0xff]  ;;  %v8612_v27 = vpack.c.bf16 %v7396_v20, %v7394_v6  ;;  %v8614_v20 = vpack.c.bf16 %v7403_v55, %v7401_v63 }
 0x1a6   :  { %v2637_v18 = vmax.f32 %v2620_v7, 0.0  ;;  %5878 = vmatprep.subr.bf16.mxu1 %v5877_v51  ;;  %v7443_v51 = vld [vmem:[#allocation11 + $0x308] sm:$0xff]  ;;  %v7481_v45 = vld [vmem:[#allocation11 + $0x320] sm:$0xff]  ;;  %8610 = vst [vmem:[#allocation29_spill] sm:$0xff] %v7492_v22  ;;  %v7497_v33 = vld [vmem:[#allocation11 + $0x3b8] sm:$0xff]  ;;  %v7529_v52 = vrot.slane %v7127_v34, %v7492_v22  ;;  %v2690_v41 = vrot.slane %v7131_v36, %v7492_v22 }
 0x1a7   :  { %v7501_v7 = vld [vmem:[#allocation11 + $0x338] sm:$0xff]  ;;  %v7553_v19 = vld [vmem:[#allocation11 + $0x348] sm:$0xff] }
 0x1a8   :  { %3929 = vmatprep.mubr.f32.mxu1 %v2637_v18  ;;  %v7471_v18 = vld [vmem:[#allocation11 + $0x3a8] sm:$0xff]  ;;  %v7583_v32 = vld [vmem:[#allocation11 + $0x3d8] sm:$0xff] }
 0x1a9   :  { %5880 = vmatpush3.bf16.msra.mxu1 %v5879_v29  ;;  %v7499_v29 = vld [vmem:[#allocation11 + $0x330] sm:$0xff] }
 0x1aa   :  { %5882 = vmatprep.subr.bf16.mxu1 %v5881_v23  ;;  %v7539_v23 = vld [vmem:[#allocation11 + $0x3c0] sm:$0xff] }
 0x1ad   :  { %5884 = vmatpush3.bf16.msra.mxu1 %v5883_v14  ;;  %v7495_v14 = vsub.s32 7, %v7121_v28  ;;  %v2097_v28 = vrot.slane %v7129_v35, %v7492_v22 }
 0x1ae   :  { %5886 = vmatprep.subr.bf16.mxu1 %v5885_v16  ;;  %v7559_v16 = vadd.f32 %v2543_v8, %v7371_v13 }
 0x1af   :  { %8611 = vst [vmem:[#allocation30_spill] sm:$0xff] %v7495_v14  ;;  %v7533_v15 = vrot.slane %v7127_v34, %v7495_v14 }
 0x1b0   :  { %v2636_v47 = vmax.f32 %v7559_v16, 0.0 }
 0x1b1   :  { %5888 = vmatpush3.bf16.msra.mxu1 %v5887_v48  ;;  %v7541_v48 = vld [vmem:[#allocation11 + $0x3c8] sm:$0xff] }
 0x1b2   :  { %5890 = vmatprep.subr.bf16.mxu1 %v5889_v9  ;;  %v7551_v9 = vld [vmem:[#allocation11 + $0x340] sm:$0xff] }
 0x1b4   :  { %v1627_v11 = vpop.f32.mrb[8].mxu0  ;;  %v1680_v34 = vpop.f32.mrb[8].mxu1 }
 0x1b5   :  { %5892 = vmatpush3.bf16.msra.mxu1 %v5891_v0  ;;  %v7581_v0 = vld [vmem:[#allocation11 + $0x3d0] sm:$0xff]  ;;  %v1628_v8 = vadd.f32 %v1627_v11, %v7423_v49  ;;  %v1629_v62 = vpop.f32.mrb[9].mxu0  ;;  %v1681_v13 = vadd.f32 %v1680_v34, %v7529_v52  ;;  %v1682_v1 = vpop.f32.mrb[9].mxu1 }
 0x1b6   :  { %5894 = vmatprep.subr.bf16.mxu1 %v8612_v27  ;;  %8613 = vst [vmem:[#allocation31_spill] sm:$0xff] %v7581_v0  ;;  %v1630_v6 = vadd.f32 %v1629_v62, %v7437_v24  ;;  %v1631_v59 = vpop.f32.mrb[10].mxu0  ;;  %v1683_v11 = vadd.f32 %v1682_v1, %v7533_v15  ;;  %v1684_v4 = vpop.f32.mrb[10].mxu1  ;;  %v8615_v62 = vpack.c.bf16 %v7407_v43, %v7405_v26 }
 0x1b7   :  { %v1964_v5 = vmax.f32 %v1628_v8, 0.0  ;;  %v1632_v25 = vadd.f32 %v1631_v59, %v7423_v49  ;;  %v1633_v38 = vpop.f32.mrb[11].mxu0  ;;  %v1966_v27 = vmax.f32 %v1681_v13, 0.0  ;;  %v1685_v63 = vadd.f32 %v1684_v4, %v7529_v52  ;;  %v1686_v55 = vpop.f32.mrb[11].mxu1 }
 0x1b8   :  { %v1634_v16 = vadd.f32 %v1633_v38, %v7437_v24  ;;  %v1967_v1 = vmax.f32 %v1683_v11, 0.0  ;;  %v1687_v56 = vadd.f32 %v1686_v55, %v7533_v15  ;;  %v8616_v8 = vrot.slane %v7129_v35, %v7392_v31 }
 0x1b9   :  { %5896 = vmatpush3.bf16.msra.mxu1 %v8614_v20  ;;  %v1965_v20 = vmax.f32 %v1630_v6, 0.0  ;;  %v8617_v59 = vrot.slane %v7131_v36, %v7392_v31  ;;  %v1981_v26 = vmax.f32 %v1632_v25, 0.0  ;;  %v2416_v43 = vmul.f32 %v2097_v28, %v1966_v27 }
 0x1ba   :  { %5898 = vmatprep.subr.bf16.mxu1 %v8615_v62  ;;  %v2414_v34 = vmul.f32 %v8616_v8, %v1964_v5  ;;  %v8618_v4 = vrot.slane %v7129_v35, %v7399_v50  ;;  %v8619_v38 = vrot.slane %v7131_v36, %v7399_v50  ;;  %v1982_v11 = vmax.f32 %v1634_v16, 0.0 }
 0x1bb   :  { %v3007_v0 = vmul.f32 %v8617_v59, %v1964_v5  ;;  %v8620_v62 = vpack.c.bf16 %v7415_v39, %v7413_v30  ;;  %v3009_v55 = vmul.f32 %v2690_v41, %v1966_v27  ;;  %v8621_v8 = vrot.slane %v7136_v40, %v7392_v31 }
 0x1bc   :  { %v2415_v13 = vmul.f32 %v8618_v4, %v1965_v20  ;;  %v3008_v6 = vmul.f32 %v8619_v38, %v1965_v20  ;;  %v8622_v25 = vrot.slane %v7138_v44, %v7392_v31  ;;  %v8623_v59 = vpack.c.bf16 %v7429_v58, %v7427_v10  ;;  %v1637_v38 = vpop.f32.mrb[12].mxu0  ;;  %v1690_v58 = vpop.f32.mrb[12].mxu1 }
 0x1bd   :  { %5900 = vmatpush3.bf16.msra.mxu1 %v8620_v62  ;;  %v2431_v5 = vmul.f32 %v8621_v8, %v1981_v26  ;;  %v8624_v20 = vrot.slane %v7129_v35, %v7495_v14  ;;  %v8625_v30 = vrot.slane %v7131_v36, %v7495_v14  ;;  %v8626_v41 = vrot.slane %v7136_v40, %v7399_v50 }
 0x1be   :  { %v3024_v28 = vmul.f32 %v8622_v25, %v1981_v26  ;;  %5934 = vmatprep.subr.bf16.mxu1 %v8623_v59  ;;  %v8627_v4 = vrot.slane %v7138_v44, %v7399_v50  ;;  %v1983_v62 = vmax.f32 %v1685_v63, 0.0  ;;  %v1984_v10 = vmax.f32 %v1687_v56, 0.0  ;;  %v1639_v59 = vpop.f32.mrb[13].mxu0 }
 0x1bf   :  { %v2417_v16 = vmul.f32 %v8624_v20, %v1967_v1  ;;  %v3010_v39 = vmul.f32 %v8625_v30, %v1967_v1  ;;  %v2432_v27 = vmul.f32 %v8626_v41, %v1982_v11  ;;  %v2490_v8 = vadd.f32 %v2431_v5, %v2414_v34  ;;  %v1692_v1 = vpop.f32.mrb[13].mxu1  ;;  %v1641_v63 = vpop.f32.mrb[14].mxu0 }
 0x1c0   :  { %v3025_v26 = vmul.f32 %v8627_v4, %v1982_v11  ;;  %v3083_v25 = vadd.f32 %v3024_v28, %v3007_v0  ;;  %v1638_v35 = vadd.f32 %v1637_v38, %v7423_v49  ;;  %3930 = vmatmul.mubr.f32.vlgmr.msra.gmra.mrb[34].mxu1 %v2636_v47  ;;  %v1691_v36 = vadd.f32 %v1690_v58, %v7529_v52  ;;  %v1694_v34 = vpop.f32.mrb[14].mxu1  ;;  %v1643_v28 = vpop.f32.mrb[15].mxu0 }
 0x1c1   :  { %v2493_v20 = vadd.f32 %v2432_v27, %v2415_v13  ;;  %v1640_v41 = vadd.f32 %v1639_v59, %v7437_v24  ;;  %v8628_v11 = vpack.c.bf16 %v7443_v51, %v7431_v12  ;;  %v8629_v56 = vrot.slane %v7136_v40, %v7492_v22  ;;  %v1696_v4 = vpop.f32.mrb[15].mxu1 }
 0x1c2   :  { %v3086_v30 = vadd.f32 %v3025_v26, %v3008_v6  ;;  %v1998_v5 = vmax.f32 %v1638_v35, 0.0  ;;  %v1642_v47 = vadd.f32 %v1641_v63, %v7423_v49  ;;  %v8630_v13 = vpack.c.bf16 %v7447_v2, %v7445_v21 }
 0x1c3   :  { %5936 = vmatpush3.bf16.msra.mxu1 %v8628_v11  ;;  %v2433_v0 = vmul.f32 %v8629_v56, %v1983_v62  ;;  %v8631_v6 = vrot.slane %v7138_v44, %v7492_v22  ;;  %v8632_v12 = vrot.slane %v7136_v40, %v7495_v14  ;;  %v1999_v26 = vmax.f32 %v1640_v41, 0.0 }
 0x1c4   :  { %5938 = vmatprep.subr.bf16.mxu1 %v8630_v13  ;;  %v1644_v38 = vadd.f32 %v1643_v28, %v7437_v24  ;;  %v8633_v49 = vrot.slane %v7138_v44, %v7495_v14  ;;  %v8634_v21 = vrot.slane %v7154_v37, %v7392_v31  ;;  %v2015_v11 = vmax.f32 %v1642_v47, 0.0 }
 0x1c5   :  { %v3026_v27 = vmul.f32 %v8631_v6, %v1983_v62  ;;  %v2434_v51 = vmul.f32 %v8632_v12, %v1984_v10  ;;  %v2496_v58 = vadd.f32 %v2433_v0, %v2416_v43  ;;  %v8635_v62 = vrot.slane %v7156_v53, %v7392_v31 }
 0x1c6   :  { %v3027_v35 = vmul.f32 %v8633_v49, %v1984_v10  ;;  %v2448_v2 = vmul.f32 %v8634_v21, %v1998_v5  ;;  %v8636_v41 = vrot.slane %v7154_v37, %v7399_v50  ;;  %v8637_v24 = vrot.slane %v7156_v53, %v7399_v50  ;;  %v3372_v49 = vld [vmem:[#allocation11 + $0x400] sm:$0xff]  ;;  %v3373_v21 = vld [vmem:[#allocation11 + $0x408] sm:$0xff] }
 0x1c7   :  { %v3041_v59 = vmul.f32 %v8635_v62, %v1998_v5  ;;  %v3089_v40 = vadd.f32 %v3026_v27, %v3009_v55  ;;  %v2016_v44 = vmax.f32 %v1644_v38, 0.0  ;;  %v8638_v10 = vpack.c.bf16 %v7467_v46, %v7457_v61  ;;  %v3390_v62 = vld [vmem:[#allocation11 + $0x490] sm:$0xff] }
 0x1c8   :  { %v2449_v63 = vmul.f32 %v8636_v41, %v1999_v26  ;;  %v3042_v43 = vmul.f32 %v8637_v24, %v1999_v26  ;;  %v2499_v56 = vadd.f32 %v2434_v51, %v2417_v16  ;;  %v2491_v0 = vadd.f32 %v2490_v8, %v2448_v2 }
 0x1c9   :  { %5940 = vmatpush3.bf16.msra.mxu1 %v8638_v10  ;;  %v3084_v28 = vadd.f32 %v3083_v25, %v3041_v59  ;;  %v8639_v5 = vrot.slane %v7158_v54, %v7392_v31  ;;  %v8640_v47 = vrot.slane %v7172_v3, %v7392_v31  ;;  %v8641_v6 = vpack.c.bf16 %v7471_v18, %v7469_v17  ;;  %v3391_v59 = vld [vmem:[#allocation11 + $0x498] sm:$0xff]  ;;  %v3350_v10 = vld [vmem:[#allocation11 + $0x350] sm:$0xff] }
 0x1ca   :  { %v2494_v27 = vadd.f32 %v2493_v20, %v2449_v63  ;;  %v3087_v12 = vadd.f32 %v3086_v30, %v3042_v43  ;;  %v8642_v61 = vrot.slane %v7158_v54, %v7399_v50  ;;  %v8643_v16 = vrot.slane %v7172_v3, %v7399_v50 }
 0x1cb   :  { %v2465_v55 = vmul.f32 %v8639_v5, %v2015_v11  ;;  %v3058_v13 = vmul.f32 %v8640_v47, %v2015_v11  ;;  %5942 = vmatprep.subr.bf16.mxu1 %v8641_v6  ;;  %v3092_v26 = vadd.f32 %v3027_v35, %v3010_v39  ;;  %v2000_v38 = vmax.f32 %v1691_v36, 0.0  ;;  %v3374_v6 = vld [vmem:[#allocation11 + $0x410] sm:$0xff] }
 0x1cc   :  { %v2466_v46 = vmul.f32 %v8642_v61, %v2016_v44  ;;  %v3059_v8 = vmul.f32 %v8643_v16, %v2016_v44  ;;  %v8646_v18 = vpack.c.bf16 %v7483_v57, %v7481_v45  ;;  %v1693_v20 = vadd.f32 %v1692_v1, %v7533_v15 }
 0x1cd   :  { %v2492_v25 = vadd.f32 %v2491_v0, %v2465_v55  ;;  %v7703_v51 = vadd.f32 %v3084_v28, %v3058_v13  ;;  %v1695_v30 = vadd.f32 %v1694_v34, %v7529_v52  ;;  %v8647_v11 = vrot.slane %v7166_v60, %v7392_v31  ;;  %v3351_v13 = vld [vmem:[#allocation11 + $0x358] sm:$0xff] }
 0x1ce   :  { %v2495_v2 = vadd.f32 %v2494_v27, %v2466_v46  ;;  %v7705_v17 = vadd.f32 %v3087_v12, %v3059_v8  ;;  %5944 = vmatpush3.bf16.msra.mxu1 %v8646_v18  ;;  %v8648_v36 = vpack.c.bf16 %v7497_v33, %v7485_v42  ;;  %v8649_v35 = vrot.slane %v7154_v37, %v7492_v22  ;;  %v3375_v27 = vld [vmem:[#allocation11 + $0x418] sm:$0xff]  ;;  %v3368_v8 = vld [vmem:[#allocation11 + $0x3e0] sm:$0xff] }
 0x1cf   :  { %8644 = vst [vmem:[#allocation32_spill] sm:$0xff] %v7703_v51  ;;  %v2621_v39 = vadd.f32 %v8647_v11, %v2492_v25  ;;  %v8650_v57 = vrot.slane %v7156_v53, %v7492_v22  ;;  %v1697_v52 = vadd.f32 %v1696_v4, %v7533_v15  ;;  %v2001_v1 = vmax.f32 %v1693_v20, 0.0  ;;  %v7756_v20 = vld [vmem:[#allocation11 + $0x360] sm:$0xff] }
 0x1d0   :  { %8645 = vst [vmem:[#allocation33_spill] sm:$0xff] %v7705_v17  ;;  %5946 = vmatprep.subr.bf16.mxu1 %v8648_v36  ;;  %v2450_v41 = vmul.f32 %v8649_v35, %v2000_v38  ;;  %v8651_v34 = vrot.slane %v7166_v60, %v7399_v50  ;;  %v2017_v24 = vmax.f32 %v1695_v30, 0.0  ;;  %v5967_v43 = vpack.c.bf16 %v3373_v21, %v3372_v49  ;;  %v3369_v21 = vld [vmem:[#allocation11 + $0x3e8] sm:$0xff]  ;;  %v7774_v35 = vld [vmem:[#allocation11 + $0x370] sm:$0xff] }
 0x1d1   :  { %v3043_v45 = vmul.f32 %v8650_v57, %v2000_v38  ;;  %v2018_v42 = vmax.f32 %v1697_v52, 0.0  ;;  %v5969_v0 = vpack.c.bf16 %v3391_v59, %v3390_v62  ;;  %v8652_v28 = vpack.c.bf16 %v7501_v7, %v7499_v29  ;;  %v7758_v30 = vld [vmem:[#allocation11 + $0x368] sm:$0xff]  ;;  %v7778_v57 = vld [vmem:[#allocation11 + $0x580] sm:$0xff] }
 0x1d2   :  { %v2622_v63 = vadd.f32 %v8651_v34, %v2495_v2  ;;  %v2497_v44 = vadd.f32 %v2496_v58, %v2450_v41  ;;  %v8653_v5 = vrot.slane %v7154_v37, %v7495_v14  ;;  %v8654_v4 = vrot.slane %v7156_v53, %v7495_v14  ;;  %v3393_v2 = vld [vmem:[#allocation11 + $0x4a8] sm:$0xff]  ;;  %v7776_v41 = vld [vmem:[#allocation11 + $0x378] sm:$0xff]  ;;  %v7785_v34 = vld [vmem:[#allocation11 + $0x500] sm:$0xff] }
 0x1d3   :  { %v3090_v33 = vadd.f32 %v3089_v40, %v3043_v45  ;;  %5948 = vmatpush3.bf16.msra.mxu1 %v8652_v28  ;;  %v8655_v58 = vrot.slane %v7158_v54, %v7492_v22  ;;  %v2638_v12 = vmax.f32 %v2621_v39, 0.0  ;;  %v8656_v7 = vpack.c.bf16 %v7541_v48, %v7539_v23  ;;  %v3392_v48 = vld [vmem:[#allocation11 + $0x4a0] sm:$0xff]  ;;  %v7780_v45 = vld [vmem:[#allocation11 + $0x588] sm:$0xff]  ;;  %v3394_v28 = vld [vmem:[#allocation11 + $0x4b0] sm:$0xff] }
 0x1d4   :  { %v2451_v15 = vmul.f32 %v8653_v5, %v2001_v1  ;;  %v3044_v55 = vmul.f32 %v8654_v4, %v2001_v1  ;;  %v2639_v47 = vmax.f32 %v2622_v63, 0.0  ;;  %v8657_v37 = vrot.slane %v7172_v3, %v7492_v22  ;;  %v7791_v63 = vld [vmem:[#allocation11 + $0x598] sm:$0xff]  ;;  %v7801_v4 = vld [vmem:[#allocation11 + $0x5a8] sm:$0xff] }
 0x1d5   :  { %v2467_v40 = vmul.f32 %v8655_v58, %v2017_v24  ;;  %5950 = vmatprep.subr.bf16.mxu1 %v8656_v7  ;;  %v8658_v53 = vrot.slane %v7158_v54, %v7495_v14  ;;  %v8659_v46 = vrot.slane %v7172_v3, %v7495_v14  ;;  %v2563_v23 = vrot.slane %v7166_v60, %v7495_v14  ;;  %v7760_v3 = vld [vmem:[#allocation11 + $0x3f0] sm:$0xff]  ;;  %v3395_v5 = vld [vmem:[#allocation11 + $0x4b8] sm:$0xff] }
 0x1d6   :  { %v3060_v29 = vmul.f32 %v8657_v37, %v2017_v24  ;;  %v2500_v25 = vadd.f32 %v2499_v56, %v2451_v15  ;;  %v3093_v38 = vadd.f32 %v3092_v26, %v3044_v55  ;;  %3999 = vmatprep.mubr.f32.mxu0 %v2639_v47  ;;  %v5955_v54 = vpack.c.bf16 %v3351_v13, %v3350_v10  ;;  %v7762_v56 = vld [vmem:[#allocation11 + $0x3f8] sm:$0xff]  ;;  %v7793_v24 = vld [vmem:[#allocation7 + $0x8] sm:$0xff]  ;;  %v7799_v15 = vld [vmem:[#allocation11 + $0x5a0] sm:$0xff] }
 0x1d7   :  { %v2468_v61 = vmul.f32 %v8658_v53, %v2018_v42  ;;  %v3061_v16 = vmul.f32 %v8659_v46, %v2018_v42  ;;  %v2498_v49 = vadd.f32 %v2497_v44, %v2467_v40  ;;  %4000 = vmatmul.mubr.f32.vlgmr.msra.gmra.mrb[40].mxu0 %v2638_v12  ;;  %v5971_v26 = vpack.c.bf16 %v3375_v27, %v3374_v6  ;;  %v3377_v42 = vld [vmem:[#allocation11 + $0x428] sm:$0xff]  ;;  %v7809_v40 = vld [vmem:[#allocation8 + $0x8] sm:$0xff]  ;;  %v3378_v53 = vld [vmem:[#allocation11 + $0x430] sm:$0xff] }
 0x1d8   :  { %v7754_v18 = vadd.f32 %v3090_v33, %v3060_v29  ;;  %v8661_v62 = vrot.slane %v7166_v60, %v7492_v22  ;;  %v8662_v11 = vpack.c.bf16 %v7553_v19, %v7551_v9  ;;  %5968 = vmatpush3.bf16.msra.mxu0 %v5967_v43  ;;  %v8664_v60 = vld [vmem:[#allocation31_spill] sm:$0xff]  ;;  %v5957_v1 = vpack.c.bf16 %v3369_v21, %v3368_v8  ;;  %v7789_v9 = vld [vmem:[#allocation11 + $0x590] sm:$0xff] }
 0x1d9   :  { %v2501_v39 = vadd.f32 %v2500_v25, %v2468_v61  ;;  %v7772_v36 = vadd.f32 %v3093_v38, %v3061_v16  ;;  %v8665_v52 = vpack.c.bf16 %v7583_v32, %v8664_v60  ;;  %v7787_v19 = vld [vmem:[#allocation11 + $0x508] sm:$0xff]  ;;  %5970 = vmatprep.subr.bf16.mxu0 %v5969_v0  ;;  %v7795_v43 = vld [vmem:[#allocation11 + $0x510] sm:$0xff]  ;;  %v5973_v44 = vpack.c.bf16 %v3393_v2, %v3392_v48  ;;  %v3376_v33 = vld [vmem:[#allocation11 + $0x420] sm:$0xff] }
 0x1da   :  { %8660 = vst [vmem:[#allocation34_spill] sm:$0xff] %v7754_v18  ;;  %v7767_v59 = vadd.f32 %v8661_v62, %v2498_v49  ;;  %5952 = vmatpush3.bf16.msra.mxu1 %v8662_v11  ;;  %v7797_v32 = vld [vmem:[#allocation11 + $0x518] sm:$0xff]  ;;  %v7803_v0 = vld [vmem:[#allocation11 + $0x520] sm:$0xff]  ;;  %v5959_v55 = vpack.c.bf16 %v7758_v30, %v7756_v20  ;;  %v5961_v47 = vpack.c.bf16 %v7762_v56, %v7760_v3  ;;  %v7813_v27 = vld [vmem:[#allocation11 + $0x528] sm:$0xff] }
 0x1db   :  { %8663 = vst [vmem:[#allocation35_spill] sm:$0xff] %v7772_v36  ;;  %5954 = vmatprep.subr.bf16.mxu1 %v8665_v52  ;;  %v2624_v10 = vadd.f32 %v2563_v23, %v2501_v39  ;;  %v7811_v13 = vld [vmem:[#allocation8 + $0x4c] sm:$0xff]  ;;  %v5975_v6 = vpack.c.bf16 %v3377_v42, %v3376_v33  ;;  %v5963_v12 = vpack.c.bf16 %v7776_v41, %v7774_v35  ;;  %v7819_v37 = vld [vmem:[#allocation8 + $0x19] sm:$0xff]  ;;  %v3379_v61 = vld [vmem:[#allocation11 + $0x438] sm:$0xff] }
 0x1dc   :  { %5972 = vmatpush3.bf16.msra.mxu0 %v5971_v26  ;;  %v5997_v7 = vpack.c.bf16 %v7780_v45, %v7778_v57  ;;  %v5977_v29 = vpack.c.bf16 %v3395_v5, %v3394_v28  ;;  %v5999_v46 = vpack.c.bf16 %v7787_v19, %v7785_v34  ;;  %v6001_v16 = vpack.c.bf16 %v7791_v63, %v7789_v9  ;;  %v8666_v8 = vld [vmem:[#allocation20_spill] sm:$0xff]  ;;  %v7831_v49 = vld [vmem:[#allocation8 + $0x5d] sm:$0xff]  ;;  %v3396_v21 = vld [vmem:[#allocation11 + $0x4c0] sm:$0xff] }
 0x1dd   :  { %v2641_v58 = vmax.f32 %v2624_v10, 0.0  ;;  %5974 = vmatprep.subr.bf16.mxu0 %v5973_v44  ;;  %v7827_v25 = vrot.slane %v7793_v24, %v8666_v8  ;;  %v6003_v38 = vpack.c.bf16 %v7797_v32, %v7795_v43  ;;  %v3397_v23 = vld [vmem:[#allocation11 + $0x4c8] sm:$0xff]  ;;  %v8667_v2 = vld [vmem:[#allocation21_spill] sm:$0xff]  ;;  %v5979_v39 = vpack.c.bf16 %v3379_v61, %v3378_v53  ;;  %v3380_v41 = vld [vmem:[#allocation11 + $0x440] sm:$0xff] }
 0x1de   :  { %5956 = vmatpush3.bf16.msra.mxu1 %v5955_v54  ;;  %v7837_v54 = vrot.slane %v7793_v24, %v8667_v2  ;;  %v7843_v3 = vld [vmem:[#allocation11 + $0x5b0] sm:$0xff]  ;;  %v7845_v56 = vld [vmem:[#allocation11 + $0x5b8] sm:$0xff]  ;;  %v3381_v57 = vld [vmem:[#allocation11 + $0x448] sm:$0xff]  ;;  %v5981_v52 = vpack.c.bf16 %v3397_v23, %v3396_v21  ;;  %v8670_v36 = vpack.c.bf16 %v7801_v4, %v7799_v15  ;;  %v8671_v17 = vpack.c.bf16 %v7813_v27, %v7803_v0 }
 0x1df   :  { %5958 = vmatprep.subr.bf16.mxu1 %v5957_v1  ;;  %4069 = vmatprep.mubr.f32.mxu1 %v2641_v58  ;;  %v7847_v26 = vld [vmem:[#allocation11 + $0x530] sm:$0xff]  ;;  %v7853_v35 = vld [vmem:[#allocation11 + $0x538] sm:$0xff]  ;;  %v7867_v10 = vld [vmem:[#allocation8 + $0x2a] sm:$0xff]  ;;  %v5983_v21 = vpack.c.bf16 %v3381_v57, %v3380_v41  ;;  %v8672_v43 = vpack.c.bf16 %v7845_v56, %v7843_v3 }
 0x1e0   :  { %5976 = vmatpush3.bf16.msra.mxu0 %v5975_v6  ;;  %v3398_v28 = vld [vmem:[#allocation11 + $0x4d0] sm:$0xff]  ;;  %v3399_v5 = vld [vmem:[#allocation11 + $0x4d8] sm:$0xff]  ;;  %v7874_v6 = vld [vmem:[#allocation8 + $0x6e] sm:$0xff] }
 0x1e1   :  { %5978 = vmatprep.subr.bf16.mxu0 %v5977_v29  ;;  %v7878_v53 = vld [vmem:[#allocation8 + $0x3b] sm:$0xff]  ;;  %v8669_v23 = vld [vmem:[#allocation22_spill] sm:$0xff]  ;;  %v7892_v60 = vld [vmem:[#allocation11 + $0x5c8] sm:$0xff]  ;;  %v5985_v45 = vpack.c.bf16 %v3399_v5, %v3398_v28 }
 0x1e2   :  { %5960 = vmatpush3.bf16.msra.mxu1 %v5959_v55  ;;  %v2640_v55 = vmax.f32 %v7767_v59, 0.0  ;;  %v7880_v61 = vld [vmem:[#allocation8 + $0x7f] sm:$0xff]  ;;  %v7884_v33 = vrot.slane %v7793_v24, %v8669_v23  ;;  %v7890_v1 = vld [vmem:[#allocation11 + $0x5c0] sm:$0xff]  ;;  %v7900_v57 = vld [vmem:[#allocation11 + $0x548] sm:$0xff]  ;;  %v8675_v56 = vrot.slane %v7809_v40, %v8669_v23 }
 0x1e3   :  { %5962 = vmatprep.subr.bf16.mxu1 %v5961_v47  ;;  %v8668_v47 = vld [vmem:[#allocation23_spill] sm:$0xff]  ;;  %v3382_v11 = vld [vmem:[#allocation11 + $0x450] sm:$0xff]  ;;  %v3383_v44 = vld [vmem:[#allocation11 + $0x458] sm:$0xff] }
 0x1e4   :  { %v7872_v58 = vrot.slane %v7793_v24, %v8668_v47  ;;  %5980 = vmatpush3.bf16.msra.mxu0 %v5979_v39  ;;  %v7894_v29 = vld [vmem:[#allocation11 + $0x540] sm:$0xff]  ;;  %v3401_v41 = vld [vmem:[#allocation11 + $0x4e8] sm:$0xff]  ;;  %v7920_v39 = vld [vmem:[#allocation11 + $0x5d0] sm:$0xff]  ;;  %v5987_v5 = vpack.c.bf16 %v3383_v44, %v3382_v11  ;;  %v1786_v19 = vpop.f32.mrb[16].mxu1 }
 0x1e5   :  { %5982 = vmatprep.subr.bf16.mxu0 %v5981_v52  ;;  %v7910_v62 = vld [vmem:[#allocation10 + $0x8] sm:$0xff]  ;;  %v7924_v48 = vld [vmem:[#allocation11 + $0x550] sm:$0xff]  ;;  %v7933_v28 = vld [vmem:[#allocation11 + $0x558] sm:$0xff]  ;;  %v1787_v32 = vadd.f32 %v1786_v19, %v7884_v33 }
 0x1e6   :  { %5964 = vmatpush3.bf16.msra.mxu1 %v5963_v12  ;;  %v3400_v52 = vld [vmem:[#allocation11 + $0x4e0] sm:$0xff]  ;;  %v7922_v12 = vld [vmem:[#allocation11 + $0x5d8] sm:$0xff]  ;;  %v3385_v42 = vld [vmem:[#allocation11 + $0x468] sm:$0xff] }
 0x1e7   :  { %5998 = vmatprep.subr.bf16.mxu1 %v5997_v7  ;;  %v3384_v7 = vld [vmem:[#allocation11 + $0x460] sm:$0xff]  ;;  %v3386_v63 = vld [vmem:[#allocation11 + $0x470] sm:$0xff]  ;;  %v3387_v59 = vld [vmem:[#allocation11 + $0x478] sm:$0xff] }
 0x1e8   :  { %5984 = vmatpush3.bf16.msra.mxu0 %v5983_v21  ;;  %v7942_v21 = vld [vmem:[#allocation11 + $0x5e0] sm:$0xff]  ;;  %v7966_v30 = vld [vmem:[#allocation11 + $0x5f0] sm:$0xff]  ;;  %v7975_v44 = vld [vmem:[#allocation11 + $0x5f8] sm:$0xff]  ;;  %v5995_v15 = vpack.c.bf16 %v3387_v59, %v3386_v63 }
 0x1e9   :  { %4070 = vmatmul.mubr.f32.vlgmr.msra.gmra.mrb[36].mxu1 %v2640_v55  ;;  %5986 = vmatprep.subr.bf16.mxu0 %v5985_v45  ;;  %v7944_v55 = vld [vmem:[#allocation11 + $0x5e8] sm:$0xff]  ;;  %v7946_v11 = vld [vmem:[#allocation11 + $0x560] sm:$0xff]  ;;  %v7977_v20 = vld [vmem:[#allocation11 + $0x570] sm:$0xff] }
 0x1ea   :  { %6000 = vmatpush3.bf16.msra.mxu1 %v5999_v46  ;;  %v5989_v46 = vpack.c.bf16 %v3401_v41, %v3400_v52  ;;  %v7956_v45 = vld [vmem:[#allocation11 + $0x568] sm:$0xff]  ;;  %v3402_v41 = vld [vmem:[#allocation11 + $0x4f0] sm:$0xff]  ;;  %v3403_v52 = vld [vmem:[#allocation11 + $0x4f8] sm:$0xff] }
 0x1eb   :  { %6002 = vmatprep.subr.bf16.mxu1 %v6001_v16  ;;  %v5991_v16 = vpack.c.bf16 %v3385_v42, %v3384_v7  ;;  %v7979_v9 = vld [vmem:[#allocation11 + $0x578] sm:$0xff]  ;;  %v3453_v42 = vld [vmem:[#allocation11 + $0x688] sm:$0xff]  ;;  %v1733_v7 = vpop.f32.mrb[16].mxu0 }
 0x1ec   :  { %5988 = vmatpush3.bf16.msra.mxu0 %v5987_v5  ;;  %v3452_v5 = vld [vmem:[#allocation11 + $0x680] sm:$0xff]  ;;  %v1734_v4 = vadd.f32 %v1733_v7, %v7827_v25 }
 0x1ed   :  { %5990 = vmatprep.subr.bf16.mxu0 %v5989_v46  ;;  %v1735_v46 = vpop.f32.mrb[17].mxu0  ;;  %v6029_v7 = vpack.c.bf16 %v3453_v42, %v3452_v5  ;;  %v8673_v5 = vrot.slane %v7809_v40, %v8666_v8 }
 0x1ee   :  { %6004 = vmatpush3.bf16.msra.mxu1 %v6003_v38  ;;  %v5993_v38 = vpack.c.bf16 %v3403_v52, %v3402_v41  ;;  %v1788_v41 = vpop.f32.mrb[17].mxu1  ;;  %v1736_v34 = vadd.f32 %v1735_v46, %v7837_v54  ;;  %v1737_v51 = vpop.f32.mrb[18].mxu0  ;;  %v1968_v19 = vmax.f32 %v1734_v4, 0.0  ;;  %v1970_v52 = vmax.f32 %v1787_v32, 0.0 }
 0x1ef   :  { %6006 = vmatprep.subr.bf16.mxu1 %v8670_v36  ;;  %v1789_v59 = vadd.f32 %v1788_v41, %v7872_v58  ;;  %v1790_v63 = vpop.f32.mrb[18].mxu1  ;;  %v1738_v36 = vadd.f32 %v1737_v51, %v7827_v25  ;;  %v1739_v18 = vpop.f32.mrb[19].mxu0  ;;  %v8674_v32 = vrot.slane %v7811_v13, %v8666_v8  ;;  %v8678_v41 = vrot.slane %v7811_v13, %v8669_v23 }
 0x1f0   :  { %5992 = vmatpush3.bf16.msra.mxu0 %v5991_v16  ;;  %v1791_v46 = vadd.f32 %v1790_v63, %v7884_v33  ;;  %v1792_v14 = vpop.f32.mrb[19].mxu1  ;;  %v1969_v0 = vmax.f32 %v1736_v34, 0.0  ;;  %v2418_v51 = vmul.f32 %v8673_v5, %v1968_v19  ;;  %v8676_v34 = vrot.slane %v7809_v40, %v8667_v2 }
 0x1f1   :  { %5994 = vmatprep.subr.bf16.mxu0 %v5993_v38  ;;  %v1971_v27 = vmax.f32 %v1789_v59, 0.0  ;;  %v1793_v16 = vadd.f32 %v1792_v14, %v7872_v58  ;;  %v3011_v42 = vmul.f32 %v8674_v32, %v1968_v19  ;;  %v1985_v3 = vmax.f32 %v1738_v36, 0.0 }
 0x1f2   :  { %6008 = vmatpush3.bf16.msra.mxu1 %v8671_v17  ;;  %v1740_v17 = vadd.f32 %v1739_v18, %v7837_v54  ;;  %v2419_v18 = vmul.f32 %v8676_v34, %v1969_v0  ;;  %v8677_v14 = vrot.slane %v7811_v13, %v8667_v2  ;;  %v3013_v59 = vmul.f32 %v8678_v41, %v1970_v52 }
 0x1f3   :  { %6010 = vmatprep.subr.bf16.mxu1 %v8672_v43  ;;  %v2420_v43 = vmul.f32 %v8675_v56, %v1970_v52  ;;  %v8679_v36 = vpack.c.bf16 %v7853_v35, %v7847_v26  ;;  %v8680_v63 = vrot.slane %v7819_v37, %v8666_v8  ;;  %v8681_v5 = vrot.slane %v7831_v49, %v8666_v8 }
 0x1f4   :  { %v3012_v38 = vmul.f32 %v8677_v14, %v1969_v0  ;;  %v1986_v4 = vmax.f32 %v1740_v17, 0.0  ;;  %5996 = vmatpush3.bf16.msra.mxu0 %v5995_v15  ;;  %v8682_v0 = vrot.slane %v7809_v40, %v8668_v47  ;;  %v8683_v52 = vrot.slane %v7811_v13, %v8668_v47  ;;  %v1743_v14 = vpop.f32.mrb[20].mxu0 }
 0x1f5   :  { %v2435_v19 = vmul.f32 %v8680_v63, %v1985_v3  ;;  %v3028_v32 = vmul.f32 %v8681_v5, %v1985_v3  ;;  %v8684_v26 = vpack.c.bf16 %v7892_v60, %v7890_v1  ;;  %v8685_v35 = vrot.slane %v7819_v37, %v8667_v2  ;;  %v1796_v63 = vpop.f32.mrb[20].mxu1  ;;  %6030 = vmatprep.subr.bf16.mxu0 %v6029_v7 }
 0x1f6   :  { %6012 = vmatpush3.bf16.msra.mxu1 %v8679_v36  ;;  %v2421_v17 = vmul.f32 %v8682_v0, %v1971_v27  ;;  %v3014_v56 = vmul.f32 %v8683_v52, %v1971_v27  ;;  %v8686_v34 = vrot.slane %v7831_v49, %v8667_v2  ;;  %v1987_v41 = vmax.f32 %v1791_v46, 0.0  ;;  %v1745_v52 = vpop.f32.mrb[21].mxu0  ;;  %v1798_v1 = vpop.f32.mrb[21].mxu1 }
 0x1f7   :  { %6014 = vmatprep.subr.bf16.mxu1 %v8684_v26  ;;  %v2436_v15 = vmul.f32 %v8685_v35, %v1986_v4  ;;  %v1988_v36 = vmax.f32 %v1793_v16, 0.0  ;;  %v2502_v5 = vadd.f32 %v2435_v19, %v2418_v51  ;;  %v3095_v0 = vadd.f32 %v3028_v32, %v3011_v42  ;;  %v1800_v7 = vpop.f32.mrb[22].mxu1 }
 0x1f8   :  { %v3029_v3 = vmul.f32 %v8686_v34, %v1986_v4  ;;  %v1744_v27 = vadd.f32 %v1743_v14, %v7827_v25  ;;  %v1797_v60 = vadd.f32 %v1796_v63, %v7884_v33  ;;  %v8687_v35 = vrot.slane %v7819_v37, %v8669_v23  ;;  %v1747_v4 = vpop.f32.mrb[22].mxu0 }
 0x1f9   :  { %v2505_v26 = vadd.f32 %v2436_v15, %v2419_v18  ;;  %v8688_v46 = vrot.slane %v7831_v49, %v8669_v23  ;;  %v8689_v51 = vpack.c.bf16 %v7900_v57, %v7894_v29  ;;  %v1746_v19 = vadd.f32 %v1745_v52, %v7837_v54  ;;  %v1749_v34 = vpop.f32.mrb[23].mxu0 }
 0x1fa   :  { %v3098_v22 = vadd.f32 %v3029_v3, %v3012_v38  ;;  %v2437_v50 = vmul.f32 %v8687_v35, %v1987_v41  ;;  %v2002_v42 = vmax.f32 %v1744_v27, 0.0  ;;  %v8690_v18 = vrot.slane %v7819_v37, %v8668_v47  ;;  %v1802_v3 = vpop.f32.mrb[23].mxu1 }
 0x1fb   :  { %v3030_v16 = vmul.f32 %v8688_v46, %v1987_v41  ;;  %6016 = vmatpush3.bf16.msra.mxu1 %v8689_v51  ;;  %v8691_v32 = vrot.slane %v7831_v49, %v8668_v47  ;;  %v8692_v14 = vpack.c.bf16 %v7922_v12, %v7920_v39  ;;  %v1748_v57 = vadd.f32 %v1747_v4, %v7827_v25 }
 0x1fc   :  { %v2438_v38 = vmul.f32 %v8690_v18, %v1988_v36  ;;  %v2508_v41 = vadd.f32 %v2437_v50, %v2420_v43  ;;  %v2004_v63 = vmax.f32 %v1797_v60, 0.0  ;;  %v8693_v27 = vrot.slane %v7867_v10, %v8666_v8 }
 0x1fd   :  { %v3031_v15 = vmul.f32 %v8691_v32, %v1988_v36  ;;  %6018 = vmatprep.subr.bf16.mxu1 %v8692_v14  ;;  %v3101_v29 = vadd.f32 %v3030_v16, %v3013_v59  ;;  %v8694_v35 = vrot.slane %v7874_v6, %v8666_v8  ;;  %v2003_v36 = vmax.f32 %v1746_v19, 0.0  ;;  %v3485_v14 = vld [vmem:[#allocation11 + $0x788] sm:$0xff] }
 0x1fe   :  { %v2452_v52 = vmul.f32 %v8693_v27, %v2002_v42  ;;  %v2511_v51 = vadd.f32 %v2438_v38, %v2421_v17  ;;  %v2019_v32 = vmax.f32 %v1748_v57, 0.0  ;;  %v8695_v12 = vrot.slane %v7867_v10, %v8669_v23 }
 0x1ff   :  { %v3045_v46 = vmul.f32 %v8694_v35, %v2002_v42  ;;  %v3104_v18 = vadd.f32 %v3031_v15, %v3014_v56  ;;  %v8696_v25 = vrot.slane %v7874_v6, %v8669_v23  ;;  %v8697_v43 = vpack.c.bf16 %v7933_v28, %v7924_v48  ;;  %v3484_v15 = vld [vmem:[#allocation11 + $0x780] sm:$0xff] }
 0x200   :  { %v2454_v50 = vmul.f32 %v8695_v12, %v2004_v63  ;;  %v2503_v59 = vadd.f32 %v2502_v5, %v2452_v52  ;;  %v8698_v16 = vrot.slane %v7867_v10, %v8667_v2  ;;  %v8699_v56 = vrot.slane %v7874_v6, %v8667_v2 }
 0x201   :  { %v3047_v39 = vmul.f32 %v8696_v25, %v2004_v63  ;;  %6020 = vmatpush3.bf16.msra.mxu1 %v8697_v43  ;;  %v3096_v60 = vadd.f32 %v3095_v0, %v3045_v46  ;;  %v8700_v42 = vpack.c.bf16 %v7944_v55, %v7942_v21  ;;  %v8701_v19 = vrot.slane %v7878_v53, %v8666_v8 }
 0x202   :  { %v2453_v17 = vmul.f32 %v8698_v16, %v2003_v36  ;;  %v3046_v4 = vmul.f32 %v8699_v56, %v2003_v36  ;;  %v8702_v48 = vrot.slane %v7880_v61, %v8666_v8  ;;  %v2509_v5 = vadd.f32 %v2508_v41, %v2454_v50 }
 0x203   :  { %6022 = vmatprep.subr.bf16.mxu1 %v8700_v42  ;;  %v2469_v38 = vmul.f32 %v8701_v19, %v2019_v32  ;;  %v3102_v0 = vadd.f32 %v3101_v29, %v3047_v39  ;;  %v1750_v27 = vadd.f32 %v1749_v34, %v7837_v54  ;;  %v1799_v52 = vadd.f32 %v1798_v1, %v7872_v58 }
 0x204   :  { %v3062_v28 = vmul.f32 %v8702_v48, %v2019_v32  ;;  %v2506_v57 = vadd.f32 %v2505_v26, %v2453_v17  ;;  %v3099_v63 = vadd.f32 %v3098_v22, %v3046_v4  ;;  %v1801_v35 = vadd.f32 %v1800_v7, %v7884_v33 }
 0x205   :  { %v2504_v55 = vadd.f32 %v2503_v59, %v2469_v38  ;;  %v1803_v46 = vadd.f32 %v1802_v3, %v7872_v58  ;;  %v8703_v36 = vpack.c.bf16 %v7956_v45, %v7946_v11  ;;  %v2020_v41 = vmax.f32 %v1750_v27, 0.0  ;;  %v3436_v27 = vld [vmem:[#allocation11 + $0x600] sm:$0xff] }
 0x206   :  { %v8108_v21 = vadd.f32 %v3096_v60, %v3062_v28  ;;  %v2005_v29 = vmax.f32 %v1799_v52, 0.0  ;;  %v8704_v22 = vpack.c.bf16 %v7975_v44, %v7966_v30  ;;  %v2571_v54 = vrot.slane %v7910_v62, %v8667_v2  ;;  %v3437_v52 = vld [vmem:[#allocation11 + $0x608] sm:$0xff] }
 0x207   :  { %6024 = vmatpush3.bf16.msra.mxu1 %v8703_v36  ;;  %v6061_v1 = vpack.c.bf16 %v3485_v14, %v3484_v15  ;;  %v2021_v26 = vmax.f32 %v1801_v35, 0.0  ;;  %v2575_v33 = vrot.slane %v7910_v62, %v8669_v23  ;;  %v2022_v7 = vmax.f32 %v1803_v46, 0.0  ;;  %v3468_v36 = vld [vmem:[#allocation11 + $0x700] sm:$0xff] }
 0x208   :  { %6026 = vmatprep.subr.bf16.mxu1 %v8704_v22  ;;  %v2579_v58 = vrot.slane %v7910_v62, %v8668_v47  ;;  %v8705_v11 = vrot.slane %v7878_v53, %v8667_v2  ;;  %v8706_v30 = vrot.slane %v7880_v61, %v8667_v2  ;;  %v8707_v34 = vrot.slane %v7867_v10, %v8668_v47  ;;  %v3486_v22 = vld [vmem:[#allocation11 + $0x790] sm:$0xff] }
 0x209   :  { %v8708_v32 = vrot.slane %v7874_v6, %v8668_v47  ;;  %v8709_v50 = vrot.slane %v7878_v53, %v8669_v23  ;;  %v8710_v39 = vrot.slane %v7880_v61, %v8669_v23  ;;  %v8711_v59 = vrot.slane %v7878_v53, %v8668_v47 }
 0x20a   :  { %v2470_v45 = vmul.f32 %v8705_v11, %v2020_v41  ;;  %v3063_v44 = vmul.f32 %v8706_v30, %v2020_v41  ;;  %v2455_v3 = vmul.f32 %v8707_v34, %v2005_v29  ;;  %v8712_v16 = vrot.slane %v7880_v61, %v8668_v47  ;;  %v3456_v30 = vld [vmem:[#allocation11 + $0x6a0] sm:$0xff]  ;;  %v3471_v34 = vld [vmem:[#allocation11 + $0x718] sm:$0xff] }
 0x20b   :  { %v3048_v12 = vmul.f32 %v8708_v32, %v2005_v29  ;;  %v2471_v25 = vmul.f32 %v8709_v50, %v2021_v26  ;;  %v3064_v43 = vmul.f32 %v8710_v39, %v2021_v26  ;;  %v2472_v60 = vmul.f32 %v8711_v59, %v2022_v7  ;;  %v3438_v26 = vld [vmem:[#allocation11 + $0x610] sm:$0xff]  ;;  %v3488_v32 = vld [vmem:[#allocation11 + $0x7a0] sm:$0xff] }
 0x20c   :  { %v3065_v17 = vmul.f32 %v8712_v16, %v2022_v7  ;;  %v8713_v56 = vpack.c.bf16 %v7979_v9, %v7977_v20  ;;  %v2507_v4 = vadd.f32 %v2506_v57, %v2470_v45  ;;  %v8151_v42 = vadd.f32 %v3099_v63, %v3063_v44  ;;  %v3454_v9 = vld [vmem:[#allocation11 + $0x690] sm:$0xff]  ;;  %v3455_v57 = vld [vmem:[#allocation11 + $0x698] sm:$0xff]  ;;  %v3440_v39 = vld [vmem:[#allocation11 + $0x620] sm:$0xff] }
 0x20d   :  { %v2512_v19 = vadd.f32 %v2511_v51, %v2455_v3  ;;  %v3105_v38 = vadd.f32 %v3104_v18, %v3048_v12  ;;  %v8714_v48 = vrot.slane %v7910_v62, %v8666_v8  ;;  %v2510_v15 = vadd.f32 %v2509_v5, %v2471_v25  ;;  %v3469_v51 = vld [vmem:[#allocation11 + $0x708] sm:$0xff]  ;;  %v3439_v7 = vld [vmem:[#allocation11 + $0x618] sm:$0xff]  ;;  %v3472_v25 = vld [vmem:[#allocation11 + $0x720] sm:$0xff] }
 0x20e   :  { %6028 = vmatpush3.bf16.msra.mxu1 %v8713_v56  ;;  %v8156_v14 = vadd.f32 %v3102_v0, %v3064_v43  ;;  %v2626_v20 = vadd.f32 %v2571_v54, %v2507_v4  ;;  %v6031_v29 = vpack.c.bf16 %v3437_v52, %v3436_v27  ;;  %v6033_v0 = vpack.c.bf16 %v3455_v57, %v3454_v9  ;;  %v3457_v54 = vld [vmem:[#allocation11 + $0x6a8] sm:$0xff]  ;;  %v3458_v16 = vld [vmem:[#allocation11 + $0x6b0] sm:$0xff] }
 0x20f   :  { %6062 = vmatprep.subr.bf16.mxu1 %v6061_v1  ;;  %v2625_v28 = vadd.f32 %v8714_v48, %v2504_v55  ;;  %v2513_v35 = vadd.f32 %v2512_v19, %v2472_v60  ;;  %v8158_v46 = vadd.f32 %v3105_v38, %v3065_v17  ;;  %v2627_v63 = vadd.f32 %v2575_v33, %v2510_v15  ;;  %v3487_v1 = vld [vmem:[#allocation11 + $0x798] sm:$0xff]  ;;  %v3470_v33 = vld [vmem:[#allocation11 + $0x710] sm:$0xff]  ;;  %v3489_v12 = vld [vmem:[#allocation11 + $0x7a8] sm:$0xff] }
 0x210   :  { %v2643_v18 = vmax.f32 %v2626_v20, 0.0  ;;  %v6063_v45 = vpack.c.bf16 %v3469_v51, %v3468_v36  ;;  %v6065_v44 = vpack.c.bf16 %v3487_v1, %v3486_v22  ;;  %v8160_v3 = vld [vmem:[#allocation10 + $0x11] sm:$0xff]  ;;  %v6037_v50 = vpack.c.bf16 %v3457_v54, %v3456_v30  ;;  %v3459_v17 = vld [vmem:[#allocation11 + $0x6b8] sm:$0xff]  ;;  %v8200_v54 = vld [vmem:[#allocation11 + $0x7c0] sm:$0xff] }
 0x211   :  { %v2628_v41 = vadd.f32 %v2579_v58, %v2513_v35  ;;  %v2642_v55 = vmax.f32 %v2625_v28, 0.0  ;;  %v2644_v5 = vmax.f32 %v2627_v63, 0.0  ;;  %v6035_v58 = vpack.c.bf16 %v3439_v7, %v3438_v26  ;;  %v3441_v43 = vld [vmem:[#allocation11 + $0x628] sm:$0xff]  ;;  %v3490_v52 = vld [vmem:[#allocation11 + $0x7b0] sm:$0xff]  ;;  %v3491_v35 = vld [vmem:[#allocation11 + $0x7b8] sm:$0xff] }
 0x212   :  { %4139 = vmatprep.mubr.f32.mxu0 %v2643_v18  ;;  %v6067_v59 = vpack.c.bf16 %v3471_v34, %v3470_v33  ;;  %v3473_v60 = vld [vmem:[#allocation11 + $0x728] sm:$0xff]  ;;  %v8164_v56 = vrot.slane %v7793_v24, %v7392_v31  ;;  %v6069_v4 = vpack.c.bf16 %v3489_v12, %v3488_v32  ;;  %v2121_v38 = vrot.slane %v7809_v40, %v7392_v31  ;;  %v8180_v36 = vld [vmem:[#allocation11 + $0x730] sm:$0xff]  ;;  %v3443_v18 = vld [vmem:[#allocation11 + $0x638] sm:$0xff] }
 0x213   :  { %v2645_v11 = vmax.f32 %v2628_v41, 0.0  ;;  %4140 = vmatmul.mubr.f32.vlgmr.msra.gmra.mrb[42].mxu0 %v2642_v55  ;;  %v2714_v48 = vrot.slane %v7811_v13, %v7392_v31  ;;  %v8715_v28 = vld [vmem:[#allocation28_spill] sm:$0xff]  ;;  %v6039_v27 = vpack.c.bf16 %v3441_v43, %v3440_v39  ;;  %v6071_v57 = vpack.c.bf16 %v3473_v60, %v3472_v25  ;;  %v8190_v55 = vld [vmem:[#allocation11 + $0x738] sm:$0xff]  ;;  %v3444_v60 = vld [vmem:[#allocation11 + $0x640] sm:$0xff] }
 0x214   :  { %6032 = vmatpush3.bf16.msra.mxu0 %v6031_v29  ;;  %v8174_v15 = vrot.slane %v7793_v24, %v8715_v28  ;;  %v2125_v20 = vrot.slane %v7809_v40, %v8715_v28  ;;  %v6041_v63 = vpack.c.bf16 %v3459_v17, %v3458_v16  ;;  %v3442_v51 = vld [vmem:[#allocation11 + $0x630] sm:$0xff]  ;;  %v6073_v30 = vpack.c.bf16 %v3491_v35, %v3490_v52  ;;  %v3493_v12 = vld [vmem:[#allocation11 + $0x7c8] sm:$0xff]  ;;  %v8247_v52 = vld [vmem:[#allocation11 + $0x658] sm:$0xff]  ;;  %v1839_v41 = vpop.f32.mrb[24].mxu0 }
 0x215   :  { %4209 = vmatprep.mubr.f32.mxu1 %v2645_v11  ;;  %6034 = vmatprep.subr.bf16.mxu0 %v6033_v0  ;;  %v3461_v0 = vld [vmem:[#allocation11 + $0x6c8] sm:$0xff]  ;;  %v8716_v26 = vld [vmem:[#allocation29_spill] sm:$0xff]  ;;  %v6043_v32 = vpack.c.bf16 %v3443_v18, %v3442_v51  ;;  %v6075_v39 = vpack.c.bf16 %v8190_v55, %v8180_v36  ;;  %v8257_v55 = vld [vmem:[#allocation11 + $0x760] sm:$0xff] }
 0x216   :  { %4210 = vmatmul.mubr.f32.vlgmr.msra.gmra.mrb[38].mxu1 %v2644_v5  ;;  %v3460_v5 = vld [vmem:[#allocation11 + $0x6c0] sm:$0xff]  ;;  %v8194_v7 = vrot.slane %v7793_v24, %v8716_v26  ;;  %v2129_v11 = vrot.slane %v7809_v40, %v8716_v26  ;;  %v8212_v25 = vld [vmem:[#allocation11 + $0x748] sm:$0xff]  ;;  %v8220_v17 = vld [vmem:[#allocation11 + $0x6d0] sm:$0xff] }
 0x217   :  { %6064 = vmatpush3.bf16.msra.mxu1 %v6063_v45  ;;  %v3445_v16 = vld [vmem:[#allocation11 + $0x648] sm:$0xff]  ;;  %v8232_v36 = vld [vmem:[#allocation11 + $0x7d8] sm:$0xff]  ;;  %v8234_v18 = vld [vmem:[#allocation11 + $0x750] sm:$0xff] }
 0x218   :  { %6066 = vmatprep.subr.bf16.mxu1 %v6065_v44  ;;  %6036 = vmatpush3.bf16.msra.mxu0 %v6035_v58  ;;  %v8717_v44 = vld [vmem:[#allocation30_spill] sm:$0xff]  ;;  %v8245_v35 = vld [vmem:[#allocation11 + $0x650] sm:$0xff]  ;;  %v8255_v43 = vld [vmem:[#allocation11 + $0x6e8] sm:$0xff] }
 0x219   :  { %6038 = vmatprep.subr.bf16.mxu0 %v6037_v50  ;;  %v8204_v33 = vrot.slane %v7793_v24, %v8717_v44  ;;  %v8210_v50 = vld [vmem:[#allocation11 + $0x740] sm:$0xff]  ;;  %v3463_v51 = vld [vmem:[#allocation11 + $0x6d8] sm:$0xff]  ;;  %v8265_v24 = vld [vmem:[#allocation11 + $0x768] sm:$0xff] }
 0x21a   :  { %v8267_v1 = vld [vmem:[#allocation11 + $0x660] sm:$0xff]  ;;  %v8269_v22 = vld [vmem:[#allocation11 + $0x668] sm:$0xff]  ;;  %v6049_v58 = vpack.c.bf16 %v3463_v51, %v8220_v17  ;;  %v8278_v19 = vld [vmem:[#allocation11 + $0x7f0] sm:$0xff] }
 0x21b   :  { %6068 = vmatpush3.bf16.msra.mxu1 %v6067_v59  ;;  %v6045_v59 = vpack.c.bf16 %v3461_v0, %v3460_v5  ;;  %v6077_v0 = vpack.c.bf16 %v3493_v12, %v8200_v54  ;;  %v6047_v5 = vpack.c.bf16 %v3445_v16, %v3444_v60  ;;  %v8280_v60 = vld [vmem:[#allocation11 + $0x7f8] sm:$0xff]  ;;  %v8282_v16 = vld [vmem:[#allocation11 + $0x6f0] sm:$0xff]  ;;  %v8310_v29 = vld [vmem:[#allocation11 + $0x980] sm:$0xff] }
 0x21c   :  { %6070 = vmatprep.subr.bf16.mxu1 %v6069_v4  ;;  %6040 = vmatpush3.bf16.msra.mxu0 %v6039_v27  ;;  %v8249_v27 = vld [vmem:[#allocation11 + $0x7e0] sm:$0xff]  ;;  %v8251_v4 = vld [vmem:[#allocation11 + $0x7e8] sm:$0xff]  ;;  %v8292_v17 = vld [vmem:[#allocation11 + $0x6f8] sm:$0xff] }
 0x21d   :  { %6042 = vmatprep.subr.bf16.mxu0 %v6041_v63  ;;  %v8230_v63 = vld [vmem:[#allocation11 + $0x7d0] sm:$0xff]  ;;  %v8296_v54 = vld [vmem:[#allocation11 + $0x778] sm:$0xff] }
 0x21e   :  { %v8294_v51 = vld [vmem:[#allocation11 + $0x770] sm:$0xff]  ;;  %v8308_v34 = vld [vmem:[#allocation11 + $0x678] sm:$0xff] }
 0x21f   :  { %6072 = vmatpush3.bf16.msra.mxu1 %v6071_v57  ;;  %v8236_v57 = vld [vmem:[#allocation11 + $0x758] sm:$0xff]  ;;  %v8306_v12 = vld [vmem:[#allocation11 + $0x670] sm:$0xff] }
 0x220   :  { %6074 = vmatprep.subr.bf16.mxu1 %v6073_v30  ;;  %v8253_v30 = vld [vmem:[#allocation11 + $0x6e0] sm:$0xff]  ;;  %6044 = vmatpush3.bf16.msra.mxu0 %v6043_v32  ;;  %v6079_v32 = vpack.c.bf16 %v8212_v25, %v8210_v50  ;;  %v6081_v50 = vpack.c.bf16 %v8232_v36, %v8230_v63  ;;  %v6083_v25 = vpack.c.bf16 %v8236_v57, %v8234_v18  ;;  %v8320_v36 = vld [vmem:[#allocation11 + $0x988] sm:$0xff] }
 0x221   :  { %6046 = vmatprep.subr.bf16.mxu0 %v6045_v59  ;;  %v6053_v59 = vpack.c.bf16 %v8255_v43, %v8253_v30  ;;  %v8322_v18 = vld [vmem:[#allocation11 + $0x880] sm:$0xff]  ;;  %v8324_v57 = vld [vmem:[#allocation11 + $0x888] sm:$0xff]  ;;  %v6089_v43 = vpack.c.bf16 %v8280_v60, %v8278_v19  ;;  %v1841_v30 = vpop.f32.mrb[25].mxu0 }
 0x223   :  { %6076 = vmatpush3.bf16.msra.mxu1 %v6075_v39  ;;  %v6085_v39 = vpack.c.bf16 %v8251_v4, %v8249_v27  ;;  %v6055_v4 = vpack.c.bf16 %v8269_v22, %v8267_v1  ;;  %v6057_v27 = vpack.c.bf16 %v8292_v17, %v8282_v16  ;;  %v1842_v22 = vadd.f32 %v1841_v30, %v8174_v15  ;;  %v1843_v1 = vpop.f32.mrb[26].mxu0 }
 0x224   :  { %6078 = vmatprep.subr.bf16.mxu1 %v6077_v0  ;;  %6048 = vmatpush3.bf16.msra.mxu0 %v6047_v5  ;;  %v6051_v0 = vpack.c.bf16 %v8247_v52, %v8245_v35  ;;  %v1892_v5 = vpop.f32.mrb[24].mxu1  ;;  %v1840_v35 = vadd.f32 %v1839_v41, %v8164_v56  ;;  %v6125_v41 = vpack.c.bf16 %v8320_v36, %v8310_v29 }
 0x225   :  { %6050 = vmatprep.subr.bf16.mxu0 %v6049_v58  ;;  %v1893_v63 = vadd.f32 %v1892_v5, %v8194_v7  ;;  %v1894_v45 = vpop.f32.mrb[25].mxu1  ;;  %v6059_v58 = vpack.c.bf16 %v8308_v34, %v8306_v12  ;;  %v6093_v16 = vpack.c.bf16 %v8324_v57, %v8322_v18  ;;  %v1844_v17 = vadd.f32 %v1843_v1, %v8164_v56  ;;  %v1845_v5 = vpop.f32.mrb[27].mxu0 }
 0x226   :  { %v1895_v19 = vadd.f32 %v1894_v45, %v8204_v33  ;;  %v1896_v60 = vpop.f32.mrb[26].mxu1  ;;  %v1973_v30 = vmax.f32 %v1842_v22, 0.0  ;;  %v1846_v45 = vadd.f32 %v1845_v5, %v8174_v15  ;;  %v8738_v29 = vrot.slane %v7867_v10, %v8717_v44 }
 0x227   :  { %6080 = vmatpush3.bf16.msra.mxu1 %v6079_v32  ;;  %v1972_v32 = vmax.f32 %v1840_v35, 0.0  ;;  %v1974_v52 = vmax.f32 %v1893_v63, 0.0  ;;  %v1897_v34 = vadd.f32 %v1896_v60, %v8194_v7  ;;  %v1898_v12 = vpop.f32.mrb[27].mxu1  ;;  %v1989_v63 = vmax.f32 %v1844_v17, 0.0 }
 0x228   :  { %6082 = vmatprep.subr.bf16.mxu1 %v6081_v50  ;;  %6052 = vmatpush3.bf16.msra.mxu0 %v6051_v0  ;;  %v1975_v9 = vmax.f32 %v1895_v19, 0.0  ;;  %v1899_v50 = vadd.f32 %v1898_v12, %v8204_v33  ;;  %v2423_v35 = vmul.f32 %v2125_v20, %v1973_v30  ;;  %v1990_v1 = vmax.f32 %v1846_v45, 0.0 }
 0x229   :  { %6054 = vmatprep.subr.bf16.mxu0 %v6053_v59  ;;  %v2422_v18 = vmul.f32 %v2121_v38, %v1972_v32  ;;  %v3015_v57 = vmul.f32 %v2714_v48, %v1972_v32  ;;  %v2424_v0 = vmul.f32 %v2129_v11, %v1974_v52  ;;  %v8718_v59 = vrot.slane %v7811_v13, %v8715_v28 }
 0x22a   :  { %v8719_v38 = vrot.slane %v7811_v13, %v8716_v26  ;;  %v8720_v48 = vrot.slane %v7819_v37, %v7392_v31  ;;  %v8721_v11 = vrot.slane %v7831_v49, %v7392_v31  ;;  %v8722_v20 = vrot.slane %v7809_v40, %v8717_v44 }
 0x22b   :  { %6084 = vmatpush3.bf16.msra.mxu1 %v6083_v25  ;;  %v3016_v22 = vmul.f32 %v8718_v59, %v1973_v30  ;;  %v8723_v17 = vrot.slane %v7811_v13, %v8717_v44  ;;  %v8725_v12 = vrot.slane %v7831_v49, %v8715_v28  ;;  %v1991_v45 = vmax.f32 %v1897_v34, 0.0 }
 0x22c   :  { %v3017_v19 = vmul.f32 %v8719_v38, %v1974_v52  ;;  %6086 = vmatprep.subr.bf16.mxu1 %v6085_v39  ;;  %v2439_v60 = vmul.f32 %v8720_v48, %v1989_v63  ;;  %v3032_v25 = vmul.f32 %v8721_v11, %v1989_v63  ;;  %v2425_v32 = vmul.f32 %v8722_v20, %v1975_v9  ;;  %v1849_v63 = vpop.f32.mrb[28].mxu0  ;;  %v1902_v38 = vpop.f32.mrb[28].mxu1 }
 0x22d   :  { %v3018_v5 = vmul.f32 %v8723_v17, %v1975_v9  ;;  %6056 = vmatpush3.bf16.msra.mxu0 %v6055_v4  ;;  %v8724_v39 = vrot.slane %v7819_v37, %v8715_v28  ;;  %v3033_v30 = vmul.f32 %v8725_v12, %v1990_v1  ;;  %v1992_v59 = vmax.f32 %v1899_v50, 0.0  ;;  %v1851_v9 = vpop.f32.mrb[29].mxu0  ;;  %v1904_v4 = vpop.f32.mrb[29].mxu1 }
 0x22e   :  { %6058 = vmatprep.subr.bf16.mxu0 %v6057_v27  ;;  %v2514_v40 = vadd.f32 %v2439_v60, %v2422_v18  ;;  %v3107_v48 = vadd.f32 %v3032_v25, %v3015_v57  ;;  %v1850_v11 = vadd.f32 %v1849_v63, %v8164_v56  ;;  %v1903_v13 = vadd.f32 %v1902_v38, %v8194_v7  ;;  %v1853_v57 = vpop.f32.mrb[30].mxu0 }
 0x22f   :  { %v2440_v52 = vmul.f32 %v8724_v39, %v1990_v1  ;;  %v8726_v20 = vpack.c.bf16 %v8265_v24, %v8257_v55  ;;  %v3110_v39 = vadd.f32 %v3033_v30, %v3016_v22  ;;  %v8727_v34 = vrot.slane %v7819_v37, %v8716_v26  ;;  %v1906_v1 = vpop.f32.mrb[30].mxu1 }
 0x230   :  { %v8728_v27 = vrot.slane %v7831_v49, %v8716_v26  ;;  %v8729_v60 = vrot.slane %v7819_v37, %v8717_v44  ;;  %v8730_v24 = vrot.slane %v7831_v49, %v8717_v44  ;;  %v2008_v22 = vmax.f32 %v1903_v13, 0.0  ;;  %v1908_v12 = vpop.f32.mrb[31].mxu1 }
 0x231   :  { %6088 = vmatpush3.bf16.msra.mxu1 %v8726_v20  ;;  %v2517_v17 = vadd.f32 %v2440_v52, %v2423_v35  ;;  %v2441_v50 = vmul.f32 %v8727_v34, %v1991_v45  ;;  %v2006_v35 = vmax.f32 %v1850_v11, 0.0  ;;  %v1855_v52 = vpop.f32.mrb[31].mxu0  ;;  %6060 = vmatpush3.bf16.msra.mxu0 %v6059_v58  ;;  %v1905_v38 = vadd.f32 %v1904_v4, %v8204_v33 }
 0x232   :  { %v3034_v18 = vmul.f32 %v8728_v27, %v1991_v45  ;;  %6090 = vmatprep.subr.bf16.mxu1 %v6089_v43  ;;  %v2442_v25 = vmul.f32 %v8729_v60, %v1992_v59  ;;  %v3035_v55 = vmul.f32 %v8730_v24, %v1992_v59  ;;  %v1852_v45 = vadd.f32 %v1851_v9, %v8174_v15 }
 0x233   :  { %v2520_v30 = vadd.f32 %v2441_v50, %v2424_v0  ;;  %6094 = vmatprep.subr.bf16.mxu0 %v6093_v16  ;;  %v8731_v37 = vrot.slane %v7867_v10, %v7392_v31  ;;  %v8732_v49 = vrot.slane %v7874_v6, %v7392_v31  ;;  %v8733_v58 = vpack.c.bf16 %v8296_v54, %v8294_v51 }
 0x234   :  { %v3113_v63 = vadd.f32 %v3034_v18, %v3017_v19  ;;  %v2523_v43 = vadd.f32 %v2442_v25, %v2425_v32  ;;  %v3116_v20 = vadd.f32 %v3035_v55, %v3018_v5  ;;  %v8734_v0 = vrot.slane %v7867_v10, %v8716_v26 }
 0x235   :  { %v2456_v34 = vmul.f32 %v8731_v37, %v2006_v35  ;;  %v3049_v59 = vmul.f32 %v8732_v49, %v2006_v35  ;;  %6092 = vmatpush3.bf16.msra.mxu1 %v8733_v58  ;;  %v8735_v16 = vrot.slane %v7874_v6, %v8716_v26  ;;  %v2007_v5 = vmax.f32 %v1852_v45, 0.0 }
 0x236   :  { %v2458_v19 = vmul.f32 %v8734_v0, %v2008_v22  ;;  %v2009_v11 = vmax.f32 %v1905_v38, 0.0  ;;  %6126 = vmatprep.subr.bf16.mxu1 %v6125_v41  ;;  %v1854_v4 = vadd.f32 %v1853_v57, %v8164_v56  ;;  %v1907_v54 = vadd.f32 %v1906_v1, %v8194_v7 }
 0x237   :  { %v3051_v32 = vmul.f32 %v8735_v16, %v2008_v22  ;;  %v2515_v13 = vadd.f32 %v2514_v40, %v2456_v34  ;;  %v3108_v9 = vadd.f32 %v3107_v48, %v3049_v59  ;;  %v8736_v27 = vrot.slane %v7867_v10, %v8715_v28 }
 0x238   :  { %v2521_v51 = vadd.f32 %v2520_v30, %v2458_v19  ;;  %v8737_v60 = vrot.slane %v7874_v6, %v8715_v28  ;;  %v2459_v36 = vmul.f32 %v8738_v29, %v2009_v11  ;;  %v8739_v41 = vrot.slane %v7874_v6, %v8717_v44 }
 0x239   :  { %v3114_v50 = vadd.f32 %v3113_v63, %v3051_v32  ;;  %v2457_v18 = vmul.f32 %v8736_v27, %v2007_v5  ;;  %v2023_v40 = vmax.f32 %v1854_v4, 0.0  ;;  %v2025_v7 = vmax.f32 %v1907_v54, 0.0 }
 0x23a   :  { %v3050_v25 = vmul.f32 %v8737_v60, %v2007_v5  ;;  %v3052_v56 = vmul.f32 %v8739_v41, %v2009_v11  ;;  %v1856_v1 = vadd.f32 %v1855_v52, %v8174_v15  ;;  %v1909_v24 = vadd.f32 %v1908_v12, %v8204_v33  ;;  %v8749_v60 = vld [vmem:[#allocation24_spill] sm:$0xff] }
 0x23b   :  { %v2518_v48 = vadd.f32 %v2517_v17, %v2457_v18  ;;  %v2524_v55 = vadd.f32 %v2523_v43, %v2459_v36  ;;  %v8740_v22 = vrot.slane %v7878_v53, %v7392_v31  ;;  %v8741_v10 = vrot.slane %v7880_v61, %v7392_v31  ;;  %v3533_v18 = vld [vmem:[#allocation11 + $0x908] sm:$0xff]  ;;  %v3550_v36 = vld [vmem:[#allocation11 + $0x990] sm:$0xff] }
 0x23c   :  { %v3111_v57 = vadd.f32 %v3110_v39, %v3050_v25  ;;  %v3117_v35 = vadd.f32 %v3116_v20, %v3052_v56  ;;  %v8742_v6 = vrot.slane %v7878_v53, %v8716_v26  ;;  %v8743_v17 = vrot.slane %v7880_v61, %v8716_v26  ;;  %v8751_v56 = vld [vmem:[#allocation26_spill] sm:$0xff] }
 0x23d   :  { %v2473_v30 = vmul.f32 %v8740_v22, %v2023_v40  ;;  %v3066_v63 = vmul.f32 %v8741_v10, %v2023_v40  ;;  %v2024_v39 = vmax.f32 %v1856_v1, 0.0  ;;  %v2026_v33 = vmax.f32 %v1909_v24, 0.0  ;;  %v3551_v40 = vld [vmem:[#allocation11 + $0x998] sm:$0xff]  ;;  %v3518_v24 = vld [vmem:[#allocation11 + $0x890] sm:$0xff] }
 0x23e   :  { %v2475_v45 = vmul.f32 %v8742_v6, %v2025_v7  ;;  %v3068_v15 = vmul.f32 %v8743_v17, %v2025_v7  ;;  %v2583_v12 = vrot.slane %v7910_v62, %v7392_v31  ;;  %v2587_v43 = vrot.slane %v7910_v62, %v8715_v28  ;;  %v3500_v7 = vld [vmem:[#allocation11 + $0x800] sm:$0xff]  ;;  %v3534_v6 = vld [vmem:[#allocation11 + $0x910] sm:$0xff] }
 0x23f   :  { %v2516_v52 = vadd.f32 %v2515_v13, %v2473_v30  ;;  %v8453_v38 = vadd.f32 %v3108_v9, %v3066_v63  ;;  %v8744_v34 = vrot.slane %v7878_v53, %v8715_v28  ;;  %v8745_v59 = vrot.slane %v7880_v61, %v8715_v28  ;;  %v3552_v17 = vld [vmem:[#allocation11 + $0x9a0] sm:$0xff] }
 0x240   :  { %v2522_v20 = vadd.f32 %v2521_v51, %v2475_v45  ;;  %v8457_v37 = vadd.f32 %v3114_v50, %v3068_v15  ;;  %v8746_v0 = vrot.slane %v7878_v53, %v8717_v44  ;;  %v8747_v16 = vrot.slane %v7880_v61, %v8717_v44  ;;  %v3532_v61 = vld [vmem:[#allocation11 + $0x900] sm:$0xff]  ;;  %v3535_v45 = vld [vmem:[#allocation11 + $0x918] sm:$0xff] }
 0x241   :  { %v2474_v49 = vmul.f32 %v8744_v34, %v2024_v39  ;;  %v3067_v58 = vmul.f32 %v8745_v59, %v2024_v39  ;;  %v2595_v5 = vrot.slane %v7910_v62, %v8717_v44  ;;  %v3136_v11 = vrot.slane %v8160_v3, %v8669_v23  ;;  %v3521_v34 = vld [vmem:[#allocation11 + $0x8a8] sm:$0xff] }
 0x242   :  { %v2476_v19 = vmul.f32 %v8746_v0, %v2026_v33  ;;  %v3069_v32 = vmul.f32 %v8747_v16, %v2026_v33  ;;  %v8748_v13 = vrot.slane %v7910_v62, %v8716_v26  ;;  %v2629_v51 = vadd.f32 %v2583_v12, %v2516_v52  ;;  %v3553_v33 = vld [vmem:[#allocation11 + $0x9a8] sm:$0xff]  ;;  %v3502_v12 = vld [vmem:[#allocation11 + $0x810] sm:$0xff] }
 0x243   :  { %v2519_v4 = vadd.f32 %v2518_v48, %v2474_v49  ;;  %v8478_v54 = vadd.f32 %v3111_v57, %v3067_v58  ;;  %v8750_v25 = vrot.slane %v8160_v3, %v8666_v8  ;;  %v3212_v62 = vadd.f32 %v3136_v11, %v8751_v56  ;;  %v3501_v48 = vld [vmem:[#allocation11 + $0x808] sm:$0xff]  ;;  %v3536_v58 = vld [vmem:[#allocation11 + $0x920] sm:$0xff] }
 0x244   :  { %v2631_v9 = vadd.f32 %v8748_v13, %v2522_v20  ;;  %v2525_v53 = vadd.f32 %v2524_v55, %v2476_v19  ;;  %v8480_v50 = vadd.f32 %v3117_v35, %v3069_v32  ;;  %v3519_v55 = vld [vmem:[#allocation11 + $0x898] sm:$0xff]  ;;  %v2646_v22 = vmax.f32 %v2629_v51, 0.0  ;;  %v3520_v20 = vld [vmem:[#allocation11 + $0x8a0] sm:$0xff]  ;;  %v3537_v0 = vld [vmem:[#allocation11 + $0x928] sm:$0xff] }
 0x245   :  { %v2630_v27 = vadd.f32 %v2587_v43, %v2519_v4  ;;  %v3210_v29 = vadd.f32 %v8750_v25, %v8749_v60  ;;  %v6127_v30 = vpack.c.bf16 %v3533_v18, %v3532_v61  ;;  %v6129_v63 = vpack.c.bf16 %v3551_v40, %v3550_v36  ;;  %v3503_v43 = vld [vmem:[#allocation11 + $0x818] sm:$0xff]  ;;  %v3554_v19 = vld [vmem:[#allocation11 + $0x9b0] sm:$0xff]  ;;  %v3504_v11 = vld [vmem:[#allocation11 + $0x820] sm:$0xff] }
 0x246   :  { %v2632_v41 = vadd.f32 %v2595_v5, %v2525_v53  ;;  %v2648_v1 = vmax.f32 %v2631_v9, 0.0  ;;  %v6095_v15 = vpack.c.bf16 %v3501_v48, %v3500_v7  ;;  %v3229_v39 = vmax.f32 %v3212_v62, 0.0  ;;  %v3555_v32 = vld [vmem:[#allocation11 + $0x9b8] sm:$0xff]  ;;  %v3505_v13 = vld [vmem:[#allocation11 + $0x828] sm:$0xff]  ;;  %v3522_v9 = vld [vmem:[#allocation11 + $0x8b0] sm:$0xff] }
 0x247   :  { %v2647_v57 = vmax.f32 %v2630_v27, 0.0  ;;  %v3227_v10 = vmax.f32 %v3210_v29, 0.0  ;;  %v6097_v52 = vpack.c.bf16 %v3519_v55, %v3518_v24  ;;  %v6131_v49 = vpack.c.bf16 %v3535_v45, %v3534_v6  ;;  %v3523_v4 = vld [vmem:[#allocation11 + $0x8b8] sm:$0xff]  ;;  %v3538_v27 = vld [vmem:[#allocation11 + $0x930] sm:$0xff]  ;;  %v3556_v18 = vld [vmem:[#allocation11 + $0x9c0] sm:$0xff] }
 0x248   :  { %v2649_v35 = vmax.f32 %v2632_v41, 0.0  ;;  %v6133_v59 = vpack.c.bf16 %v3553_v33, %v3552_v17  ;;  %v6099_v16 = vpack.c.bf16 %v3503_v43, %v3502_v12  ;;  %v6101_v5 = vpack.c.bf16 %v3521_v34, %v3520_v20  ;;  %v3539_v61 = vld [vmem:[#allocation11 + $0x938] sm:$0xff]  ;;  %v3557_v25 = vld [vmem:[#allocation11 + $0x9c8] sm:$0xff]  ;;  %v3506_v36 = vld [vmem:[#allocation11 + $0x830] sm:$0xff] }
 0x249   :  { %4279 = vmatprep.mubr.f32.mxu0 %v2647_v57  ;;  %v6135_v51 = vpack.c.bf16 %v3537_v0, %v3536_v58  ;;  %v6137_v53 = vpack.c.bf16 %v3555_v32, %v3554_v19  ;;  %v6103_v60 = vpack.c.bf16 %v3505_v13, %v3504_v11  ;;  %v6105_v29 = vpack.c.bf16 %v3523_v4, %v3522_v9  ;;  %v3507_v41 = vld [vmem:[#allocation11 + $0x838] sm:$0xff]  ;;  %v3524_v56 = vld [vmem:[#allocation11 + $0x8c0] sm:$0xff]  ;;  %v3525_v62 = vld [vmem:[#allocation11 + $0x8c8] sm:$0xff] }
 0x24a   :  { %4349 = vmatprep.mubr.f32.mxu1 %v2649_v35  ;;  %4280 = vmatmul.mubr.f32.vlgmr.msra.gmra.mrb[44].mxu0 %v2646_v22  ;;  %v6139_v40 = vpack.c.bf16 %v3539_v61, %v3538_v27  ;;  %v6141_v7 = vpack.c.bf16 %v3557_v25, %v3556_v18  ;;  %v3540_v48 = vld [vmem:[#allocation11 + $0x940] sm:$0xff]  ;;  %v3541_v57 = vld [vmem:[#allocation11 + $0x948] sm:$0xff]  ;;  %v6107_v24 = vpack.c.bf16 %v3507_v41, %v3506_v36  ;;  %v3559_v55 = vld [vmem:[#allocation11 + $0x9d8] sm:$0xff] }
 0x24b   :  { %4350 = vmatmul.mubr.f32.vlgmr.msra.gmra.mrb[40].mxu1 %v2648_v1  ;;  %4419 = vmatprep.mubr.f32.mxu0 %v3227_v10  ;;  %v3558_v1 = vld [vmem:[#allocation11 + $0x9d0] sm:$0xff]  ;;  %v6109_v35 = vpack.c.bf16 %v3525_v62, %v3524_v56  ;;  %v3508_v22 = vld [vmem:[#allocation11 + $0x840] sm:$0xff]  ;;  %v6143_v6 = vpack.c.bf16 %v3541_v57, %v3540_v48  ;;  %v3561_v12 = vld [vmem:[#allocation11 + $0x9e8] sm:$0xff]  ;;  %v3132_v56 = vrot.slane %v8160_v3, %v8667_v2 }
 0x24c   :  { %6128 = vmatpush3.bf16.msra.mxu1 %v6127_v30  ;;  %4489 = vmatprep.mubr.f32.mxu1 %v3229_v39  ;;  %v3509_v30 = vld [vmem:[#allocation11 + $0x848] sm:$0xff]  ;;  %v3526_v10 = vld [vmem:[#allocation11 + $0x8d0] sm:$0xff]  ;;  %v6145_v17 = vpack.c.bf16 %v3559_v55, %v3558_v1  ;;  %v3560_v33 = vld [vmem:[#allocation11 + $0x9e0] sm:$0xff]  ;;  %v3152_v1 = vrot.slane %v8160_v3, %v8716_v26 }
 0x24d   :  { %6130 = vmatprep.subr.bf16.mxu1 %v6129_v63  ;;  %6096 = vmatpush3.bf16.msra.mxu0 %v6095_v15  ;;  %v3527_v63 = vld [vmem:[#allocation11 + $0x8d8] sm:$0xff]  ;;  %v3542_v45 = vld [vmem:[#allocation11 + $0x950] sm:$0xff]  ;;  %v3529_v58 = vld [vmem:[#allocation11 + $0x8e8] sm:$0xff]  ;;  %v6149_v13 = vpack.c.bf16 %v3561_v12, %v3560_v33 }
 0x24e   :  { %6098 = vmatprep.subr.bf16.mxu0 %v6097_v52  ;;  %v3543_v15 = vld [vmem:[#allocation11 + $0x958] sm:$0xff]  ;;  %v8487_v39 = vld [vmem:[#allocation7 + $0x10] ss:$0 sm:$0xff]  ;;  %v6111_v52 = vpack.c.bf16 %v3509_v30, %v3508_v22  ;;  %v6113_v43 = vpack.c.bf16 %v3527_v63, %v3526_v10  ;;  %v3544_v32 = vld [vmem:[#allocation11 + $0x960] sm:$0xff] }
 0x24f   :  { %v3510_v20 = vld [vmem:[#allocation11 + $0x850] sm:$0xff]  ;;  %v3511_v34 = vld [vmem:[#allocation11 + $0x858] sm:$0xff]  ;;  %v6147_v0 = vpack.c.bf16 %v3543_v15, %v3542_v45  ;;  %v5231_v11 = vld [vmem:[#allocation8 + $0x10] ss:$0 sm:$0xff] }
 0x250   :  { %6132 = vmatpush3.bf16.msra.mxu1 %v6131_v49  ;;  %v1945_v49 = vpop.f32.mrb[32].mxu0  ;;  %v3562_v4 = vld [vmem:[#allocation11 + $0x9f0] sm:$0xff]  ;;  %v3512_v27 = vld [vmem:[#allocation11 + $0x860] sm:$0xff]  ;;  %v3531_v41 = vld [vmem:[#allocation11 + $0x8f8] sm:$0xff] }
 0x251   :  { %6134 = vmatprep.subr.bf16.mxu1 %v6133_v59  ;;  %6100 = vmatpush3.bf16.msra.mxu0 %v6099_v16  ;;  %v3528_v59 = vld [vmem:[#allocation11 + $0x8e0] sm:$0xff]  ;;  %v1946_v19 = vadd.f32 %v8487_v39, %v1945_v49  ;;  %v1947_v16 = vpop.f32.mrb[33].mxu0  ;;  %v3530_v36 = vld [vmem:[#allocation11 + $0x8f0] sm:$0xff]  ;;  %v5236_v62 = vld [vmem:[#allocation8 + $0x54] ss:$0 sm:$0xff] }
 0x252   :  { %6102 = vmatprep.subr.bf16.mxu0 %v6101_v5  ;;  %v3545_v5 = vld [vmem:[#allocation11 + $0x968] sm:$0xff]  ;;  %v1948_v9 = vpop.f32.mrb[34].mxu0  ;;  %v6117_v25 = vpack.c.bf16 %v3529_v58, %v3528_v59  ;;  %v3546_v55 = vld [vmem:[#allocation11 + $0x970] sm:$0xff]  ;;  %v3612_v22 = vld [vmem:[#allocation11 + $0xb80] sm:$0xff]  ;;  %v6121_v10 = vpack.c.bf16 %v3531_v41, %v3530_v36 }
 0x253   :  { %v1976_v61 = vmax.f32 %v1946_v19, 0.0  ;;  %v1949_v18 = vadd.f32 %v8487_v39, %v1948_v9  ;;  %v6151_v48 = vpack.c.bf16 %v3545_v5, %v3544_v32  ;;  %v3613_v15 = vld [vmem:[#allocation11 + $0xb88] sm:$0xff]  ;;  %v3514_v33 = vld [vmem:[#allocation11 + $0x870] sm:$0xff]  ;;  %v5234_v41 = vld [vmem:[#allocation8 + $0x43] ss:$0 sm:$0xff] }
 0x254   :  { %6136 = vmatpush3.bf16.msra.mxu1 %v6135_v51  ;;  %v3563_v51 = vld [vmem:[#allocation11 + $0x9f8] sm:$0xff]  ;;  %v3581_v49 = vld [vmem:[#allocation11 + $0xa88] sm:$0xff] }
 0x255   :  { %6138 = vmatprep.subr.bf16.mxu1 %v6137_v53  ;;  %6104 = vmatpush3.bf16.msra.mxu0 %v6103_v60  ;;  %v6115_v53 = vpack.c.bf16 %v3511_v34, %v3510_v20  ;;  %v1950_v60 = vpop.f32.mrb[35].mxu0  ;;  %v1993_v57 = vmax.f32 %v1949_v18, 0.0  ;;  %v2426_v63 = vmul.f32 %v5231_v11, %v1976_v61  ;;  %v8752_v12 = vld [vmem:[#allocation25_spill] sm:$0xff]  ;;  %v3580_v34 = vld [vmem:[#allocation11 + $0xa80] sm:$0xff]  ;;  %v5233_v16 = vld [vmem:[#allocation8 + $0x32] ss:$0 sm:$0xff]  ;;  %v6189_v11 = vpack.c.bf16 %v3613_v15, %v3612_v22 }
 0x256   :  { %6106 = vmatprep.subr.bf16.mxu0 %v6105_v29  ;;  %v3513_v29 = vld [vmem:[#allocation11 + $0x868] sm:$0xff]  ;;  %v1953_v20 = vpop.f32.mrb[36].mxu0  ;;  %v6157_v36 = vpack.c.bf16 %v3581_v49, %v3580_v34 }
 0x257   :  { %v6119_v30 = vpack.c.bf16 %v3513_v29, %v3512_v27  ;;  %v1954_v19 = vadd.f32 %v8487_v39, %v1953_v20  ;;  %v1955_v32 = vpop.f32.mrb[37].mxu0  ;;  %v5238_v5 = vld [vmem:[#allocation8 + $0x76] ss:$0 sm:$0xff]  ;;  %v3615_v29 = vld [vmem:[#allocation11 + $0xb98] sm:$0xff] }
 0x258   :  { %6140 = vmatpush3.bf16.msra.mxu1 %v6139_v40  ;;  %v5232_v40 = vld [vmem:[#allocation8 + $0x21] ss:$0 sm:$0xff]  ;;  %v3597_v9 = vld [vmem:[#allocation11 + $0xb08] sm:$0xff]  ;;  %v3619_v32 = vld [vmem:[#allocation11 + $0xbb8] sm:$0xff] }
 0x259   :  { %6142 = vmatprep.subr.bf16.mxu1 %v6141_v7  ;;  %6108 = vmatpush3.bf16.msra.mxu0 %v6107_v24  ;;  %v5237_v7 = vld [vmem:[#allocation8 + $0x65] ss:$0 sm:$0xff]  ;;  %v6153_v24 = vpack.c.bf16 %v3563_v51, %v3562_v4  ;;  %v2443_v45 = vmul.f32 %v5232_v40, %v1993_v57  ;;  %v3565_v20 = vld [vmem:[#allocation11 + $0xa08] sm:$0xff] }
 0x25a   :  { %6110 = vmatprep.subr.bf16.mxu0 %v6109_v35  ;;  %v3547_v35 = vld [vmem:[#allocation11 + $0x978] sm:$0xff]  ;;  %v3601_v34 = vld [vmem:[#allocation11 + $0xb28] sm:$0xff] }
 0x25b   :  { %v2526_v59 = vadd.f32 %v2443_v45, %v2426_v63  ;;  %v8753_v4 = vld [vmem:[#allocation34_spill] sm:$0xff]  ;;  %v3617_v45 = vld [vmem:[#allocation11 + $0xba8] sm:$0xff] }
 0x25c   :  { %6144 = vmatpush3.bf16.msra.mxu1 %v6143_v6  ;;  %v3019_v6 = vmul.f32 %v5236_v62, %v1976_v61  ;;  %v3216_v51 = vadd.f32 %v3152_v1, %v8753_v4  ;;  %v2010_v61 = vmax.f32 %v1954_v19, 0.0  ;;  %v8754_v49 = vld [vmem:[#allocation32_spill] sm:$0xff] }
 0x25d   :  { %6146 = vmatprep.subr.bf16.mxu1 %v6145_v17  ;;  %6112 = vmatpush3.bf16.msra.mxu0 %v6111_v52  ;;  %v3036_v17 = vmul.f32 %v5237_v7, %v1993_v57  ;;  %v3515_v52 = vld [vmem:[#allocation11 + $0x878] sm:$0xff] }
 0x25e   :  { %6114 = vmatprep.subr.bf16.mxu0 %v6113_v43  ;;  %v3211_v43 = vadd.f32 %v3132_v56, %v8752_v12  ;;  %v6123_v27 = vpack.c.bf16 %v3515_v52, %v3514_v33  ;;  %v5239_v56 = vld [vmem:[#allocation8 + $0x87] ss:$0 sm:$0xff]  ;;  %v2460_v62 = vmul.f32 %v5233_v16, %v2010_v61  ;;  %v3053_v40 = vmul.f32 %v5238_v5, %v2010_v61  ;;  %v3600_v12 = vld [vmem:[#allocation11 + $0xb20] sm:$0xff]  ;;  %v3618_v16 = vld [vmem:[#allocation11 + $0xbb0] sm:$0xff] }
 0x25f   :  { %v3119_v58 = vadd.f32 %v3036_v17, %v3019_v6  ;;  %v3233_v1 = vmax.f32 %v3216_v51, 0.0  ;;  %v3616_v6 = vld [vmem:[#allocation11 + $0xba0] sm:$0xff]  ;;  %v5235_v17 = vld [vmem:[#allocation10 + $0x10] ss:$0 sm:$0xff]  ;;  %v3566_v51 = vld [vmem:[#allocation11 + $0xa10] sm:$0xff] }
 0x260   :  { %6148 = vmatpush3.bf16.msra.mxu1 %v6147_v0  ;;  %v6155_v0 = vpack.c.bf16 %v3547_v35, %v3546_v55  ;;  %v3228_v57 = vmax.f32 %v3211_v43, 0.0  ;;  %v3598_v55 = vld [vmem:[#allocation11 + $0xb10] sm:$0xff]  ;;  %v3599_v35 = vld [vmem:[#allocation11 + $0xb18] sm:$0xff]  ;;  %v2527_v22 = vadd.f32 %v2526_v59, %v2460_v62  ;;  %v3564_v43 = vld [vmem:[#allocation11 + $0xa00] sm:$0xff] }
 0x261   :  { %6150 = vmatprep.subr.bf16.mxu1 %v6149_v13  ;;  %6116 = vmatpush3.bf16.msra.mxu0 %v6115_v53  ;;  %v3596_v13 = vld [vmem:[#allocation11 + $0xb00] sm:$0xff]  ;;  %v1956_v53 = vpop.f32.mrb[38].mxu0  ;;  %v6195_v52 = vpack.c.bf16 %v3599_v35, %v3598_v55  ;;  %v6159_v5 = vpack.c.bf16 %v3565_v20, %v3564_v43  ;;  %v3603_v61 = vld [vmem:[#allocation11 + $0xb38] sm:$0xff]  ;;  %v3622_v35 = vld [vmem:[#allocation11 + $0xbd0] sm:$0xff] }
 0x262   :  { %6118 = vmatprep.subr.bf16.mxu0 %v6117_v25  ;;  %v1957_v18 = vadd.f32 %v8487_v39, %v1956_v53  ;;  %v1958_v60 = vpop.f32.mrb[39].mxu0  ;;  %v3614_v25 = vld [vmem:[#allocation11 + $0xb90] sm:$0xff]  ;;  %v6191_v7 = vpack.c.bf16 %v3597_v9, %v3596_v13  ;;  %v3144_v39 = vrot.slane %v8160_v3, %v7392_v31  ;;  %v6197_v3 = vpack.c.bf16 %v3617_v45, %v3616_v6  ;;  %v3567_v53 = vld [vmem:[#allocation11 + $0xa18] sm:$0xff]  ;;  %v3604_v62 = vld [vmem:[#allocation11 + $0xb40] sm:$0xff] }
 0x263   :  { %v3602_v13 = vld [vmem:[#allocation11 + $0xb30] sm:$0xff]  ;;  %v3584_v60 = vld [vmem:[#allocation11 + $0xaa0] sm:$0xff]  ;;  %v3587_v55 = vld [vmem:[#allocation11 + $0xab8] sm:$0xff] }
 0x264   :  { %6152 = vmatpush3.bf16.msra.mxu1 %v6151_v48  ;;  %v2027_v48 = vmax.f32 %v1957_v18, 0.0  ;;  %v3214_v59 = vadd.f32 %v3144_v39, %v8754_v49  ;;  %v3623_v39 = vld [vmem:[#allocation11 + $0xbd8] sm:$0xff]  ;;  %v3570_v6 = vld [vmem:[#allocation11 + $0xa30] sm:$0xff]  ;;  %v3624_v43 = vld [vmem:[#allocation11 + $0xbe0] sm:$0xff] }
 0x265   :  { %6154 = vmatprep.subr.bf16.mxu1 %v6153_v24  ;;  %6120 = vmatpush3.bf16.msra.mxu0 %v6119_v30  ;;  %v6193_v24 = vpack.c.bf16 %v3615_v29, %v3614_v25  ;;  %v3120_v30 = vadd.f32 %v3119_v58, %v3053_v40  ;;  %v3582_v58 = vld [vmem:[#allocation11 + $0xa90] sm:$0xff]  ;;  %v3585_v25 = vld [vmem:[#allocation11 + $0xaa8] sm:$0xff]  ;;  %v3620_v29 = vld [vmem:[#allocation11 + $0xbc0] sm:$0xff] }
 0x266   :  { %6122 = vmatprep.subr.bf16.mxu0 %v6121_v10  ;;  %v2477_v10 = vmul.f32 %v5234_v41, %v2027_v48  ;;  %v3070_v63 = vmul.f32 %v5239_v56, %v2027_v48  ;;  %v3231_v18 = vmax.f32 %v3214_v59, 0.0  ;;  %v6163_v41 = vpack.c.bf16 %v3567_v53, %v3566_v51  ;;  %v3569_v48 = vld [vmem:[#allocation11 + $0xa28] sm:$0xff]  ;;  %v3571_v45 = vld [vmem:[#allocation11 + $0xa38] sm:$0xff]  ;;  %v3608_v49 = vld [vmem:[#allocation11 + $0xb60] sm:$0xff] }
 0x267   :  { %v6203_v56 = vpack.c.bf16 %v3603_v61, %v3602_v13  ;;  %v6165_v40 = vpack.c.bf16 %v3585_v25, %v3584_v60  ;;  %v3625_v20 = vld [vmem:[#allocation11 + $0xbe8] sm:$0xff]  ;;  %v3627_v13 = vld [vmem:[#allocation11 + $0xbf8] sm:$0xff]  ;;  %v3610_v53 = vld [vmem:[#allocation11 + $0xb70] sm:$0xff] }
 0x268   :  { %6156 = vmatpush3.bf16.msra.mxu1 %v6155_v0  ;;  %v2528_v15 = vadd.f32 %v2527_v22, %v2477_v10  ;;  %v8501_v33 = vadd.f32 %v3120_v30, %v3070_v63  ;;  %v3583_v0 = vld [vmem:[#allocation11 + $0xa98] sm:$0xff]  ;;  %v3606_v10 = vld [vmem:[#allocation11 + $0xb50] sm:$0xff] }
 0x269   :  { %6190 = vmatprep.subr.bf16.mxu1 %v6189_v11  ;;  %6124 = vmatpush3.bf16.msra.mxu0 %v6123_v27  ;;  %v6199_v11 = vpack.c.bf16 %v3601_v34, %v3600_v12  ;;  %v6161_v4 = vpack.c.bf16 %v3583_v0, %v3582_v58  ;;  %v6201_v27 = vpack.c.bf16 %v3619_v32, %v3618_v16  ;;  %v3589_v12 = vld [vmem:[#allocation11 + $0xac8] sm:$0xff]  ;;  %v3572_v58 = vld [vmem:[#allocation11 + $0xa40] sm:$0xff]  ;;  %v3590_v32 = vld [vmem:[#allocation11 + $0xad0] sm:$0xff] }
 0x26a   :  { %6158 = vmatprep.subr.bf16.mxu0 %v6157_v36  ;;  %v2633_v19 = vadd.f32 %v5235_v17, %v2528_v15  ;;  %v3621_v36 = vld [vmem:[#allocation11 + $0xbc8] sm:$0xff]  ;;  %v6209_v17 = vpack.c.bf16 %v3623_v39, %v3622_v35  ;;  %v3607_v15 = vld [vmem:[#allocation11 + $0xb58] sm:$0xff]  ;;  %v3574_v61 = vld [vmem:[#allocation11 + $0xa50] sm:$0xff] }
 0x26b   :  { %4490 = vmatmul.mubr.f32.vlgmr.msra.gmra.mrb[42].mxu1 %v3228_v57  ;;  %v6205_v57 = vpack.c.bf16 %v3621_v36, %v3620_v29  ;;  %v6211_v34 = vpack.c.bf16 %v3607_v15, %v3606_v10  ;;  %v3573_v0 = vld [vmem:[#allocation11 + $0xa48] sm:$0xff]  ;;  %v3611_v36 = vld [vmem:[#allocation11 + $0xb78] sm:$0xff] }
 0x26c   :  { %6192 = vmatpush3.bf16.msra.mxu1 %v6191_v7  ;;  %4629 = vmatprep.mubr.f32.mxu1 %v3233_v1  ;;  %v2650_v9 = vmax.f32 %v2633_v19, 0.0  ;;  %v3568_v7 = vld [vmem:[#allocation11 + $0xa20] sm:$0xff]  ;;  %v3605_v1 = vld [vmem:[#allocation11 + $0xb48] sm:$0xff]  ;;  %v6213_v19 = vpack.c.bf16 %v3625_v20, %v3624_v43  ;;  %v8755_v35 = vld [vmem:[#allocation33_spill] sm:$0xff] }
 0x26d   :  { %6194 = vmatprep.subr.bf16.mxu1 %v6193_v24  ;;  %v3586_v24 = vld [vmem:[#allocation11 + $0xab0] sm:$0xff]  ;;  %v6167_v22 = vpack.c.bf16 %v3569_v48, %v3568_v7  ;;  %v6207_v30 = vpack.c.bf16 %v3605_v1, %v3604_v62  ;;  %v3609_v16 = vld [vmem:[#allocation11 + $0xb68] sm:$0xff]  ;;  %v3676_v62 = vld [vmem:[#allocation11 + $0xd80] sm:$0xff] }
 0x26e   :  { %4420 = vmatmul.mubr.f32.vlgmr.msra.gmra.mrb[46].mxu0 %v2650_v9  ;;  %v6169_v63 = vpack.c.bf16 %v3587_v55, %v3586_v24  ;;  %v8504_v9 = vld [vmem:[#allocation10 + $0x19] sm:$0xff]  ;;  %v6215_v51 = vpack.c.bf16 %v3609_v16, %v3608_v49  ;;  %v8506_v60 = vld [vmem:[#allocation10 + $0x11] sm:$0xff]  ;;  %v3576_v24 = vld [vmem:[#allocation11 + $0xa60] sm:$0xff] }
 0x26f   :  { %6160 = vmatpush3.bf16.msra.mxu0 %v6159_v5  ;;  %4559 = vmatprep.mubr.f32.mxu0 %v3231_v18  ;;  %v3591_v5 = vld [vmem:[#allocation11 + $0xad8] sm:$0xff]  ;;  %v3148_v25 = vrot.slane %v8506_v60, %v8715_v28  ;;  %v3168_v7 = vrot.slane %v8504_v9, %v8669_v23  ;;  %v3577_v55 = vld [vmem:[#allocation11 + $0xa68] sm:$0xff] }
 0x270   :  { %6196 = vmatpush3.bf16.msra.mxu1 %v6195_v52  ;;  %6162 = vmatprep.subr.bf16.mxu0 %v6161_v4  ;;  %v3588_v52 = vld [vmem:[#allocation11 + $0xac0] sm:$0xff]  ;;  %v6175_v4 = vpack.c.bf16 %v3573_v0, %v3572_v58  ;;  %v3575_v18 = vld [vmem:[#allocation11 + $0xa58] sm:$0xff]  ;;  %v3661_v10 = vld [vmem:[#allocation11 + $0xd08] sm:$0xff] }
 0x271   :  { %6198 = vmatprep.subr.bf16.mxu1 %v6197_v3  ;;  %v6171_v3 = vpack.c.bf16 %v3571_v45, %v3570_v6  ;;  %v6173_v59 = vpack.c.bf16 %v3589_v12, %v3588_v52  ;;  %v6179_v48 = vpack.c.bf16 %v3575_v18, %v3574_v61  ;;  %v3215_v39 = vadd.f32 %v3148_v25, %v8755_v35  ;;  %v3679_v45 = vld [vmem:[#allocation11 + $0xd98] sm:$0xff]  ;;  %v3664_v61 = vld [vmem:[#allocation11 + $0xd20] sm:$0xff] }
 0x272   :  { %v3220_v6 = vadd.f32 %v3168_v7, %v8156_v14  ;;  %v3595_v23 = vld [vmem:[#allocation11 + $0xaf8] sm:$0xff]  ;;  %v6183_v52 = vpack.c.bf16 %v3577_v55, %v3576_v24  ;;  %v3140_v12 = vrot.slane %v8506_v60, %v8668_v47  ;;  %v3628_v25 = vld [vmem:[#allocation11 + $0xc00] sm:$0xff]  ;;  %v3682_v7 = vld [vmem:[#allocation11 + $0xdb0] sm:$0xff] }
 0x273   :  { %6164 = vmatpush3.bf16.msra.mxu0 %v6163_v41  ;;  %v3592_v41 = vld [vmem:[#allocation11 + $0xae0] sm:$0xff]  ;;  %v5274_v15 = vpop.f32.mrb[32].mxu1  ;;  %v3579_v49 = vld [vmem:[#allocation11 + $0xa78] sm:$0xff]  ;;  %v3232_v14 = vmax.f32 %v3215_v39, 0.0  ;;  %v3666_v24 = vld [vmem:[#allocation11 + $0xd30] sm:$0xff] }
 0x274   :  { %6200 = vmatpush3.bf16.msra.mxu1 %v6199_v11  ;;  %6166 = vmatprep.subr.bf16.mxu0 %v6165_v40  ;;  %v3626_v11 = vld [vmem:[#allocation11 + $0xbf0] sm:$0xff]  ;;  %v3677_v40 = vld [vmem:[#allocation11 + $0xd88] sm:$0xff]  ;;  %v5275_v20 = vpop.f32.mrb[33].mxu1 }
 0x275   :  { %6202 = vmatprep.subr.bf16.mxu1 %v6201_v27  ;;  %v6177_v27 = vpack.c.bf16 %v3591_v5, %v3590_v32  ;;  %v6217_v29 = vpack.c.bf16 %v3627_v13, %v3626_v11  ;;  %v8518_v0 = vadd.f32 %v5275_v20, %v5274_v15  ;;  %v3644_v32 = vld [vmem:[#allocation11 + $0xc80] sm:$0xff]  ;;  %v3645_v5 = vld [vmem:[#allocation11 + $0xc88] sm:$0xff]  ;;  %v3237_v11 = vmax.f32 %v3220_v6, 0.0  ;;  %v3630_v39 = vld [vmem:[#allocation11 + $0xc10] sm:$0xff] }
 0x276   :  { %v3680_v13 = vld [vmem:[#allocation11 + $0xda0] sm:$0xff]  ;;  %v6221_v18 = vpack.c.bf16 %v3645_v5, %v3644_v32  ;;  %v3633_v20 = vld [vmem:[#allocation11 + $0xc28] sm:$0xff]  ;;  %v3670_v32 = vld [vmem:[#allocation11 + $0xd50] sm:$0xff] }
 0x277   :  { %6168 = vmatpush3.bf16.msra.mxu0 %v6167_v22  ;;  %v6253_v22 = vpack.c.bf16 %v3677_v40, %v3676_v62  ;;  %v3646_v62 = vld [vmem:[#allocation11 + $0xc90] sm:$0xff]  ;;  %v3647_v40 = vld [vmem:[#allocation11 + $0xc98] sm:$0xff]  ;;  %v3648_v6 = vld [vmem:[#allocation11 + $0xca0] sm:$0xff] }
 0x278   :  { %6204 = vmatpush3.bf16.msra.mxu1 %v6203_v56  ;;  %6170 = vmatprep.subr.bf16.mxu0 %v6169_v63  ;;  %v3593_v56 = vld [vmem:[#allocation11 + $0xae8] sm:$0xff]  ;;  %v3678_v63 = vld [vmem:[#allocation11 + $0xd90] sm:$0xff]  ;;  %v6225_v35 = vpack.c.bf16 %v3647_v40, %v3646_v62 }
 0x279   :  { %6206 = vmatprep.subr.bf16.mxu1 %v6205_v57  ;;  %v6219_v57 = vpack.c.bf16 %v3611_v36, %v3610_v53  ;;  %v6181_v1 = vpack.c.bf16 %v3593_v56, %v3592_v41  ;;  %v6257_v58 = vpack.c.bf16 %v3679_v45, %v3678_v63  ;;  %v8756_v53 = vld [vmem:[#allocation27_spill] sm:$0xff] }
 0x27a   :  { %v3665_v41 = vld [vmem:[#allocation11 + $0xd28] sm:$0xff]  ;;  %v3684_v45 = vld [vmem:[#allocation11 + $0xdc0] sm:$0xff] }
 0x27b   :  { %6172 = vmatpush3.bf16.msra.mxu0 %v6171_v3  ;;  %v3662_v3 = vld [vmem:[#allocation11 + $0xd10] sm:$0xff]  ;;  %v3673_v40 = vld [vmem:[#allocation11 + $0xd68] sm:$0xff] }
 0x27c   :  { %6208 = vmatpush3.bf16.msra.mxu1 %v6207_v30  ;;  %6174 = vmatprep.subr.bf16.mxu0 %v6173_v59  ;;  %v3660_v30 = vld [vmem:[#allocation11 + $0xd00] sm:$0xff]  ;;  %v3160_v59 = vrot.slane %v8504_v9, %v8666_v8 }
 0x27d   :  { %6210 = vmatprep.subr.bf16.mxu1 %v6209_v17  ;;  %v3594_v17 = vld [vmem:[#allocation11 + $0xaf0] sm:$0xff]  ;;  %v6255_v43 = vpack.c.bf16 %v3661_v10, %v3660_v30  ;;  %v3667_v10 = vld [vmem:[#allocation11 + $0xd38] sm:$0xff] }
 0x27e   :  { %v6185_v16 = vpack.c.bf16 %v3595_v23, %v3594_v17  ;;  %v3218_v56 = vadd.f32 %v3160_v59, %v8108_v21  ;;  %v3649_v21 = vld [vmem:[#allocation11 + $0xca8] sm:$0xff]  ;;  %v6267_v15 = vpack.c.bf16 %v3667_v10, %v3666_v24  ;;  %v3651_v59 = vld [vmem:[#allocation11 + $0xcb8] sm:$0xff] }
 0x27f   :  { %6176 = vmatpush3.bf16.msra.mxu0 %v6175_v4  ;;  %v3681_v4 = vld [vmem:[#allocation11 + $0xda8] sm:$0xff]  ;;  %v3639_v10 = vld [vmem:[#allocation11 + $0xc58] sm:$0xff] }
 0x280   :  { %6212 = vmatpush3.bf16.msra.mxu1 %v6211_v34  ;;  %6178 = vmatprep.subr.bf16.mxu0 %v6177_v27  ;;  %v3578_v34 = vld [vmem:[#allocation11 + $0xa70] sm:$0xff]  ;;  %v3213_v27 = vadd.f32 %v3140_v12, %v8756_v53  ;;  %v6261_v36 = vpack.c.bf16 %v3681_v4, %v3680_v13  ;;  %v3235_v63 = vmax.f32 %v3218_v56, 0.0  ;;  %v3685_v17 = vld [vmem:[#allocation11 + $0xdc8] sm:$0xff]  ;;  %v6229_v12 = vpack.c.bf16 %v3649_v21, %v3648_v6  ;;  %v3635_v13 = vld [vmem:[#allocation11 + $0xc38] sm:$0xff] }
 0x281   :  { %6214 = vmatprep.subr.bf16.mxu1 %v6213_v19  ;;  %v3663_v19 = vld [vmem:[#allocation11 + $0xd18] sm:$0xff]  ;;  %v3652_v53 = vld [vmem:[#allocation11 + $0xcc0] sm:$0xff]  ;;  %v3637_v56 = vld [vmem:[#allocation11 + $0xc48] sm:$0xff] }
 0x282   :  { %v6259_v8 = vpack.c.bf16 %v3663_v19, %v3662_v3  ;;  %v3230_v55 = vmax.f32 %v3213_v27, 0.0  ;;  %v6269_v3 = vpack.c.bf16 %v3685_v17, %v3684_v45  ;;  %v3653_v27 = vld [vmem:[#allocation11 + $0xcc8] sm:$0xff]  ;;  %v3675_v6 = vld [vmem:[#allocation11 + $0xd78] sm:$0xff]  ;;  %v3656_v21 = vld [vmem:[#allocation11 + $0xce0] sm:$0xff] }
 0x283   :  { %6180 = vmatpush3.bf16.msra.mxu0 %v6179_v48  ;;  %v3683_v48 = vld [vmem:[#allocation11 + $0xdb8] sm:$0xff]  ;;  %v3657_v45 = vld [vmem:[#allocation11 + $0xce8] sm:$0xff]  ;;  %v3740_v17 = vld [vmem:[#allocation11 + $0xf80] sm:$0xff] }
 0x284   :  { %6216 = vmatpush3.bf16.msra.mxu1 %v6215_v51  ;;  %6182 = vmatprep.subr.bf16.mxu0 %v6181_v1  ;;  %v6187_v51 = vpack.c.bf16 %v3579_v49, %v3578_v34  ;;  %v6263_v1 = vpack.c.bf16 %v3665_v41, %v3664_v61  ;;  %v6265_v30 = vpack.c.bf16 %v3683_v48, %v3682_v7  ;;  %v3669_v34 = vld [vmem:[#allocation11 + $0xd48] sm:$0xff]  ;;  %v3650_v49 = vld [vmem:[#allocation11 + $0xcb0] sm:$0xff]  ;;  %v3636_v41 = vld [vmem:[#allocation11 + $0xc40] sm:$0xff] }
 0x285   :  { %6218 = vmatprep.subr.bf16.mxu1 %v6217_v29  ;;  %v3629_v29 = vld [vmem:[#allocation11 + $0xc08] sm:$0xff]  ;;  %v6233_v5 = vpack.c.bf16 %v3651_v59, %v3650_v49  ;;  %v3654_v7 = vld [vmem:[#allocation11 + $0xcd0] sm:$0xff]  ;;  %v3655_v48 = vld [vmem:[#allocation11 + $0xcd8] sm:$0xff]  ;;  %v6239_v24 = vpack.c.bf16 %v3637_v56, %v3636_v41 }
 0x286   :  { %v3689_v61 = vld [vmem:[#allocation11 + $0xde8] sm:$0xff]  ;;  %v3724_v59 = vld [vmem:[#allocation11 + $0xf00] sm:$0xff] }
 0x287   :  { %6184 = vmatpush3.bf16.msra.mxu0 %v6183_v52  ;;  %v3668_v52 = vld [vmem:[#allocation11 + $0xd40] sm:$0xff] }
 0x288   :  { %6220 = vmatpush3.bf16.msra.mxu1 %v6219_v57  ;;  %6186 = vmatprep.subr.bf16.mxu0 %v6185_v16  ;;  %v6223_v57 = vpack.c.bf16 %v3629_v29, %v3628_v25  ;;  %v6271_v16 = vpack.c.bf16 %v3669_v34, %v3668_v52  ;;  %v3672_v29 = vld [vmem:[#allocation11 + $0xd60] sm:$0xff]  ;;  %v3641_v34 = vld [vmem:[#allocation11 + $0xc68] sm:$0xff] }
 0x289   :  { %6254 = vmatprep.subr.bf16.mxu1 %v6253_v22  ;;  %v3631_v22 = vld [vmem:[#allocation11 + $0xc18] sm:$0xff]  ;;  %v3708_v41 = vld [vmem:[#allocation11 + $0xe80] sm:$0xff] }
 0x28a   :  { %v6227_v23 = vpack.c.bf16 %v3631_v22, %v3630_v39  ;;  %v3674_v39 = vld [vmem:[#allocation11 + $0xd70] sm:$0xff]  ;;  %v6241_v22 = vpack.c.bf16 %v3655_v48, %v3654_v7 }
 0x28b   :  { %4630 = vmatmul.mubr.f32.vlgmr.msra.gmra.mrb[44].mxu1 %v3232_v14  ;;  %6188 = vmatpush3.bf16.msra.mxu0 %v6187_v51  ;;  %v3686_v14 = vld [vmem:[#allocation11 + $0xdd0] sm:$0xff]  ;;  %v3671_v51 = vld [vmem:[#allocation11 + $0xd58] sm:$0xff] }
 0x28c   :  { %6256 = vmatpush3.bf16.msra.mxu1 %v6255_v43  ;;  %4769 = vmatprep.mubr.f32.mxu1 %v3237_v11  ;;  %v3632_v43 = vld [vmem:[#allocation11 + $0xc20] sm:$0xff]  ;;  %v3634_v11 = vld [vmem:[#allocation11 + $0xc30] sm:$0xff]  ;;  %v6275_v25 = vpack.c.bf16 %v3671_v51, %v3670_v32  ;;  %v3659_v32 = vld [vmem:[#allocation11 + $0xcf8] sm:$0xff] }
 0x28d   :  { %6258 = vmatprep.subr.bf16.mxu1 %v6257_v58  ;;  %6222 = vmatprep.subr.bf16.mxu0 %v6221_v18  ;;  %v3687_v58 = vld [vmem:[#allocation11 + $0xdd8] sm:$0xff]  ;;  %v6231_v19 = vpack.c.bf16 %v3633_v20, %v3632_v43  ;;  %v6235_v18 = vpack.c.bf16 %v3635_v13, %v3634_v11  ;;  %v6283_v43 = vpack.c.bf16 %v3675_v6, %v3674_v39  ;;  %v3746_v6 = vld [vmem:[#allocation11 + $0xfb0] sm:$0xff] }
 0x28e   :  { %4560 = vmatmul.mubr.f32.vlgmr.msra.gmra.mrb[48].mxu0 %v3230_v55  ;;  %v6273_v4 = vpack.c.bf16 %v3687_v58, %v3686_v14  ;;  %v3164_v55 = vrot.slane %v8504_v9, %v8667_v2  ;;  %v6245_v20 = vpack.c.bf16 %v3657_v45, %v3656_v21  ;;  %v3725_v14 = vld [vmem:[#allocation11 + $0xf08] sm:$0xff]  ;;  %v3742_v58 = vld [vmem:[#allocation11 + $0xf90] sm:$0xff]  ;;  %v3156_v11 = vrot.slane %v8506_v60, %v8717_v44  ;;  %v3747_v21 = vld [vmem:[#allocation11 + $0xfb8] sm:$0xff] }
 0x28f   :  { %6224 = vmatpush3.bf16.msra.mxu0 %v6223_v57  ;;  %4699 = vmatprep.mubr.f32.mxu0 %v3235_v63  ;;  %v3690_v57 = vld [vmem:[#allocation11 + $0xdf0] sm:$0xff]  ;;  %v3709_v60 = vld [vmem:[#allocation11 + $0xe88] sm:$0xff] }
 0x290   :  { %6260 = vmatpush3.bf16.msra.mxu1 %v6259_v8  ;;  %6226 = vmatprep.subr.bf16.mxu0 %v6225_v35  ;;  %v3688_v8 = vld [vmem:[#allocation11 + $0xde0] sm:$0xff]  ;;  %v6279_v35 = vpack.c.bf16 %v3673_v40, %v3672_v29  ;;  %v3219_v2 = vadd.f32 %v3164_v55, %v8151_v42  ;;  %v3727_v29 = vld [vmem:[#allocation11 + $0xf18] sm:$0xff]  ;;  %v3745_v40 = vld [vmem:[#allocation11 + $0xfa8] sm:$0xff] }
 0x291   :  { %6262 = vmatprep.subr.bf16.mxu1 %v6261_v36  ;;  %v6237_v36 = vpack.c.bf16 %v3653_v27, %v3652_v53  ;;  %v6277_v62 = vpack.c.bf16 %v3689_v61, %v3688_v8  ;;  %v3726_v53 = vld [vmem:[#allocation11 + $0xf10] sm:$0xff]  ;;  %v3643_v8 = vld [vmem:[#allocation11 + $0xc78] sm:$0xff]  ;;  %v3692_v55 = vld [vmem:[#allocation11 + $0xe00] sm:$0xff] }
 0x292   :  { %v3236_v13 = vmax.f32 %v3219_v2, 0.0  ;;  %v3642_v27 = vld [vmem:[#allocation11 + $0xc70] sm:$0xff] }
 0x293   :  { %6228 = vmatpush3.bf16.msra.mxu0 %v6227_v23  ;;  %v3741_v23 = vld [vmem:[#allocation11 + $0xf88] sm:$0xff]  ;;  %v6251_v48 = vpack.c.bf16 %v3643_v8, %v3642_v27  ;;  %v3694_v2 = vld [vmem:[#allocation11 + $0xe10] sm:$0xff] }
 0x294   :  { %6264 = vmatpush3.bf16.msra.mxu1 %v6263_v1  ;;  %6230 = vmatprep.subr.bf16.mxu0 %v6229_v12  ;;  %v3691_v1 = vld [vmem:[#allocation11 + $0xdf8] sm:$0xff]  ;;  %v5241_v12 = vld [vmem:[#allocation13] ss:$0 sm:$0xff]  ;;  %v6317_v49 = vpack.c.bf16 %v3741_v23, %v3740_v17  ;;  %v3730_v23 = vld [vmem:[#allocation11 + $0xf30] sm:$0xff] }
 0x295   :  { %6266 = vmatprep.subr.bf16.mxu1 %v6265_v30  ;;  %v3638_v30 = vld [vmem:[#allocation11 + $0xc50] sm:$0xff]  ;;  %v6281_v63 = vpack.c.bf16 %v3691_v1, %v3690_v57  ;;  %v3862_v61 = vadd.f32 %v8518_v0, %v5241_v12  ;;  %v8757_v57 = vld [vmem:[#allocation35_spill] sm:$0xff]  ;;  %v3695_v12 = vld [vmem:[#allocation11 + $0xe18] sm:$0xff] }
 0x296   :  { %v6243_v52 = vpack.c.bf16 %v3639_v10, %v3638_v30  ;;  %v3217_v1 = vadd.f32 %v3156_v11, %v8757_v57  ;;  %v3728_v0 = vld [vmem:[#allocation11 + $0xf20] sm:$0xff]  ;;  %v3710_v10 = vld [vmem:[#allocation11 + $0xe90] sm:$0xff] }
 0x297   :  { %6232 = vmatpush3.bf16.msra.mxu0 %v6231_v19  ;;  %v3714_v11 = vld [vmem:[#allocation11 + $0xeb0] sm:$0xff] }
 0x298   :  { %6268 = vmatpush3.bf16.msra.mxu1 %v6267_v15  ;;  %6234 = vmatprep.subr.bf16.mxu0 %v6233_v5  ;;  %v3184_v15 = vrot.slane %v8504_v9, %v8716_v26  ;;  %v3658_v26 = vld [vmem:[#allocation11 + $0xcf0] sm:$0xff]  ;;  %v5309_v5 = vpop.f32.mrb[34].mxu1 }
 0x299   :  { %6270 = vmatprep.subr.bf16.mxu1 %v6269_v3  ;;  %v3640_v3 = vld [vmem:[#allocation11 + $0xc60] sm:$0xff]  ;;  %v5310_v51 = vpop.f32.mrb[35].mxu1 }
 0x29a   :  { %v3224_v19 = vadd.f32 %v3184_v15, %v8457_v37  ;;  %v6247_v42 = vpack.c.bf16 %v3641_v34, %v3640_v3  ;;  %v3176_v37 = vrot.slane %v8504_v9, %v7392_v31  ;;  %v6323_v31 = vpack.c.bf16 %v3727_v29, %v3726_v53  ;;  %v3712_v34 = vld [vmem:[#allocation11 + $0xea0] sm:$0xff]  ;;  %v3699_v29 = vld [vmem:[#allocation11 + $0xe38] sm:$0xff] }
 0x29b   :  { %6236 = vmatpush3.bf16.msra.mxu0 %v6235_v18  ;;  %v5311_v18 = vadd.f32 %v5310_v51, %v5309_v5  ;;  %v3234_v15 = vmax.f32 %v3217_v1, 0.0  ;;  %v3751_v51 = vld [vmem:[#allocation11 + $0xfd8] sm:$0xff] }
 0x29c   :  { %6272 = vmatpush3.bf16.msra.mxu1 %v6271_v16  ;;  %6238 = vmatprep.subr.bf16.mxu0 %v6237_v36  ;;  %v3743_v16 = vld [vmem:[#allocation11 + $0xf98] sm:$0xff]  ;;  %v6249_v36 = vpack.c.bf16 %v3659_v32, %v3658_v26  ;;  %v3241_v56 = vmax.f32 %v3224_v19, 0.0  ;;  %v3222_v30 = vadd.f32 %v3176_v37, %v8453_v38  ;;  %v3713_v38 = vld [vmem:[#allocation11 + $0xea8] sm:$0xff]  ;;  %v3732_v19 = vld [vmem:[#allocation11 + $0xf40] sm:$0xff] }
 0x29d   :  { %6274 = vmatprep.subr.bf16.mxu1 %v6273_v4  ;;  %v6319_v4 = vpack.c.bf16 %v3725_v14, %v3724_v59  ;;  %v8533_v7 = vadd.f32 %v5311_v18, %v3862_v61  ;;  %v3749_v59 = vld [vmem:[#allocation11 + $0xfc8] sm:$0xff]  ;;  %v6291_v14 = vpack.c.bf16 %v3695_v12, %v3694_v2  ;;  %v3696_v26 = vld [vmem:[#allocation11 + $0xe20] sm:$0xff]  ;;  %v3734_v61 = vld [vmem:[#allocation11 + $0xf50] sm:$0xff] }
 0x29e   :  { %v3239_v3 = vmax.f32 %v3222_v30, 0.0  ;;  %v3697_v32 = vld [vmem:[#allocation11 + $0xe28] sm:$0xff]  ;;  %v3718_v30 = vld [vmem:[#allocation11 + $0xed0] sm:$0xff]  ;;  %v3739_v12 = vld [vmem:[#allocation11 + $0xf78] sm:$0xff] }
 0x29f   :  { %6240 = vmatpush3.bf16.msra.mxu0 %v6239_v24  ;;  %v6285_v24 = vpack.c.bf16 %v3709_v60, %v3708_v41  ;;  %v6295_v27 = vpack.c.bf16 %v3697_v32, %v3696_v26  ;;  %v3735_v60 = vld [vmem:[#allocation11 + $0xf58] sm:$0xff]  ;;  %v3172_v26 = vrot.slane %v8504_v9, %v8668_v47 }
 0x2a0   :  { %6276 = vmatpush3.bf16.msra.mxu1 %v6275_v25  ;;  %6242 = vmatprep.subr.bf16.mxu0 %v6241_v22  ;;  %v6321_v25 = vpack.c.bf16 %v3743_v16, %v3742_v58  ;;  %v3729_v22 = vld [vmem:[#allocation11 + $0xf28] sm:$0xff]  ;;  %v6293_v16 = vpack.c.bf16 %v3713_v38, %v3712_v34 }
 0x2a1   :  { %6278 = vmatprep.subr.bf16.mxu1 %v6277_v62  ;;  %v3744_v62 = vld [vmem:[#allocation11 + $0xfa0] sm:$0xff]  ;;  %v6327_v17 = vpack.c.bf16 %v3729_v22, %v3728_v0  ;;  %v3737_v22 = vld [vmem:[#allocation11 + $0xf68] sm:$0xff] }
 0x2a2   :  { %v6325_v39 = vpack.c.bf16 %v3745_v40, %v3744_v62  ;;  %v3717_v62 = vld [vmem:[#allocation11 + $0xec8] sm:$0xff]  ;;  %v3752_v40 = vld [vmem:[#allocation11 + $0xfe0] sm:$0xff] }
 0x2a3   :  { %6244 = vmatpush3.bf16.msra.mxu0 %v6243_v52  ;;  %v3736_v0 = vld [vmem:[#allocation11 + $0xf60] sm:$0xff] }
 0x2a4   :  { %6280 = vmatpush3.bf16.msra.mxu1 %v6279_v35  ;;  %6246 = vmatprep.subr.bf16.mxu0 %v6245_v20  ;;  %v3693_v35 = vld [vmem:[#allocation11 + $0xe08] sm:$0xff]  ;;  %v3731_v20 = vld [vmem:[#allocation11 + $0xf38] sm:$0xff] }
 0x2a5   :  { %6282 = vmatprep.subr.bf16.mxu1 %v6281_v63  ;;  %v3711_v63 = vld [vmem:[#allocation11 + $0xe98] sm:$0xff]  ;;  %v6287_v45 = vpack.c.bf16 %v3693_v35, %v3692_v55  ;;  %v6331_v58 = vpack.c.bf16 %v3731_v20, %v3730_v23  ;;  %v3700_v55 = vld [vmem:[#allocation11 + $0xe40] sm:$0xff]  ;;  %v3701_v35 = vld [vmem:[#allocation11 + $0xe48] sm:$0xff] }
 0x2a6   :  { %v6289_v52 = vpack.c.bf16 %v3711_v63, %v3710_v10  ;;  %v3719_v10 = vld [vmem:[#allocation11 + $0xed8] sm:$0xff]  ;;  %v3754_v63 = vld [vmem:[#allocation11 + $0xff0] sm:$0xff]  ;;  %v3721_v20 = vld [vmem:[#allocation11 + $0xee8] sm:$0xff] }
 0x2a7   :  { %6248 = vmatpush3.bf16.msra.mxu0 %v6247_v42  ;;  %v3733_v42 = vld [vmem:[#allocation11 + $0xf48] sm:$0xff]  ;;  %v3702_v23 = vld [vmem:[#allocation11 + $0xe50] sm:$0xff] }
 0x2a8   :  { %6284 = vmatpush3.bf16.msra.mxu1 %v6283_v43  ;;  %6250 = vmatprep.subr.bf16.mxu0 %v6249_v36  ;;  %v6329_v43 = vpack.c.bf16 %v3747_v21, %v3746_v6  ;;  %v6335_v8 = vpack.c.bf16 %v3733_v42, %v3732_v19  ;;  %v3755_v6 = vld [vmem:[#allocation11 + $0xff8] sm:$0xff]  ;;  %v6303_v21 = vpack.c.bf16 %v3701_v35, %v3700_v55  ;;  %v3706_v42 = vld [vmem:[#allocation11 + $0xe70] sm:$0xff] }
 0x2a9   :  { %6318 = vmatprep.subr.bf16.mxu1 %v6317_v49  ;;  %v3748_v49 = vld [vmem:[#allocation11 + $0xfc0] sm:$0xff]  ;;  %v6345_v2 = vpack.c.bf16 %v3755_v6, %v3754_v63  ;;  %v3723_v19 = vld [vmem:[#allocation11 + $0xef8] sm:$0xff]  ;;  %v3781_v63 = vld [vmem:[#allocation11 + $0x10c8] sm:$0xff] }
 0x2aa   :  { %v6333_v5 = vpack.c.bf16 %v3749_v59, %v3748_v49  ;;  %v5344_v53 = vpop.f32.mrb[40].mxu0  ;;  %v3704_v49 = vld [vmem:[#allocation11 + $0xe60] sm:$0xff]  ;;  %v3705_v59 = vld [vmem:[#allocation11 + $0xe68] sm:$0xff]  ;;  %v3779_v55 = vld [vmem:[#allocation11 + $0x10b8] sm:$0xff] }
 0x2ab   :  { %4770 = vmatmul.mubr.f32.vlgmr.msra.gmra.mrb[46].mxu1 %v3236_v13  ;;  %6252 = vmatpush3.bf16.msra.mxu0 %v6251_v48  ;;  %v3715_v13 = vld [vmem:[#allocation11 + $0xeb8] sm:$0xff]  ;;  %v5345_v37 = vpop.f32.mrb[41].mxu0  ;;  %v3753_v48 = vld [vmem:[#allocation11 + $0xfe8] sm:$0xff] }
 0x2ac   :  { %6320 = vmatpush3.bf16.msra.mxu1 %v6319_v4  ;;  %4909 = vmatprep.mubr.f32.mxu1 %v3241_v56  ;;  %v3750_v4 = vld [vmem:[#allocation11 + $0xfd0] sm:$0xff]  ;;  %v6297_v18 = vpack.c.bf16 %v3715_v13, %v3714_v11  ;;  %v5346_v41 = vadd.f32 %v5345_v37, %v5344_v53  ;;  %v3716_v56 = vld [vmem:[#allocation11 + $0xec0] sm:$0xff]  ;;  %v3707_v11 = vld [vmem:[#allocation11 + $0xe78] sm:$0xff]  ;;  %v3221_v37 = vadd.f32 %v3172_v26, %v8158_v46 }
 0x2ad   :  { %6322 = vmatprep.subr.bf16.mxu1 %v6321_v25  ;;  %6286 = vmatprep.subr.bf16.mxu0 %v6285_v24  ;;  %v3698_v25 = vld [vmem:[#allocation11 + $0xe30] sm:$0xff]  ;;  %v6337_v36 = vpack.c.bf16 %v3751_v51, %v3750_v4  ;;  %v6301_v24 = vpack.c.bf16 %v3717_v62, %v3716_v56  ;;  %v3772_v51 = vld [vmem:[#allocation11 + $0x1080] sm:$0xff]  ;;  %v3773_v53 = vld [vmem:[#allocation11 + $0x1088] sm:$0xff] }
 0x2ae   :  { %4700 = vmatmul.mubr.f32.vlgmr.msra.gmra.mrb[50].mxu0 %v3234_v15  ;;  %v4002_v57 = vadd.f32 %v5346_v41, %v8533_v7  ;;  %v6299_v1 = vpack.c.bf16 %v3699_v29, %v3698_v25  ;;  %v6343_v7 = vpack.c.bf16 %v3737_v22, %v3736_v0  ;;  %v3703_v15 = vld [vmem:[#allocation11 + $0xe58] sm:$0xff]  ;;  %v6349_v47 = vpack.c.bf16 %v3773_v53, %v3772_v51  ;;  %v3774_v29 = vld [vmem:[#allocation11 + $0x1090] sm:$0xff]  ;;  %v3760_v0 = vld [vmem:[#allocation11 + $0x1020] sm:$0xff] }
 0x2af   :  { %6288 = vmatpush3.bf16.msra.mxu0 %v6287_v45  ;;  %4839 = vmatprep.mubr.f32.mxu0 %v3239_v3  ;;  %v3738_v45 = vld [vmem:[#allocation11 + $0xf70] sm:$0xff]  ;;  %v6307_v3 = vpack.c.bf16 %v3703_v15, %v3702_v23  ;;  %v3783_v23 = vld [vmem:[#allocation11 + $0x10d8] sm:$0xff] }
 0x2b0   :  { %6324 = vmatpush3.bf16.msra.mxu1 %v6323_v31  ;;  %6290 = vmatprep.subr.bf16.mxu0 %v6289_v52  ;;  %v6339_v31 = vpack.c.bf16 %v3735_v60, %v3734_v61  ;;  %v3180_v52 = vrot.slane %v8504_v9, %v8715_v28  ;;  %v6347_v34 = vpack.c.bf16 %v3739_v12, %v3738_v45  ;;  %v3756_v61 = vld [vmem:[#allocation11 + $0x1000] sm:$0xff]  ;;  %v3238_v60 = vmax.f32 %v3221_v37, 0.0  ;;  %v3758_v62 = vld [vmem:[#allocation11 + $0x1010] sm:$0xff]  ;;  %v3765_v45 = vld [vmem:[#allocation11 + $0x1048] sm:$0xff] }
 0x2b1   :  { %6326 = vmatprep.subr.bf16.mxu1 %v6325_v39  ;;  %v6341_v39 = vpack.c.bf16 %v3753_v48, %v3752_v40  ;;  %v6311_v28 = vpack.c.bf16 %v3705_v59, %v3704_v49  ;;  %v3759_v40 = vld [vmem:[#allocation11 + $0x1018] sm:$0xff]  ;;  %v3762_v22 = vld [vmem:[#allocation11 + $0x1030] sm:$0xff]  ;;  %v3769_v49 = vld [vmem:[#allocation11 + $0x1068] sm:$0xff] }
 0x2b2   :  { %v6355_v46 = vpack.c.bf16 %v3759_v40, %v3758_v62  ;;  %v3767_v12 = vld [vmem:[#allocation11 + $0x1058] sm:$0xff]  ;;  %v3786_v59 = vld [vmem:[#allocation11 + $0x10f0] sm:$0xff] }
 0x2b3   :  { %6292 = vmatpush3.bf16.msra.mxu0 %v6291_v14  ;;  %v3223_v14 = vadd.f32 %v3180_v52, %v8478_v54  ;;  %v5240_v54 = vld [vmem:[#allocation10 + $0x21] ss:$0 sm:$0xff] }
 0x2b4   :  { %6328 = vmatpush3.bf16.msra.mxu1 %v6327_v17  ;;  %6294 = vmatprep.subr.bf16.mxu0 %v6293_v16  ;;  %v6305_v17 = vpack.c.bf16 %v3719_v10, %v3718_v30  ;;  %v3226_v25 = vadd.f32 %v5240_v54, %v8501_v33  ;;  %v3761_v33 = vld [vmem:[#allocation11 + $0x1028] sm:$0xff]  ;;  %v3763_v30 = vld [vmem:[#allocation11 + $0x1038] sm:$0xff]  ;;  %v3780_v10 = vld [vmem:[#allocation11 + $0x10c0] sm:$0xff] }
 0x2b5   :  { %6330 = vmatprep.subr.bf16.mxu1 %v6329_v43  ;;  %v3720_v43 = vld [vmem:[#allocation11 + $0xee0] sm:$0xff]  ;;  %v3240_v13 = vmax.f32 %v3223_v14, 0.0  ;;  %v6359_v35 = vpack.c.bf16 %v3761_v33, %v3760_v0  ;;  %v6363_v6 = vpack.c.bf16 %v3763_v30, %v3762_v22  ;;  %v3787_v14 = vld [vmem:[#allocation11 + $0x10f8] sm:$0xff] }
 0x2b6   :  { %v6309_v38 = vpack.c.bf16 %v3721_v20, %v3720_v43  ;;  %v3243_v48 = vmax.f32 %v3226_v25, 0.0  ;;  %v3784_v43 = vld [vmem:[#allocation11 + $0x10e0] sm:$0xff]  ;;  %v3785_v20 = vld [vmem:[#allocation11 + $0x10e8] sm:$0xff]  ;;  %v3771_v26 = vld [vmem:[#allocation11 + $0x1078] sm:$0xff] }
 0x2b7   :  { %6296 = vmatpush3.bf16.msra.mxu0 %v6295_v27 }
 0x2b8   :  { %6332 = vmatpush3.bf16.msra.mxu1 %v6331_v58  ;;  %6298 = vmatprep.subr.bf16.mxu0 %v6297_v18  ;;  %v3722_v58 = vld [vmem:[#allocation11 + $0xef0] sm:$0xff]  ;;  %v3757_v18 = vld [vmem:[#allocation11 + $0x1008] sm:$0xff] }
 0x2b9   :  { %6334 = vmatprep.subr.bf16.mxu1 %v6333_v5  ;;  %v6313_v5 = vpack.c.bf16 %v3723_v19, %v3722_v58  ;;  %v6351_v41 = vpack.c.bf16 %v3757_v18, %v3756_v61  ;;  %v3188_v19 = vrot.slane %v8504_v9, %v8717_v44 }
 0x2bb   :  { %6300 = vmatpush3.bf16.msra.mxu0 %v6299_v1  ;;  %v3777_v1 = vld [vmem:[#allocation11 + $0x10a8] sm:$0xff] }
 0x2bc   :  { %6336 = vmatpush3.bf16.msra.mxu1 %v6335_v8  ;;  %6302 = vmatprep.subr.bf16.mxu0 %v6301_v24  ;;  %v5379_v16 = vpop.f32.mrb[36].mxu1  ;;  %v6315_v8 = vpack.c.bf16 %v3707_v11, %v3706_v42  ;;  %v3778_v24 = vld [vmem:[#allocation11 + $0x10b0] sm:$0xff] }
 0x2bd   :  { %6338 = vmatprep.subr.bf16.mxu1 %v6337_v36  ;;  %v5380_v32 = vpop.f32.mrb[37].mxu1  ;;  %v3775_v36 = vld [vmem:[#allocation11 + $0x1098] sm:$0xff] }
 0x2be   :  { %v5381_v4 = vadd.f32 %v5380_v32, %v5379_v16  ;;  %v6353_v56 = vpack.c.bf16 %v3775_v36, %v3774_v29  ;;  %v6377_v16 = vpack.c.bf16 %v3787_v14, %v3786_v59 }
 0x2bf   :  { %6304 = vmatpush3.bf16.msra.mxu0 %v6303_v21  ;;  %v6365_v21 = vpack.c.bf16 %v3781_v63, %v3780_v10 }
 0x2c0   :  { %6340 = vmatpush3.bf16.msra.mxu1 %v6339_v31  ;;  %6306 = vmatprep.subr.bf16.mxu0 %v6305_v17  ;;  %v8543_v27 = vadd.f32 %v5381_v4, %v4002_v57  ;;  %v3776_v57 = vld [vmem:[#allocation11 + $0x10a0] sm:$0xff]  ;;  %v3782_v17 = vld [vmem:[#allocation11 + $0x10d0] sm:$0xff] }
 0x2c1   :  { %6342 = vmatprep.subr.bf16.mxu1 %v6341_v39  ;;  %v6357_v31 = vpack.c.bf16 %v3777_v1, %v3776_v57  ;;  %v6361_v39 = vpack.c.bf16 %v3779_v55, %v3778_v24  ;;  %v6369_v52 = vpack.c.bf16 %v3783_v23, %v3782_v17 }
 0x2c3   :  { %6308 = vmatpush3.bf16.msra.mxu0 %v6307_v3 }
 0x2c4   :  { %6344 = vmatpush3.bf16.msra.mxu1 %v6343_v7  ;;  %6310 = vmatprep.subr.bf16.mxu0 %v6309_v38  ;;  %v3764_v7 = vld [vmem:[#allocation11 + $0x1040] sm:$0xff] }
 0x2c5   :  { %6346 = vmatprep.subr.bf16.mxu1 %v6345_v2  ;;  %v6367_v15 = vpack.c.bf16 %v3765_v45, %v3764_v7  ;;  %v3766_v2 = vld [vmem:[#allocation11 + $0x1050] sm:$0xff]  ;;  %v3768_v38 = vld [vmem:[#allocation11 + $0x1060] sm:$0xff] }
 0x2c6   :  { %v6371_v3 = vpack.c.bf16 %v3767_v12, %v3766_v2  ;;  %v6375_v58 = vpack.c.bf16 %v3769_v49, %v3768_v38 }
 0x2c7   :  { %6312 = vmatpush3.bf16.msra.mxu0 %v6311_v28  ;;  %v3770_v28 = vld [vmem:[#allocation11 + $0x1070] sm:$0xff] }
 0x2c8   :  { %6348 = vmatpush3.bf16.msra.mxu1 %v6347_v34  ;;  %6314 = vmatprep.subr.bf16.mxu0 %v6313_v5  ;;  %v6373_v34 = vpack.c.bf16 %v3785_v20, %v3784_v43  ;;  %v6379_v32 = vpack.c.bf16 %v3771_v26, %v3770_v28  ;;  %v3225_v5 = vadd.f32 %v3188_v19, %v8480_v50 }
 0x2cb   :  { %4910 = vmatmul.mubr.f32.vlgmr.msra.gmra.mrb[48].mxu1 %v3240_v13  ;;  %6316 = vmatpush3.bf16.msra.mxu0 %v6315_v8  ;;  %v3242_v8 = vmax.f32 %v3225_v5, 0.0 }
 0x2cc   :  { %6350 = vmatprep.subr.bf16.mxu0 %v6349_v47 }
 0x2ce   :  { %4840 = vmatmul.mubr.f32.vlgmr.msra.gmra.mrb[52].mxu0 %v3238_v60 }
 0x2cf   :  { %6352 = vmatpush3.bf16.msra.mxu0 %v6351_v41  ;;  %4979 = vmatprep.mubr.f32.mxu0 %v3243_v48 }
 0x2d0   :  { %6354 = vmatprep.subr.bf16.mxu0 %v6353_v56 }
 0x2d3   :  { %6356 = vmatpush3.bf16.msra.mxu0 %v6355_v46 }
 0x2d4   :  { %6358 = vmatprep.subr.bf16.mxu0 %v6357_v31 }
 0x2d7   :  { %6360 = vmatpush3.bf16.msra.mxu0 %v6359_v35 }
 0x2d8   :  { %6362 = vmatprep.subr.bf16.mxu0 %v6361_v39 }
 0x2db   :  { %6364 = vmatpush3.bf16.msra.mxu0 %v6363_v6 }
 0x2dc   :  { %6366 = vmatprep.subr.bf16.mxu0 %v6365_v21 }
 0x2df   :  { %6368 = vmatpush3.bf16.msra.mxu0 %v6367_v15 }
 0x2e0   :  { %6370 = vmatprep.subr.bf16.mxu0 %v6369_v52 }
 0x2e3   :  { %6372 = vmatpush3.bf16.msra.mxu0 %v6371_v3 }
 0x2e4   :  { %6374 = vmatprep.subr.bf16.mxu0 %v6373_v34 }
 0x2e6   :  { %v5414_v42 = vpop.f32.mrb[42].mxu0 }
 0x2e7   :  { %6376 = vmatpush3.bf16.msra.mxu0 %v6375_v58  ;;  %v5415_v11 = vpop.f32.mrb[43].mxu0 }
 0x2e8   :  { %6378 = vmatprep.subr.bf16.mxu0 %v6377_v16  ;;  %v5416_v13 = vadd.f32 %v5415_v11, %v5414_v42 }
 0x2e9   :  { %v5449_v4 = vpop.f32.mrb[38].mxu1 }
 0x2ea   :  { %v5450_v51 = vpop.f32.mrb[39].mxu1  ;;  %v4142_v53 = vadd.f32 %v5416_v13, %v8543_v27 }
 0x2eb   :  { %6380 = vmatpush3.bf16.msra.mxu0 %v6379_v32  ;;  %v5451_v54 = vadd.f32 %v5450_v51, %v5449_v4 }
 0x2ed   :  { %v4212_v44 = vadd.f32 %v5451_v54, %v4142_v53 }
 0x2ee   :  { %4980 = vmatmul.mubr.f32.vlgmr.msra.gmra.mrb[54].mxu0 %v3242_v8 }
 0x31d   :  { %v5484_v9 = vpop.f32.mrb[44].mxu0 }
 0x31e   :  { %v5485_v37 = vpop.f32.mrb[45].mxu0  ;;  %v5519_v47 = vpop.f32.mrb[40].mxu1 }
 0x31f   :  { %v5486_v61 = vadd.f32 %v5485_v37, %v5484_v9  ;;  %v5520_v18 = vpop.f32.mrb[41].mxu1 }
 0x320   :  { %v5521_v25 = vadd.f32 %v5520_v18, %v5519_v47 }
 0x321   :  { %v4282_v50 = vadd.f32 %v5486_v61, %v4212_v44 }
 0x323   :  { %v4352_v29 = vadd.f32 %v5521_v25, %v4282_v50 }
 0x33e   :  { %v5589_v36 = vpop.f32.mrb[42].mxu1 }
 0x33f   :  { %v5590_v41 = vpop.f32.mrb[43].mxu1 }
 0x340   :  { %v5591_v60 = vadd.f32 %v5590_v41, %v5589_v36 }
 0x341   :  { %v5554_v56 = vpop.f32.mrb[46].mxu0 }
 0x342   :  { %v5555_v62 = vpop.f32.mrb[47].mxu0 }
 0x343   :  { %v5556_v40 = vadd.f32 %v5555_v62, %v5554_v56 }
 0x345   :  { %v4422_v48 = vadd.f32 %v5556_v40, %v4352_v29 }
 0x347   :  { %v4492_v27 = vadd.f32 %v5591_v60, %v4422_v48 }
 0x35e   :  { %v5659_v57 = vpop.f32.mrb[44].mxu1 }
 0x35f   :  { %v5660_v1 = vpop.f32.mrb[45].mxu1 }
 0x360   :  { %v5661_v46 = vadd.f32 %v5660_v1, %v5659_v57 }
 0x361   :  { %v5624_v31 = vpop.f32.mrb[48].mxu0 }
 0x362   :  { %v5625_v0 = vpop.f32.mrb[49].mxu0 }
 0x363   :  { %v5626_v33 = vadd.f32 %v5625_v0, %v5624_v31 }
 0x365   :  { %v4562_v24 = vadd.f32 %v5626_v33, %v4492_v27 }
 0x367   :  { %v4632_v55 = vadd.f32 %v5661_v46, %v4562_v24 }
 0x37e   :  { %v5729_v35 = vpop.f32.mrb[46].mxu1 }
 0x37f   :  { %v5730_v39 = vpop.f32.mrb[47].mxu1 }
 0x380   :  { %v5731_v22 = vadd.f32 %v5730_v39, %v5729_v35 }
 0x381   :  { %v5694_v30 = vpop.f32.mrb[50].mxu0 }
 0x382   :  { %v5695_v10 = vpop.f32.mrb[51].mxu0 }
 0x383   :  { %v5696_v63 = vadd.f32 %v5695_v10, %v5694_v30 }
 0x385   :  { %v4702_v6 = vadd.f32 %v5696_v63, %v4632_v55 }
 0x387   :  { %v4772_v21 = vadd.f32 %v5731_v22, %v4702_v6 }
 0x39e   :  { %v5799_v7 = vpop.f32.mrb[48].mxu1 }
 0x39f   :  { %v5800_v45 = vpop.f32.mrb[49].mxu1 }
 0x3a0   :  { %v5801_v17 = vadd.f32 %v5800_v45, %v5799_v7 }
 0x3a1   :  { %v5764_v23 = vpop.f32.mrb[52].mxu0 }
 0x3a2   :  { %v5765_v15 = vpop.f32.mrb[53].mxu0 }
 0x3a3   :  { %v5766_v52 = vadd.f32 %v5765_v15, %v5764_v23 }
 0x3a5   :  { %v4842_v2 = vadd.f32 %v5766_v52, %v4772_v21 }
 0x3a7   :  { %v4912_v12 = vadd.f32 %v5801_v17, %v4842_v2 }
 0x3c1   :  { %v5834_v43 = vpop.f32.mrb[54].mxu0 }
 0x3c2   :  { %v5835_v20 = vpop.f32.mrb[55].mxu0 }
 0x3c3   :  { %v5836_v3 = vadd.f32 %v5835_v20, %v5834_v43 }
 0x3c5   :  { %v4982_v34 = vadd.f32 %v5836_v3, %v4912_v12 }
 0x3c7   :  { %4985 = vst [vmem:[#allocation14] sm:$0xff] %v4982_v34 }
 0x3c8   :  { %6872 = shalt.err (!%p6869_p4)
}
 0x3c9   :  { %s6873_s16 = scalar_lea.hbm %s8570_s7, 128 }
 0x3ca   :  { %p6874_p5 = scmp.ne.s32.totalorder %s8570_s7, %s6873_s16  ;;  %p6877_p6 = scmp.lt.u32.totalorder %s6873_s16, %s8570_s7 }
 0x3cc   :  { %p6879_p7 = pnand %p6877_p6, %p6874_p5 }
 0x3ce   :  { %6882 = shalt.err (!%p6879_p7)
}
 0x3cf   :  { %4995 = dma.vmem_to_hbm [thread:$0]  %s4993_s11, 128, %s8570_s7, [#allocation4]  }
 0x3d0   :  { %6891 = dma.done.wait [#allocation4], 128  }
 0x3d1   :  { %6892 = vsyncadd [#allocation4], 4294967168 }
 0x3d2   :  { %4999 = vsyncpa [#allocation3], 1 }
 0x3d3   :  { %5000 = vsyncpa [#allocation6], 1 }
 0x3d4   :  { %5001 = vsyncpa [#allocation9], 1 }
 0x3d5   :  { %5002 = vsyncpa [#allocation12], 1 }
 0x3d6   :  { %5003 = vsyncpa [#allocation4], 1 }

// kernel: tpu_custom_call.1
= control target key start
LH: loop header
LB: loop body
LE: loop exit
PB: predicated region body
PF: predicated region fallthrough
CT: control target
= control target key end

     0   :  { %12 = vsyncpa [#allocation3], 0  ;;  %s8563_s0 = inlined_call_operand.hbm [shape: bf16[32,192], index: 0, kind: input, shape index: {}]   ;;  %s8564_s1 = inlined_call_operand.hbm [shape: bf16[192,2176], index: 1, kind: input, shape index: {}]   ;;  %s8565_s2 = inlined_call_operand.hbm [shape: f32[1,2176], index: 2, kind: input, shape index: {}]   ;;  %s8566_s3 = inlined_call_operand.hbm [shape: f32[2,4,1,2176], index: 3, kind: input, shape index: {}]   ;;  %s8567_s4 = inlined_call_operand.hbm [shape: f32[2,1,2176], index: 4, kind: input, shape index: {}]   ;;  %s8568_s5 = inlined_call_operand.hbm [shape: f32[4352,128], index: 5, kind: input, shape index: {}]   ;;  %s8569_s6 = inlined_call_operand.hbm [shape: f32[1,128], index: 6, kind: input, shape index: {}]   ;;  %s8570_s7 = inlined_call_operand.hbm [shape: f32[8,128], index: 7, kind: output, shape index: {}]  }
   0x1   :  { %13 = vsyncpa [#allocation6], 0 }
   0x2   :  { %14 = vsyncpa [#allocation9], 0 }
   0x3   :  { %15 = vsyncpa [#allocation12], 0 }
   0x4   :  { %16 = vsyncpa [#allocation4], 0  ;;  %s6893_s24 = smov [#allocation5]   ;;  %s6707_s28 = scalar_lea.hbm %s8564_s1, 26112 }
   0x5   :  { %s34_s25 = sshll.u32 %s6893_s24, 4  ;;  %p6708_p0 = scmp.ne.s32.totalorder %s8564_s1, %s6707_s28  ;;  %s35_s25 = int_to_ptr.vmem [resolvable:$true] %s34_s25 }
   0x6   :  { %p6711_p1 = scmp.lt.u32.totalorder %s6707_s28, %s8564_s1 }
   0x8   :  { %p6713_p2 = pnand %p6711_p1, %p6708_p0 }
   0xa   :  { %6716 = shalt.err (!%p6713_p2)
}
   0xb   :  { %s6717_s10 = scalar_lea.vmem %s35_s25, 26112  ;;  %p6722_p4 = scmp.lt.s32.totalorder %s35_s25, %s35_s25 }
   0xc   :  { %p6718_p3 = scmp.ne.s32.totalorder %s35_s25, %s6717_s10  ;;  %p6723_p5 = scmp.lt.s32.totalorder %s6717_s10, %s6717_s10 }
   0xe   :  { %p6724_p6 = por %p6723_p5, %p6722_p4 }
  0x10   :  { %p6725_p7 = pnand %p6724_p6, %p6718_p3 }
  0x12   :  { %6728 = shalt.err (!%p6725_p7)
}
  0x13   :  { %s6894_s11 = smov 1088   ;;  %s6895_s12 = smov 68  }
  0x14   :  { %40 = dma.hbm_to_vmem [thread:$0]  %s8564_s1, 26112, %s35_s25, [#allocation6], %s6894_s11, %s6894_s11, %s6895_s12  }
  0x15   :  { %s6896_s15 = smov [#allocation8]   ;;  %s6729_s19 = scalar_lea.hbm %s8566_s3, 2176 }
  0x16   :  { %s56_s16 = sshll.u32 %s6896_s15, 4  ;;  %p6730_p8 = scmp.ne.s32.totalorder %s8566_s3, %s6729_s19  ;;  %s57_s16 = int_to_ptr.vmem [resolvable:$true] %s56_s16 }
  0x17   :  { %p6733_p9 = scmp.lt.u32.totalorder %s6729_s19, %s8566_s3 }
  0x19   :  { %p6735_p10 = pnand %p6733_p9, %p6730_p8 }
  0x1b   :  { %6738 = shalt.err (!%p6735_p10)
}
  0x1c   :  { %s6739_s24 = scalar_lea.vmem %s57_s16, 2176  ;;  %p6744_p12 = scmp.lt.s32.totalorder %s57_s16, %s57_s16 }
  0x1d   :  { %p6740_p11 = scmp.ne.s32.totalorder %s57_s16, %s6739_s24  ;;  %p6745_p13 = scmp.lt.s32.totalorder %s6739_s24, %s6739_s24 }
  0x1f   :  { %p6746_p0 = por %p6745_p13, %p6744_p12 }
  0x21   :  { %p6747_p1 = pnand %p6746_p0, %p6740_p11 }
  0x23   :  { %6750 = shalt.err (!%p6747_p1)
}
  0x24   :  { %s6897_s1 = smov 272   ;;  %s6898_s25 = smov 17  }
  0x25   :  { %62 = dma.hbm_to_vmem [thread:$0]  %s8566_s3, 2176, %s57_s16, [#allocation9], %s6897_s1, %s6897_s1, %s6898_s25  }
  0x26   :  { %s6899_s28 = smov [#allocation11]   ;;  %s6900_s30 = smov [#allocation2]  }
  0x27   :  { %s80_s29 = sshll.u32 %s6899_s28, 4  ;;  %s22_s8 = sshll.u32 %s6900_s30, 4  ;;  %s81_s29 = int_to_ptr.vmem [resolvable:$true] %s80_s29  ;;  %s6975_s8 = int_to_ptr.vmem [resolvable:$true] %s22_s8 }
  0x28   :  { %s6751_s11 = scalar_lea.hbm %s8568_s5, 69632 }
  0x29   :  { %p6752_p2 = scmp.ne.s32.totalorder %s8568_s5, %s6751_s11  ;;  %p6755_p3 = scmp.lt.u32.totalorder %s6751_s11, %s8568_s5 }
  0x2b   :  { %p6757_p4 = pnand %p6755_p3, %p6752_p2 }
  0x2d   :  { %6760 = shalt.err (!%p6757_p4)
}
  0x2e   :  { %s6761_s3 = scalar_lea.vmem %s81_s29, 69632  ;;  %p6766_p6 = scmp.lt.s32.totalorder %s81_s29, %s81_s29 }
  0x2f   :  { %p6762_p5 = scmp.ne.s32.totalorder %s81_s29, %s6761_s3  ;;  %p6767_p7 = scmp.lt.s32.totalorder %s6761_s3, %s6761_s3 }
  0x31   :  { %p6768_p8 = por %p6767_p7, %p6766_p6 }
  0x33   :  { %p6769_p9 = pnand %p6768_p8, %p6762_p5 }
  0x35   :  { %6772 = shalt.err (!%p6769_p9)
}
  0x36   :  { %s6901_s16 = smov 128   ;;  %s6902_s17 = smov 8  }
  0x37   :  { %86 = dma.hbm_to_vmem [thread:$0]  %s8568_s5, 69632, %s81_s29, [#allocation12], %s6901_s16, %s6901_s16, %s6902_s17  }
  0x38   :  { %s6773_s22 = scalar_lea.hbm %s8563_s0, 512 }
  0x39   :  { %p6774_p10 = scmp.ne.s32.totalorder %s8563_s0, %s6773_s22  ;;  %p6777_p11 = scmp.lt.u32.totalorder %s6773_s22, %s8563_s0 }
  0x3b   :  { %p6779_p12 = pnand %p6777_p11, %p6774_p10 }
  0x3d   :  { %6782 = shalt.err (!%p6779_p12)
}
  0x3e   :  { %s6783_s28 = scalar_lea.vmem %s6975_s8, 512  ;;  %p6788_p0 = scmp.lt.s32.totalorder %s6975_s8, %s6975_s8 }
  0x3f   :  { %p6784_p13 = scmp.ne.s32.totalorder %s6975_s8, %s6783_s28  ;;  %p6789_p1 = scmp.lt.s32.totalorder %s6783_s28, %s6783_s28 }
  0x41   :  { %p6790_p2 = por %p6789_p1, %p6788_p0 }
  0x43   :  { %p6791_p3 = pnand %p6790_p2, %p6784_p13 }
  0x45   :  { %6794 = shalt.err (!%p6791_p3)
}
  0x46   :  { %28 = dma.hbm_to_vmem [thread:$0]  %s8563_s0, 512, %s6975_s8, [#allocation3], %s6901_s16, %s6901_s16, %s6902_s17  }
  0x47   :  { %s6903_s30 = smov [#allocation7]   ;;  %s6904_s10 = smov [#allocation10]  }
  0x48   :  { %s47_s9 = sshll.u32 %s6903_s30, 4  ;;  %s68_s11 = sshll.u32 %s6904_s10, 4  ;;  %s48_s9 = int_to_ptr.vmem [resolvable:$true] %s47_s9  ;;  %s7006_s11 = int_to_ptr.vmem [resolvable:$true] %s68_s11 }
  0x49   :  { %s6795_s14 = scalar_lea.hbm %s8565_s2, 272 }
  0x4a   :  { %p6796_p4 = scmp.ne.s32.totalorder %s8565_s2, %s6795_s14  ;;  %p6799_p5 = scmp.lt.u32.totalorder %s6795_s14, %s8565_s2 }
  0x4c   :  { %p6801_p6 = pnand %p6799_p5, %p6796_p4 }
  0x4e   :  { %6804 = shalt.err (!%p6801_p6)
}
  0x4f   :  { %s6805_s0 = scalar_lea.vmem %s48_s9, 272  ;;  %s6809_s8 = scalar_lea.vmem %s48_s9, 288 }
  0x50   :  { %p6806_p7 = scmp.ne.s32.totalorder %s48_s9, %s6805_s0  ;;  %p6810_p8 = scmp.lt.s32.totalorder %s48_s9, %s48_s9 }
  0x51   :  { %p6811_p9 = scmp.lt.s32.totalorder %s6809_s8, %s6805_s0 }
  0x53   :  { %p6812_p10 = por %p6811_p9, %p6810_p8 }
  0x55   :  { %p6813_p11 = pnand %p6812_p10, %p6806_p7 }
  0x57   :  { %6816 = shalt.err (!%p6813_p11)
}
  0x58   :  { %50 = dma.hbm_to_vmem [thread:$0]  %s8565_s2, 272, %s48_s9, [#allocation6]  }
  0x59   :  { %s6817_s22 = scalar_lea.hbm %s8567_s4, 544 }
  0x5a   :  { %p6818_p12 = scmp.ne.s32.totalorder %s8567_s4, %s6817_s22  ;;  %p6821_p13 = scmp.lt.u32.totalorder %s6817_s22, %s8567_s4 }
  0x5c   :  { %p6823_p0 = pnand %p6821_p13, %p6818_p12 }
  0x5e   :  { %6826 = shalt.err (!%p6823_p0)
}
  0x5f   :  { %s6827_s28 = scalar_lea.vmem %s7006_s11, 544  ;;  %p6832_p2 = scmp.lt.s32.totalorder %s7006_s11, %s7006_s11 }
  0x60   :  { %p6828_p1 = scmp.ne.s32.totalorder %s7006_s11, %s6827_s28  ;;  %p6833_p3 = scmp.lt.s32.totalorder %s6827_s28, %s6827_s28 }
  0x62   :  { %p6834_p4 = por %p6833_p3, %p6832_p2 }
  0x64   :  { %p6835_p5 = pnand %p6834_p4, %p6828_p1 }
  0x66   :  { %6838 = shalt.err (!%p6835_p5)
}
  0x67   :  { %74 = dma.hbm_to_vmem [thread:$0]  %s8567_s4, 544, %s7006_s11, [#allocation9], %s6897_s1, %s6897_s1, %s6898_s25  }
  0x68   :  { %s6905_s29 = smov [#allocation13]   ;;  %s6839_s12 = scalar_lea.hbm %s8569_s6, 16 }
  0x69   :  { %s93_s30 = sshll.u32 %s6905_s29, 4  ;;  %p6840_p6 = scmp.ne.s32.totalorder %s8569_s6, %s6839_s12  ;;  %s94_s30 = int_to_ptr.vmem [resolvable:$true] %s93_s30 }
  0x6a   :  { %p6843_p7 = scmp.lt.u32.totalorder %s6839_s12, %s8569_s6 }
  0x6c   :  { %p6845_p8 = pnand %p6843_p7, %p6840_p6 }
  0x6e   :  { %6848 = shalt.err (!%p6845_p8)
}
  0x6f   :  { %s6849_s18 = scalar_lea.vmem %s94_s30, 16  ;;  %s6853_s4 = scalar_lea.vmem %s94_s30, 32 }
  0x70   :  { %p6850_p9 = scmp.ne.s32.totalorder %s94_s30, %s6849_s18  ;;  %p6854_p10 = scmp.lt.s32.totalorder %s94_s30, %s94_s30 }
  0x71   :  { %p6855_p11 = scmp.lt.s32.totalorder %s6853_s4, %s6849_s18 }
  0x73   :  { %p6856_p12 = por %p6855_p11, %p6854_p10 }
  0x75   :  { %p6857_p13 = pnand %p6856_p12, %p6850_p9 }
  0x77   :  { %6860 = shalt.err (!%p6857_p13)
}
  0x78   :  { %96 = dma.hbm_to_vmem [thread:$0]  %s8569_s6, 16, %s94_s30, [#allocation12]  }
  0x79   :  { %6883 = dma.done.wait [#allocation3], 512  }
  0x7a   :  { %6884 = vsyncadd [#allocation3], 4294966784 }
  0x7b   :  { %6885 = dma.done.wait [#allocation6], 26384  }
  0x7c   :  { %6886 = vsyncadd [#allocation6], 4294940912 }
  0x7d   :  { %6887 = dma.done.wait [#allocation9], 2720  }
  0x7e   :  { %6888 = vsyncadd [#allocation9], 4294964576 }
  0x7f   :  { %6889 = dma.done.wait [#allocation12], 69648  }
  0x80   :  { %6890 = vsyncadd [#allocation12], 4294897648  ;;  %v6396_v0 = vld [vmem:[#allocation5 + $0x4] ss:$68 sps:$4 sm:$0xff]   ;;  %v6398_v1 = vld [vmem:[#allocation5 + $0xc] ss:$68 sps:$4 sm:$0xff]  }
  0x81   :  { %1487 = vmatprep.subr.bf16.mxu0 %v6396_v0  ;;  %v6400_v2 = vld [vmem:[#allocation5] ss:$68 sps:$4 sm:$0xff]   ;;  %v6401_v3 = vld [vmem:[#allocation5 + $0x8] ss:$68 sps:$4 sm:$0xff]   ;;  %1540 = vmatprep.subr.bf16.mxu1 %v6398_v1  ;;  %v6404_v5 = vld [vmem:[#allocation5 + $0x94] ss:$68 sps:$4 sm:$0xff]  }
  0x82   :  { %v6402_v4 = vld [vmem:[#allocation5 + $0x8c] ss:$68 sps:$4 sm:$0xff]   ;;  %1488 = vmatpush1.bf16.msra.mxu0 %v6400_v2  ;;  %1541 = vmatpush1.bf16.msra.mxu1 %v6401_v3  ;;  %v6408_v8 = vld [vmem:[#allocation5 + $0x114] ss:$68 sps:$4 sm:$0xff]   ;;  %v6410_v9 = vld [vmem:[#allocation5 + $0x11c] ss:$68 sps:$4 sm:$0xff]  }
  0x83   :  { %v6406_v6 = vld [vmem:[#allocation5 + $0x88] ss:$68 sps:$4 sm:$0xff]   ;;  %1489 = vmatprep.subr.bf16.mxu0 %v6402_v4  ;;  %v6407_v7 = vld [vmem:[#allocation5 + $0x90] ss:$68 sps:$4 sm:$0xff]   ;;  %1542 = vmatprep.subr.bf16.mxu1 %v6404_v5  ;;  %v6413_v11 = vld [vmem:[#allocation5 + $0x118] ss:$68 sps:$4 sm:$0xff]  }
  0x84   :  { %v6412_v10 = vld [vmem:[#allocation5 + $0x110] ss:$68 sps:$4 sm:$0xff]   ;;  %v6414_v12 = vld [vmem:[#allocation5 + $0x19c] ss:$68 sps:$4 sm:$0xff]   ;;  %v6416_v13 = vld [vmem:[#allocation5 + $0x1a4] ss:$68 sps:$4 sm:$0xff]  }
  0x85   :  { %v6418_v14 = vld [vmem:[#allocation5 + $0x198] ss:$68 sps:$4 sm:$0xff]   ;;  %v6419_v15 = vld [vmem:[#allocation5 + $0x1a0] ss:$68 sps:$4 sm:$0xff]   ;;  %v6422_v17 = vld [vmem:[#allocation5 + $0x22c] ss:$68 sps:$4 sm:$0xff]  }
  0x86   :  { %1490 = vmatpush1.bf16.msra.mxu0 %v6406_v6  ;;  %1543 = vmatpush1.bf16.msra.mxu1 %v6407_v7  ;;  %v6420_v16 = vld [vmem:[#allocation5 + $0x224] ss:$68 sps:$4 sm:$0xff]   ;;  %v6426_v20 = vld [vmem:[#allocation5 + $0x2ac] ss:$68 sps:$4 sm:$0xff]   ;;  %v6428_v21 = vld [vmem:[#allocation5 + $0x2b4] ss:$68 sps:$4 sm:$0xff]  }
  0x87   :  { %1491 = vmatprep.subr.bf16.mxu0 %v6408_v8  ;;  %1544 = vmatprep.subr.bf16.mxu1 %v6410_v9  ;;  %v6424_v18 = vld [vmem:[#allocation5 + $0x220] ss:$68 sps:$4 sm:$0xff]   ;;  %v6425_v19 = vld [vmem:[#allocation5 + $0x228] ss:$68 sps:$4 sm:$0xff]   ;;  %v6431_v23 = vld [vmem:[#allocation5 + $0x2b0] ss:$68 sps:$4 sm:$0xff]  }
  0x88   :  { %v6430_v22 = vld [vmem:[#allocation5 + $0x2a8] ss:$68 sps:$4 sm:$0xff]   ;;  %v6432_v24 = vld [vmem:[#allocation5 + $0x334] ss:$68 sps:$4 sm:$0xff]   ;;  %v6434_v25 = vld [vmem:[#allocation5 + $0x33c] ss:$68 sps:$4 sm:$0xff]  }
  0x89   :  { %v6436_v26 = vld [vmem:[#allocation5 + $0x330] ss:$68 sps:$4 sm:$0xff]   ;;  %v6437_v27 = vld [vmem:[#allocation5 + $0x338] ss:$68 sps:$4 sm:$0xff]   ;;  %v6440_v29 = vld [vmem:[#allocation5 + $0x3c4] ss:$68 sps:$4 sm:$0xff]  }
  0x8a   :  { %1492 = vmatpush1.bf16.msra.mxu0 %v6412_v10  ;;  %1545 = vmatpush1.bf16.msra.mxu1 %v6413_v11  ;;  %v6438_v28 = vld [vmem:[#allocation5 + $0x3bc] ss:$68 sps:$4 sm:$0xff]   ;;  %v6444_v32 = vld [vmem:[#allocation5 + $0x444] ss:$68 sps:$4 sm:$0xff]   ;;  %v6446_v33 = vld [vmem:[#allocation5 + $0x44c] ss:$68 sps:$4 sm:$0xff]  }
  0x8b   :  { %1493 = vmatprep.subr.bf16.mxu0 %v6414_v12  ;;  %1546 = vmatprep.subr.bf16.mxu1 %v6416_v13  ;;  %v6442_v30 = vld [vmem:[#allocation5 + $0x3b8] ss:$68 sps:$4 sm:$0xff]   ;;  %v6443_v31 = vld [vmem:[#allocation5 + $0x3c0] ss:$68 sps:$4 sm:$0xff]   ;;  %vm1480_vm0 = vcmask 523264   ;;  %s6907_s6 = smov [#allocation14]  }
  0x8c   :  { %v6448_v34 = vld [vmem:[#allocation5 + $0x440] ss:$68 sps:$4 sm:$0xff]   ;;  %v6449_v35 = vld [vmem:[#allocation5 + $0x448] ss:$68 sps:$4 sm:$0xff]   ;;  %v6452_v38 = vld [vmem:[#allocation5 + $0x4d4] ss:$68 sps:$4 sm:$0xff]  }
  0x8d   :  { %v6450_v36 = vld [vmem:[#allocation5 + $0x4cc] ss:$68 sps:$4 sm:$0xff]   ;;  %v6456_v41 = vld [vmem:[#allocation5 + $0x554] ss:$68 sps:$4 sm:$0xff]   ;;  %v6458_v42 = vld [vmem:[#allocation5 + $0x55c] ss:$68 sps:$4 sm:$0xff]  }
  0x8e   :  { %1494 = vmatpush1.bf16.msra.mxu0 %v6418_v14  ;;  %1547 = vmatpush1.bf16.msra.mxu1 %v6419_v15  ;;  %v7052_v37 = vld [vmem:[#allocation2 + $0x4] ss:$8 sps:$4 sm:$0xff]   ;;  %v6455_v40 = vld [vmem:[#allocation5 + $0x4d0] ss:$68 sps:$4 sm:$0xff]   ;;  %v6461_v44 = vld [vmem:[#allocation5 + $0x558] ss:$68 sps:$4 sm:$0xff]  }
  0x8f   :  { %1495 = vmatprep.subr.bf16.mxu0 %v6420_v16  ;;  %1548 = vmatprep.subr.bf16.mxu1 %v6422_v17  ;;  %v6454_v39 = vld [vmem:[#allocation5 + $0x4c8] ss:$68 sps:$4 sm:$0xff]   ;;  %v6460_v43 = vld [vmem:[#allocation5 + $0x550] ss:$68 sps:$4 sm:$0xff]   ;;  %v6462_v45 = vld [vmem:[#allocation5 + $0x5dc] ss:$68 sps:$4 sm:$0xff]  }
  0x90   :  { %5213 = vmatprep.mubr.msk.bf16.mxu0 %vm1480_vm0, %v7052_v37  ;;  %5215 = vmatprep.mubr.msk.bf16.mxu1 %vm1480_vm0, %v7052_v37  ;;  %v6464_v46 = vld [vmem:[#allocation5 + $0x5e4] ss:$68 sps:$4 sm:$0xff]   ;;  %v6466_v47 = vld [vmem:[#allocation5 + $0x5d8] ss:$68 sps:$4 sm:$0xff]   ;;  %v6471_v52 = vld [vmem:[#allocation5 + $0x10] ss:$68 sps:$4 sm:$0xff]  }
  0x91   :  { %v6467_v48 = vld [vmem:[#allocation5 + $0x5e0] ss:$68 sps:$4 sm:$0xff]   ;;  %v6473_v49 = vld [vmem:[#allocation5 + $0x14] ss:$68 sps:$4 sm:$0xff]   ;;  %v6491_v60 = vld [vmem:[#allocation5 + $0x12c] ss:$68 sps:$4 sm:$0xff]  }
  0x92   :  { %1496 = vmatpush1.bf16.msra.mxu0 %v6424_v18  ;;  %1549 = vmatpush1.bf16.msra.mxu1 %v6425_v19  ;;  %v6476_v50 = vld [vmem:[#allocation5 + $0x1c] ss:$68 sps:$4 sm:$0xff]   ;;  %v6482_v55 = vld [vmem:[#allocation5 + $0xa4] ss:$68 sps:$4 sm:$0xff]   ;;  %v7066_v61 = vld [vmem:[#allocation2 + $0x10] ss:$8 sps:$4 sm:$0xff]  }
  0x93   :  { %1497 = vmatprep.subr.bf16.mxu0 %v6426_v20  ;;  %1550 = vmatprep.subr.bf16.mxu1 %v6428_v21  ;;  %v7058_v51 = vld [vmem:[#allocation2] ss:$8 sps:$4 sm:$0xff]   ;;  %v6474_v53 = vld [vmem:[#allocation5 + $0x18] ss:$68 sps:$4 sm:$0xff]   ;;  %v6494_v0 = vld [vmem:[#allocation5 + $0x1ac] ss:$68 sps:$4 sm:$0xff]  }
  0x94   :  { %v6479_v54 = vld [vmem:[#allocation5 + $0x9c] ss:$68 sps:$4 sm:$0xff]   ;;  %v6488_v59 = vld [vmem:[#allocation5 + $0x124] ss:$68 sps:$4 sm:$0xff]   ;;  %v6497_v1 = vld [vmem:[#allocation5 + $0x1b4] ss:$68 sps:$4 sm:$0xff]  }
  0x95   :  { %v7060_v56 = vld [vmem:[#allocation2 + $0x14] ss:$8 sps:$4 sm:$0xff]   ;;  %v6480_v58 = vld [vmem:[#allocation5 + $0xa0] ss:$68 sps:$4 sm:$0xff]   ;;  %v6489_v63 = vld [vmem:[#allocation5 + $0x128] ss:$68 sps:$4 sm:$0xff]  }
  0x96   :  { %1498 = vmatpush1.bf16.msra.mxu0 %v6430_v22  ;;  %1551 = vmatpush1.bf16.msra.mxu1 %v6431_v23  ;;  %v6477_v57 = vld [vmem:[#allocation5 + $0x98] ss:$68 sps:$4 sm:$0xff]   ;;  %v6486_v62 = vld [vmem:[#allocation5 + $0x120] ss:$68 sps:$4 sm:$0xff]   ;;  %v6492_v2 = vld [vmem:[#allocation5 + $0x1a8] ss:$68 sps:$4 sm:$0xff]  }
  0x97   :  { %1499 = vmatprep.subr.bf16.mxu0 %v6432_v24  ;;  %1552 = vmatprep.subr.bf16.mxu1 %v6434_v25  ;;  %v6495_v3 = vld [vmem:[#allocation5 + $0x1b0] ss:$68 sps:$4 sm:$0xff]   ;;  %v6503_v5 = vld [vmem:[#allocation5 + $0x23c] ss:$68 sps:$4 sm:$0xff]   ;;  %v6509_v9 = vld [vmem:[#allocation5 + $0x2c4] ss:$68 sps:$4 sm:$0xff]  }
  0x98   :  { %v6500_v4 = vld [vmem:[#allocation5 + $0x234] ss:$68 sps:$4 sm:$0xff]   ;;  %v6506_v8 = vld [vmem:[#allocation5 + $0x2bc] ss:$68 sps:$4 sm:$0xff]   ;;  %v6512_v12 = vld [vmem:[#allocation5 + $0x344] ss:$68 sps:$4 sm:$0xff]  }
  0x99   :  { %v6498_v6 = vld [vmem:[#allocation5 + $0x230] ss:$68 sps:$4 sm:$0xff]   ;;  %v6501_v7 = vld [vmem:[#allocation5 + $0x238] ss:$68 sps:$4 sm:$0xff]   ;;  %v6507_v11 = vld [vmem:[#allocation5 + $0x2c0] ss:$68 sps:$4 sm:$0xff]  }
  0x9a   :  { %1500 = vmatpush1.bf16.msra.mxu0 %v6436_v26  ;;  %1553 = vmatpush1.bf16.msra.mxu1 %v6437_v27  ;;  %v6504_v10 = vld [vmem:[#allocation5 + $0x2b8] ss:$68 sps:$4 sm:$0xff]   ;;  %v6515_v13 = vld [vmem:[#allocation5 + $0x34c] ss:$68 sps:$4 sm:$0xff]   ;;  %v6510_v14 = vld [vmem:[#allocation5 + $0x340] ss:$68 sps:$4 sm:$0xff]  }
  0x9b   :  { %1501 = vmatprep.subr.bf16.mxu0 %v6438_v28  ;;  %1554 = vmatprep.subr.bf16.mxu1 %v6440_v29  ;;  %v6513_v15 = vld [vmem:[#allocation5 + $0x348] ss:$68 sps:$4 sm:$0xff]   ;;  %v6521_v17 = vld [vmem:[#allocation5 + $0x3d4] ss:$68 sps:$4 sm:$0xff]   ;;  %v6527_v21 = vld [vmem:[#allocation5 + $0x45c] ss:$68 sps:$4 sm:$0xff]  }
  0x9c   :  { %v6518_v16 = vld [vmem:[#allocation5 + $0x3cc] ss:$68 sps:$4 sm:$0xff]   ;;  %v6524_v20 = vld [vmem:[#allocation5 + $0x454] ss:$68 sps:$4 sm:$0xff]   ;;  %v6530_v24 = vld [vmem:[#allocation5 + $0x4dc] ss:$68 sps:$4 sm:$0xff]  }
  0x9d   :  { %v6516_v18 = vld [vmem:[#allocation5 + $0x3c8] ss:$68 sps:$4 sm:$0xff]   ;;  %v6519_v19 = vld [vmem:[#allocation5 + $0x3d0] ss:$68 sps:$4 sm:$0xff]   ;;  %v6525_v23 = vld [vmem:[#allocation5 + $0x458] ss:$68 sps:$4 sm:$0xff]  }
  0x9e   :  { %1502 = vmatpush1.bf16.msra.mxu0 %v6442_v30  ;;  %1555 = vmatpush1.bf16.msra.mxu1 %v6443_v31  ;;  %v6522_v22 = vld [vmem:[#allocation5 + $0x450] ss:$68 sps:$4 sm:$0xff]   ;;  %v6533_v25 = vld [vmem:[#allocation5 + $0x4e4] ss:$68 sps:$4 sm:$0xff]   ;;  %v6528_v26 = vld [vmem:[#allocation5 + $0x4d8] ss:$68 sps:$4 sm:$0xff]  }
  0x9f   :  { %1503 = vmatprep.subr.bf16.mxu0 %v6444_v32  ;;  %1556 = vmatprep.subr.bf16.mxu1 %v6446_v33  ;;  %v6531_v27 = vld [vmem:[#allocation5 + $0x4e0] ss:$68 sps:$4 sm:$0xff]   ;;  %v6539_v29 = vld [vmem:[#allocation5 + $0x56c] ss:$68 sps:$4 sm:$0xff]   ;;  %v6545_v33 = vld [vmem:[#allocation5 + $0x5f4] ss:$68 sps:$4 sm:$0xff]  }
  0xa0   :  { %v6536_v28 = vld [vmem:[#allocation5 + $0x564] ss:$68 sps:$4 sm:$0xff]   ;;  %v6542_v32 = vld [vmem:[#allocation5 + $0x5ec] ss:$68 sps:$4 sm:$0xff]   ;;  %s4992_s11 = sshll.u32 %s6907_s6, 4  ;;  %s4993_s11 = int_to_ptr.vmem [resolvable:$true] %s4992_s11 }
  0xa1   :  { %v6534_v30 = vld [vmem:[#allocation5 + $0x560] ss:$68 sps:$4 sm:$0xff]   ;;  %v6537_v31 = vld [vmem:[#allocation5 + $0x568] ss:$68 sps:$4 sm:$0xff]   ;;  %s6861_s19 = scalar_lea.vmem %s4993_s11, 128  ;;  %p6866_p1 = scmp.lt.s32.totalorder %s4993_s11, %s4993_s11 }
  0xa2   :  { %1504 = vmatpush1.bf16.msra.mxu0 %v6448_v34  ;;  %1557 = vmatpush1.bf16.msra.mxu1 %v6449_v35  ;;  %v6540_v34 = vld [vmem:[#allocation5 + $0x5e8] ss:$68 sps:$4 sm:$0xff]   ;;  %v6543_v35 = vld [vmem:[#allocation5 + $0x5f0] ss:$68 sps:$4 sm:$0xff]   ;;  %p6862_p0 = scmp.ne.s32.totalorder %s4993_s11, %s6861_s19  ;;  %p6867_p2 = scmp.lt.s32.totalorder %s6861_s19, %s6861_s19 }
  0xa3   :  { %1505 = vmatprep.subr.bf16.mxu0 %v6450_v36  ;;  %1558 = vmatprep.subr.bf16.mxu1 %v6452_v38  ;;  %v6548_v36 = vld [vmem:[#allocation5 + $0x24] ss:$68 sps:$4 sm:$0xff]   ;;  %v6551_v38 = vld [vmem:[#allocation5 + $0x2c] ss:$68 sps:$4 sm:$0xff]  }
  0xa4   :  { %p6868_p3 = por %p6867_p2, %p6866_p1 }
  0xa6   :  { %1506 = vmatpush1.bf16.msra.mxu0 %v6454_v39  ;;  %1559 = vmatpush1.bf16.msra.mxu1 %v6455_v40  ;;  %v6546_v39 = vld [vmem:[#allocation5 + $0x20] ss:$68 sps:$4 sm:$0xff]   ;;  %v6549_v40 = vld [vmem:[#allocation5 + $0x28] ss:$68 sps:$4 sm:$0xff]   ;;  %p6869_p4 = pnand %p6868_p3, %p6862_p0 }
  0xa7   :  { %1507 = vmatprep.subr.bf16.mxu0 %v6456_v41  ;;  %1560 = vmatprep.subr.bf16.mxu1 %v6458_v42  ;;  %v6554_v41 = vld [vmem:[#allocation5 + $0xac] ss:$68 sps:$4 sm:$0xff]   ;;  %v6557_v42 = vld [vmem:[#allocation5 + $0xb4] ss:$68 sps:$4 sm:$0xff]  }
  0xaa   :  { %1508 = vmatpush1.bf16.msra.mxu0 %v6460_v43  ;;  %1561 = vmatpush1.bf16.msra.mxu1 %v6461_v44  ;;  %v6552_v43 = vld [vmem:[#allocation5 + $0xa8] ss:$68 sps:$4 sm:$0xff]   ;;  %v6555_v44 = vld [vmem:[#allocation5 + $0xb0] ss:$68 sps:$4 sm:$0xff]  }
  0xab   :  { %1509 = vmatprep.subr.bf16.mxu0 %v6462_v45  ;;  %1562 = vmatprep.subr.bf16.mxu1 %v6464_v46  ;;  %v6560_v45 = vld [vmem:[#allocation5 + $0x134] ss:$68 sps:$4 sm:$0xff]   ;;  %v6563_v46 = vld [vmem:[#allocation5 + $0x13c] ss:$68 sps:$4 sm:$0xff]  }
  0xae   :  { %1510 = vmatpush1.bf16.msra.mxu0 %v6466_v47  ;;  %1563 = vmatpush1.bf16.msra.mxu1 %v6467_v48  ;;  %v6558_v47 = vld [vmem:[#allocation5 + $0x130] ss:$68 sps:$4 sm:$0xff]   ;;  %v6561_v48 = vld [vmem:[#allocation5 + $0x138] ss:$68 sps:$4 sm:$0xff]  }
  0xaf   :  { %1593 = vmatprep.subr.bf16.mxu0 %v6473_v49  ;;  %1646 = vmatprep.subr.bf16.mxu1 %v6476_v50  ;;  %v6566_v49 = vld [vmem:[#allocation5 + $0x1bc] ss:$68 sps:$4 sm:$0xff]   ;;  %v6569_v50 = vld [vmem:[#allocation5 + $0x1c4] ss:$68 sps:$4 sm:$0xff]  }
  0xb1   :  { %1520 = vmatmul.mubr.bf16.vlgmr.msra.gmra.mrb[0].mxu0 %v7058_v51  ;;  %1573 = vmatmul.mubr.bf16.vlgmr.msra.gmra.mrb[0].mxu1 %v7058_v51 }
  0xb2   :  { %1594 = vmatpush1.bf16.msra.mxu0 %v6471_v52  ;;  %1647 = vmatpush1.bf16.msra.mxu1 %v6474_v53  ;;  %v6564_v52 = vld [vmem:[#allocation5 + $0x1b8] ss:$68 sps:$4 sm:$0xff]   ;;  %v6567_v53 = vld [vmem:[#allocation5 + $0x1c0] ss:$68 sps:$4 sm:$0xff]  }
  0xb3   :  { %1595 = vmatprep.subr.bf16.mxu0 %v6479_v54  ;;  %1648 = vmatprep.subr.bf16.mxu1 %v6482_v55  ;;  %v6572_v54 = vld [vmem:[#allocation5 + $0x244] ss:$68 sps:$4 sm:$0xff]   ;;  %v6575_v55 = vld [vmem:[#allocation5 + $0x24c] ss:$68 sps:$4 sm:$0xff]  }
  0xb4   :  { %5214 = vmatprep.mubr.msk.bf16.mxu0 %vm1480_vm0, %v7060_v56  ;;  %5216 = vmatprep.mubr.msk.bf16.mxu1 %vm1480_vm0, %v7060_v56 }
  0xb6   :  { %1596 = vmatpush1.bf16.msra.mxu0 %v6477_v57  ;;  %1649 = vmatpush1.bf16.msra.mxu1 %v6480_v58  ;;  %v6570_v57 = vld [vmem:[#allocation5 + $0x240] ss:$68 sps:$4 sm:$0xff]   ;;  %v6573_v58 = vld [vmem:[#allocation5 + $0x248] ss:$68 sps:$4 sm:$0xff]  }
  0xb7   :  { %1597 = vmatprep.subr.bf16.mxu0 %v6488_v59  ;;  %1650 = vmatprep.subr.bf16.mxu1 %v6491_v60  ;;  %v6578_v59 = vld [vmem:[#allocation5 + $0x2cc] ss:$68 sps:$4 sm:$0xff]   ;;  %v6581_v60 = vld [vmem:[#allocation5 + $0x2d4] ss:$68 sps:$4 sm:$0xff]  }
  0xb9   :  { %1530 = vmatmul.mubr.bf16.gmra.mrb[4].mxu0 %v7066_v61  ;;  %1583 = vmatmul.mubr.bf16.gmra.mrb[4].mxu1 %v7066_v61 }
  0xba   :  { %1598 = vmatpush1.bf16.msra.mxu0 %v6486_v62  ;;  %1651 = vmatpush1.bf16.msra.mxu1 %v6489_v63  ;;  %v6576_v62 = vld [vmem:[#allocation5 + $0x2c8] ss:$68 sps:$4 sm:$0xff]   ;;  %v6579_v63 = vld [vmem:[#allocation5 + $0x2d0] ss:$68 sps:$4 sm:$0xff]  }
  0xbb   :  { %1599 = vmatprep.subr.bf16.mxu0 %v6494_v0  ;;  %1652 = vmatprep.subr.bf16.mxu1 %v6497_v1  ;;  %v6584_v0 = vld [vmem:[#allocation5 + $0x354] ss:$68 sps:$4 sm:$0xff]   ;;  %v6587_v1 = vld [vmem:[#allocation5 + $0x35c] ss:$68 sps:$4 sm:$0xff]  }
  0xbc   :  { %5217 = vmatprep.mubr.msk.bf16.mxu0 %vm1480_vm0, %v7052_v37  ;;  %5219 = vmatprep.mubr.msk.bf16.mxu1 %vm1480_vm0, %v7052_v37 }
  0xbe   :  { %1600 = vmatpush1.bf16.msra.mxu0 %v6492_v2  ;;  %1653 = vmatpush1.bf16.msra.mxu1 %v6495_v3  ;;  %v6582_v2 = vld [vmem:[#allocation5 + $0x350] ss:$68 sps:$4 sm:$0xff]   ;;  %v6585_v3 = vld [vmem:[#allocation5 + $0x358] ss:$68 sps:$4 sm:$0xff]  }
  0xbf   :  { %1601 = vmatprep.subr.bf16.mxu0 %v6500_v4  ;;  %1654 = vmatprep.subr.bf16.mxu1 %v6503_v5  ;;  %v6590_v4 = vld [vmem:[#allocation5 + $0x3dc] ss:$68 sps:$4 sm:$0xff]   ;;  %v6593_v5 = vld [vmem:[#allocation5 + $0x3e4] ss:$68 sps:$4 sm:$0xff]  }
  0xc2   :  { %1602 = vmatpush1.bf16.msra.mxu0 %v6498_v6  ;;  %1655 = vmatpush1.bf16.msra.mxu1 %v6501_v7  ;;  %v6588_v6 = vld [vmem:[#allocation5 + $0x3d8] ss:$68 sps:$4 sm:$0xff]   ;;  %v6591_v7 = vld [vmem:[#allocation5 + $0x3e0] ss:$68 sps:$4 sm:$0xff]  }
  0xc3   :  { %1603 = vmatprep.subr.bf16.mxu0 %v6506_v8  ;;  %1656 = vmatprep.subr.bf16.mxu1 %v6509_v9  ;;  %v6596_v8 = vld [vmem:[#allocation5 + $0x464] ss:$68 sps:$4 sm:$0xff]   ;;  %v6599_v9 = vld [vmem:[#allocation5 + $0x46c] ss:$68 sps:$4 sm:$0xff]  }
  0xc6   :  { %1604 = vmatpush1.bf16.msra.mxu0 %v6504_v10  ;;  %1657 = vmatpush1.bf16.msra.mxu1 %v6507_v11  ;;  %v6594_v10 = vld [vmem:[#allocation5 + $0x460] ss:$68 sps:$4 sm:$0xff]   ;;  %v6597_v11 = vld [vmem:[#allocation5 + $0x468] ss:$68 sps:$4 sm:$0xff]  }
  0xc7   :  { %1605 = vmatprep.subr.bf16.mxu0 %v6512_v12  ;;  %1658 = vmatprep.subr.bf16.mxu1 %v6515_v13  ;;  %v6602_v12 = vld [vmem:[#allocation5 + $0x4ec] ss:$68 sps:$4 sm:$0xff]   ;;  %v6605_v13 = vld [vmem:[#allocation5 + $0x4f4] ss:$68 sps:$4 sm:$0xff]  }
  0xca   :  { %1606 = vmatpush1.bf16.msra.mxu0 %v6510_v14  ;;  %1659 = vmatpush1.bf16.msra.mxu1 %v6513_v15  ;;  %v6600_v14 = vld [vmem:[#allocation5 + $0x4e8] ss:$68 sps:$4 sm:$0xff]   ;;  %v6603_v15 = vld [vmem:[#allocation5 + $0x4f0] ss:$68 sps:$4 sm:$0xff]  }
  0xcb   :  { %1607 = vmatprep.subr.bf16.mxu0 %v6518_v16  ;;  %1660 = vmatprep.subr.bf16.mxu1 %v6521_v17  ;;  %v6608_v16 = vld [vmem:[#allocation5 + $0x574] ss:$68 sps:$4 sm:$0xff]   ;;  %v6611_v17 = vld [vmem:[#allocation5 + $0x57c] ss:$68 sps:$4 sm:$0xff]  }
  0xce   :  { %1608 = vmatpush1.bf16.msra.mxu0 %v6516_v18  ;;  %1661 = vmatpush1.bf16.msra.mxu1 %v6519_v19  ;;  %v6606_v18 = vld [vmem:[#allocation5 + $0x570] ss:$68 sps:$4 sm:$0xff]   ;;  %v6609_v19 = vld [vmem:[#allocation5 + $0x578] ss:$68 sps:$4 sm:$0xff]  }
  0xcf   :  { %1609 = vmatprep.subr.bf16.mxu0 %v6524_v20  ;;  %1662 = vmatprep.subr.bf16.mxu1 %v6527_v21  ;;  %v6614_v20 = vld [vmem:[#allocation5 + $0x5fc] ss:$68 sps:$4 sm:$0xff]   ;;  %v6617_v21 = vld [vmem:[#allocation5 + $0x604] ss:$68 sps:$4 sm:$0xff]  }
  0xd2   :  { %1610 = vmatpush1.bf16.msra.mxu0 %v6522_v22  ;;  %1663 = vmatpush1.bf16.msra.mxu1 %v6525_v23  ;;  %v6612_v22 = vld [vmem:[#allocation5 + $0x5f8] ss:$68 sps:$4 sm:$0xff]   ;;  %v6615_v23 = vld [vmem:[#allocation5 + $0x600] ss:$68 sps:$4 sm:$0xff]  }
  0xd3   :  { %1611 = vmatprep.subr.bf16.mxu0 %v6530_v24  ;;  %1664 = vmatprep.subr.bf16.mxu1 %v6533_v25  ;;  %v6620_v24 = vld [vmem:[#allocation5 + $0x34] ss:$68 sps:$4 sm:$0xff]   ;;  %v6623_v25 = vld [vmem:[#allocation5 + $0x3c] ss:$68 sps:$4 sm:$0xff]  }
  0xd6   :  { %1612 = vmatpush1.bf16.msra.mxu0 %v6528_v26  ;;  %1665 = vmatpush1.bf16.msra.mxu1 %v6531_v27  ;;  %v6618_v26 = vld [vmem:[#allocation5 + $0x30] ss:$68 sps:$4 sm:$0xff]   ;;  %v6621_v27 = vld [vmem:[#allocation5 + $0x38] ss:$68 sps:$4 sm:$0xff]  }
  0xd7   :  { %1613 = vmatprep.subr.bf16.mxu0 %v6536_v28  ;;  %1666 = vmatprep.subr.bf16.mxu1 %v6539_v29  ;;  %v6626_v28 = vld [vmem:[#allocation5 + $0xbc] ss:$68 sps:$4 sm:$0xff]   ;;  %v6629_v29 = vld [vmem:[#allocation5 + $0xc4] ss:$68 sps:$4 sm:$0xff]  }
  0xda   :  { %1614 = vmatpush1.bf16.msra.mxu0 %v6534_v30  ;;  %1667 = vmatpush1.bf16.msra.mxu1 %v6537_v31  ;;  %v6624_v30 = vld [vmem:[#allocation5 + $0xb8] ss:$68 sps:$4 sm:$0xff]   ;;  %v6627_v31 = vld [vmem:[#allocation5 + $0xc0] ss:$68 sps:$4 sm:$0xff]  }
  0xdb   :  { %1615 = vmatprep.subr.bf16.mxu0 %v6542_v32  ;;  %1668 = vmatprep.subr.bf16.mxu1 %v6545_v33  ;;  %v6632_v32 = vld [vmem:[#allocation5 + $0x144] ss:$68 sps:$4 sm:$0xff]   ;;  %v6635_v33 = vld [vmem:[#allocation5 + $0x14c] ss:$68 sps:$4 sm:$0xff]  }
  0xde   :  { %1616 = vmatpush1.bf16.msra.mxu0 %v6540_v34  ;;  %1669 = vmatpush1.bf16.msra.mxu1 %v6543_v35  ;;  %v6630_v34 = vld [vmem:[#allocation5 + $0x140] ss:$68 sps:$4 sm:$0xff]   ;;  %v6633_v35 = vld [vmem:[#allocation5 + $0x148] ss:$68 sps:$4 sm:$0xff]  }
  0xdf   :  { %1699 = vmatprep.subr.bf16.mxu0 %v6548_v36  ;;  %1752 = vmatprep.subr.bf16.mxu1 %v6551_v38  ;;  %v6638_v36 = vld [vmem:[#allocation5 + $0x1cc] ss:$68 sps:$4 sm:$0xff]   ;;  %v6641_v38 = vld [vmem:[#allocation5 + $0x1d4] ss:$68 sps:$4 sm:$0xff]  }
  0xe1   :  { %1626 = vmatmul.mubr.bf16.vlgmr.msra.gmra.mrb[8].mxu0 %v7058_v51  ;;  %1679 = vmatmul.mubr.bf16.vlgmr.msra.gmra.mrb[8].mxu1 %v7058_v51 }
  0xe2   :  { %1700 = vmatpush1.bf16.msra.mxu0 %v6546_v39  ;;  %1753 = vmatpush1.bf16.msra.mxu1 %v6549_v40  ;;  %v6636_v39 = vld [vmem:[#allocation5 + $0x1c8] ss:$68 sps:$4 sm:$0xff]   ;;  %v6639_v40 = vld [vmem:[#allocation5 + $0x1d0] ss:$68 sps:$4 sm:$0xff]  }
  0xe3   :  { %1701 = vmatprep.subr.bf16.mxu0 %v6554_v41  ;;  %1754 = vmatprep.subr.bf16.mxu1 %v6557_v42  ;;  %v6644_v41 = vld [vmem:[#allocation5 + $0x254] ss:$68 sps:$4 sm:$0xff]   ;;  %v6647_v42 = vld [vmem:[#allocation5 + $0x25c] ss:$68 sps:$4 sm:$0xff]  }
  0xe4   :  { %5218 = vmatprep.mubr.msk.bf16.mxu0 %vm1480_vm0, %v7060_v56  ;;  %5220 = vmatprep.mubr.msk.bf16.mxu1 %vm1480_vm0, %v7060_v56 }
  0xe6   :  { %1702 = vmatpush1.bf16.msra.mxu0 %v6552_v43  ;;  %1755 = vmatpush1.bf16.msra.mxu1 %v6555_v44  ;;  %v6642_v43 = vld [vmem:[#allocation5 + $0x250] ss:$68 sps:$4 sm:$0xff]   ;;  %v6645_v44 = vld [vmem:[#allocation5 + $0x258] ss:$68 sps:$4 sm:$0xff]  }
  0xe7   :  { %1703 = vmatprep.subr.bf16.mxu0 %v6560_v45  ;;  %1756 = vmatprep.subr.bf16.mxu1 %v6563_v46  ;;  %v6650_v45 = vld [vmem:[#allocation5 + $0x2dc] ss:$68 sps:$4 sm:$0xff]   ;;  %v6653_v46 = vld [vmem:[#allocation5 + $0x2e4] ss:$68 sps:$4 sm:$0xff]  }
  0xe9   :  { %1636 = vmatmul.mubr.bf16.gmra.mrb[12].mxu0 %v7066_v61  ;;  %1689 = vmatmul.mubr.bf16.gmra.mrb[12].mxu1 %v7066_v61 }
  0xea   :  { %1704 = vmatpush1.bf16.msra.mxu0 %v6558_v47  ;;  %1757 = vmatpush1.bf16.msra.mxu1 %v6561_v48  ;;  %v6648_v47 = vld [vmem:[#allocation5 + $0x2d8] ss:$68 sps:$4 sm:$0xff]   ;;  %v6651_v48 = vld [vmem:[#allocation5 + $0x2e0] ss:$68 sps:$4 sm:$0xff]  }
  0xeb   :  { %1705 = vmatprep.subr.bf16.mxu0 %v6566_v49  ;;  %1758 = vmatprep.subr.bf16.mxu1 %v6569_v50  ;;  %v6656_v49 = vld [vmem:[#allocation5 + $0x364] ss:$68 sps:$4 sm:$0xff]   ;;  %v6659_v50 = vld [vmem:[#allocation5 + $0x36c] ss:$68 sps:$4 sm:$0xff]  }
  0xec   :  { %5221 = vmatprep.mubr.msk.bf16.mxu0 %vm1480_vm0, %v7052_v37  ;;  %5223 = vmatprep.mubr.msk.bf16.mxu1 %vm1480_vm0, %v7052_v37 }
  0xee   :  { %1706 = vmatpush1.bf16.msra.mxu0 %v6564_v52  ;;  %1759 = vmatpush1.bf16.msra.mxu1 %v6567_v53  ;;  %v6654_v52 = vld [vmem:[#allocation5 + $0x360] ss:$68 sps:$4 sm:$0xff]   ;;  %v6662_v53 = vld [vmem:[#allocation5 + $0x3ec] ss:$68 sps:$4 sm:$0xff]  }
  0xef   :  { %1707 = vmatprep.subr.bf16.mxu0 %v6572_v54  ;;  %1760 = vmatprep.subr.bf16.mxu1 %v6575_v55  ;;  %v6665_v54 = vld [vmem:[#allocation5 + $0x3f4] ss:$68 sps:$4 sm:$0xff]   ;;  %v6660_v55 = vld [vmem:[#allocation5 + $0x3e8] ss:$68 sps:$4 sm:$0xff]  }
  0xf2   :  { %1708 = vmatpush1.bf16.msra.mxu0 %v6570_v57  ;;  %1761 = vmatpush1.bf16.msra.mxu1 %v6573_v58  ;;  %v6663_v57 = vld [vmem:[#allocation5 + $0x3f0] ss:$68 sps:$4 sm:$0xff]  }
  0xf3   :  { %1709 = vmatprep.subr.bf16.mxu0 %v6578_v59  ;;  %1762 = vmatprep.subr.bf16.mxu1 %v6581_v60  ;;  %v6668_v58 = vld [vmem:[#allocation5 + $0x474] ss:$68 sps:$4 sm:$0xff]   ;;  %v6671_v59 = vld [vmem:[#allocation5 + $0x47c] ss:$68 sps:$4 sm:$0xff]  }
  0xf4   :  { %v6666_v60 = vld [vmem:[#allocation5 + $0x470] ss:$68 sps:$4 sm:$0xff]  }
  0xf6   :  { %1710 = vmatpush1.bf16.msra.mxu0 %v6576_v62  ;;  %1763 = vmatpush1.bf16.msra.mxu1 %v6579_v63  ;;  %v6669_v62 = vld [vmem:[#allocation5 + $0x478] ss:$68 sps:$4 sm:$0xff]  }
  0xf7   :  { %1711 = vmatprep.subr.bf16.mxu0 %v6584_v0  ;;  %1764 = vmatprep.subr.bf16.mxu1 %v6587_v1  ;;  %v6674_v63 = vld [vmem:[#allocation5 + $0x4fc] ss:$68 sps:$4 sm:$0xff]   ;;  %v6677_v0 = vld [vmem:[#allocation5 + $0x504] ss:$68 sps:$4 sm:$0xff]  }
  0xf8   :  { %v6672_v1 = vld [vmem:[#allocation5 + $0x4f8] ss:$68 sps:$4 sm:$0xff]  }
  0xfa   :  { %1712 = vmatpush1.bf16.msra.mxu0 %v6582_v2  ;;  %1765 = vmatpush1.bf16.msra.mxu1 %v6585_v3  ;;  %v6675_v2 = vld [vmem:[#allocation5 + $0x500] ss:$68 sps:$4 sm:$0xff]  }
  0xfb   :  { %1713 = vmatprep.subr.bf16.mxu0 %v6590_v4  ;;  %1766 = vmatprep.subr.bf16.mxu1 %v6593_v5  ;;  %v6680_v3 = vld [vmem:[#allocation5 + $0x584] ss:$68 sps:$4 sm:$0xff]   ;;  %v6683_v4 = vld [vmem:[#allocation5 + $0x58c] ss:$68 sps:$4 sm:$0xff]  }
  0xfc   :  { %v6678_v5 = vld [vmem:[#allocation5 + $0x580] ss:$68 sps:$4 sm:$0xff]  }
  0xfe   :  { %1714 = vmatpush1.bf16.msra.mxu0 %v6588_v6  ;;  %1767 = vmatpush1.bf16.msra.mxu1 %v6591_v7  ;;  %v6681_v6 = vld [vmem:[#allocation5 + $0x588] ss:$68 sps:$4 sm:$0xff]  }
  0xff   :  { %1715 = vmatprep.subr.bf16.mxu0 %v6596_v8  ;;  %1768 = vmatprep.subr.bf16.mxu1 %v6599_v9  ;;  %v6686_v7 = vld [vmem:[#allocation5 + $0x60c] ss:$68 sps:$4 sm:$0xff]   ;;  %v6689_v8 = vld [vmem:[#allocation5 + $0x614] ss:$68 sps:$4 sm:$0xff]   ;;  %v3260_v9 = vld [vmem:[#allocation11 + $0x80] sm:$0xff] }
 0x102   :  { %1716 = vmatpush1.bf16.msra.mxu0 %v6594_v10  ;;  %1769 = vmatpush1.bf16.msra.mxu1 %v6597_v11  ;;  %v3261_v10 = vld [vmem:[#allocation11 + $0x88] sm:$0xff] }
 0x103   :  { %1717 = vmatprep.subr.bf16.mxu0 %v6602_v12  ;;  %1770 = vmatprep.subr.bf16.mxu1 %v6605_v13  ;;  %v6684_v11 = vld [vmem:[#allocation5 + $0x608] ss:$68 sps:$4 sm:$0xff]   ;;  %v6687_v12 = vld [vmem:[#allocation5 + $0x610] ss:$68 sps:$4 sm:$0xff]   ;;  %v5837_v13 = vpack.c.bf16 %v3261_v10, %v3260_v9 }
 0x104   :  { %v6699_v9 = vld [vmem:[#allocation5 + $0x508] ss:$68 sps:$4 sm:$0xff]   ;;  %v6700_v10 = vld [vmem:[#allocation5 + $0x590] ss:$68 sps:$4 sm:$0xff]  }
 0x106   :  { %1718 = vmatpush1.bf16.msra.mxu0 %v6600_v14  ;;  %1771 = vmatpush1.bf16.msra.mxu1 %v6603_v15  ;;  %v3244_v14 = vld [vmem:[#allocation11] sm:$0xff]  ;;  %v3245_v15 = vld [vmem:[#allocation11 + $0x8] sm:$0xff] }
 0x107   :  { %1719 = vmatprep.subr.bf16.mxu0 %v6608_v16  ;;  %1772 = vmatprep.subr.bf16.mxu1 %v6611_v17  ;;  %v6690_v16 = vld [vmem:[#allocation5 + $0x40] ss:$68 sps:$4 sm:$0xff]   ;;  %v3262_v17 = vld [vmem:[#allocation11 + $0x90] sm:$0xff] }
 0x10a   :  { %1720 = vmatpush1.bf16.msra.mxu0 %v6606_v18  ;;  %1773 = vmatpush1.bf16.msra.mxu1 %v6609_v19  ;;  %v3263_v18 = vld [vmem:[#allocation11 + $0x98] sm:$0xff]  ;;  %v6906_v19 = vmov 0  }
 0x10b   :  { %1721 = vmatprep.subr.bf16.mxu0 %v6614_v20  ;;  %1774 = vmatprep.subr.bf16.mxu1 %v6617_v21  ;;  %v5839_v20 = vpack.c.bf16 %v3245_v15, %v3244_v14  ;;  %v5841_v21 = vpack.c.bf16 %v3263_v18, %v3262_v17  ;;  %v3308_v15 = vld [vmem:[#allocation11 + $0x200] sm:$0xff]  ;;  %v3326_v17 = vld [vmem:[#allocation11 + $0x290] sm:$0xff]  ;;  %v3327_v18 = vld [vmem:[#allocation11 + $0x298] sm:$0xff] }
 0x10e   :  { %1722 = vmatpush1.bf16.msra.mxu0 %v6612_v22  ;;  %1775 = vmatpush1.bf16.msra.mxu1 %v6615_v23  ;;  %v3246_v22 = vld [vmem:[#allocation11 + $0x10] sm:$0xff]  ;;  %v3247_v23 = vld [vmem:[#allocation11 + $0x18] sm:$0xff] }
 0x10f   :  { %1805 = vmatprep.subr.bf16.mxu0 %v6620_v24  ;;  %1858 = vmatprep.subr.bf16.mxu1 %v6623_v25  ;;  %v6691_v24 = vld [vmem:[#allocation5 + $0xc8] ss:$68 sps:$4 sm:$0xff]   ;;  %v5843_v25 = vpack.c.bf16 %v3247_v23, %v3246_v22  ;;  %v5905_v22 = vpack.c.bf16 %v3327_v18, %v3326_v17 }
 0x110   :  { %v3310_v23 = vld [vmem:[#allocation11 + $0x210] sm:$0xff] }
 0x111   :  { %1732 = vmatmul.mubr.bf16.vlgmr.msra.gmra.mrb[16].mxu0 %v7058_v51  ;;  %1785 = vmatmul.mubr.bf16.vlgmr.msra.gmra.mrb[16].mxu1 %v7058_v51 }
 0x112   :  { %1806 = vmatpush1.bf16.msra.mxu0 %v6618_v26  ;;  %1859 = vmatpush1.bf16.msra.mxu1 %v6621_v27  ;;  %v3264_v26 = vld [vmem:[#allocation11 + $0xa0] sm:$0xff]  ;;  %v3265_v27 = vld [vmem:[#allocation11 + $0xa8] sm:$0xff] }
 0x113   :  { %1807 = vmatprep.subr.bf16.mxu0 %v6626_v28  ;;  %1860 = vmatprep.subr.bf16.mxu1 %v6629_v29  ;;  %v3248_v28 = vld [vmem:[#allocation11 + $0x20] sm:$0xff]  ;;  %v6692_v29 = vld [vmem:[#allocation5 + $0x150] ss:$68 sps:$4 sm:$0xff]  }
 0x114   :  { %5222 = vmatprep.mubr.msk.bf16.mxu0 %vm1480_vm0, %v7060_v56  ;;  %5224 = vmatprep.mubr.msk.bf16.mxu1 %vm1480_vm0, %v7060_v56 }
 0x116   :  { %1808 = vmatpush1.bf16.msra.mxu0 %v6624_v30  ;;  %1861 = vmatpush1.bf16.msra.mxu1 %v6627_v31  ;;  %v3266_v30 = vld [vmem:[#allocation11 + $0xb0] sm:$0xff]  ;;  %v3267_v31 = vld [vmem:[#allocation11 + $0xb8] sm:$0xff] }
 0x117   :  { %1809 = vmatprep.subr.bf16.mxu0 %v6632_v32  ;;  %1862 = vmatprep.subr.bf16.mxu1 %v6635_v33  ;;  %v5845_v32 = vpack.c.bf16 %v3265_v27, %v3264_v26  ;;  %v3329_v26 = vld [vmem:[#allocation11 + $0x2a8] sm:$0xff] }
 0x118   :  { %v6703_v27 = vld [vmem:[#allocation2] ss:$8 sps:$4 sm:$0xff]  }
 0x119   :  { %1742 = vmatmul.mubr.bf16.gmra.mrb[20].mxu0 %v7066_v61  ;;  %1795 = vmatmul.mubr.bf16.gmra.mrb[20].mxu1 %v7066_v61 }
 0x11a   :  { %1810 = vmatpush1.bf16.msra.mxu0 %v6630_v34  ;;  %1863 = vmatpush1.bf16.msra.mxu1 %v6633_v35  ;;  %v3250_v34 = vld [vmem:[#allocation11 + $0x30] sm:$0xff]  ;;  %v3251_v35 = vld [vmem:[#allocation11 + $0x38] sm:$0xff] }
 0x11b   :  { %1811 = vmatprep.subr.bf16.mxu0 %v6638_v36  ;;  %1864 = vmatprep.subr.bf16.mxu1 %v6641_v38  ;;  %v6693_v36 = vld [vmem:[#allocation5 + $0x1d8] ss:$68 sps:$4 sm:$0xff]   ;;  %v6702_v38 = vld [vmem:[#allocation2 + $0x4] ss:$8 sps:$4 sm:$0xff]  }
 0x11c   :  { %5225 = vmatprep.mubr.msk.bf16.mxu0 %vm1480_vm0, %v7052_v37  ;;  %5227 = vmatprep.mubr.msk.bf16.mxu1 %vm1480_vm0, %v7052_v37  ;;  %v6657_v37 = vld [vmem:[#allocation5 + $0x368] ss:$68 sps:$4 sm:$0xff]  }
 0x11e   :  { %1812 = vmatpush1.bf16.msra.mxu0 %v6636_v39  ;;  %1865 = vmatpush1.bf16.msra.mxu1 %v6639_v40  ;;  %v3268_v39 = vld [vmem:[#allocation11 + $0xc0] sm:$0xff]  ;;  %v3269_v40 = vld [vmem:[#allocation11 + $0xc8] sm:$0xff] }
 0x11f   :  { %1813 = vmatprep.subr.bf16.mxu0 %v6644_v41  ;;  %1866 = vmatprep.subr.bf16.mxu1 %v6647_v42  ;;  %v5851_v41 = vpack.c.bf16 %v3251_v35, %v3250_v34  ;;  %v5853_v42 = vpack.c.bf16 %v3269_v40, %v3268_v39  ;;  %v7127_v34 = vld [vmem:[#allocation7] sm:$0xff]  ;;  %v7129_v35 = vld [vmem:[#allocation8] sm:$0xff] }
 0x120   :  { %v7136_v40 = vld [vmem:[#allocation8 + $0x11] sm:$0xff] }
 0x122   :  { %1814 = vmatpush1.bf16.msra.mxu0 %v6642_v43  ;;  %1867 = vmatpush1.bf16.msra.mxu1 %v6645_v44  ;;  %v3252_v43 = vld [vmem:[#allocation11 + $0x40] sm:$0xff]  ;;  %v3253_v44 = vld [vmem:[#allocation11 + $0x48] sm:$0xff] }
 0x123   :  { %1815 = vmatprep.subr.bf16.mxu0 %v6650_v45  ;;  %1868 = vmatprep.subr.bf16.mxu1 %v6653_v46  ;;  %v3270_v45 = vld [vmem:[#allocation11 + $0xd0] sm:$0xff]  ;;  %v3271_v46 = vld [vmem:[#allocation11 + $0xd8] sm:$0xff] }
 0x126   :  { %1816 = vmatpush1.bf16.msra.mxu0 %v6648_v47  ;;  %1869 = vmatpush1.bf16.msra.mxu1 %v6651_v48  ;;  %v5855_v47 = vpack.c.bf16 %v3253_v44, %v3252_v43  ;;  %v5857_v48 = vpack.c.bf16 %v3271_v46, %v3270_v45  ;;  %v3315_v43 = vld [vmem:[#allocation11 + $0x238] sm:$0xff]  ;;  %v7138_v44 = vld [vmem:[#allocation8 + $0x55] sm:$0xff] }
 0x127   :  { %1817 = vmatprep.subr.bf16.mxu0 %v6656_v49  ;;  %1870 = vmatprep.subr.bf16.mxu1 %v6659_v50  ;;  %v3254_v49 = vld [vmem:[#allocation11 + $0x50] sm:$0xff]  ;;  %v3255_v50 = vld [vmem:[#allocation11 + $0x58] sm:$0xff]  ;;  %v3333_v45 = vld [vmem:[#allocation11 + $0x2c8] sm:$0xff] }
 0x128   :  { %v6705_v46 = vld [vmem:[#allocation2 + $0x10] ss:$8 sps:$4 sm:$0xff]  }
 0x12a   :  { %1818 = vmatpush1.bf16.msra.mxu0 %v6654_v52  ;;  %1871 = vmatpush1.bf16.msra.mxu1 %v6657_v37  ;;  %v6695_v52 = vld [vmem:[#allocation5 + $0x2e8] ss:$68 sps:$4 sm:$0xff]   ;;  %v3272_v37 = vld [vmem:[#allocation11 + $0xe0] sm:$0xff] }
 0x12b   :  { %1819 = vmatprep.subr.bf16.mxu0 %v6662_v53  ;;  %1872 = vmatprep.subr.bf16.mxu1 %v6665_v54  ;;  %v3273_v53 = vld [vmem:[#allocation11 + $0xe8] sm:$0xff]  ;;  %v5859_v54 = vpack.c.bf16 %v3255_v50, %v3254_v49 }
 0x12e   :  { %1820 = vmatpush1.bf16.msra.mxu0 %v6660_v55  ;;  %1873 = vmatpush1.bf16.msra.mxu1 %v6663_v57  ;;  %v5861_v55 = vpack.c.bf16 %v3273_v53, %v3272_v37  ;;  %v3256_v57 = vld [vmem:[#allocation11 + $0x60] sm:$0xff]  ;;  %v7154_v37 = vld [vmem:[#allocation8 + $0x22] sm:$0xff] }
 0x12f   :  { %1821 = vmatprep.subr.bf16.mxu0 %v6668_v58  ;;  %1874 = vmatprep.subr.bf16.mxu1 %v6671_v59  ;;  %v3257_v58 = vld [vmem:[#allocation11 + $0x68] sm:$0xff]  ;;  %v6696_v59 = vld [vmem:[#allocation5 + $0x370] ss:$68 sps:$4 sm:$0xff]   ;;  %v7156_v53 = vld [vmem:[#allocation8 + $0x66] sm:$0xff] }
 0x132   :  { %1822 = vmatpush1.bf16.msra.mxu0 %v6666_v60  ;;  %1875 = vmatpush1.bf16.msra.mxu1 %v6669_v62  ;;  %v3274_v60 = vld [vmem:[#allocation11 + $0xf0] sm:$0xff]  ;;  %v3275_v62 = vld [vmem:[#allocation11 + $0xf8] sm:$0xff] }
 0x133   :  { %1823 = vmatprep.subr.bf16.mxu0 %v6674_v63  ;;  %1876 = vmatprep.subr.bf16.mxu1 %v6677_v0  ;;  %v5863_v63 = vpack.c.bf16 %v3257_v58, %v3256_v57  ;;  %v5865_v0 = vpack.c.bf16 %v3275_v62, %v3274_v60  ;;  %v7166_v60 = vld [vmem:[#allocation10] sm:$0xff] }
 0x136   :  { %1824 = vmatpush1.bf16.msra.mxu0 %v6672_v1  ;;  %1877 = vmatpush1.bf16.msra.mxu1 %v6675_v2  ;;  %v3258_v1 = vld [vmem:[#allocation11 + $0x70] sm:$0xff]  ;;  %v3259_v2 = vld [vmem:[#allocation11 + $0x78] sm:$0xff] }
 0x137   :  { %1825 = vmatprep.subr.bf16.mxu0 %v6680_v3  ;;  %1878 = vmatprep.subr.bf16.mxu1 %v6683_v4  ;;  %v6697_v3 = vld [vmem:[#allocation5 + $0x3f8] ss:$68 sps:$4 sm:$0xff]  }
 0x138   :  { %v3292_v4 = vld [vmem:[#allocation11 + $0x180] sm:$0xff] }
 0x13a   :  { %1826 = vmatpush1.bf16.msra.mxu0 %v6678_v5  ;;  %1879 = vmatpush1.bf16.msra.mxu1 %v6681_v6  ;;  %v3293_v5 = vld [vmem:[#allocation11 + $0x188] sm:$0xff]  ;;  %v5867_v6 = vpack.c.bf16 %v3259_v2, %v3258_v1 }
 0x13b   :  { %1827 = vmatprep.subr.bf16.mxu0 %v6686_v7  ;;  %1880 = vmatprep.subr.bf16.mxu1 %v6689_v8  ;;  %v5869_v7 = vpack.c.bf16 %v3293_v5, %v3292_v4  ;;  %v6698_v8 = vld [vmem:[#allocation5 + $0x480] ss:$68 sps:$4 sm:$0xff]  }
 0x13e   :  { %1828 = vmatpush1.bf16.msra.mxu0 %v6684_v11  ;;  %1881 = vmatpush1.bf16.msra.mxu1 %v6687_v12  ;;  %v3324_v11 = vld [vmem:[#allocation11 + $0x280] sm:$0xff]  ;;  %v3325_v12 = vld [vmem:[#allocation11 + $0x288] sm:$0xff] }
 0x13f   :  { %1911 = vmatprep.subr.bf16.mxu0 %v6906_v19  ;;  %5838 = vmatprep.subr.bf16.mxu1 %v5837_v13  ;;  %v6701_v13 = vld [vmem:[#allocation5 + $0x618] ss:$68 sps:$4 sm:$0xff]   ;;  %v5901_v14 = vpack.c.bf16 %v3325_v12, %v3324_v11 }
 0x141   :  { %1838 = vmatmul.mubr.bf16.vlgmr.msra.gmra.mrb[24].mxu0 %v7058_v51  ;;  %1891 = vmatmul.mubr.bf16.vlgmr.msra.gmra.mrb[24].mxu1 %v7058_v51  ;;  %v3249_v51 = vld [vmem:[#allocation11 + $0x28] sm:$0xff] }
 0x142   :  { %1912 = vmatpush1.bf16.msra.mxu0 %v6690_v16  ;;  %5226 = vmatprep.mubr.msk.bf16.mxu0 %vm1480_vm0, %v7060_v56  ;;  %v5847_v33 = vpack.c.bf16 %v3249_v51, %v3248_v28  ;;  %v3309_v16 = vld [vmem:[#allocation11 + $0x208] sm:$0xff]  ;;  %v6704_v51 = vld [vmem:[#allocation2 + $0x14] ss:$8 sps:$4 sm:$0xff]  }
 0x143   :  { %1913 = vmatprep.subr.bf16.mxu0 %v6906_v19  ;;  %5228 = vmatprep.mubr.msk.bf16.mxu1 %vm1480_vm0, %v7060_v56  ;;  %v5849_v56 = vpack.c.bf16 %v3267_v31, %v3266_v30  ;;  %v3312_v30 = vld [vmem:[#allocation11 + $0x220] sm:$0xff]  ;;  %v3313_v31 = vld [vmem:[#allocation11 + $0x228] sm:$0xff] }
 0x144   :  { %5840 = vmatpush3.bf16.msra.mxu1 %v5839_v20  ;;  %v345_v20 = vlaneseq  ;;  %v5911_v39 = vpack.c.bf16 %v3313_v31, %v3312_v30 }
 0x145   :  { %5842 = vmatprep.subr.bf16.mxu1 %v5841_v21  ;;  %v5903_v21 = vpack.c.bf16 %v3309_v16, %v3308_v15 }
 0x146   :  { %1914 = vmatpush1.bf16.msra.mxu0 %v6691_v24  ;;  %v3311_v24 = vld [vmem:[#allocation11 + $0x218] sm:$0xff]  ;;  %v7121_v28 = vshrl.u32 %v345_v20, 7 }
 0x147   :  { %1915 = vmatprep.subr.bf16.mxu0 %v6906_v19 }
 0x148   :  { %5844 = vmatpush3.bf16.msra.mxu1 %v5843_v25  ;;  %v3328_v25 = vld [vmem:[#allocation11 + $0x2a0] sm:$0xff]  ;;  %v7175_v4 = vsub.s32 2, %v7121_v28  ;;  %v7178_v5 = vsub.s32 3, %v7121_v28 }
 0x149   :  { %1848 = vmatmul.mubr.bf16.gmra.mrb[28].mxu0 %v7066_v61  ;;  %1901 = vmatmul.mubr.bf16.gmra.mrb[28].mxu1 %v7066_v61  ;;  %v6694_v61 = vld [vmem:[#allocation5 + $0x260] ss:$68 sps:$4 sm:$0xff]  }
 0x14a   :  { %1916 = vmatpush1.bf16.msra.mxu0 %v6692_v29  ;;  %5229 = vmatprep.mubr.msk.bf16.mxu0 %vm1480_vm0, %v6702_v38  ;;  %v5909_v29 = vpack.c.bf16 %v3329_v26, %v3328_v25  ;;  %v7134_v38 = vsub.s32 1, %v7121_v28  ;;  %8588 = vst [vmem:[#allocation22_spill] sm:$0xff] %v7175_v4  ;;  %8589 = vst [vmem:[#allocation23_spill] sm:$0xff] %v7178_v5  ;;  %v7210_v26 = vrot.slane %v7127_v34, %v7178_v5 }
 0x14b   :  { %1917 = vmatprep.subr.bf16.mxu0 %v6906_v19  ;;  %5846 = vmatprep.subr.bf16.mxu1 %v5845_v32  ;;  %v3330_v32 = vld [vmem:[#allocation11 + $0x2b0] sm:$0xff]  ;;  %v2149_v30 = vrot.slane %v7136_v40, %v7175_v4  ;;  %v2742_v31 = vrot.slane %v7138_v44, %v7175_v4 }
 0x14c   :  { %5848 = vmatpush3.bf16.msra.mxu1 %v5847_v33  ;;  %v3331_v33 = vld [vmem:[#allocation11 + $0x2b8] sm:$0xff]  ;;  %8587 = vst [vmem:[#allocation21_spill] sm:$0xff] %v7134_v38  ;;  %v7150_v50 = vrot.slane %v7127_v34, %v7134_v38  ;;  %v2145_v1 = vrot.slane %v7136_v40, %v7134_v38  ;;  %v2738_v2 = vrot.slane %v7138_v44, %v7134_v38 }
 0x14d   :  { %5850 = vmatprep.subr.bf16.mxu1 %v5849_v56  ;;  %v7125_v56 = vsub.s32 0, %v7121_v28 }
 0x14e   :  { %1918 = vmatpush1.bf16.msra.mxu0 %v6693_v36  ;;  %v7131_v36 = vld [vmem:[#allocation8 + $0x44] sm:$0xff] }
 0x14f   :  { %1919 = vmatprep.subr.bf16.mxu0 %v6906_v19  ;;  %8586 = vst [vmem:[#allocation20_spill] sm:$0xff] %v7125_v56  ;;  %v2666_v49 = vrot.slane %v7131_v36, %v7125_v56  ;;  %v2670_v57 = vrot.slane %v7131_v36, %v7134_v38  ;;  %v2141_v58 = vrot.slane %v7136_v40, %v7125_v56 }
 0x150   :  { %5852 = vmatpush3.bf16.msra.mxu1 %v5851_v41  ;;  %v5913_v41 = vpack.c.bf16 %v3331_v33, %v3330_v32  ;;  %v2674_v25 = vrot.slane %v7131_v36, %v7175_v4  ;;  %v3320_v32 = vld [vmem:[#allocation11 + $0x260] sm:$0xff]  ;;  %v3321_v33 = vld [vmem:[#allocation11 + $0x268] sm:$0xff] }
 0x151   :  { %5854 = vmatprep.subr.bf16.mxu1 %v5853_v42  ;;  %v3314_v42 = vld [vmem:[#allocation11 + $0x230] sm:$0xff] }
 0x152   :  { %1920 = vmatpush1.bf16.msra.mxu0 %v6694_v61  ;;  %v3332_v61 = vld [vmem:[#allocation11 + $0x2c0] sm:$0xff] }
 0x153   :  { %1921 = vmatprep.subr.bf16.mxu0 %v6906_v19  ;;  %v5917_v62 = vpack.c.bf16 %v3333_v45, %v3332_v61  ;;  %v3338_v61 = vld [vmem:[#allocation11 + $0x2f0] sm:$0xff]  ;;  %v3339_v45 = vld [vmem:[#allocation11 + $0x2f8] sm:$0xff] }
 0x154   :  { %5856 = vmatpush3.bf16.msra.mxu1 %v5855_v47  ;;  %v7142_v47 = vrot.slane %v7127_v34, %v7125_v56  ;;  %v5929_v17 = vpack.c.bf16 %v3339_v45, %v3338_v61 }
 0x155   :  { %5858 = vmatprep.subr.bf16.mxu1 %v5857_v48  ;;  %v2073_v48 = vrot.slane %v7129_v35, %v7125_v56 }
 0x156   :  { %1922 = vmatpush1.bf16.msra.mxu0 %v6695_v52  ;;  %v2077_v52 = vrot.slane %v7129_v35, %v7134_v38 }
 0x157   :  { %1923 = vmatprep.subr.bf16.mxu0 %v6906_v19 }
 0x158   :  { %5860 = vmatpush3.bf16.msra.mxu1 %v5859_v54  ;;  %v7158_v54 = vld [vmem:[#allocation8 + $0x33] sm:$0xff] }
 0x159   :  { %5862 = vmatprep.subr.bf16.mxu1 %v5861_v55  ;;  %v5915_v55 = vpack.c.bf16 %v3315_v43, %v3314_v42 }
 0x15a   :  { %1924 = vmatpush1.bf16.msra.mxu0 %v6696_v59  ;;  %v2734_v59 = vrot.slane %v7138_v44, %v7125_v56 }
 0x15b   :  { %1925 = vmatprep.subr.bf16.mxu0 %v6906_v19 }
 0x15c   :  { %5864 = vmatpush3.bf16.msra.mxu1 %v5863_v63  ;;  %v3316_v63 = vld [vmem:[#allocation11 + $0x240] sm:$0xff] }
 0x15d   :  { %5866 = vmatprep.subr.bf16.mxu1 %v5865_v0  ;;  %v3317_v0 = vld [vmem:[#allocation11 + $0x248] sm:$0xff] }
 0x15e   :  { %1926 = vmatpush1.bf16.msra.mxu0 %v6697_v3  ;;  %v7172_v3 = vld [vmem:[#allocation8 + $0x77] sm:$0xff]  ;;  %v5919_v15 = vpack.c.bf16 %v3317_v0, %v3316_v63 }
 0x15f   :  { %1927 = vmatprep.subr.bf16.mxu0 %v6906_v19 }
 0x160   :  { %5868 = vmatpush3.bf16.msra.mxu1 %v5867_v6  ;;  %v3334_v6 = vld [vmem:[#allocation11 + $0x2d0] sm:$0xff] }
 0x161   :  { %5870 = vmatprep.subr.bf16.mxu1 %v5869_v7  ;;  %v3335_v7 = vld [vmem:[#allocation11 + $0x2d8] sm:$0xff] }
 0x162   :  { %1928 = vmatpush1.bf16.msra.mxu0 %v6698_v8  ;;  %v2209_v8 = vrot.slane %v7154_v37, %v7125_v56  ;;  %v5921_v20 = vpack.c.bf16 %v3335_v7, %v3334_v6  ;;  %v7234_v6 = vld [vmem:[#allocation11 + $0x278] sm:$0xff]  ;;  %v7236_v7 = vld [vmem:[#allocation11 + $0x480] sm:$0xff] }
 0x163   :  { %1929 = vmatprep.subr.bf16.mxu0 %v6906_v19 }
 0x166   :  { %1930 = vmatpush1.bf16.msra.mxu0 %v6699_v9  ;;  %v2802_v9 = vrot.slane %v7156_v53, %v7125_v56 }
 0x167   :  { %1931 = vmatprep.subr.bf16.mxu0 %v6906_v19 }
 0x16a   :  { %1932 = vmatpush1.bf16.msra.mxu0 %v6700_v10  ;;  %v2213_v10 = vrot.slane %v7154_v37, %v7134_v38 }
 0x16b   :  { %1933 = vmatprep.subr.bf16.mxu0 %v6906_v19  ;;  %v5907_v19 = vpack.c.bf16 %v3311_v24, %v3310_v23  ;;  %v7202_v23 = vrot.slane %v7127_v34, %v7175_v4  ;;  %v2081_v24 = vrot.slane %v7129_v35, %v7175_v4 }
 0x16e   :  { %1934 = vmatpush1.bf16.msra.mxu0 %v6701_v13  ;;  %v5927_v13 = vpack.c.bf16 %v3321_v33, %v3320_v32 }
 0x16f   :  { %5902 = vmatprep.subr.bf16.mxu0 %v5901_v14 }
 0x171   :  { %1944 = vmatmul.mubr.bf16.vlgmr.msra.gmra.mrb[32].mxu0 %v6703_v27  ;;  %v3336_v27 = vld [vmem:[#allocation11 + $0x2e0] sm:$0xff] }
 0x172   :  { %5230 = vmatprep.mubr.msk.bf16.mxu0 %vm1480_vm0, %v6704_v51  ;;  %5904 = vmatpush3.bf16.msra.mxu0 %v5903_v21  ;;  %v3318_v21 = vld [vmem:[#allocation11 + $0x250] sm:$0xff]  ;;  %v3337_v51 = vld [vmem:[#allocation11 + $0x2e8] sm:$0xff] }
 0x173   :  { %5906 = vmatprep.subr.bf16.mxu0 %v5905_v22  ;;  %v3319_v22 = vld [vmem:[#allocation11 + $0x258] sm:$0xff]  ;;  %v5925_v0 = vpack.c.bf16 %v3337_v51, %v3336_v27 }
 0x174   :  { %v5923_v43 = vpack.c.bf16 %v3319_v22, %v3318_v21 }
 0x176   :  { %5908 = vmatpush3.bf16.msra.mxu0 %v5907_v19  ;;  %v2085_v19 = vrot.slane %v7129_v35, %v7178_v5 }
 0x177   :  { %5910 = vmatprep.subr.bf16.mxu0 %v5909_v29  ;;  %v2678_v29 = vrot.slane %v7131_v36, %v7178_v5 }
 0x179   :  { %1952 = vmatmul.mubr.bf16.gmra.mrb[36].mxu0 %v6705_v46  ;;  %v7226_v46 = vld [vmem:[#allocation11 + $0x270] sm:$0xff] }
 0x17a   :  { %5912 = vmatpush3.bf16.msra.mxu0 %v5911_v39  ;;  %v2153_v39 = vrot.slane %v7136_v40, %v7178_v5 }
 0x17b   :  { %5914 = vmatprep.subr.bf16.mxu0 %v5913_v41  ;;  %v2746_v41 = vrot.slane %v7138_v44, %v7178_v5 }
 0x17e   :  { %5916 = vmatpush3.bf16.msra.mxu0 %v5915_v55 }
 0x17f   :  { %5918 = vmatprep.subr.bf16.mxu0 %v5917_v62  ;;  %v5931_v62 = vpack.c.bf16 %v7234_v6, %v7226_v46 }
 0x182   :  { %5920 = vmatpush3.bf16.msra.mxu0 %v5919_v15  ;;  %v7238_v15 = vld [vmem:[#allocation11 + $0x488] sm:$0xff] }
 0x183   :  { %5922 = vmatprep.subr.bf16.mxu0 %v5921_v20  ;;  %v5965_v20 = vpack.c.bf16 %v7238_v15, %v7236_v7 }
 0x184   :  { %v1521_v21 = vpop.f32.mrb[0].mxu0  ;;  %v1574_v22 = vpop.f32.mrb[0].mxu1 }
 0x185   :  { %v1522_v27 = vadd.f32 %v1521_v21, %v7142_v47  ;;  %v1523_v51 = vpop.f32.mrb[1].mxu0  ;;  %v1575_v63 = vadd.f32 %v1574_v22, %v7202_v23  ;;  %v1576_v42 = vpop.f32.mrb[1].mxu1 }
 0x186   :  { %v1524_v14 = vadd.f32 %v1523_v51, %v7150_v50  ;;  %v1525_v18 = vpop.f32.mrb[2].mxu0  ;;  %v1577_v16 = vadd.f32 %v1576_v42, %v7210_v26  ;;  %v1578_v55 = vpop.f32.mrb[2].mxu1  ;;  %5924 = vmatpush3.bf16.msra.mxu0 %v5923_v43 }
 0x187   :  { %v1960_v21 = vmax.f32 %v1522_v27, 0.0  ;;  %v1526_v12 = vadd.f32 %v1525_v18, %v7142_v47  ;;  %v1527_v22 = vpop.f32.mrb[3].mxu0  ;;  %v1962_v11 = vmax.f32 %v1575_v63, 0.0  ;;  %v1579_v32 = vadd.f32 %v1578_v55, %v7202_v23  ;;  %v1580_v33 = vpop.f32.mrb[3].mxu1  ;;  %5926 = vmatprep.subr.bf16.mxu0 %v5925_v0 }
 0x188   :  { %v1961_v61 = vmax.f32 %v1524_v14, 0.0  ;;  %v1528_v42 = vadd.f32 %v1527_v22, %v7150_v50  ;;  %v1963_v45 = vmax.f32 %v1577_v16, 0.0  ;;  %v1581_v43 = vadd.f32 %v1580_v33, %v7210_v26 }
 0x189   :  { %v2410_v46 = vmul.f32 %v2073_v48, %v1960_v21  ;;  %v3003_v18 = vmul.f32 %v2666_v49, %v1960_v21  ;;  %v1977_v6 = vmax.f32 %v1526_v12, 0.0  ;;  %v2412_v63 = vmul.f32 %v2081_v24, %v1962_v11 }
 0x18a   :  { %v2411_v55 = vmul.f32 %v2077_v52, %v1961_v61  ;;  %v3004_v14 = vmul.f32 %v2670_v57, %v1961_v61  ;;  %v1978_v16 = vmax.f32 %v1528_v42, 0.0  ;;  %v3005_v0 = vmul.f32 %v2674_v25, %v1962_v11  ;;  %5928 = vmatpush3.bf16.msra.mxu0 %v5927_v13 }
 0x18b   :  { %v2427_v48 = vmul.f32 %v2141_v58, %v1977_v6  ;;  %v3020_v49 = vmul.f32 %v2734_v59, %v1977_v6  ;;  %v2413_v52 = vmul.f32 %v2085_v19, %v1963_v45  ;;  %v3006_v57 = vmul.f32 %v2678_v29, %v1963_v45  ;;  %5930 = vmatprep.subr.bf16.mxu0 %v5929_v17 }
 0x18c   :  { %v2428_v11 = vmul.f32 %v2145_v1, %v1978_v16  ;;  %v3021_v58 = vmul.f32 %v2738_v2, %v1978_v16  ;;  %v1531_v12 = vpop.f32.mrb[4].mxu0  ;;  %v1979_v13 = vmax.f32 %v1579_v32, 0.0  ;;  %v1980_v59 = vmax.f32 %v1581_v43, 0.0  ;;  %v1584_v24 = vpop.f32.mrb[4].mxu1 }
 0x18d   :  { %v2478_v25 = vadd.f32 %v2427_v48, %v2410_v46  ;;  %v3071_v7 = vadd.f32 %v3020_v49, %v3003_v18  ;;  %v1532_v19 = vadd.f32 %v1531_v12, %v7142_v47  ;;  %v1533_v15 = vpop.f32.mrb[5].mxu0  ;;  %v1585_v29 = vadd.f32 %v1584_v24, %v7202_v23  ;;  %v1586_v17 = vpop.f32.mrb[5].mxu1  ;;  %v3276_v24 = vld [vmem:[#allocation11 + $0x100] sm:$0xff] }
 0x18e   :  { %v2481_v27 = vadd.f32 %v2428_v11, %v2411_v55  ;;  %v3074_v51 = vadd.f32 %v3021_v58, %v3004_v14  ;;  %v1534_v1 = vadd.f32 %v1533_v15, %v7150_v50  ;;  %v1535_v21 = vpop.f32.mrb[6].mxu0  ;;  %v2429_v2 = vmul.f32 %v2149_v30, %v1979_v13  ;;  %v1588_v22 = vpop.f32.mrb[6].mxu1  ;;  %5932 = vmatpush3.bf16.msra.mxu0 %v5931_v62 }
 0x18f   :  { %v1994_v32 = vmax.f32 %v1532_v19, 0.0  ;;  %v1536_v33 = vadd.f32 %v1535_v21, %v7142_v47  ;;  %v1537_v61 = vpop.f32.mrb[7].mxu0  ;;  %v3022_v42 = vmul.f32 %v2742_v31, %v1979_v13  ;;  %v2430_v45 = vmul.f32 %v2153_v39, %v1980_v59  ;;  %v1590_v43 = vpop.f32.mrb[7].mxu1  ;;  %5966 = vmatprep.subr.bf16.mxu0 %v5965_v20 }
 0x190   :  { %v1995_v46 = vmax.f32 %v1534_v1, 0.0  ;;  %v1538_v18 = vadd.f32 %v1537_v61, %v7150_v50  ;;  %v2484_v30 = vadd.f32 %v2429_v2, %v2412_v63  ;;  %v3023_v62 = vmul.f32 %v2746_v41, %v1980_v59 }
 0x191   :  { %v2444_v47 = vmul.f32 %v2209_v8, %v1994_v32  ;;  %v3037_v31 = vmul.f32 %v2802_v9, %v1994_v32  ;;  %v2011_v6 = vmax.f32 %v1536_v33, 0.0  ;;  %v3077_v39 = vadd.f32 %v3022_v42, %v3005_v0 }
 0x192   :  { %v2445_v20 = vmul.f32 %v2213_v10, %v1995_v46  ;;  %v8590_v50 = vrot.slane %v7156_v53, %v7134_v38  ;;  %v2012_v55 = vmax.f32 %v1538_v18, 0.0  ;;  %v2487_v41 = vadd.f32 %v2430_v45, %v2413_v52 }
 0x193   :  { %v2479_v14 = vadd.f32 %v2478_v25, %v2444_v47  ;;  %v3072_v16 = vadd.f32 %v3071_v7, %v3037_v31  ;;  %v8591_v8 = vrot.slane %v7158_v54, %v7125_v56  ;;  %v8592_v9 = vrot.slane %v7172_v3, %v7125_v56  ;;  %v3277_v25 = vld [vmem:[#allocation11 + $0x108] sm:$0xff] }
 0x194   :  { %v3038_v63 = vmul.f32 %v8590_v50, %v1995_v46  ;;  %v2482_v49 = vadd.f32 %v2481_v27, %v2445_v20  ;;  %v8593_v10 = vrot.slane %v7158_v54, %v7134_v38  ;;  %v8594_v12 = vrot.slane %v7172_v3, %v7134_v38  ;;  %v3294_v27 = vld [vmem:[#allocation11 + $0x190] sm:$0xff] }
 0x195   :  { %v2461_v48 = vmul.f32 %v8591_v8, %v2011_v6  ;;  %v3054_v0 = vmul.f32 %v8592_v9, %v2011_v6  ;;  %v3080_v7 = vadd.f32 %v3023_v62, %v3006_v57  ;;  %v1996_v19 = vmax.f32 %v1585_v29, 0.0  ;;  %v3278_v8 = vld [vmem:[#allocation11 + $0x110] sm:$0xff] }
 0x196   :  { %v3075_v11 = vadd.f32 %v3074_v51, %v3038_v63  ;;  %v2462_v58 = vmul.f32 %v8593_v10, %v2012_v55  ;;  %v3055_v52 = vmul.f32 %v8594_v12, %v2012_v55  ;;  %v3295_v51 = vld [vmem:[#allocation11 + $0x198] sm:$0xff]  ;;  %v1587_v21 = vadd.f32 %v1586_v17, %v7210_v26  ;;  %v3296_v10 = vld [vmem:[#allocation11 + $0x1a0] sm:$0xff] }
 0x197   :  { %v2480_v13 = vadd.f32 %v2479_v14, %v2461_v48  ;;  %v7334_v59 = vadd.f32 %v3072_v16, %v3054_v0  ;;  %v1589_v2 = vadd.f32 %v1588_v22, %v7202_v23  ;;  %v8597_v32 = vrot.slane %v7166_v60, %v7125_v56  ;;  %v3279_v48 = vld [vmem:[#allocation11 + $0x118] sm:$0xff] }
 0x198   :  { %v2483_v15 = vadd.f32 %v2482_v49, %v2462_v58  ;;  %v7336_v1 = vadd.f32 %v3075_v11, %v3055_v52  ;;  %v8598_v61 = vrot.slane %v7154_v37, %v7175_v4  ;;  %v8599_v57 = vrot.slane %v7156_v53, %v7175_v4  ;;  %v3297_v58 = vld [vmem:[#allocation11 + $0x1a8] sm:$0xff] }
 0x199   :  { %8595 = vst [vmem:[#allocation24_spill] sm:$0xff] %v7334_v59  ;;  %v2617_v33 = vadd.f32 %v8597_v32, %v2480_v13  ;;  %v1591_v45 = vadd.f32 %v1590_v43, %v7210_v26  ;;  %v8600_v46 = vrot.slane %v7166_v60, %v7134_v38  ;;  %v5871_v18 = vpack.c.bf16 %v3277_v25, %v3276_v24  ;;  %v3298_v32 = vld [vmem:[#allocation11 + $0x1b0] sm:$0xff] }
 0x19a   :  { %8596 = vst [vmem:[#allocation25_spill] sm:$0xff] %v7336_v1  ;;  %v2446_v42 = vmul.f32 %v8598_v61, %v1996_v19  ;;  %v3039_v29 = vmul.f32 %v8599_v57, %v1996_v19  ;;  %v1997_v23 = vmax.f32 %v1587_v21, 0.0  ;;  %v2013_v22 = vmax.f32 %v1589_v2, 0.0  ;;  %v3280_v21 = vld [vmem:[#allocation11 + $0x120] sm:$0xff]  ;;  %v3281_v2 = vld [vmem:[#allocation11 + $0x128] sm:$0xff]  ;;  %v3283_v61 = vld [vmem:[#allocation11 + $0x138] sm:$0xff] }
 0x19b   :  { %v2618_v17 = vadd.f32 %v8600_v46, %v2483_v15  ;;  %v5873_v62 = vpack.c.bf16 %v3295_v51, %v3294_v27  ;;  %v2014_v6 = vmax.f32 %v1591_v45, 0.0  ;;  %v8601_v50 = vrot.slane %v7154_v37, %v7178_v5  ;;  %v3301_v57 = vld [vmem:[#allocation11 + $0x1c8] sm:$0xff]  ;;  %v7379_v45 = vld [vmem:[#allocation11 + $0x140] sm:$0xff] }
 0x19c   :  { %v2485_v47 = vadd.f32 %v2484_v30, %v2446_v42  ;;  %v3078_v31 = vadd.f32 %v3077_v39, %v3039_v29  ;;  %v8602_v55 = vrot.slane %v7156_v53, %v7178_v5  ;;  %v8603_v43 = vrot.slane %v7158_v54, %v7175_v4  ;;  %v3300_v42 = vld [vmem:[#allocation11 + $0x1c0] sm:$0xff]  ;;  %v7381_v46 = vld [vmem:[#allocation11 + $0x148] sm:$0xff] }
 0x19d   :  { %v2635_v20 = vmax.f32 %v2618_v17, 0.0  ;;  %v2447_v63 = vmul.f32 %v8601_v50, %v1997_v23  ;;  %v2634_v16 = vmax.f32 %v2617_v33, 0.0  ;;  %v8604_v30 = vrot.slane %v7172_v3, %v7175_v4  ;;  %v3282_v33 = vld [vmem:[#allocation11 + $0x130] sm:$0xff] }
 0x19e   :  { %v3040_v26 = vmul.f32 %v8602_v55, %v1997_v23  ;;  %v2463_v14 = vmul.f32 %v8603_v43, %v2013_v22  ;;  %v8605_v9 = vrot.slane %v7158_v54, %v7178_v5  ;;  %v8606_v49 = vrot.slane %v7172_v3, %v7178_v5  ;;  %v7383_v17 = vld [vmem:[#allocation11 + $0x1d0] sm:$0xff]  ;;  %v7403_v55 = vld [vmem:[#allocation11 + $0x168] sm:$0xff]  ;;  %v7407_v43 = vld [vmem:[#allocation11 + $0x1f8] sm:$0xff] }
 0x19f   :  { %v3056_v39 = vmul.f32 %v8604_v30, %v2013_v22  ;;  %3859 = vmatprep.mubr.f32.mxu1 %v2635_v20  ;;  %v2488_v12 = vadd.f32 %v2487_v41, %v2447_v63  ;;  %v2547_v24 = vrot.slane %v7166_v60, %v7178_v5  ;;  %v5875_v19 = vpack.c.bf16 %v3279_v48, %v3278_v8  ;;  %v3299_v41 = vld [vmem:[#allocation11 + $0x1b8] sm:$0xff]  ;;  %v7396_v20 = vld [vmem:[#allocation11 + $0x1e8] sm:$0xff]  ;;  %v7401_v63 = vld [vmem:[#allocation11 + $0x160] sm:$0xff] }
 0x1a0   :  { %v2464_v0 = vmul.f32 %v8605_v9, %v2014_v6  ;;  %v3057_v11 = vmul.f32 %v8606_v49, %v2014_v6  ;;  %v3081_v52 = vadd.f32 %v3080_v7, %v3040_v26  ;;  %v7371_v13 = vadd.f32 %v2485_v47, %v2463_v14  ;;  %3860 = vmatmul.mubr.f32.vlgmr.msra.gmra.mrb[32].mxu1 %v2634_v16  ;;  %v7385_v22 = vld [vmem:[#allocation11 + $0x1d8] sm:$0xff]  ;;  %v7394_v6 = vld [vmem:[#allocation11 + $0x1e0] sm:$0xff]  ;;  %v7405_v26 = vld [vmem:[#allocation11 + $0x1f0] sm:$0xff] }
 0x1a1   :  { %v7375_v25 = vadd.f32 %v3078_v31, %v3056_v39  ;;  %5872 = vmatpush3.bf16.msra.mxu1 %v5871_v18  ;;  %v5877_v51 = vpack.c.bf16 %v3297_v58, %v3296_v10  ;;  %v5879_v29 = vpack.c.bf16 %v3281_v2, %v3280_v21  ;;  %v5881_v23 = vpack.c.bf16 %v3299_v41, %v3298_v32  ;;  %v7389_v47 = vld [vmem:[#allocation11 + $0x158] sm:$0xff]  ;;  %v7413_v30 = vld [vmem:[#allocation11 + $0x170] sm:$0xff]  ;;  %v7427_v10 = vld [vmem:[#allocation11 + $0x380] sm:$0xff] }
 0x1a2   :  { %v2489_v15 = vadd.f32 %v2488_v12, %v2464_v0  ;;  %v7377_v27 = vadd.f32 %v3081_v52, %v3057_v11  ;;  %5874 = vmatprep.subr.bf16.mxu1 %v5873_v62  ;;  %v7387_v62 = vld [vmem:[#allocation11 + $0x150] sm:$0xff]  ;;  %v7392_v31 = vsub.s32 4, %v7121_v28  ;;  %v7399_v50 = vsub.s32 5, %v7121_v28  ;;  %v7415_v39 = vld [vmem:[#allocation11 + $0x178] sm:$0xff]  ;;  %v7429_v58 = vld [vmem:[#allocation11 + $0x388] sm:$0xff] }
 0x1a3   :  { %8607 = vst [vmem:[#allocation26_spill] sm:$0xff] %v7375_v25  ;;  %v5883_v14 = vpack.c.bf16 %v3283_v61, %v3282_v33  ;;  %v5885_v16 = vpack.c.bf16 %v3301_v57, %v3300_v42  ;;  %v2543_v8 = vrot.slane %v7166_v60, %v7175_v4  ;;  %v5887_v48 = vpack.c.bf16 %v7381_v46, %v7379_v45  ;;  %v7431_v12 = vld [vmem:[#allocation11 + $0x300] sm:$0xff]  ;;  %v7445_v21 = vld [vmem:[#allocation11 + $0x390] sm:$0xff]  ;;  %v7447_v2 = vld [vmem:[#allocation11 + $0x398] sm:$0xff] }
 0x1a4   :  { %8608 = vst [vmem:[#allocation27_spill] sm:$0xff] %v7377_v27  ;;  %v2620_v7 = vadd.f32 %v2547_v24, %v2489_v15  ;;  %8609 = vst [vmem:[#allocation28_spill] sm:$0xff] %v7399_v50  ;;  %v5889_v9 = vpack.c.bf16 %v7385_v22, %v7383_v17  ;;  %v5891_v0 = vpack.c.bf16 %v7389_v47, %v7387_v62  ;;  %v7457_v61 = vld [vmem:[#allocation11 + $0x310] sm:$0xff]  ;;  %v7467_v46 = vld [vmem:[#allocation11 + $0x318] sm:$0xff]  ;;  %v7492_v22 = vsub.s32 6, %v7121_v28 }
 0x1a5   :  { %5876 = vmatpush3.bf16.msra.mxu1 %v5875_v19  ;;  %v7423_v49 = vrot.slane %v7127_v34, %v7392_v31  ;;  %v7437_v24 = vrot.slane %v7127_v34, %v7399_v50  ;;  %v7469_v17 = vld [vmem:[#allocation11 + $0x3a0] sm:$0xff]  ;;  %v7483_v57 = vld [vmem:[#allocation11 + $0x328] sm:$0xff]  ;;  %v7485_v42 = vld [vmem:[#allocation11 + $0x3b0] sm:$0xff]  ;;  %v8612_v27 = vpack.c.bf16 %v7396_v20, %v7394_v6  ;;  %v8614_v20 = vpack.c.bf16 %v7403_v55, %v7401_v63 }
 0x1a6   :  { %v2637_v18 = vmax.f32 %v2620_v7, 0.0  ;;  %5878 = vmatprep.subr.bf16.mxu1 %v5877_v51  ;;  %v7443_v51 = vld [vmem:[#allocation11 + $0x308] sm:$0xff]  ;;  %v7481_v45 = vld [vmem:[#allocation11 + $0x320] sm:$0xff]  ;;  %8610 = vst [vmem:[#allocation29_spill] sm:$0xff] %v7492_v22  ;;  %v7497_v33 = vld [vmem:[#allocation11 + $0x3b8] sm:$0xff]  ;;  %v7529_v52 = vrot.slane %v7127_v34, %v7492_v22  ;;  %v2690_v41 = vrot.slane %v7131_v36, %v7492_v22 }
 0x1a7   :  { %v7501_v7 = vld [vmem:[#allocation11 + $0x338] sm:$0xff]  ;;  %v7553_v19 = vld [vmem:[#allocation11 + $0x348] sm:$0xff] }
 0x1a8   :  { %3929 = vmatprep.mubr.f32.mxu1 %v2637_v18  ;;  %v7471_v18 = vld [vmem:[#allocation11 + $0x3a8] sm:$0xff]  ;;  %v7583_v32 = vld [vmem:[#allocation11 + $0x3d8] sm:$0xff] }
 0x1a9   :  { %5880 = vmatpush3.bf16.msra.mxu1 %v5879_v29  ;;  %v7499_v29 = vld [vmem:[#allocation11 + $0x330] sm:$0xff] }
 0x1aa   :  { %5882 = vmatprep.subr.bf16.mxu1 %v5881_v23  ;;  %v7539_v23 = vld [vmem:[#allocation11 + $0x3c0] sm:$0xff] }
 0x1ad   :  { %5884 = vmatpush3.bf16.msra.mxu1 %v5883_v14  ;;  %v7495_v14 = vsub.s32 7, %v7121_v28  ;;  %v2097_v28 = vrot.slane %v7129_v35, %v7492_v22 }
 0x1ae   :  { %5886 = vmatprep.subr.bf16.mxu1 %v5885_v16  ;;  %v7559_v16 = vadd.f32 %v2543_v8, %v7371_v13 }
 0x1af   :  { %8611 = vst [vmem:[#allocation30_spill] sm:$0xff] %v7495_v14  ;;  %v7533_v15 = vrot.slane %v7127_v34, %v7495_v14 }
 0x1b0   :  { %v2636_v47 = vmax.f32 %v7559_v16, 0.0 }
 0x1b1   :  { %5888 = vmatpush3.bf16.msra.mxu1 %v5887_v48  ;;  %v7541_v48 = vld [vmem:[#allocation11 + $0x3c8] sm:$0xff] }
 0x1b2   :  { %5890 = vmatprep.subr.bf16.mxu1 %v5889_v9  ;;  %v7551_v9 = vld [vmem:[#allocation11 + $0x340] sm:$0xff] }
 0x1b4   :  { %v1627_v11 = vpop.f32.mrb[8].mxu0  ;;  %v1680_v34 = vpop.f32.mrb[8].mxu1 }
 0x1b5   :  { %5892 = vmatpush3.bf16.msra.mxu1 %v5891_v0  ;;  %v7581_v0 = vld [vmem:[#allocation11 + $0x3d0] sm:$0xff]  ;;  %v1628_v8 = vadd.f32 %v1627_v11, %v7423_v49  ;;  %v1629_v62 = vpop.f32.mrb[9].mxu0  ;;  %v1681_v13 = vadd.f32 %v1680_v34, %v7529_v52  ;;  %v1682_v1 = vpop.f32.mrb[9].mxu1 }
 0x1b6   :  { %5894 = vmatprep.subr.bf16.mxu1 %v8612_v27  ;;  %8613 = vst [vmem:[#allocation31_spill] sm:$0xff] %v7581_v0  ;;  %v1630_v6 = vadd.f32 %v1629_v62, %v7437_v24  ;;  %v1631_v59 = vpop.f32.mrb[10].mxu0  ;;  %v1683_v11 = vadd.f32 %v1682_v1, %v7533_v15  ;;  %v1684_v4 = vpop.f32.mrb[10].mxu1  ;;  %v8615_v62 = vpack.c.bf16 %v7407_v43, %v7405_v26 }
 0x1b7   :  { %v1964_v5 = vmax.f32 %v1628_v8, 0.0  ;;  %v1632_v25 = vadd.f32 %v1631_v59, %v7423_v49  ;;  %v1633_v38 = vpop.f32.mrb[11].mxu0  ;;  %v1966_v27 = vmax.f32 %v1681_v13, 0.0  ;;  %v1685_v63 = vadd.f32 %v1684_v4, %v7529_v52  ;;  %v1686_v55 = vpop.f32.mrb[11].mxu1 }
 0x1b8   :  { %v1634_v16 = vadd.f32 %v1633_v38, %v7437_v24  ;;  %v1967_v1 = vmax.f32 %v1683_v11, 0.0  ;;  %v1687_v56 = vadd.f32 %v1686_v55, %v7533_v15  ;;  %v8616_v8 = vrot.slane %v7129_v35, %v7392_v31 }
 0x1b9   :  { %5896 = vmatpush3.bf16.msra.mxu1 %v8614_v20  ;;  %v1965_v20 = vmax.f32 %v1630_v6, 0.0  ;;  %v8617_v59 = vrot.slane %v7131_v36, %v7392_v31  ;;  %v1981_v26 = vmax.f32 %v1632_v25, 0.0  ;;  %v2416_v43 = vmul.f32 %v2097_v28, %v1966_v27 }
 0x1ba   :  { %5898 = vmatprep.subr.bf16.mxu1 %v8615_v62  ;;  %v2414_v34 = vmul.f32 %v8616_v8, %v1964_v5  ;;  %v8618_v4 = vrot.slane %v7129_v35, %v7399_v50  ;;  %v8619_v38 = vrot.slane %v7131_v36, %v7399_v50  ;;  %v1982_v11 = vmax.f32 %v1634_v16, 0.0 }
 0x1bb   :  { %v3007_v0 = vmul.f32 %v8617_v59, %v1964_v5  ;;  %v8620_v62 = vpack.c.bf16 %v7415_v39, %v7413_v30  ;;  %v3009_v55 = vmul.f32 %v2690_v41, %v1966_v27  ;;  %v8621_v8 = vrot.slane %v7136_v40, %v7392_v31 }
 0x1bc   :  { %v2415_v13 = vmul.f32 %v8618_v4, %v1965_v20  ;;  %v3008_v6 = vmul.f32 %v8619_v38, %v1965_v20  ;;  %v8622_v25 = vrot.slane %v7138_v44, %v7392_v31  ;;  %v8623_v59 = vpack.c.bf16 %v7429_v58, %v7427_v10  ;;  %v1637_v38 = vpop.f32.mrb[12].mxu0  ;;  %v1690_v58 = vpop.f32.mrb[12].mxu1 }
 0x1bd   :  { %5900 = vmatpush3.bf16.msra.mxu1 %v8620_v62  ;;  %v2431_v5 = vmul.f32 %v8621_v8, %v1981_v26  ;;  %v8624_v20 = vrot.slane %v7129_v35, %v7495_v14  ;;  %v8625_v30 = vrot.slane %v7131_v36, %v7495_v14  ;;  %v8626_v41 = vrot.slane %v7136_v40, %v7399_v50 }
 0x1be   :  { %v3024_v28 = vmul.f32 %v8622_v25, %v1981_v26  ;;  %5934 = vmatprep.subr.bf16.mxu1 %v8623_v59  ;;  %v8627_v4 = vrot.slane %v7138_v44, %v7399_v50  ;;  %v1983_v62 = vmax.f32 %v1685_v63, 0.0  ;;  %v1984_v10 = vmax.f32 %v1687_v56, 0.0  ;;  %v1639_v59 = vpop.f32.mrb[13].mxu0 }
 0x1bf   :  { %v2417_v16 = vmul.f32 %v8624_v20, %v1967_v1  ;;  %v3010_v39 = vmul.f32 %v8625_v30, %v1967_v1  ;;  %v2432_v27 = vmul.f32 %v8626_v41, %v1982_v11  ;;  %v2490_v8 = vadd.f32 %v2431_v5, %v2414_v34  ;;  %v1692_v1 = vpop.f32.mrb[13].mxu1  ;;  %v1641_v63 = vpop.f32.mrb[14].mxu0 }
 0x1c0   :  { %v3025_v26 = vmul.f32 %v8627_v4, %v1982_v11  ;;  %v3083_v25 = vadd.f32 %v3024_v28, %v3007_v0  ;;  %v1638_v35 = vadd.f32 %v1637_v38, %v7423_v49  ;;  %3930 = vmatmul.mubr.f32.vlgmr.msra.gmra.mrb[34].mxu1 %v2636_v47  ;;  %v1691_v36 = vadd.f32 %v1690_v58, %v7529_v52  ;;  %v1694_v34 = vpop.f32.mrb[14].mxu1  ;;  %v1643_v28 = vpop.f32.mrb[15].mxu0 }
 0x1c1   :  { %v2493_v20 = vadd.f32 %v2432_v27, %v2415_v13  ;;  %v1640_v41 = vadd.f32 %v1639_v59, %v7437_v24  ;;  %v8628_v11 = vpack.c.bf16 %v7443_v51, %v7431_v12  ;;  %v8629_v56 = vrot.slane %v7136_v40, %v7492_v22  ;;  %v1696_v4 = vpop.f32.mrb[15].mxu1 }
 0x1c2   :  { %v3086_v30 = vadd.f32 %v3025_v26, %v3008_v6  ;;  %v1998_v5 = vmax.f32 %v1638_v35, 0.0  ;;  %v1642_v47 = vadd.f32 %v1641_v63, %v7423_v49  ;;  %v8630_v13 = vpack.c.bf16 %v7447_v2, %v7445_v21 }
 0x1c3   :  { %5936 = vmatpush3.bf16.msra.mxu1 %v8628_v11  ;;  %v2433_v0 = vmul.f32 %v8629_v56, %v1983_v62  ;;  %v8631_v6 = vrot.slane %v7138_v44, %v7492_v22  ;;  %v8632_v12 = vrot.slane %v7136_v40, %v7495_v14  ;;  %v1999_v26 = vmax.f32 %v1640_v41, 0.0 }
 0x1c4   :  { %5938 = vmatprep.subr.bf16.mxu1 %v8630_v13  ;;  %v1644_v38 = vadd.f32 %v1643_v28, %v7437_v24  ;;  %v8633_v49 = vrot.slane %v7138_v44, %v7495_v14  ;;  %v8634_v21 = vrot.slane %v7154_v37, %v7392_v31  ;;  %v2015_v11 = vmax.f32 %v1642_v47, 0.0 }
 0x1c5   :  { %v3026_v27 = vmul.f32 %v8631_v6, %v1983_v62  ;;  %v2434_v51 = vmul.f32 %v8632_v12, %v1984_v10  ;;  %v2496_v58 = vadd.f32 %v2433_v0, %v2416_v43  ;;  %v8635_v62 = vrot.slane %v7156_v53, %v7392_v31 }
 0x1c6   :  { %v3027_v35 = vmul.f32 %v8633_v49, %v1984_v10  ;;  %v2448_v2 = vmul.f32 %v8634_v21, %v1998_v5  ;;  %v8636_v41 = vrot.slane %v7154_v37, %v7399_v50  ;;  %v8637_v24 = vrot.slane %v7156_v53, %v7399_v50  ;;  %v3372_v49 = vld [vmem:[#allocation11 + $0x400] sm:$0xff]  ;;  %v3373_v21 = vld [vmem:[#allocation11 + $0x408] sm:$0xff] }
 0x1c7   :  { %v3041_v59 = vmul.f32 %v8635_v62, %v1998_v5  ;;  %v3089_v40 = vadd.f32 %v3026_v27, %v3009_v55  ;;  %v2016_v44 = vmax.f32 %v1644_v38, 0.0  ;;  %v8638_v10 = vpack.c.bf16 %v7467_v46, %v7457_v61  ;;  %v3390_v62 = vld [vmem:[#allocation11 + $0x490] sm:$0xff] }
 0x1c8   :  { %v2449_v63 = vmul.f32 %v8636_v41, %v1999_v26  ;;  %v3042_v43 = vmul.f32 %v8637_v24, %v1999_v26  ;;  %v2499_v56 = vadd.f32 %v2434_v51, %v2417_v16  ;;  %v2491_v0 = vadd.f32 %v2490_v8, %v2448_v2 }
 0x1c9   :  { %5940 = vmatpush3.bf16.msra.mxu1 %v8638_v10  ;;  %v3084_v28 = vadd.f32 %v3083_v25, %v3041_v59  ;;  %v8639_v5 = vrot.slane %v7158_v54, %v7392_v31  ;;  %v8640_v47 = vrot.slane %v7172_v3, %v7392_v31  ;;  %v8641_v6 = vpack.c.bf16 %v7471_v18, %v7469_v17  ;;  %v3391_v59 = vld [vmem:[#allocation11 + $0x498] sm:$0xff]  ;;  %v3350_v10 = vld [vmem:[#allocation11 + $0x350] sm:$0xff] }
 0x1ca   :  { %v2494_v27 = vadd.f32 %v2493_v20, %v2449_v63  ;;  %v3087_v12 = vadd.f32 %v3086_v30, %v3042_v43  ;;  %v8642_v61 = vrot.slane %v7158_v54, %v7399_v50  ;;  %v8643_v16 = vrot.slane %v7172_v3, %v7399_v50 }
 0x1cb   :  { %v2465_v55 = vmul.f32 %v8639_v5, %v2015_v11  ;;  %v3058_v13 = vmul.f32 %v8640_v47, %v2015_v11  ;;  %5942 = vmatprep.subr.bf16.mxu1 %v8641_v6  ;;  %v3092_v26 = vadd.f32 %v3027_v35, %v3010_v39  ;;  %v2000_v38 = vmax.f32 %v1691_v36, 0.0  ;;  %v3374_v6 = vld [vmem:[#allocation11 + $0x410] sm:$0xff] }
 0x1cc   :  { %v2466_v46 = vmul.f32 %v8642_v61, %v2016_v44  ;;  %v3059_v8 = vmul.f32 %v8643_v16, %v2016_v44  ;;  %v8646_v18 = vpack.c.bf16 %v7483_v57, %v7481_v45  ;;  %v1693_v20 = vadd.f32 %v1692_v1, %v7533_v15 }
 0x1cd   :  { %v2492_v25 = vadd.f32 %v2491_v0, %v2465_v55  ;;  %v7703_v51 = vadd.f32 %v3084_v28, %v3058_v13  ;;  %v1695_v30 = vadd.f32 %v1694_v34, %v7529_v52  ;;  %v8647_v11 = vrot.slane %v7166_v60, %v7392_v31  ;;  %v3351_v13 = vld [vmem:[#allocation11 + $0x358] sm:$0xff] }
 0x1ce   :  { %v2495_v2 = vadd.f32 %v2494_v27, %v2466_v46  ;;  %v7705_v17 = vadd.f32 %v3087_v12, %v3059_v8  ;;  %5944 = vmatpush3.bf16.msra.mxu1 %v8646_v18  ;;  %v8648_v36 = vpack.c.bf16 %v7497_v33, %v7485_v42  ;;  %v8649_v35 = vrot.slane %v7154_v37, %v7492_v22  ;;  %v3375_v27 = vld [vmem:[#allocation11 + $0x418] sm:$0xff]  ;;  %v3368_v8 = vld [vmem:[#allocation11 + $0x3e0] sm:$0xff] }
 0x1cf   :  { %8644 = vst [vmem:[#allocation32_spill] sm:$0xff] %v7703_v51  ;;  %v2621_v39 = vadd.f32 %v8647_v11, %v2492_v25  ;;  %v8650_v57 = vrot.slane %v7156_v53, %v7492_v22  ;;  %v1697_v52 = vadd.f32 %v1696_v4, %v7533_v15  ;;  %v2001_v1 = vmax.f32 %v1693_v20, 0.0  ;;  %v7756_v20 = vld [vmem:[#allocation11 + $0x360] sm:$0xff] }
 0x1d0   :  { %8645 = vst [vmem:[#allocation33_spill] sm:$0xff] %v7705_v17  ;;  %5946 = vmatprep.subr.bf16.mxu1 %v8648_v36  ;;  %v2450_v41 = vmul.f32 %v8649_v35, %v2000_v38  ;;  %v8651_v34 = vrot.slane %v7166_v60, %v7399_v50  ;;  %v2017_v24 = vmax.f32 %v1695_v30, 0.0  ;;  %v5967_v43 = vpack.c.bf16 %v3373_v21, %v3372_v49  ;;  %v3369_v21 = vld [vmem:[#allocation11 + $0x3e8] sm:$0xff]  ;;  %v7774_v35 = vld [vmem:[#allocation11 + $0x370] sm:$0xff] }
 0x1d1   :  { %v3043_v45 = vmul.f32 %v8650_v57, %v2000_v38  ;;  %v2018_v42 = vmax.f32 %v1697_v52, 0.0  ;;  %v5969_v0 = vpack.c.bf16 %v3391_v59, %v3390_v62  ;;  %v8652_v28 = vpack.c.bf16 %v7501_v7, %v7499_v29  ;;  %v7758_v30 = vld [vmem:[#allocation11 + $0x368] sm:$0xff]  ;;  %v7778_v57 = vld [vmem:[#allocation11 + $0x580] sm:$0xff] }
 0x1d2   :  { %v2622_v63 = vadd.f32 %v8651_v34, %v2495_v2  ;;  %v2497_v44 = vadd.f32 %v2496_v58, %v2450_v41  ;;  %v8653_v5 = vrot.slane %v7154_v37, %v7495_v14  ;;  %v8654_v4 = vrot.slane %v7156_v53, %v7495_v14  ;;  %v3393_v2 = vld [vmem:[#allocation11 + $0x4a8] sm:$0xff]  ;;  %v7776_v41 = vld [vmem:[#allocation11 + $0x378] sm:$0xff]  ;;  %v7785_v34 = vld [vmem:[#allocation11 + $0x500] sm:$0xff] }
 0x1d3   :  { %v3090_v33 = vadd.f32 %v3089_v40, %v3043_v45  ;;  %5948 = vmatpush3.bf16.msra.mxu1 %v8652_v28  ;;  %v8655_v58 = vrot.slane %v7158_v54, %v7492_v22  ;;  %v2638_v12 = vmax.f32 %v2621_v39, 0.0  ;;  %v8656_v7 = vpack.c.bf16 %v7541_v48, %v7539_v23  ;;  %v3392_v48 = vld [vmem:[#allocation11 + $0x4a0] sm:$0xff]  ;;  %v7780_v45 = vld [vmem:[#allocation11 + $0x588] sm:$0xff]  ;;  %v3394_v28 = vld [vmem:[#allocation11 + $0x4b0] sm:$0xff] }
 0x1d4   :  { %v2451_v15 = vmul.f32 %v8653_v5, %v2001_v1  ;;  %v3044_v55 = vmul.f32 %v8654_v4, %v2001_v1  ;;  %v2639_v47 = vmax.f32 %v2622_v63, 0.0  ;;  %v8657_v37 = vrot.slane %v7172_v3, %v7492_v22  ;;  %v7791_v63 = vld [vmem:[#allocation11 + $0x598] sm:$0xff]  ;;  %v7801_v4 = vld [vmem:[#allocation11 + $0x5a8] sm:$0xff] }
 0x1d5   :  { %v2467_v40 = vmul.f32 %v8655_v58, %v2017_v24  ;;  %5950 = vmatprep.subr.bf16.mxu1 %v8656_v7  ;;  %v8658_v53 = vrot.slane %v7158_v54, %v7495_v14  ;;  %v8659_v46 = vrot.slane %v7172_v3, %v7495_v14  ;;  %v2563_v23 = vrot.slane %v7166_v60, %v7495_v14  ;;  %v7760_v3 = vld [vmem:[#allocation11 + $0x3f0] sm:$0xff]  ;;  %v3395_v5 = vld [vmem:[#allocation11 + $0x4b8] sm:$0xff] }
 0x1d6   :  { %v3060_v29 = vmul.f32 %v8657_v37, %v2017_v24  ;;  %v2500_v25 = vadd.f32 %v2499_v56, %v2451_v15  ;;  %v3093_v38 = vadd.f32 %v3092_v26, %v3044_v55  ;;  %3999 = vmatprep.mubr.f32.mxu0 %v2639_v47  ;;  %v5955_v54 = vpack.c.bf16 %v3351_v13, %v3350_v10  ;;  %v7762_v56 = vld [vmem:[#allocation11 + $0x3f8] sm:$0xff]  ;;  %v7793_v24 = vld [vmem:[#allocation7 + $0x8] sm:$0xff]  ;;  %v7799_v15 = vld [vmem:[#allocation11 + $0x5a0] sm:$0xff] }
 0x1d7   :  { %v2468_v61 = vmul.f32 %v8658_v53, %v2018_v42  ;;  %v3061_v16 = vmul.f32 %v8659_v46, %v2018_v42  ;;  %v2498_v49 = vadd.f32 %v2497_v44, %v2467_v40  ;;  %4000 = vmatmul.mubr.f32.vlgmr.msra.gmra.mrb[40].mxu0 %v2638_v12  ;;  %v5971_v26 = vpack.c.bf16 %v3375_v27, %v3374_v6  ;;  %v3377_v42 = vld [vmem:[#allocation11 + $0x428] sm:$0xff]  ;;  %v7809_v40 = vld [vmem:[#allocation8 + $0x8] sm:$0xff]  ;;  %v3378_v53 = vld [vmem:[#allocation11 + $0x430] sm:$0xff] }
 0x1d8   :  { %v7754_v18 = vadd.f32 %v3090_v33, %v3060_v29  ;;  %v8661_v62 = vrot.slane %v7166_v60, %v7492_v22  ;;  %v8662_v11 = vpack.c.bf16 %v7553_v19, %v7551_v9  ;;  %5968 = vmatpush3.bf16.msra.mxu0 %v5967_v43  ;;  %v8664_v60 = vld [vmem:[#allocation31_spill] sm:$0xff]  ;;  %v5957_v1 = vpack.c.bf16 %v3369_v21, %v3368_v8  ;;  %v7789_v9 = vld [vmem:[#allocation11 + $0x590] sm:$0xff] }
 0x1d9   :  { %v2501_v39 = vadd.f32 %v2500_v25, %v2468_v61  ;;  %v7772_v36 = vadd.f32 %v3093_v38, %v3061_v16  ;;  %v8665_v52 = vpack.c.bf16 %v7583_v32, %v8664_v60  ;;  %v7787_v19 = vld [vmem:[#allocation11 + $0x508] sm:$0xff]  ;;  %5970 = vmatprep.subr.bf16.mxu0 %v5969_v0  ;;  %v7795_v43 = vld [vmem:[#allocation11 + $0x510] sm:$0xff]  ;;  %v5973_v44 = vpack.c.bf16 %v3393_v2, %v3392_v48  ;;  %v3376_v33 = vld [vmem:[#allocation11 + $0x420] sm:$0xff] }
 0x1da   :  { %8660 = vst [vmem:[#allocation34_spill] sm:$0xff] %v7754_v18  ;;  %v7767_v59 = vadd.f32 %v8661_v62, %v2498_v49  ;;  %5952 = vmatpush3.bf16.msra.mxu1 %v8662_v11  ;;  %v7797_v32 = vld [vmem:[#allocation11 + $0x518] sm:$0xff]  ;;  %v7803_v0 = vld [vmem:[#allocation11 + $0x520] sm:$0xff]  ;;  %v5959_v55 = vpack.c.bf16 %v7758_v30, %v7756_v20  ;;  %v5961_v47 = vpack.c.bf16 %v7762_v56, %v7760_v3  ;;  %v7813_v27 = vld [vmem:[#allocation11 + $0x528] sm:$0xff] }
 0x1db   :  { %8663 = vst [vmem:[#allocation35_spill] sm:$0xff] %v7772_v36  ;;  %5954 = vmatprep.subr.bf16.mxu1 %v8665_v52  ;;  %v2624_v10 = vadd.f32 %v2563_v23, %v2501_v39  ;;  %v7811_v13 = vld [vmem:[#allocation8 + $0x4c] sm:$0xff]  ;;  %v5975_v6 = vpack.c.bf16 %v3377_v42, %v3376_v33  ;;  %v5963_v12 = vpack.c.bf16 %v7776_v41, %v7774_v35  ;;  %v7819_v37 = vld [vmem:[#allocation8 + $0x19] sm:$0xff]  ;;  %v3379_v61 = vld [vmem:[#allocation11 + $0x438] sm:$0xff] }
 0x1dc   :  { %5972 = vmatpush3.bf16.msra.mxu0 %v5971_v26  ;;  %v5997_v7 = vpack.c.bf16 %v7780_v45, %v7778_v57  ;;  %v5977_v29 = vpack.c.bf16 %v3395_v5, %v3394_v28  ;;  %v5999_v46 = vpack.c.bf16 %v7787_v19, %v7785_v34  ;;  %v6001_v16 = vpack.c.bf16 %v7791_v63, %v7789_v9  ;;  %v8666_v8 = vld [vmem:[#allocation20_spill] sm:$0xff]  ;;  %v7831_v49 = vld [vmem:[#allocation8 + $0x5d] sm:$0xff]  ;;  %v3396_v21 = vld [vmem:[#allocation11 + $0x4c0] sm:$0xff] }
 0x1dd   :  { %v2641_v58 = vmax.f32 %v2624_v10, 0.0  ;;  %5974 = vmatprep.subr.bf16.mxu0 %v5973_v44  ;;  %v7827_v25 = vrot.slane %v7793_v24, %v8666_v8  ;;  %v6003_v38 = vpack.c.bf16 %v7797_v32, %v7795_v43  ;;  %v3397_v23 = vld [vmem:[#allocation11 + $0x4c8] sm:$0xff]  ;;  %v8667_v2 = vld [vmem:[#allocation21_spill] sm:$0xff]  ;;  %v5979_v39 = vpack.c.bf16 %v3379_v61, %v3378_v53  ;;  %v3380_v41 = vld [vmem:[#allocation11 + $0x440] sm:$0xff] }
 0x1de   :  { %5956 = vmatpush3.bf16.msra.mxu1 %v5955_v54  ;;  %v7837_v54 = vrot.slane %v7793_v24, %v8667_v2  ;;  %v7843_v3 = vld [vmem:[#allocation11 + $0x5b0] sm:$0xff]  ;;  %v7845_v56 = vld [vmem:[#allocation11 + $0x5b8] sm:$0xff]  ;;  %v3381_v57 = vld [vmem:[#allocation11 + $0x448] sm:$0xff]  ;;  %v5981_v52 = vpack.c.bf16 %v3397_v23, %v3396_v21  ;;  %v8670_v36 = vpack.c.bf16 %v7801_v4, %v7799_v15  ;;  %v8671_v17 = vpack.c.bf16 %v7813_v27, %v7803_v0 }
 0x1df   :  { %5958 = vmatprep.subr.bf16.mxu1 %v5957_v1  ;;  %4069 = vmatprep.mubr.f32.mxu1 %v2641_v58  ;;  %v7847_v26 = vld [vmem:[#allocation11 + $0x530] sm:$0xff]  ;;  %v7853_v35 = vld [vmem:[#allocation11 + $0x538] sm:$0xff]  ;;  %v7867_v10 = vld [vmem:[#allocation8 + $0x2a] sm:$0xff]  ;;  %v5983_v21 = vpack.c.bf16 %v3381_v57, %v3380_v41  ;;  %v8672_v43 = vpack.c.bf16 %v7845_v56, %v7843_v3 }
 0x1e0   :  { %5976 = vmatpush3.bf16.msra.mxu0 %v5975_v6  ;;  %v3398_v28 = vld [vmem:[#allocation11 + $0x4d0] sm:$0xff]  ;;  %v3399_v5 = vld [vmem:[#allocation11 + $0x4d8] sm:$0xff]  ;;  %v7874_v6 = vld [vmem:[#allocation8 + $0x6e] sm:$0xff] }
 0x1e1   :  { %5978 = vmatprep.subr.bf16.mxu0 %v5977_v29  ;;  %v7878_v53 = vld [vmem:[#allocation8 + $0x3b] sm:$0xff]  ;;  %v8669_v23 = vld [vmem:[#allocation22_spill] sm:$0xff]  ;;  %v7892_v60 = vld [vmem:[#allocation11 + $0x5c8] sm:$0xff]  ;;  %v5985_v45 = vpack.c.bf16 %v3399_v5, %v3398_v28 }
 0x1e2   :  { %5960 = vmatpush3.bf16.msra.mxu1 %v5959_v55  ;;  %v2640_v55 = vmax.f32 %v7767_v59, 0.0  ;;  %v7880_v61 = vld [vmem:[#allocation8 + $0x7f] sm:$0xff]  ;;  %v7884_v33 = vrot.slane %v7793_v24, %v8669_v23  ;;  %v7890_v1 = vld [vmem:[#allocation11 + $0x5c0] sm:$0xff]  ;;  %v7900_v57 = vld [vmem:[#allocation11 + $0x548] sm:$0xff]  ;;  %v8675_v56 = vrot.slane %v7809_v40, %v8669_v23 }
 0x1e3   :  { %5962 = vmatprep.subr.bf16.mxu1 %v5961_v47  ;;  %v8668_v47 = vld [vmem:[#allocation23_spill] sm:$0xff]  ;;  %v3382_v11 = vld [vmem:[#allocation11 + $0x450] sm:$0xff]  ;;  %v3383_v44 = vld [vmem:[#allocation11 + $0x458] sm:$0xff] }
 0x1e4   :  { %v7872_v58 = vrot.slane %v7793_v24, %v8668_v47  ;;  %5980 = vmatpush3.bf16.msra.mxu0 %v5979_v39  ;;  %v7894_v29 = vld [vmem:[#allocation11 + $0x540] sm:$0xff]  ;;  %v3401_v41 = vld [vmem:[#allocation11 + $0x4e8] sm:$0xff]  ;;  %v7920_v39 = vld [vmem:[#allocation11 + $0x5d0] sm:$0xff]  ;;  %v5987_v5 = vpack.c.bf16 %v3383_v44, %v3382_v11  ;;  %v1786_v19 = vpop.f32.mrb[16].mxu1 }
 0x1e5   :  { %5982 = vmatprep.subr.bf16.mxu0 %v5981_v52  ;;  %v7910_v62 = vld [vmem:[#allocation10 + $0x8] sm:$0xff]  ;;  %v7924_v48 = vld [vmem:[#allocation11 + $0x550] sm:$0xff]  ;;  %v7933_v28 = vld [vmem:[#allocation11 + $0x558] sm:$0xff]  ;;  %v1787_v32 = vadd.f32 %v1786_v19, %v7884_v33 }
 0x1e6   :  { %5964 = vmatpush3.bf16.msra.mxu1 %v5963_v12  ;;  %v3400_v52 = vld [vmem:[#allocation11 + $0x4e0] sm:$0xff]  ;;  %v7922_v12 = vld [vmem:[#allocation11 + $0x5d8] sm:$0xff]  ;;  %v3385_v42 = vld [vmem:[#allocation11 + $0x468] sm:$0xff] }
 0x1e7   :  { %5998 = vmatprep.subr.bf16.mxu1 %v5997_v7  ;;  %v3384_v7 = vld [vmem:[#allocation11 + $0x460] sm:$0xff]  ;;  %v3386_v63 = vld [vmem:[#allocation11 + $0x470] sm:$0xff]  ;;  %v3387_v59 = vld [vmem:[#allocation11 + $0x478] sm:$0xff] }
 0x1e8   :  { %5984 = vmatpush3.bf16.msra.mxu0 %v5983_v21  ;;  %v7942_v21 = vld [vmem:[#allocation11 + $0x5e0] sm:$0xff]  ;;  %v7966_v30 = vld [vmem:[#allocation11 + $0x5f0] sm:$0xff]  ;;  %v7975_v44 = vld [vmem:[#allocation11 + $0x5f8] sm:$0xff]  ;;  %v5995_v15 = vpack.c.bf16 %v3387_v59, %v3386_v63 }
 0x1e9   :  { %4070 = vmatmul.mubr.f32.vlgmr.msra.gmra.mrb[36].mxu1 %v2640_v55  ;;  %5986 = vmatprep.subr.bf16.mxu0 %v5985_v45  ;;  %v7944_v55 = vld [vmem:[#allocation11 + $0x5e8] sm:$0xff]  ;;  %v7946_v11 = vld [vmem:[#allocation11 + $0x560] sm:$0xff]  ;;  %v7977_v20 = vld [vmem:[#allocation11 + $0x570] sm:$0xff] }
 0x1ea   :  { %6000 = vmatpush3.bf16.msra.mxu1 %v5999_v46  ;;  %v5989_v46 = vpack.c.bf16 %v3401_v41, %v3400_v52  ;;  %v7956_v45 = vld [vmem:[#allocation11 + $0x568] sm:$0xff]  ;;  %v3402_v41 = vld [vmem:[#allocation11 + $0x4f0] sm:$0xff]  ;;  %v3403_v52 = vld [vmem:[#allocation11 + $0x4f8] sm:$0xff] }
 0x1eb   :  { %6002 = vmatprep.subr.bf16.mxu1 %v6001_v16  ;;  %v5991_v16 = vpack.c.bf16 %v3385_v42, %v3384_v7  ;;  %v7979_v9 = vld [vmem:[#allocation11 + $0x578] sm:$0xff]  ;;  %v3453_v42 = vld [vmem:[#allocation11 + $0x688] sm:$0xff]  ;;  %v1733_v7 = vpop.f32.mrb[16].mxu0 }
 0x1ec   :  { %5988 = vmatpush3.bf16.msra.mxu0 %v5987_v5  ;;  %v3452_v5 = vld [vmem:[#allocation11 + $0x680] sm:$0xff]  ;;  %v1734_v4 = vadd.f32 %v1733_v7, %v7827_v25 }
 0x1ed   :  { %5990 = vmatprep.subr.bf16.mxu0 %v5989_v46  ;;  %v1735_v46 = vpop.f32.mrb[17].mxu0  ;;  %v6029_v7 = vpack.c.bf16 %v3453_v42, %v3452_v5  ;;  %v8673_v5 = vrot.slane %v7809_v40, %v8666_v8 }
 0x1ee   :  { %6004 = vmatpush3.bf16.msra.mxu1 %v6003_v38  ;;  %v5993_v38 = vpack.c.bf16 %v3403_v52, %v3402_v41  ;;  %v1788_v41 = vpop.f32.mrb[17].mxu1  ;;  %v1736_v34 = vadd.f32 %v1735_v46, %v7837_v54  ;;  %v1737_v51 = vpop.f32.mrb[18].mxu0  ;;  %v1968_v19 = vmax.f32 %v1734_v4, 0.0  ;;  %v1970_v52 = vmax.f32 %v1787_v32, 0.0 }
 0x1ef   :  { %6006 = vmatprep.subr.bf16.mxu1 %v8670_v36  ;;  %v1789_v59 = vadd.f32 %v1788_v41, %v7872_v58  ;;  %v1790_v63 = vpop.f32.mrb[18].mxu1  ;;  %v1738_v36 = vadd.f32 %v1737_v51, %v7827_v25  ;;  %v1739_v18 = vpop.f32.mrb[19].mxu0  ;;  %v8674_v32 = vrot.slane %v7811_v13, %v8666_v8  ;;  %v8678_v41 = vrot.slane %v7811_v13, %v8669_v23 }
 0x1f0   :  { %5992 = vmatpush3.bf16.msra.mxu0 %v5991_v16  ;;  %v1791_v46 = vadd.f32 %v1790_v63, %v7884_v33  ;;  %v1792_v14 = vpop.f32.mrb[19].mxu1  ;;  %v1969_v0 = vmax.f32 %v1736_v34, 0.0  ;;  %v2418_v51 = vmul.f32 %v8673_v5, %v1968_v19  ;;  %v8676_v34 = vrot.slane %v7809_v40, %v8667_v2 }
 0x1f1   :  { %5994 = vmatprep.subr.bf16.mxu0 %v5993_v38  ;;  %v1971_v27 = vmax.f32 %v1789_v59, 0.0  ;;  %v1793_v16 = vadd.f32 %v1792_v14, %v7872_v58  ;;  %v3011_v42 = vmul.f32 %v8674_v32, %v1968_v19  ;;  %v1985_v3 = vmax.f32 %v1738_v36, 0.0 }
 0x1f2   :  { %6008 = vmatpush3.bf16.msra.mxu1 %v8671_v17  ;;  %v1740_v17 = vadd.f32 %v1739_v18, %v7837_v54  ;;  %v2419_v18 = vmul.f32 %v8676_v34, %v1969_v0  ;;  %v8677_v14 = vrot.slane %v7811_v13, %v8667_v2  ;;  %v3013_v59 = vmul.f32 %v8678_v41, %v1970_v52 }
 0x1f3   :  { %6010 = vmatprep.subr.bf16.mxu1 %v8672_v43  ;;  %v2420_v43 = vmul.f32 %v8675_v56, %v1970_v52  ;;  %v8679_v36 = vpack.c.bf16 %v7853_v35, %v7847_v26  ;;  %v8680_v63 = vrot.slane %v7819_v37, %v8666_v8  ;;  %v8681_v5 = vrot.slane %v7831_v49, %v8666_v8 }
 0x1f4   :  { %v3012_v38 = vmul.f32 %v8677_v14, %v1969_v0  ;;  %v1986_v4 = vmax.f32 %v1740_v17, 0.0  ;;  %5996 = vmatpush3.bf16.msra.mxu0 %v5995_v15  ;;  %v8682_v0 = vrot.slane %v7809_v40, %v8668_v47  ;;  %v8683_v52 = vrot.slane %v7811_v13, %v8668_v47  ;;  %v1743_v14 = vpop.f32.mrb[20].mxu0 }
 0x1f5   :  { %v2435_v19 = vmul.f32 %v8680_v63, %v1985_v3  ;;  %v3028_v32 = vmul.f32 %v8681_v5, %v1985_v3  ;;  %v8684_v26 = vpack.c.bf16 %v7892_v60, %v7890_v1  ;;  %v8685_v35 = vrot.slane %v7819_v37, %v8667_v2  ;;  %v1796_v63 = vpop.f32.mrb[20].mxu1  ;;  %6030 = vmatprep.subr.bf16.mxu0 %v6029_v7 }
 0x1f6   :  { %6012 = vmatpush3.bf16.msra.mxu1 %v8679_v36  ;;  %v2421_v17 = vmul.f32 %v8682_v0, %v1971_v27  ;;  %v3014_v56 = vmul.f32 %v8683_v52, %v1971_v27  ;;  %v8686_v34 = vrot.slane %v7831_v49, %v8667_v2  ;;  %v1987_v41 = vmax.f32 %v1791_v46, 0.0  ;;  %v1745_v52 = vpop.f32.mrb[21].mxu0  ;;  %v1798_v1 = vpop.f32.mrb[21].mxu1 }
 0x1f7   :  { %6014 = vmatprep.subr.bf16.mxu1 %v8684_v26  ;;  %v2436_v15 = vmul.f32 %v8685_v35, %v1986_v4  ;;  %v1988_v36 = vmax.f32 %v1793_v16, 0.0  ;;  %v2502_v5 = vadd.f32 %v2435_v19, %v2418_v51  ;;  %v3095_v0 = vadd.f32 %v3028_v32, %v3011_v42  ;;  %v1800_v7 = vpop.f32.mrb[22].mxu1 }
 0x1f8   :  { %v3029_v3 = vmul.f32 %v8686_v34, %v1986_v4  ;;  %v1744_v27 = vadd.f32 %v1743_v14, %v7827_v25  ;;  %v1797_v60 = vadd.f32 %v1796_v63, %v7884_v33  ;;  %v8687_v35 = vrot.slane %v7819_v37, %v8669_v23  ;;  %v1747_v4 = vpop.f32.mrb[22].mxu0 }
 0x1f9   :  { %v2505_v26 = vadd.f32 %v2436_v15, %v2419_v18  ;;  %v8688_v46 = vrot.slane %v7831_v49, %v8669_v23  ;;  %v8689_v51 = vpack.c.bf16 %v7900_v57, %v7894_v29  ;;  %v1746_v19 = vadd.f32 %v1745_v52, %v7837_v54  ;;  %v1749_v34 = vpop.f32.mrb[23].mxu0 }
 0x1fa   :  { %v3098_v22 = vadd.f32 %v3029_v3, %v3012_v38  ;;  %v2437_v50 = vmul.f32 %v8687_v35, %v1987_v41  ;;  %v2002_v42 = vmax.f32 %v1744_v27, 0.0  ;;  %v8690_v18 = vrot.slane %v7819_v37, %v8668_v47  ;;  %v1802_v3 = vpop.f32.mrb[23].mxu1 }
 0x1fb   :  { %v3030_v16 = vmul.f32 %v8688_v46, %v1987_v41  ;;  %6016 = vmatpush3.bf16.msra.mxu1 %v8689_v51  ;;  %v8691_v32 = vrot.slane %v7831_v49, %v8668_v47  ;;  %v8692_v14 = vpack.c.bf16 %v7922_v12, %v7920_v39  ;;  %v1748_v57 = vadd.f32 %v1747_v4, %v7827_v25 }
 0x1fc   :  { %v2438_v38 = vmul.f32 %v8690_v18, %v1988_v36  ;;  %v2508_v41 = vadd.f32 %v2437_v50, %v2420_v43  ;;  %v2004_v63 = vmax.f32 %v1797_v60, 0.0  ;;  %v8693_v27 = vrot.slane %v7867_v10, %v8666_v8 }
 0x1fd   :  { %v3031_v15 = vmul.f32 %v8691_v32, %v1988_v36  ;;  %6018 = vmatprep.subr.bf16.mxu1 %v8692_v14  ;;  %v3101_v29 = vadd.f32 %v3030_v16, %v3013_v59  ;;  %v8694_v35 = vrot.slane %v7874_v6, %v8666_v8  ;;  %v2003_v36 = vmax.f32 %v1746_v19, 0.0  ;;  %v3485_v14 = vld [vmem:[#allocation11 + $0x788] sm:$0xff] }
 0x1fe   :  { %v2452_v52 = vmul.f32 %v8693_v27, %v2002_v42  ;;  %v2511_v51 = vadd.f32 %v2438_v38, %v2421_v17  ;;  %v2019_v32 = vmax.f32 %v1748_v57, 0.0  ;;  %v8695_v12 = vrot.slane %v7867_v10, %v8669_v23 }
 0x1ff   :  { %v3045_v46 = vmul.f32 %v8694_v35, %v2002_v42  ;;  %v3104_v18 = vadd.f32 %v3031_v15, %v3014_v56  ;;  %v8696_v25 = vrot.slane %v7874_v6, %v8669_v23  ;;  %v8697_v43 = vpack.c.bf16 %v7933_v28, %v7924_v48  ;;  %v3484_v15 = vld [vmem:[#allocation11 + $0x780] sm:$0xff] }
 0x200   :  { %v2454_v50 = vmul.f32 %v8695_v12, %v2004_v63  ;;  %v2503_v59 = vadd.f32 %v2502_v5, %v2452_v52  ;;  %v8698_v16 = vrot.slane %v7867_v10, %v8667_v2  ;;  %v8699_v56 = vrot.slane %v7874_v6, %v8667_v2 }
 0x201   :  { %v3047_v39 = vmul.f32 %v8696_v25, %v2004_v63  ;;  %6020 = vmatpush3.bf16.msra.mxu1 %v8697_v43  ;;  %v3096_v60 = vadd.f32 %v3095_v0, %v3045_v46  ;;  %v8700_v42 = vpack.c.bf16 %v7944_v55, %v7942_v21  ;;  %v8701_v19 = vrot.slane %v7878_v53, %v8666_v8 }
 0x202   :  { %v2453_v17 = vmul.f32 %v8698_v16, %v2003_v36  ;;  %v3046_v4 = vmul.f32 %v8699_v56, %v2003_v36  ;;  %v8702_v48 = vrot.slane %v7880_v61, %v8666_v8  ;;  %v2509_v5 = vadd.f32 %v2508_v41, %v2454_v50 }
 0x203   :  { %6022 = vmatprep.subr.bf16.mxu1 %v8700_v42  ;;  %v2469_v38 = vmul.f32 %v8701_v19, %v2019_v32  ;;  %v3102_v0 = vadd.f32 %v3101_v29, %v3047_v39  ;;  %v1750_v27 = vadd.f32 %v1749_v34, %v7837_v54  ;;  %v1799_v52 = vadd.f32 %v1798_v1, %v7872_v58 }
 0x204   :  { %v3062_v28 = vmul.f32 %v8702_v48, %v2019_v32  ;;  %v2506_v57 = vadd.f32 %v2505_v26, %v2453_v17  ;;  %v3099_v63 = vadd.f32 %v3098_v22, %v3046_v4  ;;  %v1801_v35 = vadd.f32 %v1800_v7, %v7884_v33 }
 0x205   :  { %v2504_v55 = vadd.f32 %v2503_v59, %v2469_v38  ;;  %v1803_v46 = vadd.f32 %v1802_v3, %v7872_v58  ;;  %v8703_v36 = vpack.c.bf16 %v7956_v45, %v7946_v11  ;;  %v2020_v41 = vmax.f32 %v1750_v27, 0.0  ;;  %v3436_v27 = vld [vmem:[#allocation11 + $0x600] sm:$0xff] }
 0x206   :  { %v8108_v21 = vadd.f32 %v3096_v60, %v3062_v28  ;;  %v2005_v29 = vmax.f32 %v1799_v52, 0.0  ;;  %v8704_v22 = vpack.c.bf16 %v7975_v44, %v7966_v30  ;;  %v2571_v54 = vrot.slane %v7910_v62, %v8667_v2  ;;  %v3437_v52 = vld [vmem:[#allocation11 + $0x608] sm:$0xff] }
 0x207   :  { %6024 = vmatpush3.bf16.msra.mxu1 %v8703_v36  ;;  %v6061_v1 = vpack.c.bf16 %v3485_v14, %v3484_v15  ;;  %v2021_v26 = vmax.f32 %v1801_v35, 0.0  ;;  %v2575_v33 = vrot.slane %v7910_v62, %v8669_v23  ;;  %v2022_v7 = vmax.f32 %v1803_v46, 0.0  ;;  %v3468_v36 = vld [vmem:[#allocation11 + $0x700] sm:$0xff] }
 0x208   :  { %6026 = vmatprep.subr.bf16.mxu1 %v8704_v22  ;;  %v2579_v58 = vrot.slane %v7910_v62, %v8668_v47  ;;  %v8705_v11 = vrot.slane %v7878_v53, %v8667_v2  ;;  %v8706_v30 = vrot.slane %v7880_v61, %v8667_v2  ;;  %v8707_v34 = vrot.slane %v7867_v10, %v8668_v47  ;;  %v3486_v22 = vld [vmem:[#allocation11 + $0x790] sm:$0xff] }
 0x209   :  { %v8708_v32 = vrot.slane %v7874_v6, %v8668_v47  ;;  %v8709_v50 = vrot.slane %v7878_v53, %v8669_v23  ;;  %v8710_v39 = vrot.slane %v7880_v61, %v8669_v23  ;;  %v8711_v59 = vrot.slane %v7878_v53, %v8668_v47 }
 0x20a   :  { %v2470_v45 = vmul.f32 %v8705_v11, %v2020_v41  ;;  %v3063_v44 = vmul.f32 %v8706_v30, %v2020_v41  ;;  %v2455_v3 = vmul.f32 %v8707_v34, %v2005_v29  ;;  %v8712_v16 = vrot.slane %v7880_v61, %v8668_v47  ;;  %v3456_v30 = vld [vmem:[#allocation11 + $0x6a0] sm:$0xff]  ;;  %v3471_v34 = vld [vmem:[#allocation11 + $0x718] sm:$0xff] }
 0x20b   :  { %v3048_v12 = vmul.f32 %v8708_v32, %v2005_v29  ;;  %v2471_v25 = vmul.f32 %v8709_v50, %v2021_v26  ;;  %v3064_v43 = vmul.f32 %v8710_v39, %v2021_v26  ;;  %v2472_v60 = vmul.f32 %v8711_v59, %v2022_v7  ;;  %v3438_v26 = vld [vmem:[#allocation11 + $0x610] sm:$0xff]  ;;  %v3488_v32 = vld [vmem:[#allocation11 + $0x7a0] sm:$0xff] }
 0x20c   :  { %v3065_v17 = vmul.f32 %v8712_v16, %v2022_v7  ;;  %v8713_v56 = vpack.c.bf16 %v7979_v9, %v7977_v20  ;;  %v2507_v4 = vadd.f32 %v2506_v57, %v2470_v45  ;;  %v8151_v42 = vadd.f32 %v3099_v63, %v3063_v44  ;;  %v3454_v9 = vld [vmem:[#allocation11 + $0x690] sm:$0xff]  ;;  %v3455_v57 = vld [vmem:[#allocation11 + $0x698] sm:$0xff]  ;;  %v3440_v39 = vld [vmem:[#allocation11 + $0x620] sm:$0xff] }
 0x20d   :  { %v2512_v19 = vadd.f32 %v2511_v51, %v2455_v3  ;;  %v3105_v38 = vadd.f32 %v3104_v18, %v3048_v12  ;;  %v8714_v48 = vrot.slane %v7910_v62, %v8666_v8  ;;  %v2510_v15 = vadd.f32 %v2509_v5, %v2471_v25  ;;  %v3469_v51 = vld [vmem:[#allocation11 + $0x708] sm:$0xff]  ;;  %v3439_v7 = vld [vmem:[#allocation11 + $0x618] sm:$0xff]  ;;  %v3472_v25 = vld [vmem:[#allocation11 + $0x720] sm:$0xff] }
 0x20e   :  { %6028 = vmatpush3.bf16.msra.mxu1 %v8713_v56  ;;  %v8156_v14 = vadd.f32 %v3102_v0, %v3064_v43  ;;  %v2626_v20 = vadd.f32 %v2571_v54, %v2507_v4  ;;  %v6031_v29 = vpack.c.bf16 %v3437_v52, %v3436_v27  ;;  %v6033_v0 = vpack.c.bf16 %v3455_v57, %v3454_v9  ;;  %v3457_v54 = vld [vmem:[#allocation11 + $0x6a8] sm:$0xff]  ;;  %v3458_v16 = vld [vmem:[#allocation11 + $0x6b0] sm:$0xff] }
 0x20f   :  { %6062 = vmatprep.subr.bf16.mxu1 %v6061_v1  ;;  %v2625_v28 = vadd.f32 %v8714_v48, %v2504_v55  ;;  %v2513_v35 = vadd.f32 %v2512_v19, %v2472_v60  ;;  %v8158_v46 = vadd.f32 %v3105_v38, %v3065_v17  ;;  %v2627_v63 = vadd.f32 %v2575_v33, %v2510_v15  ;;  %v3487_v1 = vld [vmem:[#allocation11 + $0x798] sm:$0xff]  ;;  %v3470_v33 = vld [vmem:[#allocation11 + $0x710] sm:$0xff]  ;;  %v3489_v12 = vld [vmem:[#allocation11 + $0x7a8] sm:$0xff] }
 0x210   :  { %v2643_v18 = vmax.f32 %v2626_v20, 0.0  ;;  %v6063_v45 = vpack.c.bf16 %v3469_v51, %v3468_v36  ;;  %v6065_v44 = vpack.c.bf16 %v3487_v1, %v3486_v22  ;;  %v8160_v3 = vld [vmem:[#allocation10 + $0x11] sm:$0xff]  ;;  %v6037_v50 = vpack.c.bf16 %v3457_v54, %v3456_v30  ;;  %v3459_v17 = vld [vmem:[#allocation11 + $0x6b8] sm:$0xff]  ;;  %v8200_v54 = vld [vmem:[#allocation11 + $0x7c0] sm:$0xff] }
 0x211   :  { %v2628_v41 = vadd.f32 %v2579_v58, %v2513_v35  ;;  %v2642_v55 = vmax.f32 %v2625_v28, 0.0  ;;  %v2644_v5 = vmax.f32 %v2627_v63, 0.0  ;;  %v6035_v58 = vpack.c.bf16 %v3439_v7, %v3438_v26  ;;  %v3441_v43 = vld [vmem:[#allocation11 + $0x628] sm:$0xff]  ;;  %v3490_v52 = vld [vmem:[#allocation11 + $0x7b0] sm:$0xff]  ;;  %v3491_v35 = vld [vmem:[#allocation11 + $0x7b8] sm:$0xff] }
 0x212   :  { %4139 = vmatprep.mubr.f32.mxu0 %v2643_v18  ;;  %v6067_v59 = vpack.c.bf16 %v3471_v34, %v3470_v33  ;;  %v3473_v60 = vld [vmem:[#allocation11 + $0x728] sm:$0xff]  ;;  %v8164_v56 = vrot.slane %v7793_v24, %v7392_v31  ;;  %v6069_v4 = vpack.c.bf16 %v3489_v12, %v3488_v32  ;;  %v2121_v38 = vrot.slane %v7809_v40, %v7392_v31  ;;  %v8180_v36 = vld [vmem:[#allocation11 + $0x730] sm:$0xff]  ;;  %v3443_v18 = vld [vmem:[#allocation11 + $0x638] sm:$0xff] }
 0x213   :  { %v2645_v11 = vmax.f32 %v2628_v41, 0.0  ;;  %4140 = vmatmul.mubr.f32.vlgmr.msra.gmra.mrb[42].mxu0 %v2642_v55  ;;  %v2714_v48 = vrot.slane %v7811_v13, %v7392_v31  ;;  %v8715_v28 = vld [vmem:[#allocation28_spill] sm:$0xff]  ;;  %v6039_v27 = vpack.c.bf16 %v3441_v43, %v3440_v39  ;;  %v6071_v57 = vpack.c.bf16 %v3473_v60, %v3472_v25  ;;  %v8190_v55 = vld [vmem:[#allocation11 + $0x738] sm:$0xff]  ;;  %v3444_v60 = vld [vmem:[#allocation11 + $0x640] sm:$0xff] }
 0x214   :  { %6032 = vmatpush3.bf16.msra.mxu0 %v6031_v29  ;;  %v8174_v15 = vrot.slane %v7793_v24, %v8715_v28  ;;  %v2125_v20 = vrot.slane %v7809_v40, %v8715_v28  ;;  %v6041_v63 = vpack.c.bf16 %v3459_v17, %v3458_v16  ;;  %v3442_v51 = vld [vmem:[#allocation11 + $0x630] sm:$0xff]  ;;  %v6073_v30 = vpack.c.bf16 %v3491_v35, %v3490_v52  ;;  %v3493_v12 = vld [vmem:[#allocation11 + $0x7c8] sm:$0xff]  ;;  %v8247_v52 = vld [vmem:[#allocation11 + $0x658] sm:$0xff]  ;;  %v1839_v41 = vpop.f32.mrb[24].mxu0 }
 0x215   :  { %4209 = vmatprep.mubr.f32.mxu1 %v2645_v11  ;;  %6034 = vmatprep.subr.bf16.mxu0 %v6033_v0  ;;  %v3461_v0 = vld [vmem:[#allocation11 + $0x6c8] sm:$0xff]  ;;  %v8716_v26 = vld [vmem:[#allocation29_spill] sm:$0xff]  ;;  %v6043_v32 = vpack.c.bf16 %v3443_v18, %v3442_v51  ;;  %v6075_v39 = vpack.c.bf16 %v8190_v55, %v8180_v36  ;;  %v8257_v55 = vld [vmem:[#allocation11 + $0x760] sm:$0xff] }
 0x216   :  { %4210 = vmatmul.mubr.f32.vlgmr.msra.gmra.mrb[38].mxu1 %v2644_v5  ;;  %v3460_v5 = vld [vmem:[#allocation11 + $0x6c0] sm:$0xff]  ;;  %v8194_v7 = vrot.slane %v7793_v24, %v8716_v26  ;;  %v2129_v11 = vrot.slane %v7809_v40, %v8716_v26  ;;  %v8212_v25 = vld [vmem:[#allocation11 + $0x748] sm:$0xff]  ;;  %v8220_v17 = vld [vmem:[#allocation11 + $0x6d0] sm:$0xff] }
 0x217   :  { %6064 = vmatpush3.bf16.msra.mxu1 %v6063_v45  ;;  %v3445_v16 = vld [vmem:[#allocation11 + $0x648] sm:$0xff]  ;;  %v8232_v36 = vld [vmem:[#allocation11 + $0x7d8] sm:$0xff]  ;;  %v8234_v18 = vld [vmem:[#allocation11 + $0x750] sm:$0xff] }
 0x218   :  { %6066 = vmatprep.subr.bf16.mxu1 %v6065_v44  ;;  %6036 = vmatpush3.bf16.msra.mxu0 %v6035_v58  ;;  %v8717_v44 = vld [vmem:[#allocation30_spill] sm:$0xff]  ;;  %v8245_v35 = vld [vmem:[#allocation11 + $0x650] sm:$0xff]  ;;  %v8255_v43 = vld [vmem:[#allocation11 + $0x6e8] sm:$0xff] }
 0x219   :  { %6038 = vmatprep.subr.bf16.mxu0 %v6037_v50  ;;  %v8204_v33 = vrot.slane %v7793_v24, %v8717_v44  ;;  %v8210_v50 = vld [vmem:[#allocation11 + $0x740] sm:$0xff]  ;;  %v3463_v51 = vld [vmem:[#allocation11 + $0x6d8] sm:$0xff]  ;;  %v8265_v24 = vld [vmem:[#allocation11 + $0x768] sm:$0xff] }
 0x21a   :  { %v8267_v1 = vld [vmem:[#allocation11 + $0x660] sm:$0xff]  ;;  %v8269_v22 = vld [vmem:[#allocation11 + $0x668] sm:$0xff]  ;;  %v6049_v58 = vpack.c.bf16 %v3463_v51, %v8220_v17  ;;  %v8278_v19 = vld [vmem:[#allocation11 + $0x7f0] sm:$0xff] }
 0x21b   :  { %6068 = vmatpush3.bf16.msra.mxu1 %v6067_v59  ;;  %v6045_v59 = vpack.c.bf16 %v3461_v0, %v3460_v5  ;;  %v6077_v0 = vpack.c.bf16 %v3493_v12, %v8200_v54  ;;  %v6047_v5 = vpack.c.bf16 %v3445_v16, %v3444_v60  ;;  %v8280_v60 = vld [vmem:[#allocation11 + $0x7f8] sm:$0xff]  ;;  %v8282_v16 = vld [vmem:[#allocation11 + $0x6f0] sm:$0xff]  ;;  %v8310_v29 = vld [vmem:[#allocation11 + $0x980] sm:$0xff] }
 0x21c   :  { %6070 = vmatprep.subr.bf16.mxu1 %v6069_v4  ;;  %6040 = vmatpush3.bf16.msra.mxu0 %v6039_v27  ;;  %v8249_v27 = vld [vmem:[#allocation11 + $0x7e0] sm:$0xff]  ;;  %v8251_v4 = vld [vmem:[#allocation11 + $0x7e8] sm:$0xff]  ;;  %v8292_v17 = vld [vmem:[#allocation11 + $0x6f8] sm:$0xff] }
 0x21d   :  { %6042 = vmatprep.subr.bf16.mxu0 %v6041_v63  ;;  %v8230_v63 = vld [vmem:[#allocation11 + $0x7d0] sm:$0xff]  ;;  %v8296_v54 = vld [vmem:[#allocation11 + $0x778] sm:$0xff] }
 0x21e   :  { %v8294_v51 = vld [vmem:[#allocation11 + $0x770] sm:$0xff]  ;;  %v8308_v34 = vld [vmem:[#allocation11 + $0x678] sm:$0xff] }
 0x21f   :  { %6072 = vmatpush3.bf16.msra.mxu1 %v6071_v57  ;;  %v8236_v57 = vld [vmem:[#allocation11 + $0x758] sm:$0xff]  ;;  %v8306_v12 = vld [vmem:[#allocation11 + $0x670] sm:$0xff] }
 0x220   :  { %6074 = vmatprep.subr.bf16.mxu1 %v6073_v30  ;;  %v8253_v30 = vld [vmem:[#allocation11 + $0x6e0] sm:$0xff]  ;;  %6044 = vmatpush3.bf16.msra.mxu0 %v6043_v32  ;;  %v6079_v32 = vpack.c.bf16 %v8212_v25, %v8210_v50  ;;  %v6081_v50 = vpack.c.bf16 %v8232_v36, %v8230_v63  ;;  %v6083_v25 = vpack.c.bf16 %v8236_v57, %v8234_v18  ;;  %v8320_v36 = vld [vmem:[#allocation11 + $0x988] sm:$0xff] }
 0x221   :  { %6046 = vmatprep.subr.bf16.mxu0 %v6045_v59  ;;  %v6053_v59 = vpack.c.bf16 %v8255_v43, %v8253_v30  ;;  %v8322_v18 = vld [vmem:[#allocation11 + $0x880] sm:$0xff]  ;;  %v8324_v57 = vld [vmem:[#allocation11 + $0x888] sm:$0xff]  ;;  %v6089_v43 = vpack.c.bf16 %v8280_v60, %v8278_v19  ;;  %v1841_v30 = vpop.f32.mrb[25].mxu0 }
 0x223   :  { %6076 = vmatpush3.bf16.msra.mxu1 %v6075_v39  ;;  %v6085_v39 = vpack.c.bf16 %v8251_v4, %v8249_v27  ;;  %v6055_v4 = vpack.c.bf16 %v8269_v22, %v8267_v1  ;;  %v6057_v27 = vpack.c.bf16 %v8292_v17, %v8282_v16  ;;  %v1842_v22 = vadd.f32 %v1841_v30, %v8174_v15  ;;  %v1843_v1 = vpop.f32.mrb[26].mxu0 }
 0x224   :  { %6078 = vmatprep.subr.bf16.mxu1 %v6077_v0  ;;  %6048 = vmatpush3.bf16.msra.mxu0 %v6047_v5  ;;  %v6051_v0 = vpack.c.bf16 %v8247_v52, %v8245_v35  ;;  %v1892_v5 = vpop.f32.mrb[24].mxu1  ;;  %v1840_v35 = vadd.f32 %v1839_v41, %v8164_v56  ;;  %v6125_v41 = vpack.c.bf16 %v8320_v36, %v8310_v29 }
 0x225   :  { %6050 = vmatprep.subr.bf16.mxu0 %v6049_v58  ;;  %v1893_v63 = vadd.f32 %v1892_v5, %v8194_v7  ;;  %v1894_v45 = vpop.f32.mrb[25].mxu1  ;;  %v6059_v58 = vpack.c.bf16 %v8308_v34, %v8306_v12  ;;  %v6093_v16 = vpack.c.bf16 %v8324_v57, %v8322_v18  ;;  %v1844_v17 = vadd.f32 %v1843_v1, %v8164_v56  ;;  %v1845_v5 = vpop.f32.mrb[27].mxu0 }
 0x226   :  { %v1895_v19 = vadd.f32 %v1894_v45, %v8204_v33  ;;  %v1896_v60 = vpop.f32.mrb[26].mxu1  ;;  %v1973_v30 = vmax.f32 %v1842_v22, 0.0  ;;  %v1846_v45 = vadd.f32 %v1845_v5, %v8174_v15  ;;  %v8738_v29 = vrot.slane %v7867_v10, %v8717_v44 }
 0x227   :  { %6080 = vmatpush3.bf16.msra.mxu1 %v6079_v32  ;;  %v1972_v32 = vmax.f32 %v1840_v35, 0.0  ;;  %v1974_v52 = vmax.f32 %v1893_v63, 0.0  ;;  %v1897_v34 = vadd.f32 %v1896_v60, %v8194_v7  ;;  %v1898_v12 = vpop.f32.mrb[27].mxu1  ;;  %v1989_v63 = vmax.f32 %v1844_v17, 0.0 }
 0x228   :  { %6082 = vmatprep.subr.bf16.mxu1 %v6081_v50  ;;  %6052 = vmatpush3.bf16.msra.mxu0 %v6051_v0  ;;  %v1975_v9 = vmax.f32 %v1895_v19, 0.0  ;;  %v1899_v50 = vadd.f32 %v1898_v12, %v8204_v33  ;;  %v2423_v35 = vmul.f32 %v2125_v20, %v1973_v30  ;;  %v1990_v1 = vmax.f32 %v1846_v45, 0.0 }
 0x229   :  { %6054 = vmatprep.subr.bf16.mxu0 %v6053_v59  ;;  %v2422_v18 = vmul.f32 %v2121_v38, %v1972_v32  ;;  %v3015_v57 = vmul.f32 %v2714_v48, %v1972_v32  ;;  %v2424_v0 = vmul.f32 %v2129_v11, %v1974_v52  ;;  %v8718_v59 = vrot.slane %v7811_v13, %v8715_v28 }
 0x22a   :  { %v8719_v38 = vrot.slane %v7811_v13, %v8716_v26  ;;  %v8720_v48 = vrot.slane %v7819_v37, %v7392_v31  ;;  %v8721_v11 = vrot.slane %v7831_v49, %v7392_v31  ;;  %v8722_v20 = vrot.slane %v7809_v40, %v8717_v44 }
 0x22b   :  { %6084 = vmatpush3.bf16.msra.mxu1 %v6083_v25  ;;  %v3016_v22 = vmul.f32 %v8718_v59, %v1973_v30  ;;  %v8723_v17 = vrot.slane %v7811_v13, %v8717_v44  ;;  %v8725_v12 = vrot.slane %v7831_v49, %v8715_v28  ;;  %v1991_v45 = vmax.f32 %v1897_v34, 0.0 }
 0x22c   :  { %v3017_v19 = vmul.f32 %v8719_v38, %v1974_v52  ;;  %6086 = vmatprep.subr.bf16.mxu1 %v6085_v39  ;;  %v2439_v60 = vmul.f32 %v8720_v48, %v1989_v63  ;;  %v3032_v25 = vmul.f32 %v8721_v11, %v1989_v63  ;;  %v2425_v32 = vmul.f32 %v8722_v20, %v1975_v9  ;;  %v1849_v63 = vpop.f32.mrb[28].mxu0  ;;  %v1902_v38 = vpop.f32.mrb[28].mxu1 }
 0x22d   :  { %v3018_v5 = vmul.f32 %v8723_v17, %v1975_v9  ;;  %6056 = vmatpush3.bf16.msra.mxu0 %v6055_v4  ;;  %v8724_v39 = vrot.slane %v7819_v37, %v8715_v28  ;;  %v3033_v30 = vmul.f32 %v8725_v12, %v1990_v1  ;;  %v1992_v59 = vmax.f32 %v1899_v50, 0.0  ;;  %v1851_v9 = vpop.f32.mrb[29].mxu0  ;;  %v1904_v4 = vpop.f32.mrb[29].mxu1 }
 0x22e   :  { %6058 = vmatprep.subr.bf16.mxu0 %v6057_v27  ;;  %v2514_v40 = vadd.f32 %v2439_v60, %v2422_v18  ;;  %v3107_v48 = vadd.f32 %v3032_v25, %v3015_v57  ;;  %v1850_v11 = vadd.f32 %v1849_v63, %v8164_v56  ;;  %v1903_v13 = vadd.f32 %v1902_v38, %v8194_v7  ;;  %v1853_v57 = vpop.f32.mrb[30].mxu0 }
 0x22f   :  { %v2440_v52 = vmul.f32 %v8724_v39, %v1990_v1  ;;  %v8726_v20 = vpack.c.bf16 %v8265_v24, %v8257_v55  ;;  %v3110_v39 = vadd.f32 %v3033_v30, %v3016_v22  ;;  %v8727_v34 = vrot.slane %v7819_v37, %v8716_v26  ;;  %v1906_v1 = vpop.f32.mrb[30].mxu1 }
 0x230   :  { %v8728_v27 = vrot.slane %v7831_v49, %v8716_v26  ;;  %v8729_v60 = vrot.slane %v7819_v37, %v8717_v44  ;;  %v8730_v24 = vrot.slane %v7831_v49, %v8717_v44  ;;  %v2008_v22 = vmax.f32 %v1903_v13, 0.0  ;;  %v1908_v12 = vpop.f32.mrb[31].mxu1 }
 0x231   :  { %6088 = vmatpush3.bf16.msra.mxu1 %v8726_v20  ;;  %v2517_v17 = vadd.f32 %v2440_v52, %v2423_v35  ;;  %v2441_v50 = vmul.f32 %v8727_v34, %v1991_v45  ;;  %v2006_v35 = vmax.f32 %v1850_v11, 0.0  ;;  %v1855_v52 = vpop.f32.mrb[31].mxu0  ;;  %6060 = vmatpush3.bf16.msra.mxu0 %v6059_v58  ;;  %v1905_v38 = vadd.f32 %v1904_v4, %v8204_v33 }
 0x232   :  { %v3034_v18 = vmul.f32 %v8728_v27, %v1991_v45  ;;  %6090 = vmatprep.subr.bf16.mxu1 %v6089_v43  ;;  %v2442_v25 = vmul.f32 %v8729_v60, %v1992_v59  ;;  %v3035_v55 = vmul.f32 %v8730_v24, %v1992_v59  ;;  %v1852_v45 = vadd.f32 %v1851_v9, %v8174_v15 }
 0x233   :  { %v2520_v30 = vadd.f32 %v2441_v50, %v2424_v0  ;;  %6094 = vmatprep.subr.bf16.mxu0 %v6093_v16  ;;  %v8731_v37 = vrot.slane %v7867_v10, %v7392_v31  ;;  %v8732_v49 = vrot.slane %v7874_v6, %v7392_v31  ;;  %v8733_v58 = vpack.c.bf16 %v8296_v54, %v8294_v51 }
 0x234   :  { %v3113_v63 = vadd.f32 %v3034_v18, %v3017_v19  ;;  %v2523_v43 = vadd.f32 %v2442_v25, %v2425_v32  ;;  %v3116_v20 = vadd.f32 %v3035_v55, %v3018_v5  ;;  %v8734_v0 = vrot.slane %v7867_v10, %v8716_v26 }
 0x235   :  { %v2456_v34 = vmul.f32 %v8731_v37, %v2006_v35  ;;  %v3049_v59 = vmul.f32 %v8732_v49, %v2006_v35  ;;  %6092 = vmatpush3.bf16.msra.mxu1 %v8733_v58  ;;  %v8735_v16 = vrot.slane %v7874_v6, %v8716_v26  ;;  %v2007_v5 = vmax.f32 %v1852_v45, 0.0 }
 0x236   :  { %v2458_v19 = vmul.f32 %v8734_v0, %v2008_v22  ;;  %v2009_v11 = vmax.f32 %v1905_v38, 0.0  ;;  %6126 = vmatprep.subr.bf16.mxu1 %v6125_v41  ;;  %v1854_v4 = vadd.f32 %v1853_v57, %v8164_v56  ;;  %v1907_v54 = vadd.f32 %v1906_v1, %v8194_v7 }
 0x237   :  { %v3051_v32 = vmul.f32 %v8735_v16, %v2008_v22  ;;  %v2515_v13 = vadd.f32 %v2514_v40, %v2456_v34  ;;  %v3108_v9 = vadd.f32 %v3107_v48, %v3049_v59  ;;  %v8736_v27 = vrot.slane %v7867_v10, %v8715_v28 }
 0x238   :  { %v2521_v51 = vadd.f32 %v2520_v30, %v2458_v19  ;;  %v8737_v60 = vrot.slane %v7874_v6, %v8715_v28  ;;  %v2459_v36 = vmul.f32 %v8738_v29, %v2009_v11  ;;  %v8739_v41 = vrot.slane %v7874_v6, %v8717_v44 }
 0x239   :  { %v3114_v50 = vadd.f32 %v3113_v63, %v3051_v32  ;;  %v2457_v18 = vmul.f32 %v8736_v27, %v2007_v5  ;;  %v2023_v40 = vmax.f32 %v1854_v4, 0.0  ;;  %v2025_v7 = vmax.f32 %v1907_v54, 0.0 }
 0x23a   :  { %v3050_v25 = vmul.f32 %v8737_v60, %v2007_v5  ;;  %v3052_v56 = vmul.f32 %v8739_v41, %v2009_v11  ;;  %v1856_v1 = vadd.f32 %v1855_v52, %v8174_v15  ;;  %v1909_v24 = vadd.f32 %v1908_v12, %v8204_v33  ;;  %v8749_v60 = vld [vmem:[#allocation24_spill] sm:$0xff] }
 0x23b   :  { %v2518_v48 = vadd.f32 %v2517_v17, %v2457_v18  ;;  %v2524_v55 = vadd.f32 %v2523_v43, %v2459_v36  ;;  %v8740_v22 = vrot.slane %v7878_v53, %v7392_v31  ;;  %v8741_v10 = vrot.slane %v7880_v61, %v7392_v31  ;;  %v3533_v18 = vld [vmem:[#allocation11 + $0x908] sm:$0xff]  ;;  %v3550_v36 = vld [vmem:[#allocation11 + $0x990] sm:$0xff] }
 0x23c   :  { %v3111_v57 = vadd.f32 %v3110_v39, %v3050_v25  ;;  %v3117_v35 = vadd.f32 %v3116_v20, %v3052_v56  ;;  %v8742_v6 = vrot.slane %v7878_v53, %v8716_v26  ;;  %v8743_v17 = vrot.slane %v7880_v61, %v8716_v26  ;;  %v8751_v56 = vld [vmem:[#allocation26_spill] sm:$0xff] }
 0x23d   :  { %v2473_v30 = vmul.f32 %v8740_v22, %v2023_v40  ;;  %v3066_v63 = vmul.f32 %v8741_v10, %v2023_v40  ;;  %v2024_v39 = vmax.f32 %v1856_v1, 0.0  ;;  %v2026_v33 = vmax.f32 %v1909_v24, 0.0  ;;  %v3551_v40 = vld [vmem:[#allocation11 + $0x998] sm:$0xff]  ;;  %v3518_v24 = vld [vmem:[#allocation11 + $0x890] sm:$0xff] }
 0x23e   :  { %v2475_v45 = vmul.f32 %v8742_v6, %v2025_v7  ;;  %v3068_v15 = vmul.f32 %v8743_v17, %v2025_v7  ;;  %v2583_v12 = vrot.slane %v7910_v62, %v7392_v31  ;;  %v2587_v43 = vrot.slane %v7910_v62, %v8715_v28  ;;  %v3500_v7 = vld [vmem:[#allocation11 + $0x800] sm:$0xff]  ;;  %v3534_v6 = vld [vmem:[#allocation11 + $0x910] sm:$0xff] }
 0x23f   :  { %v2516_v52 = vadd.f32 %v2515_v13, %v2473_v30  ;;  %v8453_v38 = vadd.f32 %v3108_v9, %v3066_v63  ;;  %v8744_v34 = vrot.slane %v7878_v53, %v8715_v28  ;;  %v8745_v59 = vrot.slane %v7880_v61, %v8715_v28  ;;  %v3552_v17 = vld [vmem:[#allocation11 + $0x9a0] sm:$0xff] }
 0x240   :  { %v2522_v20 = vadd.f32 %v2521_v51, %v2475_v45  ;;  %v8457_v37 = vadd.f32 %v3114_v50, %v3068_v15  ;;  %v8746_v0 = vrot.slane %v7878_v53, %v8717_v44  ;;  %v8747_v16 = vrot.slane %v7880_v61, %v8717_v44  ;;  %v3532_v61 = vld [vmem:[#allocation11 + $0x900] sm:$0xff]  ;;  %v3535_v45 = vld [vmem:[#allocation11 + $0x918] sm:$0xff] }
 0x241   :  { %v2474_v49 = vmul.f32 %v8744_v34, %v2024_v39  ;;  %v3067_v58 = vmul.f32 %v8745_v59, %v2024_v39  ;;  %v2595_v5 = vrot.slane %v7910_v62, %v8717_v44  ;;  %v3136_v11 = vrot.slane %v8160_v3, %v8669_v23  ;;  %v3521_v34 = vld [vmem:[#allocation11 + $0x8a8] sm:$0xff] }
 0x242   :  { %v2476_v19 = vmul.f32 %v8746_v0, %v2026_v33  ;;  %v3069_v32 = vmul.f32 %v8747_v16, %v2026_v33  ;;  %v8748_v13 = vrot.slane %v7910_v62, %v8716_v26  ;;  %v2629_v51 = vadd.f32 %v2583_v12, %v2516_v52  ;;  %v3553_v33 = vld [vmem:[#allocation11 + $0x9a8] sm:$0xff]  ;;  %v3502_v12 = vld [vmem:[#allocation11 + $0x810] sm:$0xff] }
 0x243   :  { %v2519_v4 = vadd.f32 %v2518_v48, %v2474_v49  ;;  %v8478_v54 = vadd.f32 %v3111_v57, %v3067_v58  ;;  %v8750_v25 = vrot.slane %v8160_v3, %v8666_v8  ;;  %v3212_v62 = vadd.f32 %v3136_v11, %v8751_v56  ;;  %v3501_v48 = vld [vmem:[#allocation11 + $0x808] sm:$0xff]  ;;  %v3536_v58 = vld [vmem:[#allocation11 + $0x920] sm:$0xff] }
 0x244   :  { %v2631_v9 = vadd.f32 %v8748_v13, %v2522_v20  ;;  %v2525_v53 = vadd.f32 %v2524_v55, %v2476_v19  ;;  %v8480_v50 = vadd.f32 %v3117_v35, %v3069_v32  ;;  %v3519_v55 = vld [vmem:[#allocation11 + $0x898] sm:$0xff]  ;;  %v2646_v22 = vmax.f32 %v2629_v51, 0.0  ;;  %v3520_v20 = vld [vmem:[#allocation11 + $0x8a0] sm:$0xff]  ;;  %v3537_v0 = vld [vmem:[#allocation11 + $0x928] sm:$0xff] }
 0x245   :  { %v2630_v27 = vadd.f32 %v2587_v43, %v2519_v4  ;;  %v3210_v29 = vadd.f32 %v8750_v25, %v8749_v60  ;;  %v6127_v30 = vpack.c.bf16 %v3533_v18, %v3532_v61  ;;  %v6129_v63 = vpack.c.bf16 %v3551_v40, %v3550_v36  ;;  %v3503_v43 = vld [vmem:[#allocation11 + $0x818] sm:$0xff]  ;;  %v3554_v19 = vld [vmem:[#allocation11 + $0x9b0] sm:$0xff]  ;;  %v3504_v11 = vld [vmem:[#allocation11 + $0x820] sm:$0xff] }
 0x246   :  { %v2632_v41 = vadd.f32 %v2595_v5, %v2525_v53  ;;  %v2648_v1 = vmax.f32 %v2631_v9, 0.0  ;;  %v6095_v15 = vpack.c.bf16 %v3501_v48, %v3500_v7  ;;  %v3229_v39 = vmax.f32 %v3212_v62, 0.0  ;;  %v3555_v32 = vld [vmem:[#allocation11 + $0x9b8] sm:$0xff]  ;;  %v3505_v13 = vld [vmem:[#allocation11 + $0x828] sm:$0xff]  ;;  %v3522_v9 = vld [vmem:[#allocation11 + $0x8b0] sm:$0xff] }
 0x247   :  { %v2647_v57 = vmax.f32 %v2630_v27, 0.0  ;;  %v3227_v10 = vmax.f32 %v3210_v29, 0.0  ;;  %v6097_v52 = vpack.c.bf16 %v3519_v55, %v3518_v24  ;;  %v6131_v49 = vpack.c.bf16 %v3535_v45, %v3534_v6  ;;  %v3523_v4 = vld [vmem:[#allocation11 + $0x8b8] sm:$0xff]  ;;  %v3538_v27 = vld [vmem:[#allocation11 + $0x930] sm:$0xff]  ;;  %v3556_v18 = vld [vmem:[#allocation11 + $0x9c0] sm:$0xff] }
 0x248   :  { %v2649_v35 = vmax.f32 %v2632_v41, 0.0  ;;  %v6133_v59 = vpack.c.bf16 %v3553_v33, %v3552_v17  ;;  %v6099_v16 = vpack.c.bf16 %v3503_v43, %v3502_v12  ;;  %v6101_v5 = vpack.c.bf16 %v3521_v34, %v3520_v20  ;;  %v3539_v61 = vld [vmem:[#allocation11 + $0x938] sm:$0xff]  ;;  %v3557_v25 = vld [vmem:[#allocation11 + $0x9c8] sm:$0xff]  ;;  %v3506_v36 = vld [vmem:[#allocation11 + $0x830] sm:$0xff] }
 0x249   :  { %4279 = vmatprep.mubr.f32.mxu0 %v2647_v57  ;;  %v6135_v51 = vpack.c.bf16 %v3537_v0, %v3536_v58  ;;  %v6137_v53 = vpack.c.bf16 %v3555_v32, %v3554_v19  ;;  %v6103_v60 = vpack.c.bf16 %v3505_v13, %v3504_v11  ;;  %v6105_v29 = vpack.c.bf16 %v3523_v4, %v3522_v9  ;;  %v3507_v41 = vld [vmem:[#allocation11 + $0x838] sm:$0xff]  ;;  %v3524_v56 = vld [vmem:[#allocation11 + $0x8c0] sm:$0xff]  ;;  %v3525_v62 = vld [vmem:[#allocation11 + $0x8c8] sm:$0xff] }
 0x24a   :  { %4349 = vmatprep.mubr.f32.mxu1 %v2649_v35  ;;  %4280 = vmatmul.mubr.f32.vlgmr.msra.gmra.mrb[44].mxu0 %v2646_v22  ;;  %v6139_v40 = vpack.c.bf16 %v3539_v61, %v3538_v27  ;;  %v6141_v7 = vpack.c.bf16 %v3557_v25, %v3556_v18  ;;  %v3540_v48 = vld [vmem:[#allocation11 + $0x940] sm:$0xff]  ;;  %v3541_v57 = vld [vmem:[#allocation11 + $0x948] sm:$0xff]  ;;  %v6107_v24 = vpack.c.bf16 %v3507_v41, %v3506_v36  ;;  %v3559_v55 = vld [vmem:[#allocation11 + $0x9d8] sm:$0xff] }
 0x24b   :  { %4350 = vmatmul.mubr.f32.vlgmr.msra.gmra.mrb[40].mxu1 %v2648_v1  ;;  %4419 = vmatprep.mubr.f32.mxu0 %v3227_v10  ;;  %v3558_v1 = vld [vmem:[#allocation11 + $0x9d0] sm:$0xff]  ;;  %v6109_v35 = vpack.c.bf16 %v3525_v62, %v3524_v56  ;;  %v3508_v22 = vld [vmem:[#allocation11 + $0x840] sm:$0xff]  ;;  %v6143_v6 = vpack.c.bf16 %v3541_v57, %v3540_v48  ;;  %v3561_v12 = vld [vmem:[#allocation11 + $0x9e8] sm:$0xff]  ;;  %v3132_v56 = vrot.slane %v8160_v3, %v8667_v2 }
 0x24c   :  { %6128 = vmatpush3.bf16.msra.mxu1 %v6127_v30  ;;  %4489 = vmatprep.mubr.f32.mxu1 %v3229_v39  ;;  %v3509_v30 = vld [vmem:[#allocation11 + $0x848] sm:$0xff]  ;;  %v3526_v10 = vld [vmem:[#allocation11 + $0x8d0] sm:$0xff]  ;;  %v6145_v17 = vpack.c.bf16 %v3559_v55, %v3558_v1  ;;  %v3560_v33 = vld [vmem:[#allocation11 + $0x9e0] sm:$0xff]  ;;  %v3152_v1 = vrot.slane %v8160_v3, %v8716_v26 }
 0x24d   :  { %6130 = vmatprep.subr.bf16.mxu1 %v6129_v63  ;;  %6096 = vmatpush3.bf16.msra.mxu0 %v6095_v15  ;;  %v3527_v63 = vld [vmem:[#allocation11 + $0x8d8] sm:$0xff]  ;;  %v3542_v45 = vld [vmem:[#allocation11 + $0x950] sm:$0xff]  ;;  %v3529_v58 = vld [vmem:[#allocation11 + $0x8e8] sm:$0xff]  ;;  %v6149_v13 = vpack.c.bf16 %v3561_v12, %v3560_v33 }
 0x24e   :  { %6098 = vmatprep.subr.bf16.mxu0 %v6097_v52  ;;  %v3543_v15 = vld [vmem:[#allocation11 + $0x958] sm:$0xff]  ;;  %v8487_v39 = vld [vmem:[#allocation7 + $0x10] ss:$0 sm:$0xff]  ;;  %v6111_v52 = vpack.c.bf16 %v3509_v30, %v3508_v22  ;;  %v6113_v43 = vpack.c.bf16 %v3527_v63, %v3526_v10  ;;  %v3544_v32 = vld [vmem:[#allocation11 + $0x960] sm:$0xff] }
 0x24f   :  { %v3510_v20 = vld [vmem:[#allocation11 + $0x850] sm:$0xff]  ;;  %v3511_v34 = vld [vmem:[#allocation11 + $0x858] sm:$0xff]  ;;  %v6147_v0 = vpack.c.bf16 %v3543_v15, %v3542_v45  ;;  %v5231_v11 = vld [vmem:[#allocation8 + $0x10] ss:$0 sm:$0xff] }
 0x250   :  { %6132 = vmatpush3.bf16.msra.mxu1 %v6131_v49  ;;  %v1945_v49 = vpop.f32.mrb[32].mxu0  ;;  %v3562_v4 = vld [vmem:[#allocation11 + $0x9f0] sm:$0xff]  ;;  %v3512_v27 = vld [vmem:[#allocation11 + $0x860] sm:$0xff]  ;;  %v3531_v41 = vld [vmem:[#allocation11 + $0x8f8] sm:$0xff] }
 0x251   :  { %6134 = vmatprep.subr.bf16.mxu1 %v6133_v59  ;;  %6100 = vmatpush3.bf16.msra.mxu0 %v6099_v16  ;;  %v3528_v59 = vld [vmem:[#allocation11 + $0x8e0] sm:$0xff]  ;;  %v1946_v19 = vadd.f32 %v8487_v39, %v1945_v49  ;;  %v1947_v16 = vpop.f32.mrb[33].mxu0  ;;  %v3530_v36 = vld [vmem:[#allocation11 + $0x8f0] sm:$0xff]  ;;  %v5236_v62 = vld [vmem:[#allocation8 + $0x54] ss:$0 sm:$0xff] }
 0x252   :  { %6102 = vmatprep.subr.bf16.mxu0 %v6101_v5  ;;  %v3545_v5 = vld [vmem:[#allocation11 + $0x968] sm:$0xff]  ;;  %v1948_v9 = vpop.f32.mrb[34].mxu0  ;;  %v6117_v25 = vpack.c.bf16 %v3529_v58, %v3528_v59  ;;  %v3546_v55 = vld [vmem:[#allocation11 + $0x970] sm:$0xff]  ;;  %v3612_v22 = vld [vmem:[#allocation11 + $0xb80] sm:$0xff]  ;;  %v6121_v10 = vpack.c.bf16 %v3531_v41, %v3530_v36 }
 0x253   :  { %v1976_v61 = vmax.f32 %v1946_v19, 0.0  ;;  %v1949_v18 = vadd.f32 %v8487_v39, %v1948_v9  ;;  %v6151_v48 = vpack.c.bf16 %v3545_v5, %v3544_v32  ;;  %v3613_v15 = vld [vmem:[#allocation11 + $0xb88] sm:$0xff]  ;;  %v3514_v33 = vld [vmem:[#allocation11 + $0x870] sm:$0xff]  ;;  %v5234_v41 = vld [vmem:[#allocation8 + $0x43] ss:$0 sm:$0xff] }
 0x254   :  { %6136 = vmatpush3.bf16.msra.mxu1 %v6135_v51  ;;  %v3563_v51 = vld [vmem:[#allocation11 + $0x9f8] sm:$0xff]  ;;  %v3581_v49 = vld [vmem:[#allocation11 + $0xa88] sm:$0xff] }
 0x255   :  { %6138 = vmatprep.subr.bf16.mxu1 %v6137_v53  ;;  %6104 = vmatpush3.bf16.msra.mxu0 %v6103_v60  ;;  %v6115_v53 = vpack.c.bf16 %v3511_v34, %v3510_v20  ;;  %v1950_v60 = vpop.f32.mrb[35].mxu0  ;;  %v1993_v57 = vmax.f32 %v1949_v18, 0.0  ;;  %v2426_v63 = vmul.f32 %v5231_v11, %v1976_v61  ;;  %v8752_v12 = vld [vmem:[#allocation25_spill] sm:$0xff]  ;;  %v3580_v34 = vld [vmem:[#allocation11 + $0xa80] sm:$0xff]  ;;  %v5233_v16 = vld [vmem:[#allocation8 + $0x32] ss:$0 sm:$0xff]  ;;  %v6189_v11 = vpack.c.bf16 %v3613_v15, %v3612_v22 }
 0x256   :  { %6106 = vmatprep.subr.bf16.mxu0 %v6105_v29  ;;  %v3513_v29 = vld [vmem:[#allocation11 + $0x868] sm:$0xff]  ;;  %v1953_v20 = vpop.f32.mrb[36].mxu0  ;;  %v6157_v36 = vpack.c.bf16 %v3581_v49, %v3580_v34 }
 0x257   :  { %v6119_v30 = vpack.c.bf16 %v3513_v29, %v3512_v27  ;;  %v1954_v19 = vadd.f32 %v8487_v39, %v1953_v20  ;;  %v1955_v32 = vpop.f32.mrb[37].mxu0  ;;  %v5238_v5 = vld [vmem:[#allocation8 + $0x76] ss:$0 sm:$0xff]  ;;  %v3615_v29 = vld [vmem:[#allocation11 + $0xb98] sm:$0xff] }
 0x258   :  { %6140 = vmatpush3.bf16.msra.mxu1 %v6139_v40  ;;  %v5232_v40 = vld [vmem:[#allocation8 + $0x21] ss:$0 sm:$0xff]  ;;  %v3597_v9 = vld [vmem:[#allocation11 + $0xb08] sm:$0xff]  ;;  %v3619_v32 = vld [vmem:[#allocation11 + $0xbb8] sm:$0xff] }
 0x259   :  { %6142 = vmatprep.subr.bf16.mxu1 %v6141_v7  ;;  %6108 = vmatpush3.bf16.msra.mxu0 %v6107_v24  ;;  %v5237_v7 = vld [vmem:[#allocation8 + $0x65] ss:$0 sm:$0xff]  ;;  %v6153_v24 = vpack.c.bf16 %v3563_v51, %v3562_v4  ;;  %v2443_v45 = vmul.f32 %v5232_v40, %v1993_v57  ;;  %v3565_v20 = vld [vmem:[#allocation11 + $0xa08] sm:$0xff] }
 0x25a   :  { %6110 = vmatprep.subr.bf16.mxu0 %v6109_v35  ;;  %v3547_v35 = vld [vmem:[#allocation11 + $0x978] sm:$0xff]  ;;  %v3601_v34 = vld [vmem:[#allocation11 + $0xb28] sm:$0xff] }
 0x25b   :  { %v2526_v59 = vadd.f32 %v2443_v45, %v2426_v63  ;;  %v8753_v4 = vld [vmem:[#allocation34_spill] sm:$0xff]  ;;  %v3617_v45 = vld [vmem:[#allocation11 + $0xba8] sm:$0xff] }
 0x25c   :  { %6144 = vmatpush3.bf16.msra.mxu1 %v6143_v6  ;;  %v3019_v6 = vmul.f32 %v5236_v62, %v1976_v61  ;;  %v3216_v51 = vadd.f32 %v3152_v1, %v8753_v4  ;;  %v2010_v61 = vmax.f32 %v1954_v19, 0.0  ;;  %v8754_v49 = vld [vmem:[#allocation32_spill] sm:$0xff] }
 0x25d   :  { %6146 = vmatprep.subr.bf16.mxu1 %v6145_v17  ;;  %6112 = vmatpush3.bf16.msra.mxu0 %v6111_v52  ;;  %v3036_v17 = vmul.f32 %v5237_v7, %v1993_v57  ;;  %v3515_v52 = vld [vmem:[#allocation11 + $0x878] sm:$0xff] }
 0x25e   :  { %6114 = vmatprep.subr.bf16.mxu0 %v6113_v43  ;;  %v3211_v43 = vadd.f32 %v3132_v56, %v8752_v12  ;;  %v6123_v27 = vpack.c.bf16 %v3515_v52, %v3514_v33  ;;  %v5239_v56 = vld [vmem:[#allocation8 + $0x87] ss:$0 sm:$0xff]  ;;  %v2460_v62 = vmul.f32 %v5233_v16, %v2010_v61  ;;  %v3053_v40 = vmul.f32 %v5238_v5, %v2010_v61  ;;  %v3600_v12 = vld [vmem:[#allocation11 + $0xb20] sm:$0xff]  ;;  %v3618_v16 = vld [vmem:[#allocation11 + $0xbb0] sm:$0xff] }
 0x25f   :  { %v3119_v58 = vadd.f32 %v3036_v17, %v3019_v6  ;;  %v3233_v1 = vmax.f32 %v3216_v51, 0.0  ;;  %v3616_v6 = vld [vmem:[#allocation11 + $0xba0] sm:$0xff]  ;;  %v5235_v17 = vld [vmem:[#allocation10 + $0x10] ss:$0 sm:$0xff]  ;;  %v3566_v51 = vld [vmem:[#allocation11 + $0xa10] sm:$0xff] }
 0x260   :  { %6148 = vmatpush3.bf16.msra.mxu1 %v6147_v0  ;;  %v6155_v0 = vpack.c.bf16 %v3547_v35, %v3546_v55  ;;  %v3228_v57 = vmax.f32 %v3211_v43, 0.0  ;;  %v3598_v55 = vld [vmem:[#allocation11 + $0xb10] sm:$0xff]  ;;  %v3599_v35 = vld [vmem:[#allocation11 + $0xb18] sm:$0xff]  ;;  %v2527_v22 = vadd.f32 %v2526_v59, %v2460_v62  ;;  %v3564_v43 = vld [vmem:[#allocation11 + $0xa00] sm:$0xff] }
 0x261   :  { %6150 = vmatprep.subr.bf16.mxu1 %v6149_v13  ;;  %6116 = vmatpush3.bf16.msra.mxu0 %v6115_v53  ;;  %v3596_v13 = vld [vmem:[#allocation11 + $0xb00] sm:$0xff]  ;;  %v1956_v53 = vpop.f32.mrb[38].mxu0  ;;  %v6195_v52 = vpack.c.bf16 %v3599_v35, %v3598_v55  ;;  %v6159_v5 = vpack.c.bf16 %v3565_v20, %v3564_v43  ;;  %v3603_v61 = vld [vmem:[#allocation11 + $0xb38] sm:$0xff]  ;;  %v3622_v35 = vld [vmem:[#allocation11 + $0xbd0] sm:$0xff] }
 0x262   :  { %6118 = vmatprep.subr.bf16.mxu0 %v6117_v25  ;;  %v1957_v18 = vadd.f32 %v8487_v39, %v1956_v53  ;;  %v1958_v60 = vpop.f32.mrb[39].mxu0  ;;  %v3614_v25 = vld [vmem:[#allocation11 + $0xb90] sm:$0xff]  ;;  %v6191_v7 = vpack.c.bf16 %v3597_v9, %v3596_v13  ;;  %v3144_v39 = vrot.slane %v8160_v3, %v7392_v31  ;;  %v6197_v3 = vpack.c.bf16 %v3617_v45, %v3616_v6  ;;  %v3567_v53 = vld [vmem:[#allocation11 + $0xa18] sm:$0xff]  ;;  %v3604_v62 = vld [vmem:[#allocation11 + $0xb40] sm:$0xff] }
 0x263   :  { %v3602_v13 = vld [vmem:[#allocation11 + $0xb30] sm:$0xff]  ;;  %v3584_v60 = vld [vmem:[#allocation11 + $0xaa0] sm:$0xff]  ;;  %v3587_v55 = vld [vmem:[#allocation11 + $0xab8] sm:$0xff] }
 0x264   :  { %6152 = vmatpush3.bf16.msra.mxu1 %v6151_v48  ;;  %v2027_v48 = vmax.f32 %v1957_v18, 0.0  ;;  %v3214_v59 = vadd.f32 %v3144_v39, %v8754_v49  ;;  %v3623_v39 = vld [vmem:[#allocation11 + $0xbd8] sm:$0xff]  ;;  %v3570_v6 = vld [vmem:[#allocation11 + $0xa30] sm:$0xff]  ;;  %v3624_v43 = vld [vmem:[#allocation11 + $0xbe0] sm:$0xff] }
 0x265   :  { %6154 = vmatprep.subr.bf16.mxu1 %v6153_v24  ;;  %6120 = vmatpush3.bf16.msra.mxu0 %v6119_v30  ;;  %v6193_v24 = vpack.c.bf16 %v3615_v29, %v3614_v25  ;;  %v3120_v30 = vadd.f32 %v3119_v58, %v3053_v40  ;;  %v3582_v58 = vld [vmem:[#allocation11 + $0xa90] sm:$0xff]  ;;  %v3585_v25 = vld [vmem:[#allocation11 + $0xaa8] sm:$0xff]  ;;  %v3620_v29 = vld [vmem:[#allocation11 + $0xbc0] sm:$0xff] }
 0x266   :  { %6122 = vmatprep.subr.bf16.mxu0 %v6121_v10  ;;  %v2477_v10 = vmul.f32 %v5234_v41, %v2027_v48  ;;  %v3070_v63 = vmul.f32 %v5239_v56, %v2027_v48  ;;  %v3231_v18 = vmax.f32 %v3214_v59, 0.0  ;;  %v6163_v41 = vpack.c.bf16 %v3567_v53, %v3566_v51  ;;  %v3569_v48 = vld [vmem:[#allocation11 + $0xa28] sm:$0xff]  ;;  %v3571_v45 = vld [vmem:[#allocation11 + $0xa38] sm:$0xff]  ;;  %v3608_v49 = vld [vmem:[#allocation11 + $0xb60] sm:$0xff] }
 0x267   :  { %v6203_v56 = vpack.c.bf16 %v3603_v61, %v3602_v13  ;;  %v6165_v40 = vpack.c.bf16 %v3585_v25, %v3584_v60  ;;  %v3625_v20 = vld [vmem:[#allocation11 + $0xbe8] sm:$0xff]  ;;  %v3627_v13 = vld [vmem:[#allocation11 + $0xbf8] sm:$0xff]  ;;  %v3610_v53 = vld [vmem:[#allocation11 + $0xb70] sm:$0xff] }
 0x268   :  { %6156 = vmatpush3.bf16.msra.mxu1 %v6155_v0  ;;  %v2528_v15 = vadd.f32 %v2527_v22, %v2477_v10  ;;  %v8501_v33 = vadd.f32 %v3120_v30, %v3070_v63  ;;  %v3583_v0 = vld [vmem:[#allocation11 + $0xa98] sm:$0xff]  ;;  %v3606_v10 = vld [vmem:[#allocation11 + $0xb50] sm:$0xff] }
 0x269   :  { %6190 = vmatprep.subr.bf16.mxu1 %v6189_v11  ;;  %6124 = vmatpush3.bf16.msra.mxu0 %v6123_v27  ;;  %v6199_v11 = vpack.c.bf16 %v3601_v34, %v3600_v12  ;;  %v6161_v4 = vpack.c.bf16 %v3583_v0, %v3582_v58  ;;  %v6201_v27 = vpack.c.bf16 %v3619_v32, %v3618_v16  ;;  %v3589_v12 = vld [vmem:[#allocation11 + $0xac8] sm:$0xff]  ;;  %v3572_v58 = vld [vmem:[#allocation11 + $0xa40] sm:$0xff]  ;;  %v3590_v32 = vld [vmem:[#allocation11 + $0xad0] sm:$0xff] }
 0x26a   :  { %6158 = vmatprep.subr.bf16.mxu0 %v6157_v36  ;;  %v2633_v19 = vadd.f32 %v5235_v17, %v2528_v15  ;;  %v3621_v36 = vld [vmem:[#allocation11 + $0xbc8] sm:$0xff]  ;;  %v6209_v17 = vpack.c.bf16 %v3623_v39, %v3622_v35  ;;  %v3607_v15 = vld [vmem:[#allocation11 + $0xb58] sm:$0xff]  ;;  %v3574_v61 = vld [vmem:[#allocation11 + $0xa50] sm:$0xff] }
 0x26b   :  { %4490 = vmatmul.mubr.f32.vlgmr.msra.gmra.mrb[42].mxu1 %v3228_v57  ;;  %v6205_v57 = vpack.c.bf16 %v3621_v36, %v3620_v29  ;;  %v6211_v34 = vpack.c.bf16 %v3607_v15, %v3606_v10  ;;  %v3573_v0 = vld [vmem:[#allocation11 + $0xa48] sm:$0xff]  ;;  %v3611_v36 = vld [vmem:[#allocation11 + $0xb78] sm:$0xff] }
 0x26c   :  { %6192 = vmatpush3.bf16.msra.mxu1 %v6191_v7  ;;  %4629 = vmatprep.mubr.f32.mxu1 %v3233_v1  ;;  %v2650_v9 = vmax.f32 %v2633_v19, 0.0  ;;  %v3568_v7 = vld [vmem:[#allocation11 + $0xa20] sm:$0xff]  ;;  %v3605_v1 = vld [vmem:[#allocation11 + $0xb48] sm:$0xff]  ;;  %v6213_v19 = vpack.c.bf16 %v3625_v20, %v3624_v43  ;;  %v8755_v35 = vld [vmem:[#allocation33_spill] sm:$0xff] }
 0x26d   :  { %6194 = vmatprep.subr.bf16.mxu1 %v6193_v24  ;;  %v3586_v24 = vld [vmem:[#allocation11 + $0xab0] sm:$0xff]  ;;  %v6167_v22 = vpack.c.bf16 %v3569_v48, %v3568_v7  ;;  %v6207_v30 = vpack.c.bf16 %v3605_v1, %v3604_v62  ;;  %v3609_v16 = vld [vmem:[#allocation11 + $0xb68] sm:$0xff]  ;;  %v3676_v62 = vld [vmem:[#allocation11 + $0xd80] sm:$0xff] }
 0x26e   :  { %4420 = vmatmul.mubr.f32.vlgmr.msra.gmra.mrb[46].mxu0 %v2650_v9  ;;  %v6169_v63 = vpack.c.bf16 %v3587_v55, %v3586_v24  ;;  %v8504_v9 = vld [vmem:[#allocation10 + $0x19] sm:$0xff]  ;;  %v6215_v51 = vpack.c.bf16 %v3609_v16, %v3608_v49  ;;  %v8506_v60 = vld [vmem:[#allocation10 + $0x11] sm:$0xff]  ;;  %v3576_v24 = vld [vmem:[#allocation11 + $0xa60] sm:$0xff] }
 0x26f   :  { %6160 = vmatpush3.bf16.msra.mxu0 %v6159_v5  ;;  %4559 = vmatprep.mubr.f32.mxu0 %v3231_v18  ;;  %v3591_v5 = vld [vmem:[#allocation11 + $0xad8] sm:$0xff]  ;;  %v3148_v25 = vrot.slane %v8506_v60, %v8715_v28  ;;  %v3168_v7 = vrot.slane %v8504_v9, %v8669_v23  ;;  %v3577_v55 = vld [vmem:[#allocation11 + $0xa68] sm:$0xff] }
 0x270   :  { %6196 = vmatpush3.bf16.msra.mxu1 %v6195_v52  ;;  %6162 = vmatprep.subr.bf16.mxu0 %v6161_v4  ;;  %v3588_v52 = vld [vmem:[#allocation11 + $0xac0] sm:$0xff]  ;;  %v6175_v4 = vpack.c.bf16 %v3573_v0, %v3572_v58  ;;  %v3575_v18 = vld [vmem:[#allocation11 + $0xa58] sm:$0xff]  ;;  %v3661_v10 = vld [vmem:[#allocation11 + $0xd08] sm:$0xff] }
 0x271   :  { %6198 = vmatprep.subr.bf16.mxu1 %v6197_v3  ;;  %v6171_v3 = vpack.c.bf16 %v3571_v45, %v3570_v6  ;;  %v6173_v59 = vpack.c.bf16 %v3589_v12, %v3588_v52  ;;  %v6179_v48 = vpack.c.bf16 %v3575_v18, %v3574_v61  ;;  %v3215_v39 = vadd.f32 %v3148_v25, %v8755_v35  ;;  %v3679_v45 = vld [vmem:[#allocation11 + $0xd98] sm:$0xff]  ;;  %v3664_v61 = vld [vmem:[#allocation11 + $0xd20] sm:$0xff] }
 0x272   :  { %v3220_v6 = vadd.f32 %v3168_v7, %v8156_v14  ;;  %v3595_v23 = vld [vmem:[#allocation11 + $0xaf8] sm:$0xff]  ;;  %v6183_v52 = vpack.c.bf16 %v3577_v55, %v3576_v24  ;;  %v3140_v12 = vrot.slane %v8506_v60, %v8668_v47  ;;  %v3628_v25 = vld [vmem:[#allocation11 + $0xc00] sm:$0xff]  ;;  %v3682_v7 = vld [vmem:[#allocation11 + $0xdb0] sm:$0xff] }
 0x273   :  { %6164 = vmatpush3.bf16.msra.mxu0 %v6163_v41  ;;  %v3592_v41 = vld [vmem:[#allocation11 + $0xae0] sm:$0xff]  ;;  %v5274_v15 = vpop.f32.mrb[32].mxu1  ;;  %v3579_v49 = vld [vmem:[#allocation11 + $0xa78] sm:$0xff]  ;;  %v3232_v14 = vmax.f32 %v3215_v39, 0.0  ;;  %v3666_v24 = vld [vmem:[#allocation11 + $0xd30] sm:$0xff] }
 0x274   :  { %6200 = vmatpush3.bf16.msra.mxu1 %v6199_v11  ;;  %6166 = vmatprep.subr.bf16.mxu0 %v6165_v40  ;;  %v3626_v11 = vld [vmem:[#allocation11 + $0xbf0] sm:$0xff]  ;;  %v3677_v40 = vld [vmem:[#allocation11 + $0xd88] sm:$0xff]  ;;  %v5275_v20 = vpop.f32.mrb[33].mxu1 }
 0x275   :  { %6202 = vmatprep.subr.bf16.mxu1 %v6201_v27  ;;  %v6177_v27 = vpack.c.bf16 %v3591_v5, %v3590_v32  ;;  %v6217_v29 = vpack.c.bf16 %v3627_v13, %v3626_v11  ;;  %v8518_v0 = vadd.f32 %v5275_v20, %v5274_v15  ;;  %v3644_v32 = vld [vmem:[#allocation11 + $0xc80] sm:$0xff]  ;;  %v3645_v5 = vld [vmem:[#allocation11 + $0xc88] sm:$0xff]  ;;  %v3237_v11 = vmax.f32 %v3220_v6, 0.0  ;;  %v3630_v39 = vld [vmem:[#allocation11 + $0xc10] sm:$0xff] }
 0x276   :  { %v3680_v13 = vld [vmem:[#allocation11 + $0xda0] sm:$0xff]  ;;  %v6221_v18 = vpack.c.bf16 %v3645_v5, %v3644_v32  ;;  %v3633_v20 = vld [vmem:[#allocation11 + $0xc28] sm:$0xff]  ;;  %v3670_v32 = vld [vmem:[#allocation11 + $0xd50] sm:$0xff] }
 0x277   :  { %6168 = vmatpush3.bf16.msra.mxu0 %v6167_v22  ;;  %v6253_v22 = vpack.c.bf16 %v3677_v40, %v3676_v62  ;;  %v3646_v62 = vld [vmem:[#allocation11 + $0xc90] sm:$0xff]  ;;  %v3647_v40 = vld [vmem:[#allocation11 + $0xc98] sm:$0xff]  ;;  %v3648_v6 = vld [vmem:[#allocation11 + $0xca0] sm:$0xff] }
 0x278   :  { %6204 = vmatpush3.bf16.msra.mxu1 %v6203_v56  ;;  %6170 = vmatprep.subr.bf16.mxu0 %v6169_v63  ;;  %v3593_v56 = vld [vmem:[#allocation11 + $0xae8] sm:$0xff]  ;;  %v3678_v63 = vld [vmem:[#allocation11 + $0xd90] sm:$0xff]  ;;  %v6225_v35 = vpack.c.bf16 %v3647_v40, %v3646_v62 }
 0x279   :  { %6206 = vmatprep.subr.bf16.mxu1 %v6205_v57  ;;  %v6219_v57 = vpack.c.bf16 %v3611_v36, %v3610_v53  ;;  %v6181_v1 = vpack.c.bf16 %v3593_v56, %v3592_v41  ;;  %v6257_v58 = vpack.c.bf16 %v3679_v45, %v3678_v63  ;;  %v8756_v53 = vld [vmem:[#allocation27_spill] sm:$0xff] }
 0x27a   :  { %v3665_v41 = vld [vmem:[#allocation11 + $0xd28] sm:$0xff]  ;;  %v3684_v45 = vld [vmem:[#allocation11 + $0xdc0] sm:$0xff] }
 0x27b   :  { %6172 = vmatpush3.bf16.msra.mxu0 %v6171_v3  ;;  %v3662_v3 = vld [vmem:[#allocation11 + $0xd10] sm:$0xff]  ;;  %v3673_v40 = vld [vmem:[#allocation11 + $0xd68] sm:$0xff] }
 0x27c   :  { %6208 = vmatpush3.bf16.msra.mxu1 %v6207_v30  ;;  %6174 = vmatprep.subr.bf16.mxu0 %v6173_v59  ;;  %v3660_v30 = vld [vmem:[#allocation11 + $0xd00] sm:$0xff]  ;;  %v3160_v59 = vrot.slane %v8504_v9, %v8666_v8 }
 0x27d   :  { %6210 = vmatprep.subr.bf16.mxu1 %v6209_v17  ;;  %v3594_v17 = vld [vmem:[#allocation11 + $0xaf0] sm:$0xff]  ;;  %v6255_v43 = vpack.c.bf16 %v3661_v10, %v3660_v30  ;;  %v3667_v10 = vld [vmem:[#allocation11 + $0xd38] sm:$0xff] }
 0x27e   :  { %v6185_v16 = vpack.c.bf16 %v3595_v23, %v3594_v17  ;;  %v3218_v56 = vadd.f32 %v3160_v59, %v8108_v21  ;;  %v3649_v21 = vld [vmem:[#allocation11 + $0xca8] sm:$0xff]  ;;  %v6267_v15 = vpack.c.bf16 %v3667_v10, %v3666_v24  ;;  %v3651_v59 = vld [vmem:[#allocation11 + $0xcb8] sm:$0xff] }
 0x27f   :  { %6176 = vmatpush3.bf16.msra.mxu0 %v6175_v4  ;;  %v3681_v4 = vld [vmem:[#allocation11 + $0xda8] sm:$0xff]  ;;  %v3639_v10 = vld [vmem:[#allocation11 + $0xc58] sm:$0xff] }
 0x280   :  { %6212 = vmatpush3.bf16.msra.mxu1 %v6211_v34  ;;  %6178 = vmatprep.subr.bf16.mxu0 %v6177_v27  ;;  %v3578_v34 = vld [vmem:[#allocation11 + $0xa70] sm:$0xff]  ;;  %v3213_v27 = vadd.f32 %v3140_v12, %v8756_v53  ;;  %v6261_v36 = vpack.c.bf16 %v3681_v4, %v3680_v13  ;;  %v3235_v63 = vmax.f32 %v3218_v56, 0.0  ;;  %v3685_v17 = vld [vmem:[#allocation11 + $0xdc8] sm:$0xff]  ;;  %v6229_v12 = vpack.c.bf16 %v3649_v21, %v3648_v6  ;;  %v3635_v13 = vld [vmem:[#allocation11 + $0xc38] sm:$0xff] }
 0x281   :  { %6214 = vmatprep.subr.bf16.mxu1 %v6213_v19  ;;  %v3663_v19 = vld [vmem:[#allocation11 + $0xd18] sm:$0xff]  ;;  %v3652_v53 = vld [vmem:[#allocation11 + $0xcc0] sm:$0xff]  ;;  %v3637_v56 = vld [vmem:[#allocation11 + $0xc48] sm:$0xff] }
 0x282   :  { %v6259_v8 = vpack.c.bf16 %v3663_v19, %v3662_v3  ;;  %v3230_v55 = vmax.f32 %v3213_v27, 0.0  ;;  %v6269_v3 = vpack.c.bf16 %v3685_v17, %v3684_v45  ;;  %v3653_v27 = vld [vmem:[#allocation11 + $0xcc8] sm:$0xff]  ;;  %v3675_v6 = vld [vmem:[#allocation11 + $0xd78] sm:$0xff]  ;;  %v3656_v21 = vld [vmem:[#allocation11 + $0xce0] sm:$0xff] }
 0x283   :  { %6180 = vmatpush3.bf16.msra.mxu0 %v6179_v48  ;;  %v3683_v48 = vld [vmem:[#allocation11 + $0xdb8] sm:$0xff]  ;;  %v3657_v45 = vld [vmem:[#allocation11 + $0xce8] sm:$0xff]  ;;  %v3740_v17 = vld [vmem:[#allocation11 + $0xf80] sm:$0xff] }
 0x284   :  { %6216 = vmatpush3.bf16.msra.mxu1 %v6215_v51  ;;  %6182 = vmatprep.subr.bf16.mxu0 %v6181_v1  ;;  %v6187_v51 = vpack.c.bf16 %v3579_v49, %v3578_v34  ;;  %v6263_v1 = vpack.c.bf16 %v3665_v41, %v3664_v61  ;;  %v6265_v30 = vpack.c.bf16 %v3683_v48, %v3682_v7  ;;  %v3669_v34 = vld [vmem:[#allocation11 + $0xd48] sm:$0xff]  ;;  %v3650_v49 = vld [vmem:[#allocation11 + $0xcb0] sm:$0xff]  ;;  %v3636_v41 = vld [vmem:[#allocation11 + $0xc40] sm:$0xff] }
 0x285   :  { %6218 = vmatprep.subr.bf16.mxu1 %v6217_v29  ;;  %v3629_v29 = vld [vmem:[#allocation11 + $0xc08] sm:$0xff]  ;;  %v6233_v5 = vpack.c.bf16 %v3651_v59, %v3650_v49  ;;  %v3654_v7 = vld [vmem:[#allocation11 + $0xcd0] sm:$0xff]  ;;  %v3655_v48 = vld [vmem:[#allocation11 + $0xcd8] sm:$0xff]  ;;  %v6239_v24 = vpack.c.bf16 %v3637_v56, %v3636_v41 }
 0x286   :  { %v3689_v61 = vld [vmem:[#allocation11 + $0xde8] sm:$0xff]  ;;  %v3724_v59 = vld [vmem:[#allocation11 + $0xf00] sm:$0xff] }
 0x287   :  { %6184 = vmatpush3.bf16.msra.mxu0 %v6183_v52  ;;  %v3668_v52 = vld [vmem:[#allocation11 + $0xd40] sm:$0xff] }
 0x288   :  { %6220 = vmatpush3.bf16.msra.mxu1 %v6219_v57  ;;  %6186 = vmatprep.subr.bf16.mxu0 %v6185_v16  ;;  %v6223_v57 = vpack.c.bf16 %v3629_v29, %v3628_v25  ;;  %v6271_v16 = vpack.c.bf16 %v3669_v34, %v3668_v52  ;;  %v3672_v29 = vld [vmem:[#allocation11 + $0xd60] sm:$0xff]  ;;  %v3641_v34 = vld [vmem:[#allocation11 + $0xc68] sm:$0xff] }
 0x289   :  { %6254 = vmatprep.subr.bf16.mxu1 %v6253_v22  ;;  %v3631_v22 = vld [vmem:[#allocation11 + $0xc18] sm:$0xff]  ;;  %v3708_v41 = vld [vmem:[#allocation11 + $0xe80] sm:$0xff] }
 0x28a   :  { %v6227_v23 = vpack.c.bf16 %v3631_v22, %v3630_v39  ;;  %v3674_v39 = vld [vmem:[#allocation11 + $0xd70] sm:$0xff]  ;;  %v6241_v22 = vpack.c.bf16 %v3655_v48, %v3654_v7 }
 0x28b   :  { %4630 = vmatmul.mubr.f32.vlgmr.msra.gmra.mrb[44].mxu1 %v3232_v14  ;;  %6188 = vmatpush3.bf16.msra.mxu0 %v6187_v51  ;;  %v3686_v14 = vld [vmem:[#allocation11 + $0xdd0] sm:$0xff]  ;;  %v3671_v51 = vld [vmem:[#allocation11 + $0xd58] sm:$0xff] }
 0x28c   :  { %6256 = vmatpush3.bf16.msra.mxu1 %v6255_v43  ;;  %4769 = vmatprep.mubr.f32.mxu1 %v3237_v11  ;;  %v3632_v43 = vld [vmem:[#allocation11 + $0xc20] sm:$0xff]  ;;  %v3634_v11 = vld [vmem:[#allocation11 + $0xc30] sm:$0xff]  ;;  %v6275_v25 = vpack.c.bf16 %v3671_v51, %v3670_v32  ;;  %v3659_v32 = vld [vmem:[#allocation11 + $0xcf8] sm:$0xff] }
 0x28d   :  { %6258 = vmatprep.subr.bf16.mxu1 %v6257_v58  ;;  %6222 = vmatprep.subr.bf16.mxu0 %v6221_v18  ;;  %v3687_v58 = vld [vmem:[#allocation11 + $0xdd8] sm:$0xff]  ;;  %v6231_v19 = vpack.c.bf16 %v3633_v20, %v3632_v43  ;;  %v6235_v18 = vpack.c.bf16 %v3635_v13, %v3634_v11  ;;  %v6283_v43 = vpack.c.bf16 %v3675_v6, %v3674_v39  ;;  %v3746_v6 = vld [vmem:[#allocation11 + $0xfb0] sm:$0xff] }
 0x28e   :  { %4560 = vmatmul.mubr.f32.vlgmr.msra.gmra.mrb[48].mxu0 %v3230_v55  ;;  %v6273_v4 = vpack.c.bf16 %v3687_v58, %v3686_v14  ;;  %v3164_v55 = vrot.slane %v8504_v9, %v8667_v2  ;;  %v6245_v20 = vpack.c.bf16 %v3657_v45, %v3656_v21  ;;  %v3725_v14 = vld [vmem:[#allocation11 + $0xf08] sm:$0xff]  ;;  %v3742_v58 = vld [vmem:[#allocation11 + $0xf90] sm:$0xff]  ;;  %v3156_v11 = vrot.slane %v8506_v60, %v8717_v44  ;;  %v3747_v21 = vld [vmem:[#allocation11 + $0xfb8] sm:$0xff] }
 0x28f   :  { %6224 = vmatpush3.bf16.msra.mxu0 %v6223_v57  ;;  %4699 = vmatprep.mubr.f32.mxu0 %v3235_v63  ;;  %v3690_v57 = vld [vmem:[#allocation11 + $0xdf0] sm:$0xff]  ;;  %v3709_v60 = vld [vmem:[#allocation11 + $0xe88] sm:$0xff] }
 0x290   :  { %6260 = vmatpush3.bf16.msra.mxu1 %v6259_v8  ;;  %6226 = vmatprep.subr.bf16.mxu0 %v6225_v35  ;;  %v3688_v8 = vld [vmem:[#allocation11 + $0xde0] sm:$0xff]  ;;  %v6279_v35 = vpack.c.bf16 %v3673_v40, %v3672_v29  ;;  %v3219_v2 = vadd.f32 %v3164_v55, %v8151_v42  ;;  %v3727_v29 = vld [vmem:[#allocation11 + $0xf18] sm:$0xff]  ;;  %v3745_v40 = vld [vmem:[#allocation11 + $0xfa8] sm:$0xff] }
 0x291   :  { %6262 = vmatprep.subr.bf16.mxu1 %v6261_v36  ;;  %v6237_v36 = vpack.c.bf16 %v3653_v27, %v3652_v53  ;;  %v6277_v62 = vpack.c.bf16 %v3689_v61, %v3688_v8  ;;  %v3726_v53 = vld [vmem:[#allocation11 + $0xf10] sm:$0xff]  ;;  %v3643_v8 = vld [vmem:[#allocation11 + $0xc78] sm:$0xff]  ;;  %v3692_v55 = vld [vmem:[#allocation11 + $0xe00] sm:$0xff] }
 0x292   :  { %v3236_v13 = vmax.f32 %v3219_v2, 0.0  ;;  %v3642_v27 = vld [vmem:[#allocation11 + $0xc70] sm:$0xff] }
 0x293   :  { %6228 = vmatpush3.bf16.msra.mxu0 %v6227_v23  ;;  %v3741_v23 = vld [vmem:[#allocation11 + $0xf88] sm:$0xff]  ;;  %v6251_v48 = vpack.c.bf16 %v3643_v8, %v3642_v27  ;;  %v3694_v2 = vld [vmem:[#allocation11 + $0xe10] sm:$0xff] }
 0x294   :  { %6264 = vmatpush3.bf16.msra.mxu1 %v6263_v1  ;;  %6230 = vmatprep.subr.bf16.mxu0 %v6229_v12  ;;  %v3691_v1 = vld [vmem:[#allocation11 + $0xdf8] sm:$0xff]  ;;  %v5241_v12 = vld [vmem:[#allocation13] ss:$0 sm:$0xff]  ;;  %v6317_v49 = vpack.c.bf16 %v3741_v23, %v3740_v17  ;;  %v3730_v23 = vld [vmem:[#allocation11 + $0xf30] sm:$0xff] }
 0x295   :  { %6266 = vmatprep.subr.bf16.mxu1 %v6265_v30  ;;  %v3638_v30 = vld [vmem:[#allocation11 + $0xc50] sm:$0xff]  ;;  %v6281_v63 = vpack.c.bf16 %v3691_v1, %v3690_v57  ;;  %v3862_v61 = vadd.f32 %v8518_v0, %v5241_v12  ;;  %v8757_v57 = vld [vmem:[#allocation35_spill] sm:$0xff]  ;;  %v3695_v12 = vld [vmem:[#allocation11 + $0xe18] sm:$0xff] }
 0x296   :  { %v6243_v52 = vpack.c.bf16 %v3639_v10, %v3638_v30  ;;  %v3217_v1 = vadd.f32 %v3156_v11, %v8757_v57  ;;  %v3728_v0 = vld [vmem:[#allocation11 + $0xf20] sm:$0xff]  ;;  %v3710_v10 = vld [vmem:[#allocation11 + $0xe90] sm:$0xff] }
 0x297   :  { %6232 = vmatpush3.bf16.msra.mxu0 %v6231_v19  ;;  %v3714_v11 = vld [vmem:[#allocation11 + $0xeb0] sm:$0xff] }
 0x298   :  { %6268 = vmatpush3.bf16.msra.mxu1 %v6267_v15  ;;  %6234 = vmatprep.subr.bf16.mxu0 %v6233_v5  ;;  %v3184_v15 = vrot.slane %v8504_v9, %v8716_v26  ;;  %v3658_v26 = vld [vmem:[#allocation11 + $0xcf0] sm:$0xff]  ;;  %v5309_v5 = vpop.f32.mrb[34].mxu1 }
 0x299   :  { %6270 = vmatprep.subr.bf16.mxu1 %v6269_v3  ;;  %v3640_v3 = vld [vmem:[#allocation11 + $0xc60] sm:$0xff]  ;;  %v5310_v51 = vpop.f32.mrb[35].mxu1 }
 0x29a   :  { %v3224_v19 = vadd.f32 %v3184_v15, %v8457_v37  ;;  %v6247_v42 = vpack.c.bf16 %v3641_v34, %v3640_v3  ;;  %v3176_v37 = vrot.slane %v8504_v9, %v7392_v31  ;;  %v6323_v31 = vpack.c.bf16 %v3727_v29, %v3726_v53  ;;  %v3712_v34 = vld [vmem:[#allocation11 + $0xea0] sm:$0xff]  ;;  %v3699_v29 = vld [vmem:[#allocation11 + $0xe38] sm:$0xff] }
 0x29b   :  { %6236 = vmatpush3.bf16.msra.mxu0 %v6235_v18  ;;  %v5311_v18 = vadd.f32 %v5310_v51, %v5309_v5  ;;  %v3234_v15 = vmax.f32 %v3217_v1, 0.0  ;;  %v3751_v51 = vld [vmem:[#allocation11 + $0xfd8] sm:$0xff] }
 0x29c   :  { %6272 = vmatpush3.bf16.msra.mxu1 %v6271_v16  ;;  %6238 = vmatprep.subr.bf16.mxu0 %v6237_v36  ;;  %v3743_v16 = vld [vmem:[#allocation11 + $0xf98] sm:$0xff]  ;;  %v6249_v36 = vpack.c.bf16 %v3659_v32, %v3658_v26  ;;  %v3241_v56 = vmax.f32 %v3224_v19, 0.0  ;;  %v3222_v30 = vadd.f32 %v3176_v37, %v8453_v38  ;;  %v3713_v38 = vld [vmem:[#allocation11 + $0xea8] sm:$0xff]  ;;  %v3732_v19 = vld [vmem:[#allocation11 + $0xf40] sm:$0xff] }
 0x29d   :  { %6274 = vmatprep.subr.bf16.mxu1 %v6273_v4  ;;  %v6319_v4 = vpack.c.bf16 %v3725_v14, %v3724_v59  ;;  %v8533_v7 = vadd.f32 %v5311_v18, %v3862_v61  ;;  %v3749_v59 = vld [vmem:[#allocation11 + $0xfc8] sm:$0xff]  ;;  %v6291_v14 = vpack.c.bf16 %v3695_v12, %v3694_v2  ;;  %v3696_v26 = vld [vmem:[#allocation11 + $0xe20] sm:$0xff]  ;;  %v3734_v61 = vld [vmem:[#allocation11 + $0xf50] sm:$0xff] }
 0x29e   :  { %v3239_v3 = vmax.f32 %v3222_v30, 0.0  ;;  %v3697_v32 = vld [vmem:[#allocation11 + $0xe28] sm:$0xff]  ;;  %v3718_v30 = vld [vmem:[#allocation11 + $0xed0] sm:$0xff]  ;;  %v3739_v12 = vld [vmem:[#allocation11 + $0xf78] sm:$0xff] }
 0x29f   :  { %6240 = vmatpush3.bf16.msra.mxu0 %v6239_v24  ;;  %v6285_v24 = vpack.c.bf16 %v3709_v60, %v3708_v41  ;;  %v6295_v27 = vpack.c.bf16 %v3697_v32, %v3696_v26  ;;  %v3735_v60 = vld [vmem:[#allocation11 + $0xf58] sm:$0xff]  ;;  %v3172_v26 = vrot.slane %v8504_v9, %v8668_v47 }
 0x2a0   :  { %6276 = vmatpush3.bf16.msra.mxu1 %v6275_v25  ;;  %6242 = vmatprep.subr.bf16.mxu0 %v6241_v22  ;;  %v6321_v25 = vpack.c.bf16 %v3743_v16, %v3742_v58  ;;  %v3729_v22 = vld [vmem:[#allocation11 + $0xf28] sm:$0xff]  ;;  %v6293_v16 = vpack.c.bf16 %v3713_v38, %v3712_v34 }
 0x2a1   :  { %6278 = vmatprep.subr.bf16.mxu1 %v6277_v62  ;;  %v3744_v62 = vld [vmem:[#allocation11 + $0xfa0] sm:$0xff]  ;;  %v6327_v17 = vpack.c.bf16 %v3729_v22, %v3728_v0  ;;  %v3737_v22 = vld [vmem:[#allocation11 + $0xf68] sm:$0xff] }
 0x2a2   :  { %v6325_v39 = vpack.c.bf16 %v3745_v40, %v3744_v62  ;;  %v3717_v62 = vld [vmem:[#allocation11 + $0xec8] sm:$0xff]  ;;  %v3752_v40 = vld [vmem:[#allocation11 + $0xfe0] sm:$0xff] }
 0x2a3   :  { %6244 = vmatpush3.bf16.msra.mxu0 %v6243_v52  ;;  %v3736_v0 = vld [vmem:[#allocation11 + $0xf60] sm:$0xff] }
 0x2a4   :  { %6280 = vmatpush3.bf16.msra.mxu1 %v6279_v35  ;;  %6246 = vmatprep.subr.bf16.mxu0 %v6245_v20  ;;  %v3693_v35 = vld [vmem:[#allocation11 + $0xe08] sm:$0xff]  ;;  %v3731_v20 = vld [vmem:[#allocation11 + $0xf38] sm:$0xff] }
 0x2a5   :  { %6282 = vmatprep.subr.bf16.mxu1 %v6281_v63  ;;  %v3711_v63 = vld [vmem:[#allocation11 + $0xe98] sm:$0xff]  ;;  %v6287_v45 = vpack.c.bf16 %v3693_v35, %v3692_v55  ;;  %v6331_v58 = vpack.c.bf16 %v3731_v20, %v3730_v23  ;;  %v3700_v55 = vld [vmem:[#allocation11 + $0xe40] sm:$0xff]  ;;  %v3701_v35 = vld [vmem:[#allocation11 + $0xe48] sm:$0xff] }
 0x2a6   :  { %v6289_v52 = vpack.c.bf16 %v3711_v63, %v3710_v10  ;;  %v3719_v10 = vld [vmem:[#allocation11 + $0xed8] sm:$0xff]  ;;  %v3754_v63 = vld [vmem:[#allocation11 + $0xff0] sm:$0xff]  ;;  %v3721_v20 = vld [vmem:[#allocation11 + $0xee8] sm:$0xff] }
 0x2a7   :  { %6248 = vmatpush3.bf16.msra.mxu0 %v6247_v42  ;;  %v3733_v42 = vld [vmem:[#allocation11 + $0xf48] sm:$0xff]  ;;  %v3702_v23 = vld [vmem:[#allocation11 + $0xe50] sm:$0xff] }
 0x2a8   :  { %6284 = vmatpush3.bf16.msra.mxu1 %v6283_v43  ;;  %6250 = vmatprep.subr.bf16.mxu0 %v6249_v36  ;;  %v6329_v43 = vpack.c.bf16 %v3747_v21, %v3746_v6  ;;  %v6335_v8 = vpack.c.bf16 %v3733_v42, %v3732_v19  ;;  %v3755_v6 = vld [vmem:[#allocation11 + $0xff8] sm:$0xff]  ;;  %v6303_v21 = vpack.c.bf16 %v3701_v35, %v3700_v55  ;;  %v3706_v42 = vld [vmem:[#allocation11 + $0xe70] sm:$0xff] }
 0x2a9   :  { %6318 = vmatprep.subr.bf16.mxu1 %v6317_v49  ;;  %v3748_v49 = vld [vmem:[#allocation11 + $0xfc0] sm:$0xff]  ;;  %v6345_v2 = vpack.c.bf16 %v3755_v6, %v3754_v63  ;;  %v3723_v19 = vld [vmem:[#allocation11 + $0xef8] sm:$0xff]  ;;  %v3781_v63 = vld [vmem:[#allocation11 + $0x10c8] sm:$0xff] }
 0x2aa   :  { %v6333_v5 = vpack.c.bf16 %v3749_v59, %v3748_v49  ;;  %v5344_v53 = vpop.f32.mrb[40].mxu0  ;;  %v3704_v49 = vld [vmem:[#allocation11 + $0xe60] sm:$0xff]  ;;  %v3705_v59 = vld [vmem:[#allocation11 + $0xe68] sm:$0xff]  ;;  %v3779_v55 = vld [vmem:[#allocation11 + $0x10b8] sm:$0xff] }
 0x2ab   :  { %4770 = vmatmul.mubr.f32.vlgmr.msra.gmra.mrb[46].mxu1 %v3236_v13  ;;  %6252 = vmatpush3.bf16.msra.mxu0 %v6251_v48  ;;  %v3715_v13 = vld [vmem:[#allocation11 + $0xeb8] sm:$0xff]  ;;  %v5345_v37 = vpop.f32.mrb[41].mxu0  ;;  %v3753_v48 = vld [vmem:[#allocation11 + $0xfe8] sm:$0xff] }
 0x2ac   :  { %6320 = vmatpush3.bf16.msra.mxu1 %v6319_v4  ;;  %4909 = vmatprep.mubr.f32.mxu1 %v3241_v56  ;;  %v3750_v4 = vld [vmem:[#allocation11 + $0xfd0] sm:$0xff]  ;;  %v6297_v18 = vpack.c.bf16 %v3715_v13, %v3714_v11  ;;  %v5346_v41 = vadd.f32 %v5345_v37, %v5344_v53  ;;  %v3716_v56 = vld [vmem:[#allocation11 + $0xec0] sm:$0xff]  ;;  %v3707_v11 = vld [vmem:[#allocation11 + $0xe78] sm:$0xff]  ;;  %v3221_v37 = vadd.f32 %v3172_v26, %v8158_v46 }
 0x2ad   :  { %6322 = vmatprep.subr.bf16.mxu1 %v6321_v25  ;;  %6286 = vmatprep.subr.bf16.mxu0 %v6285_v24  ;;  %v3698_v25 = vld [vmem:[#allocation11 + $0xe30] sm:$0xff]  ;;  %v6337_v36 = vpack.c.bf16 %v3751_v51, %v3750_v4  ;;  %v6301_v24 = vpack.c.bf16 %v3717_v62, %v3716_v56  ;;  %v3772_v51 = vld [vmem:[#allocation11 + $0x1080] sm:$0xff]  ;;  %v3773_v53 = vld [vmem:[#allocation11 + $0x1088] sm:$0xff] }
 0x2ae   :  { %4700 = vmatmul.mubr.f32.vlgmr.msra.gmra.mrb[50].mxu0 %v3234_v15  ;;  %v4002_v57 = vadd.f32 %v5346_v41, %v8533_v7  ;;  %v6299_v1 = vpack.c.bf16 %v3699_v29, %v3698_v25  ;;  %v6343_v7 = vpack.c.bf16 %v3737_v22, %v3736_v0  ;;  %v3703_v15 = vld [vmem:[#allocation11 + $0xe58] sm:$0xff]  ;;  %v6349_v47 = vpack.c.bf16 %v3773_v53, %v3772_v51  ;;  %v3774_v29 = vld [vmem:[#allocation11 + $0x1090] sm:$0xff]  ;;  %v3760_v0 = vld [vmem:[#allocation11 + $0x1020] sm:$0xff] }
 0x2af   :  { %6288 = vmatpush3.bf16.msra.mxu0 %v6287_v45  ;;  %4839 = vmatprep.mubr.f32.mxu0 %v3239_v3  ;;  %v3738_v45 = vld [vmem:[#allocation11 + $0xf70] sm:$0xff]  ;;  %v6307_v3 = vpack.c.bf16 %v3703_v15, %v3702_v23  ;;  %v3783_v23 = vld [vmem:[#allocation11 + $0x10d8] sm:$0xff] }
 0x2b0   :  { %6324 = vmatpush3.bf16.msra.mxu1 %v6323_v31  ;;  %6290 = vmatprep.subr.bf16.mxu0 %v6289_v52  ;;  %v6339_v31 = vpack.c.bf16 %v3735_v60, %v3734_v61  ;;  %v3180_v52 = vrot.slane %v8504_v9, %v8715_v28  ;;  %v6347_v34 = vpack.c.bf16 %v3739_v12, %v3738_v45  ;;  %v3756_v61 = vld [vmem:[#allocation11 + $0x1000] sm:$0xff]  ;;  %v3238_v60 = vmax.f32 %v3221_v37, 0.0  ;;  %v3758_v62 = vld [vmem:[#allocation11 + $0x1010] sm:$0xff]  ;;  %v3765_v45 = vld [vmem:[#allocation11 + $0x1048] sm:$0xff] }
 0x2b1   :  { %6326 = vmatprep.subr.bf16.mxu1 %v6325_v39  ;;  %v6341_v39 = vpack.c.bf16 %v3753_v48, %v3752_v40  ;;  %v6311_v28 = vpack.c.bf16 %v3705_v59, %v3704_v49  ;;  %v3759_v40 = vld [vmem:[#allocation11 + $0x1018] sm:$0xff]  ;;  %v3762_v22 = vld [vmem:[#allocation11 + $0x1030] sm:$0xff]  ;;  %v3769_v49 = vld [vmem:[#allocation11 + $0x1068] sm:$0xff] }
 0x2b2   :  { %v6355_v46 = vpack.c.bf16 %v3759_v40, %v3758_v62  ;;  %v3767_v12 = vld [vmem:[#allocation11 + $0x1058] sm:$0xff]  ;;  %v3786_v59 = vld [vmem:[#allocation11 + $0x10f0] sm:$0xff] }
 0x2b3   :  { %6292 = vmatpush3.bf16.msra.mxu0 %v6291_v14  ;;  %v3223_v14 = vadd.f32 %v3180_v52, %v8478_v54  ;;  %v5240_v54 = vld [vmem:[#allocation10 + $0x21] ss:$0 sm:$0xff] }
 0x2b4   :  { %6328 = vmatpush3.bf16.msra.mxu1 %v6327_v17  ;;  %6294 = vmatprep.subr.bf16.mxu0 %v6293_v16  ;;  %v6305_v17 = vpack.c.bf16 %v3719_v10, %v3718_v30  ;;  %v3226_v25 = vadd.f32 %v5240_v54, %v8501_v33  ;;  %v3761_v33 = vld [vmem:[#allocation11 + $0x1028] sm:$0xff]  ;;  %v3763_v30 = vld [vmem:[#allocation11 + $0x1038] sm:$0xff]  ;;  %v3780_v10 = vld [vmem:[#allocation11 + $0x10c0] sm:$0xff] }
 0x2b5   :  { %6330 = vmatprep.subr.bf16.mxu1 %v6329_v43  ;;  %v3720_v43 = vld [vmem:[#allocation11 + $0xee0] sm:$0xff]  ;;  %v3240_v13 = vmax.f32 %v3223_v14, 0.0  ;;  %v6359_v35 = vpack.c.bf16 %v3761_v33, %v3760_v0  ;;  %v6363_v6 = vpack.c.bf16 %v3763_v30, %v3762_v22  ;;  %v3787_v14 = vld [vmem:[#allocation11 + $0x10f8] sm:$0xff] }
 0x2b6   :  { %v6309_v38 = vpack.c.bf16 %v3721_v20, %v3720_v43  ;;  %v3243_v48 = vmax.f32 %v3226_v25, 0.0  ;;  %v3784_v43 = vld [vmem:[#allocation11 + $0x10e0] sm:$0xff]  ;;  %v3785_v20 = vld [vmem:[#allocation11 + $0x10e8] sm:$0xff]  ;;  %v3771_v26 = vld [vmem:[#allocation11 + $0x1078] sm:$0xff] }
 0x2b7   :  { %6296 = vmatpush3.bf16.msra.mxu0 %v6295_v27 }
 0x2b8   :  { %6332 = vmatpush3.bf16.msra.mxu1 %v6331_v58  ;;  %6298 = vmatprep.subr.bf16.mxu0 %v6297_v18  ;;  %v3722_v58 = vld [vmem:[#allocation11 + $0xef0] sm:$0xff]  ;;  %v3757_v18 = vld [vmem:[#allocation11 + $0x1008] sm:$0xff] }
 0x2b9   :  { %6334 = vmatprep.subr.bf16.mxu1 %v6333_v5  ;;  %v6313_v5 = vpack.c.bf16 %v3723_v19, %v3722_v58  ;;  %v6351_v41 = vpack.c.bf16 %v3757_v18, %v3756_v61  ;;  %v3188_v19 = vrot.slane %v8504_v9, %v8717_v44 }
 0x2bb   :  { %6300 = vmatpush3.bf16.msra.mxu0 %v6299_v1  ;;  %v3777_v1 = vld [vmem:[#allocation11 + $0x10a8] sm:$0xff] }
 0x2bc   :  { %6336 = vmatpush3.bf16.msra.mxu1 %v6335_v8  ;;  %6302 = vmatprep.subr.bf16.mxu0 %v6301_v24  ;;  %v5379_v16 = vpop.f32.mrb[36].mxu1  ;;  %v6315_v8 = vpack.c.bf16 %v3707_v11, %v3706_v42  ;;  %v3778_v24 = vld [vmem:[#allocation11 + $0x10b0] sm:$0xff] }
 0x2bd   :  { %6338 = vmatprep.subr.bf16.mxu1 %v6337_v36  ;;  %v5380_v32 = vpop.f32.mrb[37].mxu1  ;;  %v3775_v36 = vld [vmem:[#allocation11 + $0x1098] sm:$0xff] }
 0x2be   :  { %v5381_v4 = vadd.f32 %v5380_v32, %v5379_v16  ;;  %v6353_v56 = vpack.c.bf16 %v3775_v36, %v3774_v29  ;;  %v6377_v16 = vpack.c.bf16 %v3787_v14, %v3786_v59 }
 0x2bf   :  { %6304 = vmatpush3.bf16.msra.mxu0 %v6303_v21  ;;  %v6365_v21 = vpack.c.bf16 %v3781_v63, %v3780_v10 }
 0x2c0   :  { %6340 = vmatpush3.bf16.msra.mxu1 %v6339_v31  ;;  %6306 = vmatprep.subr.bf16.mxu0 %v6305_v17  ;;  %v8543_v27 = vadd.f32 %v5381_v4, %v4002_v57  ;;  %v3776_v57 = vld [vmem:[#allocation11 + $0x10a0] sm:$0xff]  ;;  %v3782_v17 = vld [vmem:[#allocation11 + $0x10d0] sm:$0xff] }
 0x2c1   :  { %6342 = vmatprep.subr.bf16.mxu1 %v6341_v39  ;;  %v6357_v31 = vpack.c.bf16 %v3777_v1, %v3776_v57  ;;  %v6361_v39 = vpack.c.bf16 %v3779_v55, %v3778_v24  ;;  %v6369_v52 = vpack.c.bf16 %v3783_v23, %v3782_v17 }
 0x2c3   :  { %6308 = vmatpush3.bf16.msra.mxu0 %v6307_v3 }
 0x2c4   :  { %6344 = vmatpush3.bf16.msra.mxu1 %v6343_v7  ;;  %6310 = vmatprep.subr.bf16.mxu0 %v6309_v38  ;;  %v3764_v7 = vld [vmem:[#allocation11 + $0x1040] sm:$0xff] }
 0x2c5   :  { %6346 = vmatprep.subr.bf16.mxu1 %v6345_v2  ;;  %v6367_v15 = vpack.c.bf16 %v3765_v45, %v3764_v7  ;;  %v3766_v2 = vld [vmem:[#allocation11 + $0x1050] sm:$0xff]  ;;  %v3768_v38 = vld [vmem:[#allocation11 + $0x1060] sm:$0xff] }
 0x2c6   :  { %v6371_v3 = vpack.c.bf16 %v3767_v12, %v3766_v2  ;;  %v6375_v58 = vpack.c.bf16 %v3769_v49, %v3768_v38 }
 0x2c7   :  { %6312 = vmatpush3.bf16.msra.mxu0 %v6311_v28  ;;  %v3770_v28 = vld [vmem:[#allocation11 + $0x1070] sm:$0xff] }
 0x2c8   :  { %6348 = vmatpush3.bf16.msra.mxu1 %v6347_v34  ;;  %6314 = vmatprep.subr.bf16.mxu0 %v6313_v5  ;;  %v6373_v34 = vpack.c.bf16 %v3785_v20, %v3784_v43  ;;  %v6379_v32 = vpack.c.bf16 %v3771_v26, %v3770_v28  ;;  %v3225_v5 = vadd.f32 %v3188_v19, %v8480_v50 }
 0x2cb   :  { %4910 = vmatmul.mubr.f32.vlgmr.msra.gmra.mrb[48].mxu1 %v3240_v13  ;;  %6316 = vmatpush3.bf16.msra.mxu0 %v6315_v8  ;;  %v3242_v8 = vmax.f32 %v3225_v5, 0.0 }
 0x2cc   :  { %6350 = vmatprep.subr.bf16.mxu0 %v6349_v47 }
 0x2ce   :  { %4840 = vmatmul.mubr.f32.vlgmr.msra.gmra.mrb[52].mxu0 %v3238_v60 }
 0x2cf   :  { %6352 = vmatpush3.bf16.msra.mxu0 %v6351_v41  ;;  %4979 = vmatprep.mubr.f32.mxu0 %v3243_v48 }
 0x2d0   :  { %6354 = vmatprep.subr.bf16.mxu0 %v6353_v56 }
 0x2d3   :  { %6356 = vmatpush3.bf16.msra.mxu0 %v6355_v46 }
 0x2d4   :  { %6358 = vmatprep.subr.bf16.mxu0 %v6357_v31 }
 0x2d7   :  { %6360 = vmatpush3.bf16.msra.mxu0 %v6359_v35 }
 0x2d8   :  { %6362 = vmatprep.subr.bf16.mxu0 %v6361_v39 }
 0x2db   :  { %6364 = vmatpush3.bf16.msra.mxu0 %v6363_v6 }
 0x2dc   :  { %6366 = vmatprep.subr.bf16.mxu0 %v6365_v21 }
 0x2df   :  { %6368 = vmatpush3.bf16.msra.mxu0 %v6367_v15 }
 0x2e0   :  { %6370 = vmatprep.subr.bf16.mxu0 %v6369_v52 }
 0x2e3   :  { %6372 = vmatpush3.bf16.msra.mxu0 %v6371_v3 }
 0x2e4   :  { %6374 = vmatprep.subr.bf16.mxu0 %v6373_v34 }
 0x2e6   :  { %v5414_v42 = vpop.f32.mrb[42].mxu0 }
 0x2e7   :  { %6376 = vmatpush3.bf16.msra.mxu0 %v6375_v58  ;;  %v5415_v11 = vpop.f32.mrb[43].mxu0 }
 0x2e8   :  { %6378 = vmatprep.subr.bf16.mxu0 %v6377_v16  ;;  %v5416_v13 = vadd.f32 %v5415_v11, %v5414_v42 }
 0x2e9   :  { %v5449_v4 = vpop.f32.mrb[38].mxu1 }
 0x2ea   :  { %v5450_v51 = vpop.f32.mrb[39].mxu1  ;;  %v4142_v53 = vadd.f32 %v5416_v13, %v8543_v27 }
 0x2eb   :  { %6380 = vmatpush3.bf16.msra.mxu0 %v6379_v32  ;;  %v5451_v54 = vadd.f32 %v5450_v51, %v5449_v4 }
 0x2ed   :  { %v4212_v44 = vadd.f32 %v5451_v54, %v4142_v53 }
 0x2ee   :  { %4980 = vmatmul.mubr.f32.vlgmr.msra.gmra.mrb[54].mxu0 %v3242_v8 }
 0x31d   :  { %v5484_v9 = vpop.f32.mrb[44].mxu0 }
 0x31e   :  { %v5485_v37 = vpop.f32.mrb[45].mxu0  ;;  %v5519_v47 = vpop.f32.mrb[40].mxu1 }
 0x31f   :  { %v5486_v61 = vadd.f32 %v5485_v37, %v5484_v9  ;;  %v5520_v18 = vpop.f32.mrb[41].mxu1 }
 0x320   :  { %v5521_v25 = vadd.f32 %v5520_v18, %v5519_v47 }
 0x321   :  { %v4282_v50 = vadd.f32 %v5486_v61, %v4212_v44 }
 0x323   :  { %v4352_v29 = vadd.f32 %v5521_v25, %v4282_v50 }
 0x33e   :  { %v5589_v36 = vpop.f32.mrb[42].mxu1 }
 0x33f   :  { %v5590_v41 = vpop.f32.mrb[43].mxu1 }
 0x340   :  { %v5591_v60 = vadd.f32 %v5590_v41, %v5589_v36 }
 0x341   :  { %v5554_v56 = vpop.f32.mrb[46].mxu0 }
 0x342   :  { %v5555_v62 = vpop.f32.mrb[47].mxu0 }
 0x343   :  { %v5556_v40 = vadd.f32 %v5555_v62, %v5554_v56 }
 0x345   :  { %v4422_v48 = vadd.f32 %v5556_v40, %v4352_v29 }
 0x347   :  { %v4492_v27 = vadd.f32 %v5591_v60, %v4422_v48 }
 0x35e   :  { %v5659_v57 = vpop.f32.mrb[44].mxu1 }
 0x35f   :  { %v5660_v1 = vpop.f32.mrb[45].mxu1 }
 0x360   :  { %v5661_v46 = vadd.f32 %v5660_v1, %v5659_v57 }
 0x361   :  { %v5624_v31 = vpop.f32.mrb[48].mxu0 }
 0x362   :  { %v5625_v0 = vpop.f32.mrb[49].mxu0 }
 0x363   :  { %v5626_v33 = vadd.f32 %v5625_v0, %v5624_v31 }
 0x365   :  { %v4562_v24 = vadd.f32 %v5626_v33, %v4492_v27 }
 0x367   :  { %v4632_v55 = vadd.f32 %v5661_v46, %v4562_v24 }
 0x37e   :  { %v5729_v35 = vpop.f32.mrb[46].mxu1 }
 0x37f   :  { %v5730_v39 = vpop.f32.mrb[47].mxu1 }
 0x380   :  { %v5731_v22 = vadd.f32 %v5730_v39, %v5729_v35 }
 0x381   :  { %v5694_v30 = vpop.f32.mrb[50].mxu0 }
 0x382   :  { %v5695_v10 = vpop.f32.mrb[51].mxu0 }
 0x383   :  { %v5696_v63 = vadd.f32 %v5695_v10, %v5694_v30 }
 0x385   :  { %v4702_v6 = vadd.f32 %v5696_v63, %v4632_v55 }
 0x387   :  { %v4772_v21 = vadd.f32 %v5731_v22, %v4702_v6 }
 0x39e   :  { %v5799_v7 = vpop.f32.mrb[48].mxu1 }
 0x39f   :  { %v5800_v45 = vpop.f32.mrb[49].mxu1 }
 0x3a0   :  { %v5801_v17 = vadd.f32 %v5800_v45, %v5799_v7 }
 0x3a1   :  { %v5764_v23 = vpop.f32.mrb[52].mxu0 }
 0x3a2   :  { %v5765_v15 = vpop.f32.mrb[53].mxu0 }
 0x3a3   :  { %v5766_v52 = vadd.f32 %v5765_v15, %v5764_v23 }
 0x3a5   :  { %v4842_v2 = vadd.f32 %v5766_v52, %v4772_v21 }
 0x3a7   :  { %v4912_v12 = vadd.f32 %v5801_v17, %v4842_v2 }
 0x3c1   :  { %v5834_v43 = vpop.f32.mrb[54].mxu0 }
 0x3c2   :  { %v5835_v20 = vpop.f32.mrb[55].mxu0 }
 0x3c3   :  { %v5836_v3 = vadd.f32 %v5835_v20, %v5834_v43 }
 0x3c5   :  { %v4982_v34 = vadd.f32 %v5836_v3, %v4912_v12 }
 0x3c7   :  { %4985 = vst [vmem:[#allocation14] sm:$0xff] %v4982_v34 }
 0x3c8   :  { %6872 = shalt.err (!%p6869_p4)
}
 0x3c9   :  { %s6873_s16 = scalar_lea.hbm %s8570_s7, 128 }
 0x3ca   :  { %p6874_p5 = scmp.ne.s32.totalorder %s8570_s7, %s6873_s16  ;;  %p6877_p6 = scmp.lt.u32.totalorder %s6873_s16, %s8570_s7 }
 0x3cc   :  { %p6879_p7 = pnand %p6877_p6, %p6874_p5 }
 0x3ce   :  { %6882 = shalt.err (!%p6879_p7)
}
 0x3cf   :  { %4995 = dma.vmem_to_hbm [thread:$0]  %s4993_s11, 128, %s8570_s7, [#allocation4]  }
 0x3d0   :  { %6891 = dma.done.wait [#allocation4], 128  }
 0x3d1   :  { %6892 = vsyncadd [#allocation4], 4294967168 }
 0x3d2   :  { %4999 = vsyncpa [#allocation3], 1 }
 0x3d3   :  { %5000 = vsyncpa [#allocation6], 1 }
 0x3d4   :  { %5001 = vsyncpa [#allocation9], 1 }
 0x3d5   :  { %5002 = vsyncpa [#allocation12], 1 }
 0x3d6   :  { %5003 = vsyncpa [#allocation4], 1 }

</bundles_post_ra>
